<compile_context>
chip_gen: v7x
topology: tpu7x:2x2x1
jax: 0.10.0
libtpu: 0.0.40
codegen_flags: <defaults>
</compile_context>

<pallas_src>
import functools

import jax
import jax.numpy as jnp
from jax.experimental import pallas as pl
from jax.experimental.pallas import tpu as pltpu

BN_EPS = 1e-5  # PyTorch BatchNorm2d default eps
VMEM_LIMIT = 32 * 1024 * 1024  # safe on v5e/v6e (128 MiB) and v7x (64 MiB)


def _round_up(a, b):
    return (a + b - 1) // b * b


def _pad_rows(x, mp):
    if x.shape[0] == mp:
        return x
    return jnp.pad(x, ((0, mp - x.shape[0]), (0, 0)))


# --------------------------- tiled matmul kernel ---------------------------

def _mm_kernel(x_ref, w_ref, o_ref, acc_ref):
    @pl.when(pl.program_id(1) == 0)
    def _():
        acc_ref[...] = jnp.zeros_like(acc_ref)

    acc_ref[...] += jnp.dot(x_ref[...], w_ref[...],
                            preferred_element_type=jnp.float32)

    @pl.when(pl.program_id(1) == pl.num_programs(1) - 1)
    def _():
        o_ref[...] = acc_ref[...]


def pallas_matmul(x, w, *, tm=512, tk=512):
    """x: (M, K) bf16/f32, w: (K, Np) with Np % 128 == 0. Returns (M, Np) f32."""
    M, K = x.shape
    Kw, Np = w.shape
    assert K == Kw and Np % 128 == 0
    tm = min(tm, _round_up(M, 8))
    mp = _round_up(M, tm)
    if K <= tk:
        tk_, kp = K, K
    else:
        tk_, kp = tk, _round_up(K, tk)
    xp = x
    if mp != M or kp != K:
        xp = jnp.pad(x, ((0, mp - M), (0, kp - K)))
    wp = w if kp == K else jnp.pad(w, ((0, kp - K), (0, 0)))
    out = pl.pallas_call(
        _mm_kernel,
        out_shape=jax.ShapeDtypeStruct((mp, Np), jnp.float32),
        grid=(mp // tm, kp // tk_),
        in_specs=[pl.BlockSpec((tm, tk_), lambda i, k: (i, k)),
                  pl.BlockSpec((tk_, Np), lambda i, k: (k, 0))],
        out_specs=pl.BlockSpec((tm, Np), lambda i, k: (i, 0)),
        scratch_shapes=[pltpu.VMEM((tm, Np), jnp.float32)],
        compiler_params=pltpu.CompilerParams(
            dimension_semantics=("parallel", "arbitrary"),
            vmem_limit_bytes=VMEM_LIMIT),
    )(xp, wp)
    return out[:M]


# ---------------- fused (normalize + ReLU) -> matmul kernel ----------------

def _norm_relu_mm_kernel(x_ref, s_ref, t_ref, w_ref, o_ref, acc_ref):
    @pl.when(pl.program_id(1) == 0)
    def _():
        acc_ref[...] = jnp.zeros_like(acc_ref)

    xn = jnp.maximum(x_ref[...] * s_ref[...] + t_ref[...], 0.0)
    acc_ref[...] += jnp.dot(xn.astype(w_ref.dtype), w_ref[...],
                            preferred_element_type=jnp.float32)

    @pl.when(pl.program_id(1) == pl.num_programs(1) - 1)
    def _():
        o_ref[...] = acc_ref[...]


def pallas_norm_relu_matmul(x, s, t, w, *, tm=512, tk=512):
    """relu(x * s + t) @ w  with x f32 (M,K), s/t f32 (1,K), w bf16 (K,Np)."""
    M, K = x.shape
    _, Np = w.shape
    assert Np % 128 == 0
    tm = min(tm, _round_up(M, 8))
    mp = _round_up(M, tm)
    if K <= tk:
        tk_, kp = K, K
    else:
        tk_, kp = tk, _round_up(K, tk)
    xp = x
    if mp != M or kp != K:
        xp = jnp.pad(x, ((0, mp - M), (0, kp - K)))
    sp = s if kp == K else jnp.pad(s, ((0, 0), (0, kp - K)))
    tp = t if kp == K else jnp.pad(t, ((0, 0), (0, kp - K)))
    wp = w if kp == K else jnp.pad(w, ((0, kp - K), (0, 0)))
    out = pl.pallas_call(
        _norm_relu_mm_kernel,
        out_shape=jax.ShapeDtypeStruct((mp, Np), jnp.float32),
        grid=(mp // tm, kp // tk_),
        in_specs=[pl.BlockSpec((tm, tk_), lambda i, k: (i, k)),
                  pl.BlockSpec((1, tk_), lambda i, k: (0, k)),
                  pl.BlockSpec((1, tk_), lambda i, k: (0, k)),
                  pl.BlockSpec((tk_, Np), lambda i, k: (k, 0))],
        out_specs=pl.BlockSpec((tm, Np), lambda i, k: (i, 0)),
        scratch_shapes=[pltpu.VMEM((tm, Np), jnp.float32)],
        compiler_params=pltpu.CompilerParams(
            dimension_semantics=("parallel", "arbitrary"),
            vmem_limit_bytes=VMEM_LIMIT),
    )(xp, sp, tp, wp)
    return out[:M]


# --------------------- tiled BatchNorm stats reduction ---------------------

def _make_bn_stats_kernel(m_true):
    inv_m = 1.0 / float(m_true)

    def kernel(x_ref, s_ref, t_ref, sum_ref, sq_ref):
        @pl.when(pl.program_id(0) == 0)
        def _():
            sum_ref[...] = jnp.zeros_like(sum_ref)
            sq_ref[...] = jnp.zeros_like(sq_ref)

        x = x_ref[...]
        sum_ref[...] += jnp.sum(x, axis=0, keepdims=True)
        sq_ref[...] += jnp.sum(x * x, axis=0, keepdims=True)

        @pl.when(pl.program_id(0) == pl.num_programs(0) - 1)
        def _():
            mean = sum_ref[...] * inv_m
            var = jnp.maximum(sq_ref[...] * inv_m - mean * mean, 0.0)
            scale = jax.lax.rsqrt(var + BN_EPS)
            s_ref[...] = scale
            t_ref[...] = -mean * scale

    return kernel


def pallas_bn_stats(x2d, *, tm=512):
    """Per-channel scale/shift of BatchNorm2d(affine=False) in f32.
    Padded zero rows don't perturb the sums (division is by the true M)."""
    M, C = x2d.shape
    tm = min(tm, _round_up(M, 8))
    mp = _round_up(M, tm)
    xp = _pad_rows(x2d, mp)
    s, t = pl.pallas_call(
        _make_bn_stats_kernel(M),
        out_shape=(jax.ShapeDtypeStruct((1, C), jnp.float32),
                   jax.ShapeDtypeStruct((1, C), jnp.float32)),
        grid=(mp // tm,),
        in_specs=[pl.BlockSpec((tm, C), lambda i: (i, 0))],
        out_specs=(pl.BlockSpec((1, C), lambda i: (0, 0)),
                   pl.BlockSpec((1, C), lambda i: (0, 0))),
        scratch_shapes=[pltpu.VMEM((1, C), jnp.float32),
                        pltpu.VMEM((1, C), jnp.float32)],
        compiler_params=pltpu.CompilerParams(
            dimension_semantics=("arbitrary",)),
    )(xp)
    return s, t


# ------------------- tiled elementwise normalize + ReLU --------------------

def _norm_relu_kernel(x_ref, s_ref, t_ref, o_ref):
    o_ref[...] = jnp.maximum(x_ref[...] * s_ref[...] + t_ref[...], 0.0)


def pallas_norm_relu(x2d, s, t, *, tm=512):
    M, C = x2d.shape
    tm = min(tm, _round_up(M, 8))
    mp = _round_up(M, tm)
    xp = _pad_rows(x2d, mp)
    out = pl.pallas_call(
        _norm_relu_kernel,
        out_shape=jax.ShapeDtypeStruct((mp, C), jnp.float32),
        grid=(mp // tm,),
        in_specs=[pl.BlockSpec((tm, C), lambda i: (i, 0)),
                  pl.BlockSpec((1, C), lambda i: (0, 0)),
                  pl.BlockSpec((1, C), lambda i: (0, 0))],
        out_specs=pl.BlockSpec((tm, C), lambda i: (i, 0)),
        compiler_params=pltpu.CompilerParams(
            dimension_semantics=("parallel",),
            vmem_limit_bytes=VMEM_LIMIT),
    )(xp, s, t)
    return out[:M]


# -------- fused tail: bn5-normalize + ReLU + global avg pool + Linear ------

def _make_gap_fc_kernel(hw_true, padded):
    inv_hw = 1.0 / float(hw_true)

    def kernel(x_ref, s_ref, t_ref, w_ref, b_ref, o_ref, acc_ref):
        k = pl.program_id(0)

        @pl.when(k == 0)
        def _():
            acc_ref[...] = jnp.zeros_like(acc_ref)

        xn = jnp.maximum(x_ref[...] * s_ref[...] + t_ref[...], 0.0)
        if padded:  # mask HW-padding rows out of the pooling sum
            thw = x_ref.shape[1]
            idx = jax.lax.broadcasted_iota(jnp.int32, (1, thw, 1), 1) + k * thw
            xn = jnp.where(idx < hw_true, xn, 0.0)
        acc_ref[...] += jnp.sum(xn, axis=1)

        @pl.when(k == pl.num_programs(0) - 1)
        def _():
            pooled = acc_ref[...] * inv_hw
            o_ref[...] = jnp.dot(pooled, w_ref[...],
                                 preferred_element_type=jnp.float32) + b_ref[...]

    return kernel


def pallas_bn_relu_gap_fc(x3, s, t, fc_w, fc_b, *, thw_tile=512):
    N, HW, C = x3.shape
    Np = fc_w.shape[1]
    if HW <= thw_tile:
        thw, hwp = HW, HW
    else:
        thw, hwp = thw_tile, _round_up(HW, thw_tile)
    xp = x3 if hwp == HW else jnp.pad(x3, ((0, 0), (0, hwp - HW), (0, 0)))
    s3 = s.reshape(1, 1, C)
    t3 = t.reshape(1, 1, C)
    return pl.pallas_call(
        _make_gap_fc_kernel(HW, hwp != HW),
        out_shape=jax.ShapeDtypeStruct((N, Np), jnp.float32),
        grid=(hwp // thw,),
        in_specs=[pl.BlockSpec((N, thw, C), lambda k: (0, k, 0)),
                  pl.BlockSpec((1, 1, C), lambda k: (0, 0, 0)),
                  pl.BlockSpec((1, 1, C), lambda k: (0, 0, 0)),
                  pl.BlockSpec((C, Np), lambda k: (0, 0)),
                  pl.BlockSpec((1, Np), lambda k: (0, 0))],
        out_specs=pl.BlockSpec((N, Np), lambda k: (0, 0)),
        scratch_shapes=[pltpu.VMEM((N, C), jnp.float32)],
        compiler_params=pltpu.CompilerParams(
            dimension_semantics=("arbitrary",),
            vmem_limit_bytes=VMEM_LIMIT),
    )(xp, s3, t3, fc_w, fc_b)


# ------------------------------- JAX glue ops -------------------------------

def im2col(x, kh, kw, stride, pad):
    xp = jnp.pad(x, ((0, 0), (pad, pad), (pad, pad), (0, 0)))
    N, Hp, Wp, C = xp.shape
    oh = (Hp - kh) // stride + 1
    ow = (Wp - kw) // stride + 1
    cols = []
    for i in range(kh):
        for j in range(kw):
            cols.append(xp[:, i:i + stride * oh:stride,
                            j:j + stride * ow:stride, :])
    patches = jnp.concatenate(cols, axis=-1)          # (N, oh, ow, kh*kw*C)
    return patches.reshape(N * oh * ow, kh * kw * C), (N, oh, ow)


def conv2d(x, w_mat, cout, kh, kw, stride, pad):
    """x NHWC f32, w_mat bf16 (kh*kw*Cin, Cout_padded). Returns NHWC f32."""
    xb = x.astype(jnp.bfloat16)
    if kh == 1 and kw == 1 and stride == 1 and pad == 0:
        N, H, W, C = x.shape
        y = pallas_matmul(xb.reshape(N * H * W, C), w_mat)
        return y[:, :cout].reshape(N, H, W, cout)
    patches, (N, oh, ow) = im2col(xb, kh, kw, stride, pad)
    y = pallas_matmul(patches, w_mat)
    return y[:, :cout].reshape(N, oh, ow, cout)


def fused_bn_relu_conv1x1(x, w_mat, cout):
    """BatchNorm(affine=False) + ReLU fused into the 1x1-conv matmul."""
    N, H, W, C = x.shape
    x2d = x.reshape(N * H * W, C)
    s, t = pallas_bn_stats(x2d)
    y = pallas_norm_relu_matmul(x2d, s, t, w_mat)
    return y[:, :cout].reshape(N, H, W, cout)


def max_pool(x, k, s, p):
    # PyTorch MaxPool2d pads with -inf (padding never wins the max)
    return jax.lax.reduce_window(
        x, -jnp.inf, jax.lax.max,
        (1, k, k, 1), (1, s, s, 1),
        ((0, 0), (p, p), (p, p), (0, 0)))


def avg_pool_2x2(x):
    s = jax.lax.reduce_window(
        x, 0.0, jax.lax.add, (1, 2, 2, 1), (1, 2, 2, 1), "VALID")
    return s * 0.25


# ------------------------------- parameters -------------------------------

def kaiming_conv(key, cin, cout, kh, kw):
    """kaiming_normal_ (fan_in, relu gain); weight stored as
    (kh*kw*cin, round_up(cout,128)) bf16 with zero-padded lane columns."""
    fan_in = cin * kh * kw
    std = (2.0 / fan_in) ** 0.5
    w = jax.random.normal(key, (kh * kw * cin, cout), jnp.float32) * std
    coutp = _round_up(cout, 128)
    if coutp != cout:
        w = jnp.pad(w, ((0, 0), (0, coutp - cout)))
    return w.astype(jnp.bfloat16)


def init_params(key, growth_rate, block_config, num_init_features, bn_size,
                num_classes):
    params = {}
    keys = iter(jax.random.split(key, 256))
    params["conv0"] = kaiming_conv(next(keys), 3, num_init_features, 7, 7)
    num_features = num_init_features
    for bi, num_layers in enumerate(block_config):
        for li in range(num_layers):
            cin = num_features + li * growth_rate
            params[f"b{bi}_l{li}_conv1"] = kaiming_conv(
                next(keys), cin, bn_size * growth_rate, 1, 1)
            params[f"b{bi}_l{li}_conv2"] = kaiming_conv(
                next(keys), bn_size * growth_rate, growth_rate, 3, 3)
        num_features = num_features + num_layers * growth_rate
        if bi != len(block_config) - 1:
            params[f"trans{bi}"] = kaiming_conv(
                next(keys), num_features, num_features // 2, 1, 1)
            num_features = num_features // 2
    bound = 1.0 / (num_features ** 0.5)
    nclsp = _round_up(num_classes, 128)
    fc_w = jax.random.uniform(next(keys), (num_features, num_classes),
                              jnp.float32, -bound, bound)
    params["fc_w"] = jnp.pad(fc_w, ((0, 0), (0, nclsp - num_classes)))
    params["fc_b"] = jnp.zeros((1, nclsp), jnp.float32)  # zeroed in PyTorch init
    return params


# ------------------------------ forward pass ------------------------------

def mixstyle_densenet_forward(x_nchw, params, *, growth_rate, block_config,
                              num_init_features, bn_size, num_classes):
    x = jnp.transpose(x_nchw, (0, 2, 3, 1)).astype(jnp.float32)  # NCHW -> NHWC

    # stem: conv0 -> bn0 -> relu0 -> pool0
    x = conv2d(x, params["conv0"], num_init_features, 7, 7, 2, 3)
    N, H, W, C = x.shape
    s0, t0 = pallas_bn_stats(x.reshape(N * H * W, C))
    x = pallas_norm_relu(x.reshape(N * H * W, C), s0, t0).reshape(N, H, W, C)
    x = max_pool(x, 3, 2, 1)

    num_features = num_init_features
    for bi, num_layers in enumerate(block_config):
        # _DenseBlock
        for li in range(num_layers):
            # bn1 + relu1 + conv1 (1x1) fused into one kernel
            h = fused_bn_relu_conv1x1(x, params[f"b{bi}_l{li}_conv1"],
                                      bn_size * growth_rate)
            # bn2 + relu2 then conv2 (3x3, pad 1) -- normalize must precede the
            # zero-padding of the im2col path, so it stays a separate kernel.
            Nh, Hh, Wh, Ch = h.shape
            s2, t2 = pallas_bn_stats(h.reshape(Nh * Hh * Wh, Ch))
            hn = pallas_norm_relu(h.reshape(Nh * Hh * Wh, Ch), s2, t2)
            hn = hn.reshape(Nh, Hh, Wh, Ch)
            h2 = conv2d(hn, params[f"b{bi}_l{li}_conv2"], growth_rate, 3, 3, 1, 1)
            # drop_rate == 0 -> dropout is a no-op
            x = jnp.concatenate([x, h2], axis=-1)
        num_features = num_features + num_layers * growth_rate
        # TODO(synk): MixStyle (inserted after blocks 1 & 2) is not defined in
        # the source file; at inference it is an identity, so it is elided.
        if bi == 0:
            x = jnp.pad(x, ((0, 0), (2, 2), (2, 2), (0, 0)))  # ZeroPad2d(2)
        if bi != len(block_config) - 1:
            # _Transition: bn + relu + 1x1 conv fused, then 2x2 avg pool
            x = fused_bn_relu_conv1x1(x, params[f"trans{bi}"], num_features // 2)
            x = avg_pool_2x2(x)
            num_features = num_features // 2

    # bn5 + F.relu + adaptive_avg_pool2d((1,1)) + flatten + classifier (fused)
    N, H, W, C = x.shape
    s5, t5 = pallas_bn_stats(x.reshape(N * H * W, C))
    out = pallas_bn_relu_gap_fc(x.reshape(N, H * W, C), s5, t5,
                                params["fc_w"], params["fc_b"])
    return out[:, :num_classes]


# --------------------------------- driver ---------------------------------

if __name__ == "__main__":
    key = jax.random.PRNGKey(0)
    k_param, k_x = jax.random.split(key)

    # Small-but-consistent configuration (same architecture, scaled down).
    growth_rate = 8
    block_config = (2, 2, 2, 2)
    num_init_features = 16
    bn_size = 2
    num_classes = 2

    params = init_params(k_param, growth_rate, block_config,
                         num_init_features, bn_size, num_classes)

    # PyTorch-convention NCHW input.
    x = jax.random.normal(k_x, (2, 3, 32, 32), jnp.float32)

    fwd = jax.jit(functools.partial(
        mixstyle_densenet_forward,
        growth_rate=growth_rate, block_config=block_config,
        num_init_features=num_init_features, bn_size=bn_size,
        num_classes=num_classes))
    out = fwd(x, params)
    jax.block_until_ready(out)
    assert out.shape == (2, num_classes), out.shape
    print("KERNEL_OK")
</pallas_src>

<mosaic_0001>
module attributes {stable_mosaic.version = 11 : i64} {
  func.func @kernel(%arg0: i32, %arg1: memref<512x16xf32, #tpu.memory_space<vmem>>, %arg2: memref<1x16xf32, #tpu.memory_space<vmem>>, %arg3: memref<1x16xf32, #tpu.memory_space<vmem>>, %arg4: memref<1x16xf32, #tpu.memory_space<vmem>>, %arg5: memref<1x16xf32, #tpu.memory_space<vmem>>) attributes {dimension_semantics = [#tpu.dimension_semantics<arbitrary>], iteration_bounds = array<i64: 1>, scalar_prefetch = 0 : i64, scratch_operands = 2 : i64, tpu.core_type = #tpu.core_type<tc>, window_params = [{transform_indices = @transform_0, window_bounds = array<i64: 512, 16>}, {pipeline_mode = #tpu.pipeline_mode<synchronous>, transform_indices = @transform_1, window_bounds = array<i64: 1, 16>}, {pipeline_mode = #tpu.pipeline_mode<synchronous>, transform_indices = @transform_2, window_bounds = array<i64: 1, 16>}]} {
    %c0_i32 = arith.constant 0 : i32
    %0 = arith.cmpi eq, %arg0, %c0_i32 : i32
    %1 = arith.extui %0 : i1 to i32
    %c0_i32_0 = arith.constant 0 : i32
    %2 = arith.cmpi ne, %1, %c0_i32_0 : i32
    scf.if %2 {
      %cst_13 = arith.constant 0.000000e+00 : f32
      %18 = vector.broadcast %cst_13 : f32 to vector<1x16xf32>
      %c0_14 = arith.constant 0 : index
      %c0_15 = arith.constant 0 : index
      %19 = vector.load %arg4[%c0_14, %c0_15] : memref<1x16xf32, #tpu.memory_space<vmem>>, vector<1x16xf32>
      tpu.vector_store %arg4[%c0_14, %c0_15], %18 {strides = array<i32>} : memref<1x16xf32, #tpu.memory_space<vmem>>, vector<1x16xf32>,
      %cst_16 = arith.constant 0.000000e+00 : f32
      %20 = vector.broadcast %cst_16 : f32 to vector<1x16xf32>
      %c0_17 = arith.constant 0 : index
      %c0_18 = arith.constant 0 : index
      %21 = vector.load %arg5[%c0_17, %c0_18] : memref<1x16xf32, #tpu.memory_space<vmem>>, vector<1x16xf32>
      tpu.vector_store %arg5[%c0_17, %c0_18], %20 {strides = array<i32>} : memref<1x16xf32, #tpu.memory_space<vmem>>, vector<1x16xf32>,
    } else {
    }
    %c0 = arith.constant 0 : index
    %c0_1 = arith.constant 0 : index
    %3 = vector.load %arg1[%c0, %c0_1] : memref<512x16xf32, #tpu.memory_space<vmem>>, vector<512x16xf32>
    %c0_2 = arith.constant 0 : index
    %c0_3 = arith.constant 0 : index
    %4 = vector.load %arg4[%c0_2, %c0_3] : memref<1x16xf32, #tpu.memory_space<vmem>>, vector<1x16xf32>
    %cst = arith.constant dense<0.000000e+00> : vector<16xf32>
    %5 = vector.multi_reduction <add>, %3, %cst [0] : vector<512x16xf32> to vector<16xf32>
    %6 = vector.shape_cast %5 : vector<16xf32> to vector<1x16xf32>
    %7 = arith.addf %4, %6 : vector<1x16xf32>
    %c0_4 = arith.constant 0 : index
    %c0_5 = arith.constant 0 : index
    %8 = vector.load %arg4[%c0_4, %c0_5] : memref<1x16xf32, #tpu.memory_space<vmem>>, vector<1x16xf32>
    tpu.vector_store %arg4[%c0_4, %c0_5], %7 {strides = array<i32>} : memref<1x16xf32, #tpu.memory_space<vmem>>, vector<1x16xf32>,
    %c0_6 = arith.constant 0 : index
    %c0_7 = arith.constant 0 : index
    %9 = vector.load %arg5[%c0_6, %c0_7] : memref<1x16xf32, #tpu.memory_space<vmem>>, vector<1x16xf32>
    %10 = arith.mulf %3, %3 : vector<512x16xf32>
    %cst_8 = arith.constant dense<0.000000e+00> : vector<16xf32>
    %11 = vector.multi_reduction <add>, %10, %cst_8 [0] : vector<512x16xf32> to vector<16xf32>
    %12 = vector.shape_cast %11 : vector<16xf32> to vector<1x16xf32>
    %13 = arith.addf %9, %12 : vector<1x16xf32>
    %c0_9 = arith.constant 0 : index
    %c0_10 = arith.constant 0 : index
    %14 = vector.load %arg5[%c0_9, %c0_10] : memref<1x16xf32, #tpu.memory_space<vmem>>, vector<1x16xf32>
    tpu.vector_store %arg5[%c0_9, %c0_10], %13 {strides = array<i32>} : memref<1x16xf32, #tpu.memory_space<vmem>>, vector<1x16xf32>,
    %c0_i32_11 = arith.constant 0 : i32
    %15 = arith.cmpi eq, %arg0, %c0_i32_11 : i32
    %16 = arith.extui %15 : i1 to i32
    %c0_i32_12 = arith.constant 0 : i32
    %17 = arith.cmpi ne, %16, %c0_i32_12 : i32
    scf.if %17 {
      %c0_13 = arith.constant 0 : index
      %c0_14 = arith.constant 0 : index
      %18 = vector.load %arg4[%c0_13, %c0_14] : memref<1x16xf32, #tpu.memory_space<vmem>>, vector<1x16xf32>
      %cst_15 = arith.constant 0.001953125 : f32
      %19 = vector.broadcast %cst_15 : f32 to vector<1x16xf32>
      %20 = arith.mulf %18, %19 : vector<1x16xf32>
      %c0_16 = arith.constant 0 : index
      %c0_17 = arith.constant 0 : index
      %21 = vector.load %arg5[%c0_16, %c0_17] : memref<1x16xf32, #tpu.memory_space<vmem>>, vector<1x16xf32>
      %cst_18 = arith.constant 0.001953125 : f32
      %22 = vector.broadcast %cst_18 : f32 to vector<1x16xf32>
      %23 = arith.mulf %21, %22 : vector<1x16xf32>
      %24 = arith.mulf %20, %20 : vector<1x16xf32>
      %25 = arith.subf %23, %24 : vector<1x16xf32>
      %cst_19 = arith.constant 0.000000e+00 : f32
      %26 = vector.broadcast %cst_19 : f32 to vector<1x16xf32>
      %27 = arith.maximumf %25, %26 : vector<1x16xf32>
      %cst_20 = arith.constant 9.99999974E-6 : f32
      %28 = vector.broadcast %cst_20 : f32 to vector<1x16xf32>
      %29 = arith.addf %27, %28 : vector<1x16xf32>
      %30 = math.rsqrt %29 : vector<1x16xf32>
      %c0_21 = arith.constant 0 : index
      %c0_22 = arith.constant 0 : index
      %31 = vector.load %arg2[%c0_21, %c0_22] : memref<1x16xf32, #tpu.memory_space<vmem>>, vector<1x16xf32>
      tpu.vector_store %arg2[%c0_21, %c0_22], %30 {strides = array<i32>} : memref<1x16xf32, #tpu.memory_space<vmem>>, vector<1x16xf32>,
      %cst_23 = arith.constant 0.000000e+00 : f32
      %32 = vector.broadcast %cst_23 : f32 to vector<1x16xf32>
      %33 = arith.subf %32, %20 : vector<1x16xf32>
      %34 = arith.mulf %33, %30 : vector<1x16xf32>
      %c0_24 = arith.constant 0 : index
      %c0_25 = arith.constant 0 : index
      %35 = vector.load %arg3[%c0_24, %c0_25] : memref<1x16xf32, #tpu.memory_space<vmem>>, vector<1x16xf32>
      tpu.vector_store %arg3[%c0_24, %c0_25], %34 {strides = array<i32>} : memref<1x16xf32, #tpu.memory_space<vmem>>, vector<1x16xf32>,
    } else {
    }
    return
  }
  func.func @transform_0(%arg0: i32) -> (i32, i32) {
    %c0_i32 = arith.constant 0 : i32
    %c0_i32_0 = arith.constant 0 : i32
    return %arg0, %c0_i32 : i32, i32
  }
  func.func @transform_1(%arg0: i32) -> (i32, i32) {
    %c0_i32 = arith.constant 0 : i32
    %c0_i32_0 = arith.constant 0 : i32
    %c0_i32_1 = arith.constant 0 : i32
    return %c0_i32, %c0_i32_0 : i32, i32
  }
  func.func @transform_2(%arg0: i32) -> (i32, i32) {
    %c0_i32 = arith.constant 0 : i32
    %c0_i32_0 = arith.constant 0 : i32
    %c0_i32_1 = arith.constant 0 : i32
    return %c0_i32, %c0_i32_0 : i32, i32
  }
}

module attributes {stable_mosaic.version = 11 : i64} {
  func.func @_mm_kernel(%arg0: i32, %arg1: i32, %arg2: memref<512x147xbf16, #tpu.memory_space<vmem>>, %arg3: memref<147x128xbf16, #tpu.memory_space<vmem>>, %arg4: memref<512x128xf32, #tpu.memory_space<vmem>>, %arg5: memref<512x128xf32, #tpu.memory_space<vmem>>) attributes {dimension_semantics = [#tpu.dimension_semantics<parallel>, #tpu.dimension_semantics<arbitrary>], iteration_bounds = array<i64: 1, 1>, scalar_prefetch = 0 : i64, scratch_operands = 1 : i64, tpu.core_type = #tpu.core_type<tc>, window_params = [{transform_indices = @transform_0, window_bounds = array<i64: 512, 147>}, {transform_indices = @transform_1, window_bounds = array<i64: 147, 128>}, {transform_indices = @transform_2, window_bounds = array<i64: 512, 128>}]} {
    %c0_i32 = arith.constant 0 : i32
    %0 = arith.cmpi eq, %arg1, %c0_i32 : i32
    %1 = arith.extui %0 : i1 to i32
    %c0_i32_0 = arith.constant 0 : i32
    %2 = arith.cmpi ne, %1, %c0_i32_0 : i32
    scf.if %2 {
      %cst_10 = arith.constant 0.000000e+00 : f32
      %12 = vector.broadcast %cst_10 : f32 to vector<512x128xf32>
      %c0_11 = arith.constant 0 : index
      %c0_12 = arith.constant 0 : index
      %13 = vector.load %arg5[%c0_11, %c0_12] : memref<512x128xf32, #tpu.memory_space<vmem>>, vector<512x128xf32>
      tpu.vector_store %arg5[%c0_11, %c0_12], %12 {strides = array<i32>} : memref<512x128xf32, #tpu.memory_space<vmem>>, vector<512x128xf32>,
    } else {
    }
    %c0 = arith.constant 0 : index
    %c0_1 = arith.constant 0 : index
    %3 = vector.load %arg5[%c0, %c0_1] : memref<512x128xf32, #tpu.memory_space<vmem>>, vector<512x128xf32>
    %c0_2 = arith.constant 0 : index
    %c0_3 = arith.constant 0 : index
    %4 = vector.load %arg2[%c0_2, %c0_3] : memref<512x147xbf16, #tpu.memory_space<vmem>>, vector<512x147xbf16>
    %c0_4 = arith.constant 0 : index
    %c0_5 = arith.constant 0 : index
    %5 = vector.load %arg3[%c0_4, %c0_5] : memref<147x128xbf16, #tpu.memory_space<vmem>>, vector<147x128xbf16>
    %cst = arith.constant dense<0.000000e+00> : vector<512x128xf32>
    %6 = tpu.matmul %4, %5, %cst {dimension_numbers = #tpu.dot_dimension_numbers<[1], [0], [0], [1], [0, 0, 1, 1], [], []>} : vector<512x147xbf16>, vector<147x128xbf16>, vector<512x128xf32> -> vector<512x128xf32>
    %7 = arith.addf %3, %6 : vector<512x128xf32>
    %c0_6 = arith.constant 0 : index
    %c0_7 = arith.constant 0 : index
    %8 = vector.load %arg5[%c0_6, %c0_7] : memref<512x128xf32, #tpu.memory_space<vmem>>, vector<512x128xf32>
    tpu.vector_store %arg5[%c0_6, %c0_7], %7 {strides = array<i32>} : memref<512x128xf32, #tpu.memory_space<vmem>>, vector<512x128xf32>,
    %c0_i32_8 = arith.constant 0 : i32
    %9 = arith.cmpi eq, %arg1, %c0_i32_8 : i32
    %10 = arith.extui %9 : i1 to i32
    %c0_i32_9 = arith.constant 0 : i32
    %11 = arith.cmpi ne, %10, %c0_i32_9 : i32
    scf.if %11 {
      %c0_10 = arith.constant 0 : index
      %c0_11 = arith.constant 0 : index
      %12 = vector.load %arg5[%c0_10, %c0_11] : memref<512x128xf32, #tpu.memory_space<vmem>>, vector<512x128xf32>
      %c0_12 = arith.constant 0 : index
      %c0_13 = arith.constant 0 : index
      %13 = vector.load %arg4[%c0_12, %c0_13] : memref<512x128xf32, #tpu.memory_space<vmem>>, vector<512x128xf32>
      tpu.vector_store %arg4[%c0_12, %c0_13], %12 {strides = array<i32>} : memref<512x128xf32, #tpu.memory_space<vmem>>, vector<512x128xf32>,
    } else {
    }
    return
  }
  func.func @transform_0(%arg0: i32, %arg1: i32) -> (i32, i32) {
    %c0_i32 = arith.constant 0 : i32
    return %arg0, %arg1 : i32, i32
  }
  func.func @transform_1(%arg0: i32, %arg1: i32) -> (i32, i32) {
    %c0_i32 = arith.constant 0 : i32
    %c0_i32_0 = arith.constant 0 : i32
    return %arg1, %c0_i32 : i32, i32
  }
  func.func @transform_2(%arg0: i32, %arg1: i32) -> (i32, i32) {
    %c0_i32 = arith.constant 0 : i32
    %c0_i32_0 = arith.constant 0 : i32
    return %arg0, %c0_i32 : i32, i32
  }
}

module attributes {stable_mosaic.version = 11 : i64} {
  func.func @_norm_relu_kernel(%arg0: i32, %arg1: memref<512x16xf32, #tpu.memory_space<vmem>>, %arg2: memref<1x16xf32, #tpu.memory_space<vmem>>, %arg3: memref<1x16xf32, #tpu.memory_space<vmem>>, %arg4: memref<512x16xf32, #tpu.memory_space<vmem>>) attributes {dimension_semantics = [#tpu.dimension_semantics<parallel>], iteration_bounds = array<i64: 1>, scalar_prefetch = 0 : i64, scratch_operands = 0 : i64, tpu.core_type = #tpu.core_type<tc>, window_params = [{transform_indices = @transform_0, window_bounds = array<i64: 512, 16>}, {pipeline_mode = #tpu.pipeline_mode<synchronous>, transform_indices = @transform_1, window_bounds = array<i64: 1, 16>}, {pipeline_mode = #tpu.pipeline_mode<synchronous>, transform_indices = @transform_2, window_bounds = array<i64: 1, 16>}, {transform_indices = @transform_3, window_bounds = array<i64: 512, 16>}]} {
    %c0 = arith.constant 0 : index
    %c0_0 = arith.constant 0 : index
    %0 = vector.load %arg1[%c0, %c0_0] : memref<512x16xf32, #tpu.memory_space<vmem>>, vector<512x16xf32>
    %c0_1 = arith.constant 0 : index
    %c0_2 = arith.constant 0 : index
    %1 = vector.load %arg2[%c0_1, %c0_2] : memref<1x16xf32, #tpu.memory_space<vmem>>, vector<1x16xf32>
    %2 = vector.broadcast %1 : vector<1x16xf32> to vector<512x16xf32>
    %3 = arith.mulf %0, %2 : vector<512x16xf32>
    %c0_3 = arith.constant 0 : index
    %c0_4 = arith.constant 0 : index
    %4 = vector.load %arg3[%c0_3, %c0_4] : memref<1x16xf32, #tpu.memory_space<vmem>>, vector<1x16xf32>
    %5 = vector.broadcast %4 : vector<1x16xf32> to vector<512x16xf32>
    %6 = arith.addf %3, %5 : vector<512x16xf32>
    %cst = arith.constant 0.000000e+00 : f32
    %7 = vector.broadcast %cst : f32 to vector<512x16xf32>
    %8 = arith.maximumf %6, %7 : vector<512x16xf32>
    %c0_5 = arith.constant 0 : index
    %c0_6 = arith.constant 0 : index
    %9 = vector.load %arg4[%c0_5, %c0_6] : memref<512x16xf32, #tpu.memory_space<vmem>>, vector<512x16xf32>
    tpu.vector_store %arg4[%c0_5, %c0_6], %8 {strides = array<i32>} : memref<512x16xf32, #tpu.memory_space<vmem>>, vector<512x16xf32>,
    return
  }
  func.func @transform_0(%arg0: i32) -> (i32, i32) {
    %c0_i32 = arith.constant 0 : i32
    %c0_i32_0 = arith.constant 0 : i32
    return %arg0, %c0_i32 : i32, i32
  }
  func.func @transform_1(%arg0: i32) -> (i32, i32) {
    %c0_i32 = arith.constant 0 : i32
    %c0_i32_0 = arith.constant 0 : i32
    %c0_i32_1 = arith.constant 0 : i32
    return %c0_i32, %c0_i32_0 : i32, i32
  }
  func.func @transform_2(%arg0: i32) -> (i32, i32) {
    %c0_i32 = arith.constant 0 : i32
    %c0_i32_0 = arith.constant 0 : i32
    %c0_i32_1 = arith.constant 0 : i32
    return %c0_i32, %c0_i32_0 : i32, i32
  }
  func.func @transform_3(%arg0: i32) -> (i32, i32) {
    %c0_i32 = arith.constant 0 : i32
    %c0_i32_0 = arith.constant 0 : i32
    return %arg0, %c0_i32 : i32, i32
  }
}

module attributes {stable_mosaic.version = 11 : i64} {
  func.func @kernel(%arg0: i32, %arg1: memref<128x16xf32, #tpu.memory_space<vmem>>, %arg2: memref<1x16xf32, #tpu.memory_space<vmem>>, %arg3: memref<1x16xf32, #tpu.memory_space<vmem>>, %arg4: memref<1x16xf32, #tpu.memory_space<vmem>>, %arg5: memref<1x16xf32, #tpu.memory_space<vmem>>) attributes {dimension_semantics = [#tpu.dimension_semantics<arbitrary>], iteration_bounds = array<i64: 1>, scalar_prefetch = 0 : i64, scratch_operands = 2 : i64, tpu.core_type = #tpu.core_type<tc>, window_params = [{transform_indices = @transform_0, window_bounds = array<i64: 128, 16>}, {pipeline_mode = #tpu.pipeline_mode<synchronous>, transform_indices = @transform_1, window_bounds = array<i64: 1, 16>}, {pipeline_mode = #tpu.pipeline_mode<synchronous>, transform_indices = @transform_2, window_bounds = array<i64: 1, 16>}]} {
    %c0_i32 = arith.constant 0 : i32
    %0 = arith.cmpi eq, %arg0, %c0_i32 : i32
    %1 = arith.extui %0 : i1 to i32
    %c0_i32_0 = arith.constant 0 : i32
    %2 = arith.cmpi ne, %1, %c0_i32_0 : i32
    scf.if %2 {
      %cst_13 = arith.constant 0.000000e+00 : f32
      %18 = vector.broadcast %cst_13 : f32 to vector<1x16xf32>
      %c0_14 = arith.constant 0 : index
      %c0_15 = arith.constant 0 : index
      %19 = vector.load %arg4[%c0_14, %c0_15] : memref<1x16xf32, #tpu.memory_space<vmem>>, vector<1x16xf32>
      tpu.vector_store %arg4[%c0_14, %c0_15], %18 {strides = array<i32>} : memref<1x16xf32, #tpu.memory_space<vmem>>, vector<1x16xf32>,
      %cst_16 = arith.constant 0.000000e+00 : f32
      %20 = vector.broadcast %cst_16 : f32 to vector<1x16xf32>
      %c0_17 = arith.constant 0 : index
      %c0_18 = arith.constant 0 : index
      %21 = vector.load %arg5[%c0_17, %c0_18] : memref<1x16xf32, #tpu.memory_space<vmem>>, vector<1x16xf32>
      tpu.vector_store %arg5[%c0_17, %c0_18], %20 {strides = array<i32>} : memref<1x16xf32, #tpu.memory_space<vmem>>, vector<1x16xf32>,
    } else {
    }
    %c0 = arith.constant 0 : index
    %c0_1 = arith.constant 0 : index
    %3 = vector.load %arg1[%c0, %c0_1] : memref<128x16xf32, #tpu.memory_space<vmem>>, vector<128x16xf32>
    %c0_2 = arith.constant 0 : index
    %c0_3 = arith.constant 0 : index
    %4 = vector.load %arg4[%c0_2, %c0_3] : memref<1x16xf32, #tpu.memory_space<vmem>>, vector<1x16xf32>
    %cst = arith.constant dense<0.000000e+00> : vector<16xf32>
    %5 = vector.multi_reduction <add>, %3, %cst [0] : vector<128x16xf32> to vector<16xf32>
    %6 = vector.shape_cast %5 : vector<16xf32> to vector<1x16xf32>
    %7 = arith.addf %4, %6 : vector<1x16xf32>
    %c0_4 = arith.constant 0 : index
    %c0_5 = arith.constant 0 : index
    %8 = vector.load %arg4[%c0_4, %c0_5] : memref<1x16xf32, #tpu.memory_space<vmem>>, vector<1x16xf32>
    tpu.vector_store %arg4[%c0_4, %c0_5], %7 {strides = array<i32>} : memref<1x16xf32, #tpu.memory_space<vmem>>, vector<1x16xf32>,
    %c0_6 = arith.constant 0 : index
    %c0_7 = arith.constant 0 : index
    %9 = vector.load %arg5[%c0_6, %c0_7] : memref<1x16xf32, #tpu.memory_space<vmem>>, vector<1x16xf32>
    %10 = arith.mulf %3, %3 : vector<128x16xf32>
    %cst_8 = arith.constant dense<0.000000e+00> : vector<16xf32>
    %11 = vector.multi_reduction <add>, %10, %cst_8 [0] : vector<128x16xf32> to vector<16xf32>
    %12 = vector.shape_cast %11 : vector<16xf32> to vector<1x16xf32>
    %13 = arith.addf %9, %12 : vector<1x16xf32>
    %c0_9 = arith.constant 0 : index
    %c0_10 = arith.constant 0 : index
    %14 = vector.load %arg5[%c0_9, %c0_10] : memref<1x16xf32, #tpu.memory_space<vmem>>, vector<1x16xf32>
    tpu.vector_store %arg5[%c0_9, %c0_10], %13 {strides = array<i32>} : memref<1x16xf32, #tpu.memory_space<vmem>>, vector<1x16xf32>,
    %c0_i32_11 = arith.constant 0 : i32
    %15 = arith.cmpi eq, %arg0, %c0_i32_11 : i32
    %16 = arith.extui %15 : i1 to i32
    %c0_i32_12 = arith.constant 0 : i32
    %17 = arith.cmpi ne, %16, %c0_i32_12 : i32
    scf.if %17 {
      %c0_13 = arith.constant 0 : index
      %c0_14 = arith.constant 0 : index
      %18 = vector.load %arg4[%c0_13, %c0_14] : memref<1x16xf32, #tpu.memory_space<vmem>>, vector<1x16xf32>
      %cst_15 = arith.constant 7.812500e-03 : f32
      %19 = vector.broadcast %cst_15 : f32 to vector<1x16xf32>
      %20 = arith.mulf %18, %19 : vector<1x16xf32>
      %c0_16 = arith.constant 0 : index
      %c0_17 = arith.constant 0 : index
      %21 = vector.load %arg5[%c0_16, %c0_17] : memref<1x16xf32, #tpu.memory_space<vmem>>, vector<1x16xf32>
      %cst_18 = arith.constant 7.812500e-03 : f32
      %22 = vector.broadcast %cst_18 : f32 to vector<1x16xf32>
      %23 = arith.mulf %21, %22 : vector<1x16xf32>
      %24 = arith.mulf %20, %20 : vector<1x16xf32>
      %25 = arith.subf %23, %24 : vector<1x16xf32>
      %cst_19 = arith.constant 0.000000e+00 : f32
      %26 = vector.broadcast %cst_19 : f32 to vector<1x16xf32>
      %27 = arith.maximumf %25, %26 : vector<1x16xf32>
      %cst_20 = arith.constant 9.99999974E-6 : f32
      %28 = vector.broadcast %cst_20 : f32 to vector<1x16xf32>
      %29 = arith.addf %27, %28 : vector<1x16xf32>
      %30 = math.rsqrt %29 : vector<1x16xf32>
      %c0_21 = arith.constant 0 : index
      %c0_22 = arith.constant 0 : index
      %31 = vector.load %arg2[%c0_21, %c0_22] : memref<1x16xf32, #tpu.memory_space<vmem>>, vector<1x16xf32>
      tpu.vector_store %arg2[%c0_21, %c0_22], %30 {strides = array<i32>} : memref<1x16xf32, #tpu.memory_space<vmem>>, vector<1x16xf32>,
      %cst_23 = arith.constant 0.000000e+00 : f32
      %32 = vector.broadcast %cst_23 : f32 to vector<1x16xf32>
      %33 = arith.subf %32, %20 : vector<1x16xf32>
      %34 = arith.mulf %33, %30 : vector<1x16xf32>
      %c0_24 = arith.constant 0 : index
      %c0_25 = arith.constant 0 : index
      %35 = vector.load %arg3[%c0_24, %c0_25] : memref<1x16xf32, #tpu.memory_space<vmem>>, vector<1x16xf32>
      tpu.vector_store %arg3[%c0_24, %c0_25], %34 {strides = array<i32>} : memref<1x16xf32, #tpu.memory_space<vmem>>, vector<1x16xf32>,
    } else {
    }
    return
  }
  func.func @transform_0(%arg0: i32) -> (i32, i32) {
    %c0_i32 = arith.constant 0 : i32
    %c0_i32_0 = arith.constant 0 : i32
    return %arg0, %c0_i32 : i32, i32
  }
  func.func @transform_1(%arg0: i32) -> (i32, i32) {
    %c0_i32 = arith.constant 0 : i32
    %c0_i32_0 = arith.constant 0 : i32
    %c0_i32_1 = arith.constant 0 : i32
    return %c0_i32, %c0_i32_0 : i32, i32
  }
  func.func @transform_2(%arg0: i32) -> (i32, i32) {
    %c0_i32 = arith.constant 0 : i32
    %c0_i32_0 = arith.constant 0 : i32
    %c0_i32_1 = arith.constant 0 : i32
    return %c0_i32, %c0_i32_0 : i32, i32
  }
}

module attributes {stable_mosaic.version = 11 : i64} {
  func.func @_norm_relu_mm_kernel(%arg0: i32, %arg1: i32, %arg2: memref<128x16xf32, #tpu.memory_space<vmem>>, %arg3: memref<1x16xf32, #tpu.memory_space<vmem>>, %arg4: memref<1x16xf32, #tpu.memory_space<vmem>>, %arg5: memref<16x128xbf16, #tpu.memory_space<vmem>>, %arg6: memref<128x128xf32, #tpu.memory_space<vmem>>, %arg7: memref<128x128xf32, #tpu.memory_space<vmem>>) attributes {dimension_semantics = [#tpu.dimension_semantics<parallel>, #tpu.dimension_semantics<arbitrary>], iteration_bounds = array<i64: 1, 1>, scalar_prefetch = 0 : i64, scratch_operands = 1 : i64, tpu.core_type = #tpu.core_type<tc>, window_params = [{transform_indices = @transform_0, window_bounds = array<i64: 128, 16>}, {transform_indices = @transform_1, window_bounds = array<i64: 1, 16>}, {transform_indices = @transform_2, window_bounds = array<i64: 1, 16>}, {transform_indices = @transform_3, window_bounds = array<i64: 16, 128>}, {transform_indices = @transform_4, window_bounds = array<i64: 128, 128>}]} {
    %c0_i32 = arith.constant 0 : i32
    %0 = arith.cmpi eq, %arg1, %c0_i32 : i32
    %1 = arith.extui %0 : i1 to i32
    %c0_i32_0 = arith.constant 0 : i32
    %2 = arith.cmpi ne, %1, %c0_i32_0 : i32
    scf.if %2 {
      %cst_15 = arith.constant 0.000000e+00 : f32
      %21 = vector.broadcast %cst_15 : f32 to vector<128x128xf32>
      %c0_16 = arith.constant 0 : index
      %c0_17 = arith.constant 0 : index
      %22 = vector.load %arg7[%c0_16, %c0_17] : memref<128x128xf32, #tpu.memory_space<vmem>>, vector<128x128xf32>
      tpu.vector_store %arg7[%c0_16, %c0_17], %21 {strides = array<i32>} : memref<128x128xf32, #tpu.memory_space<vmem>>, vector<128x128xf32>,
    } else {
    }
    %c0 = arith.constant 0 : index
    %c0_1 = arith.constant 0 : index
    %3 = vector.load %arg2[%c0, %c0_1] : memref<128x16xf32, #tpu.memory_space<vmem>>, vector<128x16xf32>
    %c0_2 = arith.constant 0 : index
    %c0_3 = arith.constant 0 : index
    %4 = vector.load %arg3[%c0_2, %c0_3] : memref<1x16xf32, #tpu.memory_space<vmem>>, vector<1x16xf32>
    %5 = vector.broadcast %4 : vector<1x16xf32> to vector<128x16xf32>
    %6 = arith.mulf %3, %5 : vector<128x16xf32>
    %c0_4 = arith.constant 0 : index
    %c0_5 = arith.constant 0 : index
    %7 = vector.load %arg4[%c0_4, %c0_5] : memref<1x16xf32, #tpu.memory_space<vmem>>, vector<1x16xf32>
    %8 = vector.broadcast %7 : vector<1x16xf32> to vector<128x16xf32>
    %9 = arith.addf %6, %8 : vector<128x16xf32>
    %cst = arith.constant 0.000000e+00 : f32
    %10 = vector.broadcast %cst : f32 to vector<128x16xf32>
    %11 = arith.maximumf %9, %10 : vector<128x16xf32>
    %c0_6 = arith.constant 0 : index
    %c0_7 = arith.constant 0 : index
    %12 = vector.load %arg7[%c0_6, %c0_7] : memref<128x128xf32, #tpu.memory_space<vmem>>, vector<128x128xf32>
    %13 = arith.truncf %11 : vector<128x16xf32> to vector<128x16xbf16>
    %c0_8 = arith.constant 0 : index
    %c0_9 = arith.constant 0 : index
    %14 = vector.load %arg5[%c0_8, %c0_9] : memref<16x128xbf16, #tpu.memory_space<vmem>>, vector<16x128xbf16>
    %cst_10 = arith.constant dense<0.000000e+00> : vector<128x128xf32>
    %15 = tpu.matmul %13, %14, %cst_10 {dimension_numbers = #tpu.dot_dimension_numbers<[1], [0], [0], [1], [0, 0, 1, 1], [], []>} : vector<128x16xbf16>, vector<16x128xbf16>, vector<128x128xf32> -> vector<128x128xf32>
    %16 = arith.addf %12, %15 : vector<128x128xf32>
    %c0_11 = arith.constant 0 : index
    %c0_12 = arith.constant 0 : index
    %17 = vector.load %arg7[%c0_11, %c0_12] : memref<128x128xf32, #tpu.memory_space<vmem>>, vector<128x128xf32>
    tpu.vector_store %arg7[%c0_11, %c0_12], %16 {strides = array<i32>} : memref<128x128xf32, #tpu.memory_space<vmem>>, vector<128x128xf32>,
    %c0_i32_13 = arith.constant 0 : i32
    %18 = arith.cmpi eq, %arg1, %c0_i32_13 : i32
    %19 = arith.extui %18 : i1 to i32
    %c0_i32_14 = arith.constant 0 : i32
    %20 = arith.cmpi ne, %19, %c0_i32_14 : i32
    scf.if %20 {
      %c0_15 = arith.constant 0 : index
      %c0_16 = arith.constant 0 : index
      %21 = vector.load %arg7[%c0_15, %c0_16] : memref<128x128xf32, #tpu.memory_space<vmem>>, vector<128x128xf32>
      %c0_17 = arith.constant 0 : index
      %c0_18 = arith.constant 0 : index
      %22 = vector.load %arg6[%c0_17, %c0_18] : memref<128x128xf32, #tpu.memory_space<vmem>>, vector<128x128xf32>
      tpu.vector_store %arg6[%c0_17, %c0_18], %21 {strides = array<i32>} : memref<128x128xf32, #tpu.memory_space<vmem>>, vector<128x128xf32>,
    } else {
    }
    return
  }
  func.func @transform_0(%arg0: i32, %arg1: i32) -> (i32, i32) {
    %c0_i32 = arith.constant 0 : i32
    return %arg0, %arg1 : i32, i32
  }
  func.func @transform_1(%arg0: i32, %arg1: i32) -> (i32, i32) {
    %c0_i32 = arith.constant 0 : i32
    %c0_i32_0 = arith.constant 0 : i32
    return %c0_i32, %arg1 : i32, i32
  }
  func.func @transform_2(%arg0: i32, %arg1: i32) -> (i32, i32) {
    %c0_i32 = arith.constant 0 : i32
    %c0_i32_0 = arith.constant 0 : i32
    return %c0_i32, %arg1 : i32, i32
  }
  func.func @transform_3(%arg0: i32, %arg1: i32) -> (i32, i32) {
    %c0_i32 = arith.constant 0 : i32
    %c0_i32_0 = arith.constant 0 : i32
    return %arg1, %c0_i32 : i32, i32
  }
  func.func @transform_4(%arg0: i32, %arg1: i32) -> (i32, i32) {
    %c0_i32 = arith.constant 0 : i32
    %c0_i32_0 = arith.constant 0 : i32
    return %arg0, %c0_i32 : i32, i32
  }
}

module attributes {stable_mosaic.version = 11 : i64} {
  func.func @_norm_relu_kernel(%arg0: i32, %arg1: memref<128x16xf32, #tpu.memory_space<vmem>>, %arg2: memref<1x16xf32, #tpu.memory_space<vmem>>, %arg3: memref<1x16xf32, #tpu.memory_space<vmem>>, %arg4: memref<128x16xf32, #tpu.memory_space<vmem>>) attributes {dimension_semantics = [#tpu.dimension_semantics<parallel>], iteration_bounds = array<i64: 1>, scalar_prefetch = 0 : i64, scratch_operands = 0 : i64, tpu.core_type = #tpu.core_type<tc>, window_params = [{transform_indices = @transform_0, window_bounds = array<i64: 128, 16>}, {pipeline_mode = #tpu.pipeline_mode<synchronous>, transform_indices = @transform_1, window_bounds = array<i64: 1, 16>}, {pipeline_mode = #tpu.pipeline_mode<synchronous>, transform_indices = @transform_2, window_bounds = array<i64: 1, 16>}, {transform_indices = @transform_3, window_bounds = array<i64: 128, 16>}]} {
    %c0 = arith.constant 0 : index
    %c0_0 = arith.constant 0 : index
    %0 = vector.load %arg1[%c0, %c0_0] : memref<128x16xf32, #tpu.memory_space<vmem>>, vector<128x16xf32>
    %c0_1 = arith.constant 0 : index
    %c0_2 = arith.constant 0 : index
    %1 = vector.load %arg2[%c0_1, %c0_2] : memref<1x16xf32, #tpu.memory_space<vmem>>, vector<1x16xf32>
    %2 = vector.broadcast %1 : vector<1x16xf32> to vector<128x16xf32>
    %3 = arith.mulf %0, %2 : vector<128x16xf32>
    %c0_3 = arith.constant 0 : index
    %c0_4 = arith.constant 0 : index
    %4 = vector.load %arg3[%c0_3, %c0_4] : memref<1x16xf32, #tpu.memory_space<vmem>>, vector<1x16xf32>
    %5 = vector.broadcast %4 : vector<1x16xf32> to vector<128x16xf32>
    %6 = arith.addf %3, %5 : vector<128x16xf32>
    %cst = arith.constant 0.000000e+00 : f32
    %7 = vector.broadcast %cst : f32 to vector<128x16xf32>
    %8 = arith.maximumf %6, %7 : vector<128x16xf32>
    %c0_5 = arith.constant 0 : index
    %c0_6 = arith.constant 0 : index
    %9 = vector.load %arg4[%c0_5, %c0_6] : memref<128x16xf32, #tpu.memory_space<vmem>>, vector<128x16xf32>
    tpu.vector_store %arg4[%c0_5, %c0_6], %8 {strides = array<i32>} : memref<128x16xf32, #tpu.memory_space<vmem>>, vector<128x16xf32>,
    return
  }
  func.func @transform_0(%arg0: i32) -> (i32, i32) {
    %c0_i32 = arith.constant 0 : i32
    %c0_i32_0 = arith.constant 0 : i32
    return %arg0, %c0_i32 : i32, i32
  }
  func.func @transform_1(%arg0: i32) -> (i32, i32) {
    %c0_i32 = arith.constant 0 : i32
    %c0_i32_0 = arith.constant 0 : i32
    %c0_i32_1 = arith.constant 0 : i32
    return %c0_i32, %c0_i32_0 : i32, i32
  }
  func.func @transform_2(%arg0: i32) -> (i32, i32) {
    %c0_i32 = arith.constant 0 : i32
    %c0_i32_0 = arith.constant 0 : i32
    %c0_i32_1 = arith.constant 0 : i32
    return %c0_i32, %c0_i32_0 : i32, i32
  }
  func.func @transform_3(%arg0: i32) -> (i32, i32) {
    %c0_i32 = arith.constant 0 : i32
    %c0_i32_0 = arith.constant 0 : i32
    return %arg0, %c0_i32 : i32, i32
  }
}

module attributes {stable_mosaic.version = 11 : i64} {
  func.func @_mm_kernel(%arg0: i32, %arg1: i32, %arg2: memref<128x144xbf16, #tpu.memory_space<vmem>>, %arg3: memref<144x128xbf16, #tpu.memory_space<vmem>>, %arg4: memref<128x128xf32, #tpu.memory_space<vmem>>, %arg5: memref<128x128xf32, #tpu.memory_space<vmem>>) attributes {dimension_semantics = [#tpu.dimension_semantics<parallel>, #tpu.dimension_semantics<arbitrary>], iteration_bounds = array<i64: 1, 1>, scalar_prefetch = 0 : i64, scratch_operands = 1 : i64, tpu.core_type = #tpu.core_type<tc>, window_params = [{transform_indices = @transform_0, window_bounds = array<i64: 128, 144>}, {transform_indices = @transform_1, window_bounds = array<i64: 144, 128>}, {transform_indices = @transform_2, window_bounds = array<i64: 128, 128>}]} {
    %c0_i32 = arith.constant 0 : i32
    %0 = arith.cmpi eq, %arg1, %c0_i32 : i32
    %1 = arith.extui %0 : i1 to i32
    %c0_i32_0 = arith.constant 0 : i32
    %2 = arith.cmpi ne, %1, %c0_i32_0 : i32
    scf.if %2 {
      %cst_10 = arith.constant 0.000000e+00 : f32
      %12 = vector.broadcast %cst_10 : f32 to vector<128x128xf32>
      %c0_11 = arith.constant 0 : index
      %c0_12 = arith.constant 0 : index
      %13 = vector.load %arg5[%c0_11, %c0_12] : memref<128x128xf32, #tpu.memory_space<vmem>>, vector<128x128xf32>
      tpu.vector_store %arg5[%c0_11, %c0_12], %12 {strides = array<i32>} : memref<128x128xf32, #tpu.memory_space<vmem>>, vector<128x128xf32>,
    } else {
    }
    %c0 = arith.constant 0 : index
    %c0_1 = arith.constant 0 : index
    %3 = vector.load %arg5[%c0, %c0_1] : memref<128x128xf32, #tpu.memory_space<vmem>>, vector<128x128xf32>
    %c0_2 = arith.constant 0 : index
    %c0_3 = arith.constant 0 : index
    %4 = vector.load %arg2[%c0_2, %c0_3] : memref<128x144xbf16, #tpu.memory_space<vmem>>, vector<128x144xbf16>
    %c0_4 = arith.constant 0 : index
    %c0_5 = arith.constant 0 : index
    %5 = vector.load %arg3[%c0_4, %c0_5] : memref<144x128xbf16, #tpu.memory_space<vmem>>, vector<144x128xbf16>
    %cst = arith.constant dense<0.000000e+00> : vector<128x128xf32>
    %6 = tpu.matmul %4, %5, %cst {dimension_numbers = #tpu.dot_dimension_numbers<[1], [0], [0], [1], [0, 0, 1, 1], [], []>} : vector<128x144xbf16>, vector<144x128xbf16>, vector<128x128xf32> -> vector<128x128xf32>
    %7 = arith.addf %3, %6 : vector<128x128xf32>
    %c0_6 = arith.constant 0 : index
    %c0_7 = arith.constant 0 : index
    %8 = vector.load %arg5[%c0_6, %c0_7] : memref<128x128xf32, #tpu.memory_space<vmem>>, vector<128x128xf32>
    tpu.vector_store %arg5[%c0_6, %c0_7], %7 {strides = array<i32>} : memref<128x128xf32, #tpu.memory_space<vmem>>, vector<128x128xf32>,
    %c0_i32_8 = arith.constant 0 : i32
    %9 = arith.cmpi eq, %arg1, %c0_i32_8 : i32
    %10 = arith.extui %9 : i1 to i32
    %c0_i32_9 = arith.constant 0 : i32
    %11 = arith.cmpi ne, %10, %c0_i32_9 : i32
    scf.if %11 {
      %c0_10 = arith.constant 0 : index
      %c0_11 = arith.constant 0 : index
      %12 = vector.load %arg5[%c0_10, %c0_11] : memref<128x128xf32, #tpu.memory_space<vmem>>, vector<128x128xf32>
      %c0_12 = arith.constant 0 : index
      %c0_13 = arith.constant 0 : index
      %13 = vector.load %arg4[%c0_12, %c0_13] : memref<128x128xf32, #tpu.memory_space<vmem>>, vector<128x128xf32>
      tpu.vector_store %arg4[%c0_12, %c0_13], %12 {strides = array<i32>} : memref<128x128xf32, #tpu.memory_space<vmem>>, vector<128x128xf32>,
    } else {
    }
    return
  }
  func.func @transform_0(%arg0: i32, %arg1: i32) -> (i32, i32) {
    %c0_i32 = arith.constant 0 : i32
    return %arg0, %arg1 : i32, i32
  }
  func.func @transform_1(%arg0: i32, %arg1: i32) -> (i32, i32) {
    %c0_i32 = arith.constant 0 : i32
    %c0_i32_0 = arith.constant 0 : i32
    return %arg1, %c0_i32 : i32, i32
  }
  func.func @transform_2(%arg0: i32, %arg1: i32) -> (i32, i32) {
    %c0_i32 = arith.constant 0 : i32
    %c0_i32_0 = arith.constant 0 : i32
    return %arg0, %c0_i32 : i32, i32
  }
}

module attributes {stable_mosaic.version = 11 : i64} {
  func.func @_norm_relu_mm_kernel(%arg0: i32, %arg1: i32, %arg2: memref<128x24xf32, #tpu.memory_space<vmem>>, %arg3: memref<1x24xf32, #tpu.memory_space<vmem>>, %arg4: memref<1x24xf32, #tpu.memory_space<vmem>>, %arg5: memref<24x128xbf16, #tpu.memory_space<vmem>>, %arg6: memref<128x128xf32, #tpu.memory_space<vmem>>, %arg7: memref<128x128xf32, #tpu.memory_space<vmem>>) attributes {dimension_semantics = [#tpu.dimension_semantics<parallel>, #tpu.dimension_semantics<arbitrary>], iteration_bounds = array<i64: 1, 1>, scalar_prefetch = 0 : i64, scratch_operands = 1 : i64, tpu.core_type = #tpu.core_type<tc>, window_params = [{transform_indices = @transform_0, window_bounds = array<i64: 128, 24>}, {transform_indices = @transform_1, window_bounds = array<i64: 1, 24>}, {transform_indices = @transform_2, window_bounds = array<i64: 1, 24>}, {transform_indices = @transform_3, window_bounds = array<i64: 24, 128>}, {transform_indices = @transform_4, window_bounds = array<i64: 128, 128>}]} {
    %c0_i32 = arith.constant 0 : i32
    %0 = arith.cmpi eq, %arg1, %c0_i32 : i32
    %1 = arith.extui %0 : i1 to i32
    %c0_i32_0 = arith.constant 0 : i32
    %2 = arith.cmpi ne, %1, %c0_i32_0 : i32
    scf.if %2 {
      %cst_15 = arith.constant 0.000000e+00 : f32
      %21 = vector.broadcast %cst_15 : f32 to vector<128x128xf32>
      %c0_16 = arith.constant 0 : index
      %c0_17 = arith.constant 0 : index
      %22 = vector.load %arg7[%c0_16, %c0_17] : memref<128x128xf32, #tpu.memory_space<vmem>>, vector<128x128xf32>
      tpu.vector_store %arg7[%c0_16, %c0_17], %21 {strides = array<i32>} : memref<128x128xf32, #tpu.memory_space<vmem>>, vector<128x128xf32>,
    } else {
    }
    %c0 = arith.constant 0 : index
    %c0_1 = arith.constant 0 : index
    %3 = vector.load %arg2[%c0, %c0_1] : memref<128x24xf32, #tpu.memory_space<vmem>>, vector<128x24xf32>
    %c0_2 = arith.constant 0 : index
    %c0_3 = arith.constant 0 : index
    %4 = vector.load %arg3[%c0_2, %c0_3] : memref<1x24xf32, #tpu.memory_space<vmem>>, vector<1x24xf32>
    %5 = vector.broadcast %4 : vector<1x24xf32> to vector<128x24xf32>
    %6 = arith.mulf %3, %5 : vector<128x24xf32>
    %c0_4 = arith.constant 0 : index
    %c0_5 = arith.constant 0 : index
    %7 = vector.load %arg4[%c0_4, %c0_5] : memref<1x24xf32, #tpu.memory_space<vmem>>, vector<1x24xf32>
    %8 = vector.broadcast %7 : vector<1x24xf32> to vector<128x24xf32>
    %9 = arith.addf %6, %8 : vector<128x24xf32>
    %cst = arith.constant 0.000000e+00 : f32
    %10 = vector.broadcast %cst : f32 to vector<128x24xf32>
    %11 = arith.maximumf %9, %10 : vector<128x24xf32>
    %c0_6 = arith.constant 0 : index
    %c0_7 = arith.constant 0 : index
    %12 = vector.load %arg7[%c0_6, %c0_7] : memref<128x128xf32, #tpu.memory_space<vmem>>, vector<128x128xf32>
    %13 = arith.truncf %11 : vector<128x24xf32> to vector<128x24xbf16>
    %c0_8 = arith.constant 0 : index
    %c0_9 = arith.constant 0 : index
    %14 = vector.load %arg5[%c0_8, %c0_9] : memref<24x128xbf16, #tpu.memory_space<vmem>>, vector<24x128xbf16>
    %cst_10 = arith.constant dense<0.000000e+00> : vector<128x128xf32>
    %15 = tpu.matmul %13, %14, %cst_10 {dimension_numbers = #tpu.dot_dimension_numbers<[1], [0], [0], [1], [0, 0, 1, 1], [], []>} : vector<128x24xbf16>, vector<24x128xbf16>, vector<128x128xf32> -> vector<128x128xf32>
    %16 = arith.addf %12, %15 : vector<128x128xf32>
    %c0_11 = arith.constant 0 : index
    %c0_12 = arith.constant 0 : index
    %17 = vector.load %arg7[%c0_11, %c0_12] : memref<128x128xf32, #tpu.memory_space<vmem>>, vector<128x128xf32>
    tpu.vector_store %arg7[%c0_11, %c0_12], %16 {strides = array<i32>} : memref<128x128xf32, #tpu.memory_space<vmem>>, vector<128x128xf32>,
    %c0_i32_13 = arith.constant 0 : i32
    %18 = arith.cmpi eq, %arg1, %c0_i32_13 : i32
    %19 = arith.extui %18 : i1 to i32
    %c0_i32_14 = arith.constant 0 : i32
    %20 = arith.cmpi ne, %19, %c0_i32_14 : i32
    scf.if %20 {
      %c0_15 = arith.constant 0 : index
      %c0_16 = arith.constant 0 : index
      %21 = vector.load %arg7[%c0_15, %c0_16] : memref<128x128xf32, #tpu.memory_space<vmem>>, vector<128x128xf32>
      %c0_17 = arith.constant 0 : index
      %c0_18 = arith.constant 0 : index
      %22 = vector.load %arg6[%c0_17, %c0_18] : memref<128x128xf32, #tpu.memory_space<vmem>>, vector<128x128xf32>
      tpu.vector_store %arg6[%c0_17, %c0_18], %21 {strides = array<i32>} : memref<128x128xf32, #tpu.memory_space<vmem>>, vector<128x128xf32>,
    } else {
    }
    return
  }
  func.func @transform_0(%arg0: i32, %arg1: i32) -> (i32, i32) {
    %c0_i32 = arith.constant 0 : i32
    return %arg0, %arg1 : i32, i32
  }
  func.func @transform_1(%arg0: i32, %arg1: i32) -> (i32, i32) {
    %c0_i32 = arith.constant 0 : i32
    %c0_i32_0 = arith.constant 0 : i32
    return %c0_i32, %arg1 : i32, i32
  }
  func.func @transform_2(%arg0: i32, %arg1: i32) -> (i32, i32) {
    %c0_i32 = arith.constant 0 : i32
    %c0_i32_0 = arith.constant 0 : i32
    return %c0_i32, %arg1 : i32, i32
  }
  func.func @transform_3(%arg0: i32, %arg1: i32) -> (i32, i32) {
    %c0_i32 = arith.constant 0 : i32
    %c0_i32_0 = arith.constant 0 : i32
    return %arg1, %c0_i32 : i32, i32
  }
  func.func @transform_4(%arg0: i32, %arg1: i32) -> (i32, i32) {
    %c0_i32 = arith.constant 0 : i32
    %c0_i32_0 = arith.constant 0 : i32
    return %arg0, %c0_i32 : i32, i32
  }
}

module attributes {stable_mosaic.version = 11 : i64} {
  func.func @kernel(%arg0: i32, %arg1: memref<128x24xf32, #tpu.memory_space<vmem>>, %arg2: memref<1x24xf32, #tpu.memory_space<vmem>>, %arg3: memref<1x24xf32, #tpu.memory_space<vmem>>, %arg4: memref<1x24xf32, #tpu.memory_space<vmem>>, %arg5: memref<1x24xf32, #tpu.memory_space<vmem>>) attributes {dimension_semantics = [#tpu.dimension_semantics<arbitrary>], iteration_bounds = array<i64: 1>, scalar_prefetch = 0 : i64, scratch_operands = 2 : i64, tpu.core_type = #tpu.core_type<tc>, window_params = [{transform_indices = @transform_0, window_bounds = array<i64: 128, 24>}, {pipeline_mode = #tpu.pipeline_mode<synchronous>, transform_indices = @transform_1, window_bounds = array<i64: 1, 24>}, {pipeline_mode = #tpu.pipeline_mode<synchronous>, transform_indices = @transform_2, window_bounds = array<i64: 1, 24>}]} {
    %c0_i32 = arith.constant 0 : i32
    %0 = arith.cmpi eq, %arg0, %c0_i32 : i32
    %1 = arith.extui %0 : i1 to i32
    %c0_i32_0 = arith.constant 0 : i32
    %2 = arith.cmpi ne, %1, %c0_i32_0 : i32
    scf.if %2 {
      %cst_13 = arith.constant 0.000000e+00 : f32
      %18 = vector.broadcast %cst_13 : f32 to vector<1x24xf32>
      %c0_14 = arith.constant 0 : index
      %c0_15 = arith.constant 0 : index
      %19 = vector.load %arg4[%c0_14, %c0_15] : memref<1x24xf32, #tpu.memory_space<vmem>>, vector<1x24xf32>
      tpu.vector_store %arg4[%c0_14, %c0_15], %18 {strides = array<i32>} : memref<1x24xf32, #tpu.memory_space<vmem>>, vector<1x24xf32>,
      %cst_16 = arith.constant 0.000000e+00 : f32
      %20 = vector.broadcast %cst_16 : f32 to vector<1x24xf32>
      %c0_17 = arith.constant 0 : index
      %c0_18 = arith.constant 0 : index
      %21 = vector.load %arg5[%c0_17, %c0_18] : memref<1x24xf32, #tpu.memory_space<vmem>>, vector<1x24xf32>
      tpu.vector_store %arg5[%c0_17, %c0_18], %20 {strides = array<i32>} : memref<1x24xf32, #tpu.memory_space<vmem>>, vector<1x24xf32>,
    } else {
    }
    %c0 = arith.constant 0 : index
    %c0_1 = arith.constant 0 : index
    %3 = vector.load %arg1[%c0, %c0_1] : memref<128x24xf32, #tpu.memory_space<vmem>>, vector<128x24xf32>
    %c0_2 = arith.constant 0 : index
    %c0_3 = arith.constant 0 : index
    %4 = vector.load %arg4[%c0_2, %c0_3] : memref<1x24xf32, #tpu.memory_space<vmem>>, vector<1x24xf32>
    %cst = arith.constant dense<0.000000e+00> : vector<24xf32>
    %5 = vector.multi_reduction <add>, %3, %cst [0] : vector<128x24xf32> to vector<24xf32>
    %6 = vector.shape_cast %5 : vector<24xf32> to vector<1x24xf32>
    %7 = arith.addf %4, %6 : vector<1x24xf32>
    %c0_4 = arith.constant 0 : index
    %c0_5 = arith.constant 0 : index
    %8 = vector.load %arg4[%c0_4, %c0_5] : memref<1x24xf32, #tpu.memory_space<vmem>>, vector<1x24xf32>
    tpu.vector_store %arg4[%c0_4, %c0_5], %7 {strides = array<i32>} : memref<1x24xf32, #tpu.memory_space<vmem>>, vector<1x24xf32>,
    %c0_6 = arith.constant 0 : index
    %c0_7 = arith.constant 0 : index
    %9 = vector.load %arg5[%c0_6, %c0_7] : memref<1x24xf32, #tpu.memory_space<vmem>>, vector<1x24xf32>
    %10 = arith.mulf %3, %3 : vector<128x24xf32>
    %cst_8 = arith.constant dense<0.000000e+00> : vector<24xf32>
    %11 = vector.multi_reduction <add>, %10, %cst_8 [0] : vector<128x24xf32> to vector<24xf32>
    %12 = vector.shape_cast %11 : vector<24xf32> to vector<1x24xf32>
    %13 = arith.addf %9, %12 : vector<1x24xf32>
    %c0_9 = arith.constant 0 : index
    %c0_10 = arith.constant 0 : index
    %14 = vector.load %arg5[%c0_9, %c0_10] : memref<1x24xf32, #tpu.memory_space<vmem>>, vector<1x24xf32>
    tpu.vector_store %arg5[%c0_9, %c0_10], %13 {strides = array<i32>} : memref<1x24xf32, #tpu.memory_space<vmem>>, vector<1x24xf32>,
    %c0_i32_11 = arith.constant 0 : i32
    %15 = arith.cmpi eq, %arg0, %c0_i32_11 : i32
    %16 = arith.extui %15 : i1 to i32
    %c0_i32_12 = arith.constant 0 : i32
    %17 = arith.cmpi ne, %16, %c0_i32_12 : i32
    scf.if %17 {
      %c0_13 = arith.constant 0 : index
      %c0_14 = arith.constant 0 : index
      %18 = vector.load %arg4[%c0_13, %c0_14] : memref<1x24xf32, #tpu.memory_space<vmem>>, vector<1x24xf32>
      %cst_15 = arith.constant 7.812500e-03 : f32
      %19 = vector.broadcast %cst_15 : f32 to vector<1x24xf32>
      %20 = arith.mulf %18, %19 : vector<1x24xf32>
      %c0_16 = arith.constant 0 : index
      %c0_17 = arith.constant 0 : index
      %21 = vector.load %arg5[%c0_16, %c0_17] : memref<1x24xf32, #tpu.memory_space<vmem>>, vector<1x24xf32>
      %cst_18 = arith.constant 7.812500e-03 : f32
      %22 = vector.broadcast %cst_18 : f32 to vector<1x24xf32>
      %23 = arith.mulf %21, %22 : vector<1x24xf32>
      %24 = arith.mulf %20, %20 : vector<1x24xf32>
      %25 = arith.subf %23, %24 : vector<1x24xf32>
      %cst_19 = arith.constant 0.000000e+00 : f32
      %26 = vector.broadcast %cst_19 : f32 to vector<1x24xf32>
      %27 = arith.maximumf %25, %26 : vector<1x24xf32>
      %cst_20 = arith.constant 9.99999974E-6 : f32
      %28 = vector.broadcast %cst_20 : f32 to vector<1x24xf32>
      %29 = arith.addf %27, %28 : vector<1x24xf32>
      %30 = math.rsqrt %29 : vector<1x24xf32>
      %c0_21 = arith.constant 0 : index
      %c0_22 = arith.constant 0 : index
      %31 = vector.load %arg2[%c0_21, %c0_22] : memref<1x24xf32, #tpu.memory_space<vmem>>, vector<1x24xf32>
      tpu.vector_store %arg2[%c0_21, %c0_22], %30 {strides = array<i32>} : memref<1x24xf32, #tpu.memory_space<vmem>>, vector<1x24xf32>,
      %cst_23 = arith.constant 0.000000e+00 : f32
      %32 = vector.broadcast %cst_23 : f32 to vector<1x24xf32>
      %33 = arith.subf %32, %20 : vector<1x24xf32>
      %34 = arith.mulf %33, %30 : vector<1x24xf32>
      %c0_24 = arith.constant 0 : index
      %c0_25 = arith.constant 0 : index
      %35 = vector.load %arg3[%c0_24, %c0_25] : memref<1x24xf32, #tpu.memory_space<vmem>>, vector<1x24xf32>
      tpu.vector_store %arg3[%c0_24, %c0_25], %34 {strides = array<i32>} : memref<1x24xf32, #tpu.memory_space<vmem>>, vector<1x24xf32>,
    } else {
    }
    return
  }
  func.func @transform_0(%arg0: i32) -> (i32, i32) {
    %c0_i32 = arith.constant 0 : i32
    %c0_i32_0 = arith.constant 0 : i32
    return %arg0, %c0_i32 : i32, i32
  }
  func.func @transform_1(%arg0: i32) -> (i32, i32) {
    %c0_i32 = arith.constant 0 : i32
    %c0_i32_0 = arith.constant 0 : i32
    %c0_i32_1 = arith.constant 0 : i32
    return %c0_i32, %c0_i32_0 : i32, i32
  }
  func.func @transform_2(%arg0: i32) -> (i32, i32) {
    %c0_i32 = arith.constant 0 : i32
    %c0_i32_0 = arith.constant 0 : i32
    %c0_i32_1 = arith.constant 0 : i32
    return %c0_i32, %c0_i32_0 : i32, i32
  }
}

module attributes {stable_mosaic.version = 11 : i64} {
  func.func @kernel(%arg0: i32, %arg1: memref<288x32xf32, #tpu.memory_space<vmem>>, %arg2: memref<1x32xf32, #tpu.memory_space<vmem>>, %arg3: memref<1x32xf32, #tpu.memory_space<vmem>>, %arg4: memref<1x32xf32, #tpu.memory_space<vmem>>, %arg5: memref<1x32xf32, #tpu.memory_space<vmem>>) attributes {dimension_semantics = [#tpu.dimension_semantics<arbitrary>], iteration_bounds = array<i64: 1>, scalar_prefetch = 0 : i64, scratch_operands = 2 : i64, tpu.core_type = #tpu.core_type<tc>, window_params = [{transform_indices = @transform_0, window_bounds = array<i64: 288, 32>}, {pipeline_mode = #tpu.pipeline_mode<synchronous>, transform_indices = @transform_1, window_bounds = array<i64: 1, 32>}, {pipeline_mode = #tpu.pipeline_mode<synchronous>, transform_indices = @transform_2, window_bounds = array<i64: 1, 32>}]} {
    %c0_i32 = arith.constant 0 : i32
    %0 = arith.cmpi eq, %arg0, %c0_i32 : i32
    %1 = arith.extui %0 : i1 to i32
    %c0_i32_0 = arith.constant 0 : i32
    %2 = arith.cmpi ne, %1, %c0_i32_0 : i32
    scf.if %2 {
      %cst_13 = arith.constant 0.000000e+00 : f32
      %18 = vector.broadcast %cst_13 : f32 to vector<1x32xf32>
      %c0_14 = arith.constant 0 : index
      %c0_15 = arith.constant 0 : index
      %19 = vector.load %arg4[%c0_14, %c0_15] : memref<1x32xf32, #tpu.memory_space<vmem>>, vector<1x32xf32>
      tpu.vector_store %arg4[%c0_14, %c0_15], %18 {strides = array<i32>} : memref<1x32xf32, #tpu.memory_space<vmem>>, vector<1x32xf32>,
      %cst_16 = arith.constant 0.000000e+00 : f32
      %20 = vector.broadcast %cst_16 : f32 to vector<1x32xf32>
      %c0_17 = arith.constant 0 : index
      %c0_18 = arith.constant 0 : index
      %21 = vector.load %arg5[%c0_17, %c0_18] : memref<1x32xf32, #tpu.memory_space<vmem>>, vector<1x32xf32>
      tpu.vector_store %arg5[%c0_17, %c0_18], %20 {strides = array<i32>} : memref<1x32xf32, #tpu.memory_space<vmem>>, vector<1x32xf32>,
    } else {
    }
    %c0 = arith.constant 0 : index
    %c0_1 = arith.constant 0 : index
    %3 = vector.load %arg1[%c0, %c0_1] : memref<288x32xf32, #tpu.memory_space<vmem>>, vector<288x32xf32>
    %c0_2 = arith.constant 0 : index
    %c0_3 = arith.constant 0 : index
    %4 = vector.load %arg4[%c0_2, %c0_3] : memref<1x32xf32, #tpu.memory_space<vmem>>, vector<1x32xf32>
    %cst = arith.constant dense<0.000000e+00> : vector<32xf32>
    %5 = vector.multi_reduction <add>, %3, %cst [0] : vector<288x32xf32> to vector<32xf32>
    %6 = vector.shape_cast %5 : vector<32xf32> to vector<1x32xf32>
    %7 = arith.addf %4, %6 : vector<1x32xf32>
    %c0_4 = arith.constant 0 : index
    %c0_5 = arith.constant 0 : index
    %8 = vector.load %arg4[%c0_4, %c0_5] : memref<1x32xf32, #tpu.memory_space<vmem>>, vector<1x32xf32>
    tpu.vector_store %arg4[%c0_4, %c0_5], %7 {strides = array<i32>} : memref<1x32xf32, #tpu.memory_space<vmem>>, vector<1x32xf32>,
    %c0_6 = arith.constant 0 : index
    %c0_7 = arith.constant 0 : index
    %9 = vector.load %arg5[%c0_6, %c0_7] : memref<1x32xf32, #tpu.memory_space<vmem>>, vector<1x32xf32>
    %10 = arith.mulf %3, %3 : vector<288x32xf32>
    %cst_8 = arith.constant dense<0.000000e+00> : vector<32xf32>
    %11 = vector.multi_reduction <add>, %10, %cst_8 [0] : vector<288x32xf32> to vector<32xf32>
    %12 = vector.shape_cast %11 : vector<32xf32> to vector<1x32xf32>
    %13 = arith.addf %9, %12 : vector<1x32xf32>
    %c0_9 = arith.constant 0 : index
    %c0_10 = arith.constant 0 : index
    %14 = vector.load %arg5[%c0_9, %c0_10] : memref<1x32xf32, #tpu.memory_space<vmem>>, vector<1x32xf32>
    tpu.vector_store %arg5[%c0_9, %c0_10], %13 {strides = array<i32>} : memref<1x32xf32, #tpu.memory_space<vmem>>, vector<1x32xf32>,
    %c0_i32_11 = arith.constant 0 : i32
    %15 = arith.cmpi eq, %arg0, %c0_i32_11 : i32
    %16 = arith.extui %15 : i1 to i32
    %c0_i32_12 = arith.constant 0 : i32
    %17 = arith.cmpi ne, %16, %c0_i32_12 : i32
    scf.if %17 {
      %c0_13 = arith.constant 0 : index
      %c0_14 = arith.constant 0 : index
      %18 = vector.load %arg4[%c0_13, %c0_14] : memref<1x32xf32, #tpu.memory_space<vmem>>, vector<1x32xf32>
      %cst_15 = arith.constant 0.00347222225 : f32
      %19 = vector.broadcast %cst_15 : f32 to vector<1x32xf32>
      %20 = arith.mulf %18, %19 : vector<1x32xf32>
      %c0_16 = arith.constant 0 : index
      %c0_17 = arith.constant 0 : index
      %21 = vector.load %arg5[%c0_16, %c0_17] : memref<1x32xf32, #tpu.memory_space<vmem>>, vector<1x32xf32>
      %cst_18 = arith.constant 0.00347222225 : f32
      %22 = vector.broadcast %cst_18 : f32 to vector<1x32xf32>
      %23 = arith.mulf %21, %22 : vector<1x32xf32>
      %24 = arith.mulf %20, %20 : vector<1x32xf32>
      %25 = arith.subf %23, %24 : vector<1x32xf32>
      %cst_19 = arith.constant 0.000000e+00 : f32
      %26 = vector.broadcast %cst_19 : f32 to vector<1x32xf32>
      %27 = arith.maximumf %25, %26 : vector<1x32xf32>
      %cst_20 = arith.constant 9.99999974E-6 : f32
      %28 = vector.broadcast %cst_20 : f32 to vector<1x32xf32>
      %29 = arith.addf %27, %28 : vector<1x32xf32>
      %30 = math.rsqrt %29 : vector<1x32xf32>
      %c0_21 = arith.constant 0 : index
      %c0_22 = arith.constant 0 : index
      %31 = vector.load %arg2[%c0_21, %c0_22] : memref<1x32xf32, #tpu.memory_space<vmem>>, vector<1x32xf32>
      tpu.vector_store %arg2[%c0_21, %c0_22], %30 {strides = array<i32>} : memref<1x32xf32, #tpu.memory_space<vmem>>, vector<1x32xf32>,
      %cst_23 = arith.constant 0.000000e+00 : f32
      %32 = vector.broadcast %cst_23 : f32 to vector<1x32xf32>
      %33 = arith.subf %32, %20 : vector<1x32xf32>
      %34 = arith.mulf %33, %30 : vector<1x32xf32>
      %c0_24 = arith.constant 0 : index
      %c0_25 = arith.constant 0 : index
      %35 = vector.load %arg3[%c0_24, %c0_25] : memref<1x32xf32, #tpu.memory_space<vmem>>, vector<1x32xf32>
      tpu.vector_store %arg3[%c0_24, %c0_25], %34 {strides = array<i32>} : memref<1x32xf32, #tpu.memory_space<vmem>>, vector<1x32xf32>,
    } else {
    }
    return
  }
  func.func @transform_0(%arg0: i32) -> (i32, i32) {
    %c0_i32 = arith.constant 0 : i32
    %c0_i32_0 = arith.constant 0 : i32
    return %arg0, %c0_i32 : i32, i32
  }
  func.func @transform_1(%arg0: i32) -> (i32, i32) {
    %c0_i32 = arith.constant 0 : i32
    %c0_i32_0 = arith.constant 0 : i32
    %c0_i32_1 = arith.constant 0 : i32
    return %c0_i32, %c0_i32_0 : i32, i32
  }
  func.func @transform_2(%arg0: i32) -> (i32, i32) {
    %c0_i32 = arith.constant 0 : i32
    %c0_i32_0 = arith.constant 0 : i32
    %c0_i32_1 = arith.constant 0 : i32
    return %c0_i32, %c0_i32_0 : i32, i32
  }
}

module attributes {stable_mosaic.version = 11 : i64} {
  func.func @_norm_relu_mm_kernel(%arg0: i32, %arg1: i32, %arg2: memref<288x32xf32, #tpu.memory_space<vmem>>, %arg3: memref<1x32xf32, #tpu.memory_space<vmem>>, %arg4: memref<1x32xf32, #tpu.memory_space<vmem>>, %arg5: memref<32x128xbf16, #tpu.memory_space<vmem>>, %arg6: memref<288x128xf32, #tpu.memory_space<vmem>>, %arg7: memref<288x128xf32, #tpu.memory_space<vmem>>) attributes {dimension_semantics = [#tpu.dimension_semantics<parallel>, #tpu.dimension_semantics<arbitrary>], iteration_bounds = array<i64: 1, 1>, scalar_prefetch = 0 : i64, scratch_operands = 1 : i64, tpu.core_type = #tpu.core_type<tc>, window_params = [{transform_indices = @transform_0, window_bounds = array<i64: 288, 32>}, {transform_indices = @transform_1, window_bounds = array<i64: 1, 32>}, {transform_indices = @transform_2, window_bounds = array<i64: 1, 32>}, {transform_indices = @transform_3, window_bounds = array<i64: 32, 128>}, {transform_indices = @transform_4, window_bounds = array<i64: 288, 128>}]} {
    %c0_i32 = arith.constant 0 : i32
    %0 = arith.cmpi eq, %arg1, %c0_i32 : i32
    %1 = arith.extui %0 : i1 to i32
    %c0_i32_0 = arith.constant 0 : i32
    %2 = arith.cmpi ne, %1, %c0_i32_0 : i32
    scf.if %2 {
      %cst_15 = arith.constant 0.000000e+00 : f32
      %21 = vector.broadcast %cst_15 : f32 to vector<288x128xf32>
      %c0_16 = arith.constant 0 : index
      %c0_17 = arith.constant 0 : index
      %22 = vector.load %arg7[%c0_16, %c0_17] : memref<288x128xf32, #tpu.memory_space<vmem>>, vector<288x128xf32>
      tpu.vector_store %arg7[%c0_16, %c0_17], %21 {strides = array<i32>} : memref<288x128xf32, #tpu.memory_space<vmem>>, vector<288x128xf32>,
    } else {
    }
    %c0 = arith.constant 0 : index
    %c0_1 = arith.constant 0 : index
    %3 = vector.load %arg2[%c0, %c0_1] : memref<288x32xf32, #tpu.memory_space<vmem>>, vector<288x32xf32>
    %c0_2 = arith.constant 0 : index
    %c0_3 = arith.constant 0 : index
    %4 = vector.load %arg3[%c0_2, %c0_3] : memref<1x32xf32, #tpu.memory_space<vmem>>, vector<1x32xf32>
    %5 = vector.broadcast %4 : vector<1x32xf32> to vector<288x32xf32>
    %6 = arith.mulf %3, %5 : vector<288x32xf32>
    %c0_4 = arith.constant 0 : index
    %c0_5 = arith.constant 0 : index
    %7 = vector.load %arg4[%c0_4, %c0_5] : memref<1x32xf32, #tpu.memory_space<vmem>>, vector<1x32xf32>
    %8 = vector.broadcast %7 : vector<1x32xf32> to vector<288x32xf32>
    %9 = arith.addf %6, %8 : vector<288x32xf32>
    %cst = arith.constant 0.000000e+00 : f32
    %10 = vector.broadcast %cst : f32 to vector<288x32xf32>
    %11 = arith.maximumf %9, %10 : vector<288x32xf32>
    %c0_6 = arith.constant 0 : index
    %c0_7 = arith.constant 0 : index
    %12 = vector.load %arg7[%c0_6, %c0_7] : memref<288x128xf32, #tpu.memory_space<vmem>>, vector<288x128xf32>
    %13 = arith.truncf %11 : vector<288x32xf32> to vector<288x32xbf16>
    %c0_8 = arith.constant 0 : index
    %c0_9 = arith.constant 0 : index
    %14 = vector.load %arg5[%c0_8, %c0_9] : memref<32x128xbf16, #tpu.memory_space<vmem>>, vector<32x128xbf16>
    %cst_10 = arith.constant dense<0.000000e+00> : vector<288x128xf32>
    %15 = tpu.matmul %13, %14, %cst_10 {dimension_numbers = #tpu.dot_dimension_numbers<[1], [0], [0], [1], [0, 0, 1, 1], [], []>} : vector<288x32xbf16>, vector<32x128xbf16>, vector<288x128xf32> -> vector<288x128xf32>
    %16 = arith.addf %12, %15 : vector<288x128xf32>
    %c0_11 = arith.constant 0 : index
    %c0_12 = arith.constant 0 : index
    %17 = vector.load %arg7[%c0_11, %c0_12] : memref<288x128xf32, #tpu.memory_space<vmem>>, vector<288x128xf32>
    tpu.vector_store %arg7[%c0_11, %c0_12], %16 {strides = array<i32>} : memref<288x128xf32, #tpu.memory_space<vmem>>, vector<288x128xf32>,
    %c0_i32_13 = arith.constant 0 : i32
    %18 = arith.cmpi eq, %arg1, %c0_i32_13 : i32
    %19 = arith.extui %18 : i1 to i32
    %c0_i32_14 = arith.constant 0 : i32
    %20 = arith.cmpi ne, %19, %c0_i32_14 : i32
    scf.if %20 {
      %c0_15 = arith.constant 0 : index
      %c0_16 = arith.constant 0 : index
      %21 = vector.load %arg7[%c0_15, %c0_16] : memref<288x128xf32, #tpu.memory_space<vmem>>, vector<288x128xf32>
      %c0_17 = arith.constant 0 : index
      %c0_18 = arith.constant 0 : index
      %22 = vector.load %arg6[%c0_17, %c0_18] : memref<288x128xf32, #tpu.memory_space<vmem>>, vector<288x128xf32>
      tpu.vector_store %arg6[%c0_17, %c0_18], %21 {strides = array<i32>} : memref<288x128xf32, #tpu.memory_space<vmem>>, vector<288x128xf32>,
    } else {
    }
    return
  }
  func.func @transform_0(%arg0: i32, %arg1: i32) -> (i32, i32) {
    %c0_i32 = arith.constant 0 : i32
    return %arg0, %arg1 : i32, i32
  }
  func.func @transform_1(%arg0: i32, %arg1: i32) -> (i32, i32) {
    %c0_i32 = arith.constant 0 : i32
    %c0_i32_0 = arith.constant 0 : i32
    return %c0_i32, %arg1 : i32, i32
  }
  func.func @transform_2(%arg0: i32, %arg1: i32) -> (i32, i32) {
    %c0_i32 = arith.constant 0 : i32
    %c0_i32_0 = arith.constant 0 : i32
    return %c0_i32, %arg1 : i32, i32
  }
  func.func @transform_3(%arg0: i32, %arg1: i32) -> (i32, i32) {
    %c0_i32 = arith.constant 0 : i32
    %c0_i32_0 = arith.constant 0 : i32
    return %arg1, %c0_i32 : i32, i32
  }
  func.func @transform_4(%arg0: i32, %arg1: i32) -> (i32, i32) {
    %c0_i32 = arith.constant 0 : i32
    %c0_i32_0 = arith.constant 0 : i32
    return %arg0, %c0_i32 : i32, i32
  }
}

module attributes {stable_mosaic.version = 11 : i64} {
  func.func @kernel(%arg0: i32, %arg1: memref<72x16xf32, #tpu.memory_space<vmem>>, %arg2: memref<1x16xf32, #tpu.memory_space<vmem>>, %arg3: memref<1x16xf32, #tpu.memory_space<vmem>>, %arg4: memref<1x16xf32, #tpu.memory_space<vmem>>, %arg5: memref<1x16xf32, #tpu.memory_space<vmem>>) attributes {dimension_semantics = [#tpu.dimension_semantics<arbitrary>], iteration_bounds = array<i64: 1>, scalar_prefetch = 0 : i64, scratch_operands = 2 : i64, tpu.core_type = #tpu.core_type<tc>, window_params = [{transform_indices = @transform_0, window_bounds = array<i64: 72, 16>}, {pipeline_mode = #tpu.pipeline_mode<synchronous>, transform_indices = @transform_1, window_bounds = array<i64: 1, 16>}, {pipeline_mode = #tpu.pipeline_mode<synchronous>, transform_indices = @transform_2, window_bounds = array<i64: 1, 16>}]} {
    %c0_i32 = arith.constant 0 : i32
    %0 = arith.cmpi eq, %arg0, %c0_i32 : i32
    %1 = arith.extui %0 : i1 to i32
    %c0_i32_0 = arith.constant 0 : i32
    %2 = arith.cmpi ne, %1, %c0_i32_0 : i32
    scf.if %2 {
      %cst_13 = arith.constant 0.000000e+00 : f32
      %18 = vector.broadcast %cst_13 : f32 to vector<1x16xf32>
      %c0_14 = arith.constant 0 : index
      %c0_15 = arith.constant 0 : index
      %19 = vector.load %arg4[%c0_14, %c0_15] : memref<1x16xf32, #tpu.memory_space<vmem>>, vector<1x16xf32>
      tpu.vector_store %arg4[%c0_14, %c0_15], %18 {strides = array<i32>} : memref<1x16xf32, #tpu.memory_space<vmem>>, vector<1x16xf32>,
      %cst_16 = arith.constant 0.000000e+00 : f32
      %20 = vector.broadcast %cst_16 : f32 to vector<1x16xf32>
      %c0_17 = arith.constant 0 : index
      %c0_18 = arith.constant 0 : index
      %21 = vector.load %arg5[%c0_17, %c0_18] : memref<1x16xf32, #tpu.memory_space<vmem>>, vector<1x16xf32>
      tpu.vector_store %arg5[%c0_17, %c0_18], %20 {strides = array<i32>} : memref<1x16xf32, #tpu.memory_space<vmem>>, vector<1x16xf32>,
    } else {
    }
    %c0 = arith.constant 0 : index
    %c0_1 = arith.constant 0 : index
    %3 = vector.load %arg1[%c0, %c0_1] : memref<72x16xf32, #tpu.memory_space<vmem>>, vector<72x16xf32>
    %c0_2 = arith.constant 0 : index
    %c0_3 = arith.constant 0 : index
    %4 = vector.load %arg4[%c0_2, %c0_3] : memref<1x16xf32, #tpu.memory_space<vmem>>, vector<1x16xf32>
    %cst = arith.constant dense<0.000000e+00> : vector<16xf32>
    %5 = vector.multi_reduction <add>, %3, %cst [0] : vector<72x16xf32> to vector<16xf32>
    %6 = vector.shape_cast %5 : vector<16xf32> to vector<1x16xf32>
    %7 = arith.addf %4, %6 : vector<1x16xf32>
    %c0_4 = arith.constant 0 : index
    %c0_5 = arith.constant 0 : index
    %8 = vector.load %arg4[%c0_4, %c0_5] : memref<1x16xf32, #tpu.memory_space<vmem>>, vector<1x16xf32>
    tpu.vector_store %arg4[%c0_4, %c0_5], %7 {strides = array<i32>} : memref<1x16xf32, #tpu.memory_space<vmem>>, vector<1x16xf32>,
    %c0_6 = arith.constant 0 : index
    %c0_7 = arith.constant 0 : index
    %9 = vector.load %arg5[%c0_6, %c0_7] : memref<1x16xf32, #tpu.memory_space<vmem>>, vector<1x16xf32>
    %10 = arith.mulf %3, %3 : vector<72x16xf32>
    %cst_8 = arith.constant dense<0.000000e+00> : vector<16xf32>
    %11 = vector.multi_reduction <add>, %10, %cst_8 [0] : vector<72x16xf32> to vector<16xf32>
    %12 = vector.shape_cast %11 : vector<16xf32> to vector<1x16xf32>
    %13 = arith.addf %9, %12 : vector<1x16xf32>
    %c0_9 = arith.constant 0 : index
    %c0_10 = arith.constant 0 : index
    %14 = vector.load %arg5[%c0_9, %c0_10] : memref<1x16xf32, #tpu.memory_space<vmem>>, vector<1x16xf32>
    tpu.vector_store %arg5[%c0_9, %c0_10], %13 {strides = array<i32>} : memref<1x16xf32, #tpu.memory_space<vmem>>, vector<1x16xf32>,
    %c0_i32_11 = arith.constant 0 : i32
    %15 = arith.cmpi eq, %arg0, %c0_i32_11 : i32
    %16 = arith.extui %15 : i1 to i32
    %c0_i32_12 = arith.constant 0 : i32
    %17 = arith.cmpi ne, %16, %c0_i32_12 : i32
    scf.if %17 {
      %c0_13 = arith.constant 0 : index
      %c0_14 = arith.constant 0 : index
      %18 = vector.load %arg4[%c0_13, %c0_14] : memref<1x16xf32, #tpu.memory_space<vmem>>, vector<1x16xf32>
      %cst_15 = arith.constant 0.013888889 : f32
      %19 = vector.broadcast %cst_15 : f32 to vector<1x16xf32>
      %20 = arith.mulf %18, %19 : vector<1x16xf32>
      %c0_16 = arith.constant 0 : index
      %c0_17 = arith.constant 0 : index
      %21 = vector.load %arg5[%c0_16, %c0_17] : memref<1x16xf32, #tpu.memory_space<vmem>>, vector<1x16xf32>
      %cst_18 = arith.constant 0.013888889 : f32
      %22 = vector.broadcast %cst_18 : f32 to vector<1x16xf32>
      %23 = arith.mulf %21, %22 : vector<1x16xf32>
      %24 = arith.mulf %20, %20 : vector<1x16xf32>
      %25 = arith.subf %23, %24 : vector<1x16xf32>
      %cst_19 = arith.constant 0.000000e+00 : f32
      %26 = vector.broadcast %cst_19 : f32 to vector<1x16xf32>
      %27 = arith.maximumf %25, %26 : vector<1x16xf32>
      %cst_20 = arith.constant 9.99999974E-6 : f32
      %28 = vector.broadcast %cst_20 : f32 to vector<1x16xf32>
      %29 = arith.addf %27, %28 : vector<1x16xf32>
      %30 = math.rsqrt %29 : vector<1x16xf32>
      %c0_21 = arith.constant 0 : index
      %c0_22 = arith.constant 0 : index
      %31 = vector.load %arg2[%c0_21, %c0_22] : memref<1x16xf32, #tpu.memory_space<vmem>>, vector<1x16xf32>
      tpu.vector_store %arg2[%c0_21, %c0_22], %30 {strides = array<i32>} : memref<1x16xf32, #tpu.memory_space<vmem>>, vector<1x16xf32>,
      %cst_23 = arith.constant 0.000000e+00 : f32
      %32 = vector.broadcast %cst_23 : f32 to vector<1x16xf32>
      %33 = arith.subf %32, %20 : vector<1x16xf32>
      %34 = arith.mulf %33, %30 : vector<1x16xf32>
      %c0_24 = arith.constant 0 : index
      %c0_25 = arith.constant 0 : index
      %35 = vector.load %arg3[%c0_24, %c0_25] : memref<1x16xf32, #tpu.memory_space<vmem>>, vector<1x16xf32>
      tpu.vector_store %arg3[%c0_24, %c0_25], %34 {strides = array<i32>} : memref<1x16xf32, #tpu.memory_space<vmem>>, vector<1x16xf32>,
    } else {
    }
    return
  }
  func.func @transform_0(%arg0: i32) -> (i32, i32) {
    %c0_i32 = arith.constant 0 : i32
    %c0_i32_0 = arith.constant 0 : i32
    return %arg0, %c0_i32 : i32, i32
  }
  func.func @transform_1(%arg0: i32) -> (i32, i32) {
    %c0_i32 = arith.constant 0 : i32
    %c0_i32_0 = arith.constant 0 : i32
    %c0_i32_1 = arith.constant 0 : i32
    return %c0_i32, %c0_i32_0 : i32, i32
  }
  func.func @transform_2(%arg0: i32) -> (i32, i32) {
    %c0_i32 = arith.constant 0 : i32
    %c0_i32_0 = arith.constant 0 : i32
    %c0_i32_1 = arith.constant 0 : i32
    return %c0_i32, %c0_i32_0 : i32, i32
  }
}

module attributes {stable_mosaic.version = 11 : i64} {
  func.func @_norm_relu_mm_kernel(%arg0: i32, %arg1: i32, %arg2: memref<72x16xf32, #tpu.memory_space<vmem>>, %arg3: memref<1x16xf32, #tpu.memory_space<vmem>>, %arg4: memref<1x16xf32, #tpu.memory_space<vmem>>, %arg5: memref<16x128xbf16, #tpu.memory_space<vmem>>, %arg6: memref<72x128xf32, #tpu.memory_space<vmem>>, %arg7: memref<72x128xf32, #tpu.memory_space<vmem>>) attributes {dimension_semantics = [#tpu.dimension_semantics<parallel>, #tpu.dimension_semantics<arbitrary>], iteration_bounds = array<i64: 1, 1>, scalar_prefetch = 0 : i64, scratch_operands = 1 : i64, tpu.core_type = #tpu.core_type<tc>, window_params = [{transform_indices = @transform_0, window_bounds = array<i64: 72, 16>}, {transform_indices = @transform_1, window_bounds = array<i64: 1, 16>}, {transform_indices = @transform_2, window_bounds = array<i64: 1, 16>}, {transform_indices = @transform_3, window_bounds = array<i64: 16, 128>}, {transform_indices = @transform_4, window_bounds = array<i64: 72, 128>}]} {
    %c0_i32 = arith.constant 0 : i32
    %0 = arith.cmpi eq, %arg1, %c0_i32 : i32
    %1 = arith.extui %0 : i1 to i32
    %c0_i32_0 = arith.constant 0 : i32
    %2 = arith.cmpi ne, %1, %c0_i32_0 : i32
    scf.if %2 {
      %cst_15 = arith.constant 0.000000e+00 : f32
      %21 = vector.broadcast %cst_15 : f32 to vector<72x128xf32>
      %c0_16 = arith.constant 0 : index
      %c0_17 = arith.constant 0 : index
      %22 = vector.load %arg7[%c0_16, %c0_17] : memref<72x128xf32, #tpu.memory_space<vmem>>, vector<72x128xf32>
      tpu.vector_store %arg7[%c0_16, %c0_17], %21 {strides = array<i32>} : memref<72x128xf32, #tpu.memory_space<vmem>>, vector<72x128xf32>,
    } else {
    }
    %c0 = arith.constant 0 : index
    %c0_1 = arith.constant 0 : index
    %3 = vector.load %arg2[%c0, %c0_1] : memref<72x16xf32, #tpu.memory_space<vmem>>, vector<72x16xf32>
    %c0_2 = arith.constant 0 : index
    %c0_3 = arith.constant 0 : index
    %4 = vector.load %arg3[%c0_2, %c0_3] : memref<1x16xf32, #tpu.memory_space<vmem>>, vector<1x16xf32>
    %5 = vector.broadcast %4 : vector<1x16xf32> to vector<72x16xf32>
    %6 = arith.mulf %3, %5 : vector<72x16xf32>
    %c0_4 = arith.constant 0 : index
    %c0_5 = arith.constant 0 : index
    %7 = vector.load %arg4[%c0_4, %c0_5] : memref<1x16xf32, #tpu.memory_space<vmem>>, vector<1x16xf32>
    %8 = vector.broadcast %7 : vector<1x16xf32> to vector<72x16xf32>
    %9 = arith.addf %6, %8 : vector<72x16xf32>
    %cst = arith.constant 0.000000e+00 : f32
    %10 = vector.broadcast %cst : f32 to vector<72x16xf32>
    %11 = arith.maximumf %9, %10 : vector<72x16xf32>
    %c0_6 = arith.constant 0 : index
    %c0_7 = arith.constant 0 : index
    %12 = vector.load %arg7[%c0_6, %c0_7] : memref<72x128xf32, #tpu.memory_space<vmem>>, vector<72x128xf32>
    %13 = arith.truncf %11 : vector<72x16xf32> to vector<72x16xbf16>
    %c0_8 = arith.constant 0 : index
    %c0_9 = arith.constant 0 : index
    %14 = vector.load %arg5[%c0_8, %c0_9] : memref<16x128xbf16, #tpu.memory_space<vmem>>, vector<16x128xbf16>
    %cst_10 = arith.constant dense<0.000000e+00> : vector<72x128xf32>
    %15 = tpu.matmul %13, %14, %cst_10 {dimension_numbers = #tpu.dot_dimension_numbers<[1], [0], [0], [1], [0, 0, 1, 1], [], []>} : vector<72x16xbf16>, vector<16x128xbf16>, vector<72x128xf32> -> vector<72x128xf32>
    %16 = arith.addf %12, %15 : vector<72x128xf32>
    %c0_11 = arith.constant 0 : index
    %c0_12 = arith.constant 0 : index
    %17 = vector.load %arg7[%c0_11, %c0_12] : memref<72x128xf32, #tpu.memory_space<vmem>>, vector<72x128xf32>
    tpu.vector_store %arg7[%c0_11, %c0_12], %16 {strides = array<i32>} : memref<72x128xf32, #tpu.memory_space<vmem>>, vector<72x128xf32>,
    %c0_i32_13 = arith.constant 0 : i32
    %18 = arith.cmpi eq, %arg1, %c0_i32_13 : i32
    %19 = arith.extui %18 : i1 to i32
    %c0_i32_14 = arith.constant 0 : i32
    %20 = arith.cmpi ne, %19, %c0_i32_14 : i32
    scf.if %20 {
      %c0_15 = arith.constant 0 : index
      %c0_16 = arith.constant 0 : index
      %21 = vector.load %arg7[%c0_15, %c0_16] : memref<72x128xf32, #tpu.memory_space<vmem>>, vector<72x128xf32>
      %c0_17 = arith.constant 0 : index
      %c0_18 = arith.constant 0 : index
      %22 = vector.load %arg6[%c0_17, %c0_18] : memref<72x128xf32, #tpu.memory_space<vmem>>, vector<72x128xf32>
      tpu.vector_store %arg6[%c0_17, %c0_18], %21 {strides = array<i32>} : memref<72x128xf32, #tpu.memory_space<vmem>>, vector<72x128xf32>,
    } else {
    }
    return
  }
  func.func @transform_0(%arg0: i32, %arg1: i32) -> (i32, i32) {
    %c0_i32 = arith.constant 0 : i32
    return %arg0, %arg1 : i32, i32
  }
  func.func @transform_1(%arg0: i32, %arg1: i32) -> (i32, i32) {
    %c0_i32 = arith.constant 0 : i32
    %c0_i32_0 = arith.constant 0 : i32
    return %c0_i32, %arg1 : i32, i32
  }
  func.func @transform_2(%arg0: i32, %arg1: i32) -> (i32, i32) {
    %c0_i32 = arith.constant 0 : i32
    %c0_i32_0 = arith.constant 0 : i32
    return %c0_i32, %arg1 : i32, i32
  }
  func.func @transform_3(%arg0: i32, %arg1: i32) -> (i32, i32) {
    %c0_i32 = arith.constant 0 : i32
    %c0_i32_0 = arith.constant 0 : i32
    return %arg1, %c0_i32 : i32, i32
  }
  func.func @transform_4(%arg0: i32, %arg1: i32) -> (i32, i32) {
    %c0_i32 = arith.constant 0 : i32
    %c0_i32_0 = arith.constant 0 : i32
    return %arg0, %c0_i32 : i32, i32
  }
}

module attributes {stable_mosaic.version = 11 : i64} {
  func.func @_norm_relu_kernel(%arg0: i32, %arg1: memref<72x16xf32, #tpu.memory_space<vmem>>, %arg2: memref<1x16xf32, #tpu.memory_space<vmem>>, %arg3: memref<1x16xf32, #tpu.memory_space<vmem>>, %arg4: memref<72x16xf32, #tpu.memory_space<vmem>>) attributes {dimension_semantics = [#tpu.dimension_semantics<parallel>], iteration_bounds = array<i64: 1>, scalar_prefetch = 0 : i64, scratch_operands = 0 : i64, tpu.core_type = #tpu.core_type<tc>, window_params = [{transform_indices = @transform_0, window_bounds = array<i64: 72, 16>}, {pipeline_mode = #tpu.pipeline_mode<synchronous>, transform_indices = @transform_1, window_bounds = array<i64: 1, 16>}, {pipeline_mode = #tpu.pipeline_mode<synchronous>, transform_indices = @transform_2, window_bounds = array<i64: 1, 16>}, {transform_indices = @transform_3, window_bounds = array<i64: 72, 16>}]} {
    %c0 = arith.constant 0 : index
    %c0_0 = arith.constant 0 : index
    %0 = vector.load %arg1[%c0, %c0_0] : memref<72x16xf32, #tpu.memory_space<vmem>>, vector<72x16xf32>
    %c0_1 = arith.constant 0 : index
    %c0_2 = arith.constant 0 : index
    %1 = vector.load %arg2[%c0_1, %c0_2] : memref<1x16xf32, #tpu.memory_space<vmem>>, vector<1x16xf32>
    %2 = vector.broadcast %1 : vector<1x16xf32> to vector<72x16xf32>
    %3 = arith.mulf %0, %2 : vector<72x16xf32>
    %c0_3 = arith.constant 0 : index
    %c0_4 = arith.constant 0 : index
    %4 = vector.load %arg3[%c0_3, %c0_4] : memref<1x16xf32, #tpu.memory_space<vmem>>, vector<1x16xf32>
    %5 = vector.broadcast %4 : vector<1x16xf32> to vector<72x16xf32>
    %6 = arith.addf %3, %5 : vector<72x16xf32>
    %cst = arith.constant 0.000000e+00 : f32
    %7 = vector.broadcast %cst : f32 to vector<72x16xf32>
    %8 = arith.maximumf %6, %7 : vector<72x16xf32>
    %c0_5 = arith.constant 0 : index
    %c0_6 = arith.constant 0 : index
    %9 = vector.load %arg4[%c0_5, %c0_6] : memref<72x16xf32, #tpu.memory_space<vmem>>, vector<72x16xf32>
    tpu.vector_store %arg4[%c0_5, %c0_6], %8 {strides = array<i32>} : memref<72x16xf32, #tpu.memory_space<vmem>>, vector<72x16xf32>,
    return
  }
  func.func @transform_0(%arg0: i32) -> (i32, i32) {
    %c0_i32 = arith.constant 0 : i32
    %c0_i32_0 = arith.constant 0 : i32
    return %arg0, %c0_i32 : i32, i32
  }
  func.func @transform_1(%arg0: i32) -> (i32, i32) {
    %c0_i32 = arith.constant 0 : i32
    %c0_i32_0 = arith.constant 0 : i32
    %c0_i32_1 = arith.constant 0 : i32
    return %c0_i32, %c0_i32_0 : i32, i32
  }
  func.func @transform_2(%arg0: i32) -> (i32, i32) {
    %c0_i32 = arith.constant 0 : i32
    %c0_i32_0 = arith.constant 0 : i32
    %c0_i32_1 = arith.constant 0 : i32
    return %c0_i32, %c0_i32_0 : i32, i32
  }
  func.func @transform_3(%arg0: i32) -> (i32, i32) {
    %c0_i32 = arith.constant 0 : i32
    %c0_i32_0 = arith.constant 0 : i32
    return %arg0, %c0_i32 : i32, i32
  }
}

module attributes {stable_mosaic.version = 11 : i64} {
  func.func @_mm_kernel(%arg0: i32, %arg1: i32, %arg2: memref<72x144xbf16, #tpu.memory_space<vmem>>, %arg3: memref<144x128xbf16, #tpu.memory_space<vmem>>, %arg4: memref<72x128xf32, #tpu.memory_space<vmem>>, %arg5: memref<72x128xf32, #tpu.memory_space<vmem>>) attributes {dimension_semantics = [#tpu.dimension_semantics<parallel>, #tpu.dimension_semantics<arbitrary>], iteration_bounds = array<i64: 1, 1>, scalar_prefetch = 0 : i64, scratch_operands = 1 : i64, tpu.core_type = #tpu.core_type<tc>, window_params = [{transform_indices = @transform_0, window_bounds = array<i64: 72, 144>}, {transform_indices = @transform_1, window_bounds = array<i64: 144, 128>}, {transform_indices = @transform_2, window_bounds = array<i64: 72, 128>}]} {
    %c0_i32 = arith.constant 0 : i32
    %0 = arith.cmpi eq, %arg1, %c0_i32 : i32
    %1 = arith.extui %0 : i1 to i32
    %c0_i32_0 = arith.constant 0 : i32
    %2 = arith.cmpi ne, %1, %c0_i32_0 : i32
    scf.if %2 {
      %cst_10 = arith.constant 0.000000e+00 : f32
      %12 = vector.broadcast %cst_10 : f32 to vector<72x128xf32>
      %c0_11 = arith.constant 0 : index
      %c0_12 = arith.constant 0 : index
      %13 = vector.load %arg5[%c0_11, %c0_12] : memref<72x128xf32, #tpu.memory_space<vmem>>, vector<72x128xf32>
      tpu.vector_store %arg5[%c0_11, %c0_12], %12 {strides = array<i32>} : memref<72x128xf32, #tpu.memory_space<vmem>>, vector<72x128xf32>,
    } else {
    }
    %c0 = arith.constant 0 : index
    %c0_1 = arith.constant 0 : index
    %3 = vector.load %arg5[%c0, %c0_1] : memref<72x128xf32, #tpu.memory_space<vmem>>, vector<72x128xf32>
    %c0_2 = arith.constant 0 : index
    %c0_3 = arith.constant 0 : index
    %4 = vector.load %arg2[%c0_2, %c0_3] : memref<72x144xbf16, #tpu.memory_space<vmem>>, vector<72x144xbf16>
    %c0_4 = arith.constant 0 : index
    %c0_5 = arith.constant 0 : index
    %5 = vector.load %arg3[%c0_4, %c0_5] : memref<144x128xbf16, #tpu.memory_space<vmem>>, vector<144x128xbf16>
    %cst = arith.constant dense<0.000000e+00> : vector<72x128xf32>
    %6 = tpu.matmul %4, %5, %cst {dimension_numbers = #tpu.dot_dimension_numbers<[1], [0], [0], [1], [0, 0, 1, 1], [], []>} : vector<72x144xbf16>, vector<144x128xbf16>, vector<72x128xf32> -> vector<72x128xf32>
    %7 = arith.addf %3, %6 : vector<72x128xf32>
    %c0_6 = arith.constant 0 : index
    %c0_7 = arith.constant 0 : index
    %8 = vector.load %arg5[%c0_6, %c0_7] : memref<72x128xf32, #tpu.memory_space<vmem>>, vector<72x128xf32>
    tpu.vector_store %arg5[%c0_6, %c0_7], %7 {strides = array<i32>} : memref<72x128xf32, #tpu.memory_space<vmem>>, vector<72x128xf32>,
    %c0_i32_8 = arith.constant 0 : i32
    %9 = arith.cmpi eq, %arg1, %c0_i32_8 : i32
    %10 = arith.extui %9 : i1 to i32
    %c0_i32_9 = arith.constant 0 : i32
    %11 = arith.cmpi ne, %10, %c0_i32_9 : i32
    scf.if %11 {
      %c0_10 = arith.constant 0 : index
      %c0_11 = arith.constant 0 : index
      %12 = vector.load %arg5[%c0_10, %c0_11] : memref<72x128xf32, #tpu.memory_space<vmem>>, vector<72x128xf32>
      %c0_12 = arith.constant 0 : index
      %c0_13 = arith.constant 0 : index
      %13 = vector.load %arg4[%c0_12, %c0_13] : memref<72x128xf32, #tpu.memory_space<vmem>>, vector<72x128xf32>
      tpu.vector_store %arg4[%c0_12, %c0_13], %12 {strides = array<i32>} : memref<72x128xf32, #tpu.memory_space<vmem>>, vector<72x128xf32>,
    } else {
    }
    return
  }
  func.func @transform_0(%arg0: i32, %arg1: i32) -> (i32, i32) {
    %c0_i32 = arith.constant 0 : i32
    return %arg0, %arg1 : i32, i32
  }
  func.func @transform_1(%arg0: i32, %arg1: i32) -> (i32, i32) {
    %c0_i32 = arith.constant 0 : i32
    %c0_i32_0 = arith.constant 0 : i32
    return %arg1, %c0_i32 : i32, i32
  }
  func.func @transform_2(%arg0: i32, %arg1: i32) -> (i32, i32) {
    %c0_i32 = arith.constant 0 : i32
    %c0_i32_0 = arith.constant 0 : i32
    return %arg0, %c0_i32 : i32, i32
  }
}

module attributes {stable_mosaic.version = 11 : i64} {
  func.func @kernel(%arg0: i32, %arg1: memref<72x24xf32, #tpu.memory_space<vmem>>, %arg2: memref<1x24xf32, #tpu.memory_space<vmem>>, %arg3: memref<1x24xf32, #tpu.memory_space<vmem>>, %arg4: memref<1x24xf32, #tpu.memory_space<vmem>>, %arg5: memref<1x24xf32, #tpu.memory_space<vmem>>) attributes {dimension_semantics = [#tpu.dimension_semantics<arbitrary>], iteration_bounds = array<i64: 1>, scalar_prefetch = 0 : i64, scratch_operands = 2 : i64, tpu.core_type = #tpu.core_type<tc>, window_params = [{transform_indices = @transform_0, window_bounds = array<i64: 72, 24>}, {pipeline_mode = #tpu.pipeline_mode<synchronous>, transform_indices = @transform_1, window_bounds = array<i64: 1, 24>}, {pipeline_mode = #tpu.pipeline_mode<synchronous>, transform_indices = @transform_2, window_bounds = array<i64: 1, 24>}]} {
    %c0_i32 = arith.constant 0 : i32
    %0 = arith.cmpi eq, %arg0, %c0_i32 : i32
    %1 = arith.extui %0 : i1 to i32
    %c0_i32_0 = arith.constant 0 : i32
    %2 = arith.cmpi ne, %1, %c0_i32_0 : i32
    scf.if %2 {
      %cst_13 = arith.constant 0.000000e+00 : f32
      %18 = vector.broadcast %cst_13 : f32 to vector<1x24xf32>
      %c0_14 = arith.constant 0 : index
      %c0_15 = arith.constant 0 : index
      %19 = vector.load %arg4[%c0_14, %c0_15] : memref<1x24xf32, #tpu.memory_space<vmem>>, vector<1x24xf32>
      tpu.vector_store %arg4[%c0_14, %c0_15], %18 {strides = array<i32>} : memref<1x24xf32, #tpu.memory_space<vmem>>, vector<1x24xf32>,
      %cst_16 = arith.constant 0.000000e+00 : f32
      %20 = vector.broadcast %cst_16 : f32 to vector<1x24xf32>
      %c0_17 = arith.constant 0 : index
      %c0_18 = arith.constant 0 : index
      %21 = vector.load %arg5[%c0_17, %c0_18] : memref<1x24xf32, #tpu.memory_space<vmem>>, vector<1x24xf32>
      tpu.vector_store %arg5[%c0_17, %c0_18], %20 {strides = array<i32>} : memref<1x24xf32, #tpu.memory_space<vmem>>, vector<1x24xf32>,
    } else {
    }
    %c0 = arith.constant 0 : index
    %c0_1 = arith.constant 0 : index
    %3 = vector.load %arg1[%c0, %c0_1] : memref<72x24xf32, #tpu.memory_space<vmem>>, vector<72x24xf32>
    %c0_2 = arith.constant 0 : index
    %c0_3 = arith.constant 0 : index
    %4 = vector.load %arg4[%c0_2, %c0_3] : memref<1x24xf32, #tpu.memory_space<vmem>>, vector<1x24xf32>
    %cst = arith.constant dense<0.000000e+00> : vector<24xf32>
    %5 = vector.multi_reduction <add>, %3, %cst [0] : vector<72x24xf32> to vector<24xf32>
    %6 = vector.shape_cast %5 : vector<24xf32> to vector<1x24xf32>
    %7 = arith.addf %4, %6 : vector<1x24xf32>
    %c0_4 = arith.constant 0 : index
    %c0_5 = arith.constant 0 : index
    %8 = vector.load %arg4[%c0_4, %c0_5] : memref<1x24xf32, #tpu.memory_space<vmem>>, vector<1x24xf32>
    tpu.vector_store %arg4[%c0_4, %c0_5], %7 {strides = array<i32>} : memref<1x24xf32, #tpu.memory_space<vmem>>, vector<1x24xf32>,
    %c0_6 = arith.constant 0 : index
    %c0_7 = arith.constant 0 : index
    %9 = vector.load %arg5[%c0_6, %c0_7] : memref<1x24xf32, #tpu.memory_space<vmem>>, vector<1x24xf32>
    %10 = arith.mulf %3, %3 : vector<72x24xf32>
    %cst_8 = arith.constant dense<0.000000e+00> : vector<24xf32>
    %11 = vector.multi_reduction <add>, %10, %cst_8 [0] : vector<72x24xf32> to vector<24xf32>
    %12 = vector.shape_cast %11 : vector<24xf32> to vector<1x24xf32>
    %13 = arith.addf %9, %12 : vector<1x24xf32>
    %c0_9 = arith.constant 0 : index
    %c0_10 = arith.constant 0 : index
    %14 = vector.load %arg5[%c0_9, %c0_10] : memref<1x24xf32, #tpu.memory_space<vmem>>, vector<1x24xf32>
    tpu.vector_store %arg5[%c0_9, %c0_10], %13 {strides = array<i32>} : memref<1x24xf32, #tpu.memory_space<vmem>>, vector<1x24xf32>,
    %c0_i32_11 = arith.constant 0 : i32
    %15 = arith.cmpi eq, %arg0, %c0_i32_11 : i32
    %16 = arith.extui %15 : i1 to i32
    %c0_i32_12 = arith.constant 0 : i32
    %17 = arith.cmpi ne, %16, %c0_i32_12 : i32
    scf.if %17 {
      %c0_13 = arith.constant 0 : index
      %c0_14 = arith.constant 0 : index
      %18 = vector.load %arg4[%c0_13, %c0_14] : memref<1x24xf32, #tpu.memory_space<vmem>>, vector<1x24xf32>
      %cst_15 = arith.constant 0.013888889 : f32
      %19 = vector.broadcast %cst_15 : f32 to vector<1x24xf32>
      %20 = arith.mulf %18, %19 : vector<1x24xf32>
      %c0_16 = arith.constant 0 : index
      %c0_17 = arith.constant 0 : index
      %21 = vector.load %arg5[%c0_16, %c0_17] : memref<1x24xf32, #tpu.memory_space<vmem>>, vector<1x24xf32>
      %cst_18 = arith.constant 0.013888889 : f32
      %22 = vector.broadcast %cst_18 : f32 to vector<1x24xf32>
      %23 = arith.mulf %21, %22 : vector<1x24xf32>
      %24 = arith.mulf %20, %20 : vector<1x24xf32>
      %25 = arith.subf %23, %24 : vector<1x24xf32>
      %cst_19 = arith.constant 0.000000e+00 : f32
      %26 = vector.broadcast %cst_19 : f32 to vector<1x24xf32>
      %27 = arith.maximumf %25, %26 : vector<1x24xf32>
      %cst_20 = arith.constant 9.99999974E-6 : f32
      %28 = vector.broadcast %cst_20 : f32 to vector<1x24xf32>
      %29 = arith.addf %27, %28 : vector<1x24xf32>
      %30 = math.rsqrt %29 : vector<1x24xf32>
      %c0_21 = arith.constant 0 : index
      %c0_22 = arith.constant 0 : index
      %31 = vector.load %arg2[%c0_21, %c0_22] : memref<1x24xf32, #tpu.memory_space<vmem>>, vector<1x24xf32>
      tpu.vector_store %arg2[%c0_21, %c0_22], %30 {strides = array<i32>} : memref<1x24xf32, #tpu.memory_space<vmem>>, vector<1x24xf32>,
      %cst_23 = arith.constant 0.000000e+00 : f32
      %32 = vector.broadcast %cst_23 : f32 to vector<1x24xf32>
      %33 = arith.subf %32, %20 : vector<1x24xf32>
      %34 = arith.mulf %33, %30 : vector<1x24xf32>
      %c0_24 = arith.constant 0 : index
      %c0_25 = arith.constant 0 : index
      %35 = vector.load %arg3[%c0_24, %c0_25] : memref<1x24xf32, #tpu.memory_space<vmem>>, vector<1x24xf32>
      tpu.vector_store %arg3[%c0_24, %c0_25], %34 {strides = array<i32>} : memref<1x24xf32, #tpu.memory_space<vmem>>, vector<1x24xf32>,
    } else {
    }
    return
  }
  func.func @transform_0(%arg0: i32) -> (i32, i32) {
    %c0_i32 = arith.constant 0 : i32
    %c0_i32_0 = arith.constant 0 : i32
    return %arg0, %c0_i32 : i32, i32
  }
  func.func @transform_1(%arg0: i32) -> (i32, i32) {
    %c0_i32 = arith.constant 0 : i32
    %c0_i32_0 = arith.constant 0 : i32
    %c0_i32_1 = arith.constant 0 : i32
    return %c0_i32, %c0_i32_0 : i32, i32
  }
  func.func @transform_2(%arg0: i32) -> (i32, i32) {
    %c0_i32 = arith.constant 0 : i32
    %c0_i32_0 = arith.constant 0 : i32
    %c0_i32_1 = arith.constant 0 : i32
    return %c0_i32, %c0_i32_0 : i32, i32
  }
}

module attributes {stable_mosaic.version = 11 : i64} {
  func.func @_norm_relu_mm_kernel(%arg0: i32, %arg1: i32, %arg2: memref<72x24xf32, #tpu.memory_space<vmem>>, %arg3: memref<1x24xf32, #tpu.memory_space<vmem>>, %arg4: memref<1x24xf32, #tpu.memory_space<vmem>>, %arg5: memref<24x128xbf16, #tpu.memory_space<vmem>>, %arg6: memref<72x128xf32, #tpu.memory_space<vmem>>, %arg7: memref<72x128xf32, #tpu.memory_space<vmem>>) attributes {dimension_semantics = [#tpu.dimension_semantics<parallel>, #tpu.dimension_semantics<arbitrary>], iteration_bounds = array<i64: 1, 1>, scalar_prefetch = 0 : i64, scratch_operands = 1 : i64, tpu.core_type = #tpu.core_type<tc>, window_params = [{transform_indices = @transform_0, window_bounds = array<i64: 72, 24>}, {transform_indices = @transform_1, window_bounds = array<i64: 1, 24>}, {transform_indices = @transform_2, window_bounds = array<i64: 1, 24>}, {transform_indices = @transform_3, window_bounds = array<i64: 24, 128>}, {transform_indices = @transform_4, window_bounds = array<i64: 72, 128>}]} {
    %c0_i32 = arith.constant 0 : i32
    %0 = arith.cmpi eq, %arg1, %c0_i32 : i32
    %1 = arith.extui %0 : i1 to i32
    %c0_i32_0 = arith.constant 0 : i32
    %2 = arith.cmpi ne, %1, %c0_i32_0 : i32
    scf.if %2 {
      %cst_15 = arith.constant 0.000000e+00 : f32
      %21 = vector.broadcast %cst_15 : f32 to vector<72x128xf32>
      %c0_16 = arith.constant 0 : index
      %c0_17 = arith.constant 0 : index
      %22 = vector.load %arg7[%c0_16, %c0_17] : memref<72x128xf32, #tpu.memory_space<vmem>>, vector<72x128xf32>
      tpu.vector_store %arg7[%c0_16, %c0_17], %21 {strides = array<i32>} : memref<72x128xf32, #tpu.memory_space<vmem>>, vector<72x128xf32>,
    } else {
    }
    %c0 = arith.constant 0 : index
    %c0_1 = arith.constant 0 : index
    %3 = vector.load %arg2[%c0, %c0_1] : memref<72x24xf32, #tpu.memory_space<vmem>>, vector<72x24xf32>
    %c0_2 = arith.constant 0 : index
    %c0_3 = arith.constant 0 : index
    %4 = vector.load %arg3[%c0_2, %c0_3] : memref<1x24xf32, #tpu.memory_space<vmem>>, vector<1x24xf32>
    %5 = vector.broadcast %4 : vector<1x24xf32> to vector<72x24xf32>
    %6 = arith.mulf %3, %5 : vector<72x24xf32>
    %c0_4 = arith.constant 0 : index
    %c0_5 = arith.constant 0 : index
    %7 = vector.load %arg4[%c0_4, %c0_5] : memref<1x24xf32, #tpu.memory_space<vmem>>, vector<1x24xf32>
    %8 = vector.broadcast %7 : vector<1x24xf32> to vector<72x24xf32>
    %9 = arith.addf %6, %8 : vector<72x24xf32>
    %cst = arith.constant 0.000000e+00 : f32
    %10 = vector.broadcast %cst : f32 to vector<72x24xf32>
    %11 = arith.maximumf %9, %10 : vector<72x24xf32>
    %c0_6 = arith.constant 0 : index
    %c0_7 = arith.constant 0 : index
    %12 = vector.load %arg7[%c0_6, %c0_7] : memref<72x128xf32, #tpu.memory_space<vmem>>, vector<72x128xf32>
    %13 = arith.truncf %11 : vector<72x24xf32> to vector<72x24xbf16>
    %c0_8 = arith.constant 0 : index
    %c0_9 = arith.constant 0 : index
    %14 = vector.load %arg5[%c0_8, %c0_9] : memref<24x128xbf16, #tpu.memory_space<vmem>>, vector<24x128xbf16>
    %cst_10 = arith.constant dense<0.000000e+00> : vector<72x128xf32>
    %15 = tpu.matmul %13, %14, %cst_10 {dimension_numbers = #tpu.dot_dimension_numbers<[1], [0], [0], [1], [0, 0, 1, 1], [], []>} : vector<72x24xbf16>, vector<24x128xbf16>, vector<72x128xf32> -> vector<72x128xf32>
    %16 = arith.addf %12, %15 : vector<72x128xf32>
    %c0_11 = arith.constant 0 : index
    %c0_12 = arith.constant 0 : index
    %17 = vector.load %arg7[%c0_11, %c0_12] : memref<72x128xf32, #tpu.memory_space<vmem>>, vector<72x128xf32>
    tpu.vector_store %arg7[%c0_11, %c0_12], %16 {strides = array<i32>} : memref<72x128xf32, #tpu.memory_space<vmem>>, vector<72x128xf32>,
    %c0_i32_13 = arith.constant 0 : i32
    %18 = arith.cmpi eq, %arg1, %c0_i32_13 : i32
    %19 = arith.extui %18 : i1 to i32
    %c0_i32_14 = arith.constant 0 : i32
    %20 = arith.cmpi ne, %19, %c0_i32_14 : i32
    scf.if %20 {
      %c0_15 = arith.constant 0 : index
      %c0_16 = arith.constant 0 : index
      %21 = vector.load %arg7[%c0_15, %c0_16] : memref<72x128xf32, #tpu.memory_space<vmem>>, vector<72x128xf32>
      %c0_17 = arith.constant 0 : index
      %c0_18 = arith.constant 0 : index
      %22 = vector.load %arg6[%c0_17, %c0_18] : memref<72x128xf32, #tpu.memory_space<vmem>>, vector<72x128xf32>
      tpu.vector_store %arg6[%c0_17, %c0_18], %21 {strides = array<i32>} : memref<72x128xf32, #tpu.memory_space<vmem>>, vector<72x128xf32>,
    } else {
    }
    return
  }
  func.func @transform_0(%arg0: i32, %arg1: i32) -> (i32, i32) {
    %c0_i32 = arith.constant 0 : i32
    return %arg0, %arg1 : i32, i32
  }
  func.func @transform_1(%arg0: i32, %arg1: i32) -> (i32, i32) {
    %c0_i32 = arith.constant 0 : i32
    %c0_i32_0 = arith.constant 0 : i32
    return %c0_i32, %arg1 : i32, i32
  }
  func.func @transform_2(%arg0: i32, %arg1: i32) -> (i32, i32) {
    %c0_i32 = arith.constant 0 : i32
    %c0_i32_0 = arith.constant 0 : i32
    return %c0_i32, %arg1 : i32, i32
  }
  func.func @transform_3(%arg0: i32, %arg1: i32) -> (i32, i32) {
    %c0_i32 = arith.constant 0 : i32
    %c0_i32_0 = arith.constant 0 : i32
    return %arg1, %c0_i32 : i32, i32
  }
  func.func @transform_4(%arg0: i32, %arg1: i32) -> (i32, i32) {
    %c0_i32 = arith.constant 0 : i32
    %c0_i32_0 = arith.constant 0 : i32
    return %arg0, %c0_i32 : i32, i32
  }
}

module attributes {stable_mosaic.version = 11 : i64} {
  func.func @kernel(%arg0: i32, %arg1: memref<72x32xf32, #tpu.memory_space<vmem>>, %arg2: memref<1x32xf32, #tpu.memory_space<vmem>>, %arg3: memref<1x32xf32, #tpu.memory_space<vmem>>, %arg4: memref<1x32xf32, #tpu.memory_space<vmem>>, %arg5: memref<1x32xf32, #tpu.memory_space<vmem>>) attributes {dimension_semantics = [#tpu.dimension_semantics<arbitrary>], iteration_bounds = array<i64: 1>, scalar_prefetch = 0 : i64, scratch_operands = 2 : i64, tpu.core_type = #tpu.core_type<tc>, window_params = [{transform_indices = @transform_0, window_bounds = array<i64: 72, 32>}, {pipeline_mode = #tpu.pipeline_mode<synchronous>, transform_indices = @transform_1, window_bounds = array<i64: 1, 32>}, {pipeline_mode = #tpu.pipeline_mode<synchronous>, transform_indices = @transform_2, window_bounds = array<i64: 1, 32>}]} {
    %c0_i32 = arith.constant 0 : i32
    %0 = arith.cmpi eq, %arg0, %c0_i32 : i32
    %1 = arith.extui %0 : i1 to i32
    %c0_i32_0 = arith.constant 0 : i32
    %2 = arith.cmpi ne, %1, %c0_i32_0 : i32
    scf.if %2 {
      %cst_13 = arith.constant 0.000000e+00 : f32
      %18 = vector.broadcast %cst_13 : f32 to vector<1x32xf32>
      %c0_14 = arith.constant 0 : index
      %c0_15 = arith.constant 0 : index
      %19 = vector.load %arg4[%c0_14, %c0_15] : memref<1x32xf32, #tpu.memory_space<vmem>>, vector<1x32xf32>
      tpu.vector_store %arg4[%c0_14, %c0_15], %18 {strides = array<i32>} : memref<1x32xf32, #tpu.memory_space<vmem>>, vector<1x32xf32>,
      %cst_16 = arith.constant 0.000000e+00 : f32
      %20 = vector.broadcast %cst_16 : f32 to vector<1x32xf32>
      %c0_17 = arith.constant 0 : index
      %c0_18 = arith.constant 0 : index
      %21 = vector.load %arg5[%c0_17, %c0_18] : memref<1x32xf32, #tpu.memory_space<vmem>>, vector<1x32xf32>
      tpu.vector_store %arg5[%c0_17, %c0_18], %20 {strides = array<i32>} : memref<1x32xf32, #tpu.memory_space<vmem>>, vector<1x32xf32>,
    } else {
    }
    %c0 = arith.constant 0 : index
    %c0_1 = arith.constant 0 : index
    %3 = vector.load %arg1[%c0, %c0_1] : memref<72x32xf32, #tpu.memory_space<vmem>>, vector<72x32xf32>
    %c0_2 = arith.constant 0 : index
    %c0_3 = arith.constant 0 : index
    %4 = vector.load %arg4[%c0_2, %c0_3] : memref<1x32xf32, #tpu.memory_space<vmem>>, vector<1x32xf32>
    %cst = arith.constant dense<0.000000e+00> : vector<32xf32>
    %5 = vector.multi_reduction <add>, %3, %cst [0] : vector<72x32xf32> to vector<32xf32>
    %6 = vector.shape_cast %5 : vector<32xf32> to vector<1x32xf32>
    %7 = arith.addf %4, %6 : vector<1x32xf32>
    %c0_4 = arith.constant 0 : index
    %c0_5 = arith.constant 0 : index
    %8 = vector.load %arg4[%c0_4, %c0_5] : memref<1x32xf32, #tpu.memory_space<vmem>>, vector<1x32xf32>
    tpu.vector_store %arg4[%c0_4, %c0_5], %7 {strides = array<i32>} : memref<1x32xf32, #tpu.memory_space<vmem>>, vector<1x32xf32>,
    %c0_6 = arith.constant 0 : index
    %c0_7 = arith.constant 0 : index
    %9 = vector.load %arg5[%c0_6, %c0_7] : memref<1x32xf32, #tpu.memory_space<vmem>>, vector<1x32xf32>
    %10 = arith.mulf %3, %3 : vector<72x32xf32>
    %cst_8 = arith.constant dense<0.000000e+00> : vector<32xf32>
    %11 = vector.multi_reduction <add>, %10, %cst_8 [0] : vector<72x32xf32> to vector<32xf32>
    %12 = vector.shape_cast %11 : vector<32xf32> to vector<1x32xf32>
    %13 = arith.addf %9, %12 : vector<1x32xf32>
    %c0_9 = arith.constant 0 : index
    %c0_10 = arith.constant 0 : index
    %14 = vector.load %arg5[%c0_9, %c0_10] : memref<1x32xf32, #tpu.memory_space<vmem>>, vector<1x32xf32>
    tpu.vector_store %arg5[%c0_9, %c0_10], %13 {strides = array<i32>} : memref<1x32xf32, #tpu.memory_space<vmem>>, vector<1x32xf32>,
    %c0_i32_11 = arith.constant 0 : i32
    %15 = arith.cmpi eq, %arg0, %c0_i32_11 : i32
    %16 = arith.extui %15 : i1 to i32
    %c0_i32_12 = arith.constant 0 : i32
    %17 = arith.cmpi ne, %16, %c0_i32_12 : i32
    scf.if %17 {
      %c0_13 = arith.constant 0 : index
      %c0_14 = arith.constant 0 : index
      %18 = vector.load %arg4[%c0_13, %c0_14] : memref<1x32xf32, #tpu.memory_space<vmem>>, vector<1x32xf32>
      %cst_15 = arith.constant 0.013888889 : f32
      %19 = vector.broadcast %cst_15 : f32 to vector<1x32xf32>
      %20 = arith.mulf %18, %19 : vector<1x32xf32>
      %c0_16 = arith.constant 0 : index
      %c0_17 = arith.constant 0 : index
      %21 = vector.load %arg5[%c0_16, %c0_17] : memref<1x32xf32, #tpu.memory_space<vmem>>, vector<1x32xf32>
      %cst_18 = arith.constant 0.013888889 : f32
      %22 = vector.broadcast %cst_18 : f32 to vector<1x32xf32>
      %23 = arith.mulf %21, %22 : vector<1x32xf32>
      %24 = arith.mulf %20, %20 : vector<1x32xf32>
      %25 = arith.subf %23, %24 : vector<1x32xf32>
      %cst_19 = arith.constant 0.000000e+00 : f32
      %26 = vector.broadcast %cst_19 : f32 to vector<1x32xf32>
      %27 = arith.maximumf %25, %26 : vector<1x32xf32>
      %cst_20 = arith.constant 9.99999974E-6 : f32
      %28 = vector.broadcast %cst_20 : f32 to vector<1x32xf32>
      %29 = arith.addf %27, %28 : vector<1x32xf32>
      %30 = math.rsqrt %29 : vector<1x32xf32>
      %c0_21 = arith.constant 0 : index
      %c0_22 = arith.constant 0 : index
      %31 = vector.load %arg2[%c0_21, %c0_22] : memref<1x32xf32, #tpu.memory_space<vmem>>, vector<1x32xf32>
      tpu.vector_store %arg2[%c0_21, %c0_22], %30 {strides = array<i32>} : memref<1x32xf32, #tpu.memory_space<vmem>>, vector<1x32xf32>,
      %cst_23 = arith.constant 0.000000e+00 : f32
      %32 = vector.broadcast %cst_23 : f32 to vector<1x32xf32>
      %33 = arith.subf %32, %20 : vector<1x32xf32>
      %34 = arith.mulf %33, %30 : vector<1x32xf32>
      %c0_24 = arith.constant 0 : index
      %c0_25 = arith.constant 0 : index
      %35 = vector.load %arg3[%c0_24, %c0_25] : memref<1x32xf32, #tpu.memory_space<vmem>>, vector<1x32xf32>
      tpu.vector_store %arg3[%c0_24, %c0_25], %34 {strides = array<i32>} : memref<1x32xf32, #tpu.memory_space<vmem>>, vector<1x32xf32>,
    } else {
    }
    return
  }
  func.func @transform_0(%arg0: i32) -> (i32, i32) {
    %c0_i32 = arith.constant 0 : i32
    %c0_i32_0 = arith.constant 0 : i32
    return %arg0, %c0_i32 : i32, i32
  }
  func.func @transform_1(%arg0: i32) -> (i32, i32) {
    %c0_i32 = arith.constant 0 : i32
    %c0_i32_0 = arith.constant 0 : i32
    %c0_i32_1 = arith.constant 0 : i32
    return %c0_i32, %c0_i32_0 : i32, i32
  }
  func.func @transform_2(%arg0: i32) -> (i32, i32) {
    %c0_i32 = arith.constant 0 : i32
    %c0_i32_0 = arith.constant 0 : i32
    %c0_i32_1 = arith.constant 0 : i32
    return %c0_i32, %c0_i32_0 : i32, i32
  }
}

module attributes {stable_mosaic.version = 11 : i64} {
  func.func @_norm_relu_mm_kernel(%arg0: i32, %arg1: i32, %arg2: memref<72x32xf32, #tpu.memory_space<vmem>>, %arg3: memref<1x32xf32, #tpu.memory_space<vmem>>, %arg4: memref<1x32xf32, #tpu.memory_space<vmem>>, %arg5: memref<32x128xbf16, #tpu.memory_space<vmem>>, %arg6: memref<72x128xf32, #tpu.memory_space<vmem>>, %arg7: memref<72x128xf32, #tpu.memory_space<vmem>>) attributes {dimension_semantics = [#tpu.dimension_semantics<parallel>, #tpu.dimension_semantics<arbitrary>], iteration_bounds = array<i64: 1, 1>, scalar_prefetch = 0 : i64, scratch_operands = 1 : i64, tpu.core_type = #tpu.core_type<tc>, window_params = [{transform_indices = @transform_0, window_bounds = array<i64: 72, 32>}, {transform_indices = @transform_1, window_bounds = array<i64: 1, 32>}, {transform_indices = @transform_2, window_bounds = array<i64: 1, 32>}, {transform_indices = @transform_3, window_bounds = array<i64: 32, 128>}, {transform_indices = @transform_4, window_bounds = array<i64: 72, 128>}]} {
    %c0_i32 = arith.constant 0 : i32
    %0 = arith.cmpi eq, %arg1, %c0_i32 : i32
    %1 = arith.extui %0 : i1 to i32
    %c0_i32_0 = arith.constant 0 : i32
    %2 = arith.cmpi ne, %1, %c0_i32_0 : i32
    scf.if %2 {
      %cst_15 = arith.constant 0.000000e+00 : f32
      %21 = vector.broadcast %cst_15 : f32 to vector<72x128xf32>
      %c0_16 = arith.constant 0 : index
      %c0_17 = arith.constant 0 : index
      %22 = vector.load %arg7[%c0_16, %c0_17] : memref<72x128xf32, #tpu.memory_space<vmem>>, vector<72x128xf32>
      tpu.vector_store %arg7[%c0_16, %c0_17], %21 {strides = array<i32>} : memref<72x128xf32, #tpu.memory_space<vmem>>, vector<72x128xf32>,
    } else {
    }
    %c0 = arith.constant 0 : index
    %c0_1 = arith.constant 0 : index
    %3 = vector.load %arg2[%c0, %c0_1] : memref<72x32xf32, #tpu.memory_space<vmem>>, vector<72x32xf32>
    %c0_2 = arith.constant 0 : index
    %c0_3 = arith.constant 0 : index
    %4 = vector.load %arg3[%c0_2, %c0_3] : memref<1x32xf32, #tpu.memory_space<vmem>>, vector<1x32xf32>
    %5 = vector.broadcast %4 : vector<1x32xf32> to vector<72x32xf32>
    %6 = arith.mulf %3, %5 : vector<72x32xf32>
    %c0_4 = arith.constant 0 : index
    %c0_5 = arith.constant 0 : index
    %7 = vector.load %arg4[%c0_4, %c0_5] : memref<1x32xf32, #tpu.memory_space<vmem>>, vector<1x32xf32>
    %8 = vector.broadcast %7 : vector<1x32xf32> to vector<72x32xf32>
    %9 = arith.addf %6, %8 : vector<72x32xf32>
    %cst = arith.constant 0.000000e+00 : f32
    %10 = vector.broadcast %cst : f32 to vector<72x32xf32>
    %11 = arith.maximumf %9, %10 : vector<72x32xf32>
    %c0_6 = arith.constant 0 : index
    %c0_7 = arith.constant 0 : index
    %12 = vector.load %arg7[%c0_6, %c0_7] : memref<72x128xf32, #tpu.memory_space<vmem>>, vector<72x128xf32>
    %13 = arith.truncf %11 : vector<72x32xf32> to vector<72x32xbf16>
    %c0_8 = arith.constant 0 : index
    %c0_9 = arith.constant 0 : index
    %14 = vector.load %arg5[%c0_8, %c0_9] : memref<32x128xbf16, #tpu.memory_space<vmem>>, vector<32x128xbf16>
    %cst_10 = arith.constant dense<0.000000e+00> : vector<72x128xf32>
    %15 = tpu.matmul %13, %14, %cst_10 {dimension_numbers = #tpu.dot_dimension_numbers<[1], [0], [0], [1], [0, 0, 1, 1], [], []>} : vector<72x32xbf16>, vector<32x128xbf16>, vector<72x128xf32> -> vector<72x128xf32>
    %16 = arith.addf %12, %15 : vector<72x128xf32>
    %c0_11 = arith.constant 0 : index
    %c0_12 = arith.constant 0 : index
    %17 = vector.load %arg7[%c0_11, %c0_12] : memref<72x128xf32, #tpu.memory_space<vmem>>, vector<72x128xf32>
    tpu.vector_store %arg7[%c0_11, %c0_12], %16 {strides = array<i32>} : memref<72x128xf32, #tpu.memory_space<vmem>>, vector<72x128xf32>,
    %c0_i32_13 = arith.constant 0 : i32
    %18 = arith.cmpi eq, %arg1, %c0_i32_13 : i32
    %19 = arith.extui %18 : i1 to i32
    %c0_i32_14 = arith.constant 0 : i32
    %20 = arith.cmpi ne, %19, %c0_i32_14 : i32
    scf.if %20 {
      %c0_15 = arith.constant 0 : index
      %c0_16 = arith.constant 0 : index
      %21 = vector.load %arg7[%c0_15, %c0_16] : memref<72x128xf32, #tpu.memory_space<vmem>>, vector<72x128xf32>
      %c0_17 = arith.constant 0 : index
      %c0_18 = arith.constant 0 : index
      %22 = vector.load %arg6[%c0_17, %c0_18] : memref<72x128xf32, #tpu.memory_space<vmem>>, vector<72x128xf32>
      tpu.vector_store %arg6[%c0_17, %c0_18], %21 {strides = array<i32>} : memref<72x128xf32, #tpu.memory_space<vmem>>, vector<72x128xf32>,
    } else {
    }
    return
  }
  func.func @transform_0(%arg0: i32, %arg1: i32) -> (i32, i32) {
    %c0_i32 = arith.constant 0 : i32
    return %arg0, %arg1 : i32, i32
  }
  func.func @transform_1(%arg0: i32, %arg1: i32) -> (i32, i32) {
    %c0_i32 = arith.constant 0 : i32
    %c0_i32_0 = arith.constant 0 : i32
    return %c0_i32, %arg1 : i32, i32
  }
  func.func @transform_2(%arg0: i32, %arg1: i32) -> (i32, i32) {
    %c0_i32 = arith.constant 0 : i32
    %c0_i32_0 = arith.constant 0 : i32
    return %c0_i32, %arg1 : i32, i32
  }
  func.func @transform_3(%arg0: i32, %arg1: i32) -> (i32, i32) {
    %c0_i32 = arith.constant 0 : i32
    %c0_i32_0 = arith.constant 0 : i32
    return %arg1, %c0_i32 : i32, i32
  }
  func.func @transform_4(%arg0: i32, %arg1: i32) -> (i32, i32) {
    %c0_i32 = arith.constant 0 : i32
    %c0_i32_0 = arith.constant 0 : i32
    return %arg0, %c0_i32 : i32, i32
  }
}

module attributes {stable_mosaic.version = 11 : i64} {
  func.func @kernel(%arg0: i32, %arg1: memref<24x16xf32, #tpu.memory_space<vmem>>, %arg2: memref<1x16xf32, #tpu.memory_space<vmem>>, %arg3: memref<1x16xf32, #tpu.memory_space<vmem>>, %arg4: memref<1x16xf32, #tpu.memory_space<vmem>>, %arg5: memref<1x16xf32, #tpu.memory_space<vmem>>) attributes {dimension_semantics = [#tpu.dimension_semantics<arbitrary>], iteration_bounds = array<i64: 1>, scalar_prefetch = 0 : i64, scratch_operands = 2 : i64, tpu.core_type = #tpu.core_type<tc>, window_params = [{transform_indices = @transform_0, window_bounds = array<i64: 24, 16>}, {pipeline_mode = #tpu.pipeline_mode<synchronous>, transform_indices = @transform_1, window_bounds = array<i64: 1, 16>}, {pipeline_mode = #tpu.pipeline_mode<synchronous>, transform_indices = @transform_2, window_bounds = array<i64: 1, 16>}]} {
    %c0_i32 = arith.constant 0 : i32
    %0 = arith.cmpi eq, %arg0, %c0_i32 : i32
    %1 = arith.extui %0 : i1 to i32
    %c0_i32_0 = arith.constant 0 : i32
    %2 = arith.cmpi ne, %1, %c0_i32_0 : i32
    scf.if %2 {
      %cst_13 = arith.constant 0.000000e+00 : f32
      %18 = vector.broadcast %cst_13 : f32 to vector<1x16xf32>
      %c0_14 = arith.constant 0 : index
      %c0_15 = arith.constant 0 : index
      %19 = vector.load %arg4[%c0_14, %c0_15] : memref<1x16xf32, #tpu.memory_space<vmem>>, vector<1x16xf32>
      tpu.vector_store %arg4[%c0_14, %c0_15], %18 {strides = array<i32>} : memref<1x16xf32, #tpu.memory_space<vmem>>, vector<1x16xf32>,
      %cst_16 = arith.constant 0.000000e+00 : f32
      %20 = vector.broadcast %cst_16 : f32 to vector<1x16xf32>
      %c0_17 = arith.constant 0 : index
      %c0_18 = arith.constant 0 : index
      %21 = vector.load %arg5[%c0_17, %c0_18] : memref<1x16xf32, #tpu.memory_space<vmem>>, vector<1x16xf32>
      tpu.vector_store %arg5[%c0_17, %c0_18], %20 {strides = array<i32>} : memref<1x16xf32, #tpu.memory_space<vmem>>, vector<1x16xf32>,
    } else {
    }
    %c0 = arith.constant 0 : index
    %c0_1 = arith.constant 0 : index
    %3 = vector.load %arg1[%c0, %c0_1] : memref<24x16xf32, #tpu.memory_space<vmem>>, vector<24x16xf32>
    %c0_2 = arith.constant 0 : index
    %c0_3 = arith.constant 0 : index
    %4 = vector.load %arg4[%c0_2, %c0_3] : memref<1x16xf32, #tpu.memory_space<vmem>>, vector<1x16xf32>
    %cst = arith.constant dense<0.000000e+00> : vector<16xf32>
    %5 = vector.multi_reduction <add>, %3, %cst [0] : vector<24x16xf32> to vector<16xf32>
    %6 = vector.shape_cast %5 : vector<16xf32> to vector<1x16xf32>
    %7 = arith.addf %4, %6 : vector<1x16xf32>
    %c0_4 = arith.constant 0 : index
    %c0_5 = arith.constant 0 : index
    %8 = vector.load %arg4[%c0_4, %c0_5] : memref<1x16xf32, #tpu.memory_space<vmem>>, vector<1x16xf32>
    tpu.vector_store %arg4[%c0_4, %c0_5], %7 {strides = array<i32>} : memref<1x16xf32, #tpu.memory_space<vmem>>, vector<1x16xf32>,
    %c0_6 = arith.constant 0 : index
    %c0_7 = arith.constant 0 : index
    %9 = vector.load %arg5[%c0_6, %c0_7] : memref<1x16xf32, #tpu.memory_space<vmem>>, vector<1x16xf32>
    %10 = arith.mulf %3, %3 : vector<24x16xf32>
    %cst_8 = arith.constant dense<0.000000e+00> : vector<16xf32>
    %11 = vector.multi_reduction <add>, %10, %cst_8 [0] : vector<24x16xf32> to vector<16xf32>
    %12 = vector.shape_cast %11 : vector<16xf32> to vector<1x16xf32>
    %13 = arith.addf %9, %12 : vector<1x16xf32>
    %c0_9 = arith.constant 0 : index
    %c0_10 = arith.constant 0 : index
    %14 = vector.load %arg5[%c0_9, %c0_10] : memref<1x16xf32, #tpu.memory_space<vmem>>, vector<1x16xf32>
    tpu.vector_store %arg5[%c0_9, %c0_10], %13 {strides = array<i32>} : memref<1x16xf32, #tpu.memory_space<vmem>>, vector<1x16xf32>,
    %c0_i32_11 = arith.constant 0 : i32
    %15 = arith.cmpi eq, %arg0, %c0_i32_11 : i32
    %16 = arith.extui %15 : i1 to i32
    %c0_i32_12 = arith.constant 0 : i32
    %17 = arith.cmpi ne, %16, %c0_i32_12 : i32
    scf.if %17 {
      %c0_13 = arith.constant 0 : index
      %c0_14 = arith.constant 0 : index
      %18 = vector.load %arg4[%c0_13, %c0_14] : memref<1x16xf32, #tpu.memory_space<vmem>>, vector<1x16xf32>
      %cst_15 = arith.constant 0.055555556 : f32
      %19 = vector.broadcast %cst_15 : f32 to vector<1x16xf32>
      %20 = arith.mulf %18, %19 : vector<1x16xf32>
      %c0_16 = arith.constant 0 : index
      %c0_17 = arith.constant 0 : index
      %21 = vector.load %arg5[%c0_16, %c0_17] : memref<1x16xf32, #tpu.memory_space<vmem>>, vector<1x16xf32>
      %cst_18 = arith.constant 0.055555556 : f32
      %22 = vector.broadcast %cst_18 : f32 to vector<1x16xf32>
      %23 = arith.mulf %21, %22 : vector<1x16xf32>
      %24 = arith.mulf %20, %20 : vector<1x16xf32>
      %25 = arith.subf %23, %24 : vector<1x16xf32>
      %cst_19 = arith.constant 0.000000e+00 : f32
      %26 = vector.broadcast %cst_19 : f32 to vector<1x16xf32>
      %27 = arith.maximumf %25, %26 : vector<1x16xf32>
      %cst_20 = arith.constant 9.99999974E-6 : f32
      %28 = vector.broadcast %cst_20 : f32 to vector<1x16xf32>
      %29 = arith.addf %27, %28 : vector<1x16xf32>
      %30 = math.rsqrt %29 : vector<1x16xf32>
      %c0_21 = arith.constant 0 : index
      %c0_22 = arith.constant 0 : index
      %31 = vector.load %arg2[%c0_21, %c0_22] : memref<1x16xf32, #tpu.memory_space<vmem>>, vector<1x16xf32>
      tpu.vector_store %arg2[%c0_21, %c0_22], %30 {strides = array<i32>} : memref<1x16xf32, #tpu.memory_space<vmem>>, vector<1x16xf32>,
      %cst_23 = arith.constant 0.000000e+00 : f32
      %32 = vector.broadcast %cst_23 : f32 to vector<1x16xf32>
      %33 = arith.subf %32, %20 : vector<1x16xf32>
      %34 = arith.mulf %33, %30 : vector<1x16xf32>
      %c0_24 = arith.constant 0 : index
      %c0_25 = arith.constant 0 : index
      %35 = vector.load %arg3[%c0_24, %c0_25] : memref<1x16xf32, #tpu.memory_space<vmem>>, vector<1x16xf32>
      tpu.vector_store %arg3[%c0_24, %c0_25], %34 {strides = array<i32>} : memref<1x16xf32, #tpu.memory_space<vmem>>, vector<1x16xf32>,
    } else {
    }
    return
  }
  func.func @transform_0(%arg0: i32) -> (i32, i32) {
    %c0_i32 = arith.constant 0 : i32
    %c0_i32_0 = arith.constant 0 : i32
    return %arg0, %c0_i32 : i32, i32
  }
  func.func @transform_1(%arg0: i32) -> (i32, i32) {
    %c0_i32 = arith.constant 0 : i32
    %c0_i32_0 = arith.constant 0 : i32
    %c0_i32_1 = arith.constant 0 : i32
    return %c0_i32, %c0_i32_0 : i32, i32
  }
  func.func @transform_2(%arg0: i32) -> (i32, i32) {
    %c0_i32 = arith.constant 0 : i32
    %c0_i32_0 = arith.constant 0 : i32
    %c0_i32_1 = arith.constant 0 : i32
    return %c0_i32, %c0_i32_0 : i32, i32
  }
}

module attributes {stable_mosaic.version = 11 : i64} {
  func.func @_norm_relu_mm_kernel(%arg0: i32, %arg1: i32, %arg2: memref<24x16xf32, #tpu.memory_space<vmem>>, %arg3: memref<1x16xf32, #tpu.memory_space<vmem>>, %arg4: memref<1x16xf32, #tpu.memory_space<vmem>>, %arg5: memref<16x128xbf16, #tpu.memory_space<vmem>>, %arg6: memref<24x128xf32, #tpu.memory_space<vmem>>, %arg7: memref<24x128xf32, #tpu.memory_space<vmem>>) attributes {dimension_semantics = [#tpu.dimension_semantics<parallel>, #tpu.dimension_semantics<arbitrary>], iteration_bounds = array<i64: 1, 1>, scalar_prefetch = 0 : i64, scratch_operands = 1 : i64, tpu.core_type = #tpu.core_type<tc>, window_params = [{transform_indices = @transform_0, window_bounds = array<i64: 24, 16>}, {transform_indices = @transform_1, window_bounds = array<i64: 1, 16>}, {transform_indices = @transform_2, window_bounds = array<i64: 1, 16>}, {transform_indices = @transform_3, window_bounds = array<i64: 16, 128>}, {transform_indices = @transform_4, window_bounds = array<i64: 24, 128>}]} {
    %c0_i32 = arith.constant 0 : i32
    %0 = arith.cmpi eq, %arg1, %c0_i32 : i32
    %1 = arith.extui %0 : i1 to i32
    %c0_i32_0 = arith.constant 0 : i32
    %2 = arith.cmpi ne, %1, %c0_i32_0 : i32
    scf.if %2 {
      %cst_15 = arith.constant 0.000000e+00 : f32
      %21 = vector.broadcast %cst_15 : f32 to vector<24x128xf32>
      %c0_16 = arith.constant 0 : index
      %c0_17 = arith.constant 0 : index
      %22 = vector.load %arg7[%c0_16, %c0_17] : memref<24x128xf32, #tpu.memory_space<vmem>>, vector<24x128xf32>
      tpu.vector_store %arg7[%c0_16, %c0_17], %21 {strides = array<i32>} : memref<24x128xf32, #tpu.memory_space<vmem>>, vector<24x128xf32>,
    } else {
    }
    %c0 = arith.constant 0 : index
    %c0_1 = arith.constant 0 : index
    %3 = vector.load %arg2[%c0, %c0_1] : memref<24x16xf32, #tpu.memory_space<vmem>>, vector<24x16xf32>
    %c0_2 = arith.constant 0 : index
    %c0_3 = arith.constant 0 : index
    %4 = vector.load %arg3[%c0_2, %c0_3] : memref<1x16xf32, #tpu.memory_space<vmem>>, vector<1x16xf32>
    %5 = vector.broadcast %4 : vector<1x16xf32> to vector<24x16xf32>
    %6 = arith.mulf %3, %5 : vector<24x16xf32>
    %c0_4 = arith.constant 0 : index
    %c0_5 = arith.constant 0 : index
    %7 = vector.load %arg4[%c0_4, %c0_5] : memref<1x16xf32, #tpu.memory_space<vmem>>, vector<1x16xf32>
    %8 = vector.broadcast %7 : vector<1x16xf32> to vector<24x16xf32>
    %9 = arith.addf %6, %8 : vector<24x16xf32>
    %cst = arith.constant 0.000000e+00 : f32
    %10 = vector.broadcast %cst : f32 to vector<24x16xf32>
    %11 = arith.maximumf %9, %10 : vector<24x16xf32>
    %c0_6 = arith.constant 0 : index
    %c0_7 = arith.constant 0 : index
    %12 = vector.load %arg7[%c0_6, %c0_7] : memref<24x128xf32, #tpu.memory_space<vmem>>, vector<24x128xf32>
    %13 = arith.truncf %11 : vector<24x16xf32> to vector<24x16xbf16>
    %c0_8 = arith.constant 0 : index
    %c0_9 = arith.constant 0 : index
    %14 = vector.load %arg5[%c0_8, %c0_9] : memref<16x128xbf16, #tpu.memory_space<vmem>>, vector<16x128xbf16>
    %cst_10 = arith.constant dense<0.000000e+00> : vector<24x128xf32>
    %15 = tpu.matmul %13, %14, %cst_10 {dimension_numbers = #tpu.dot_dimension_numbers<[1], [0], [0], [1], [0, 0, 1, 1], [], []>} : vector<24x16xbf16>, vector<16x128xbf16>, vector<24x128xf32> -> vector<24x128xf32>
    %16 = arith.addf %12, %15 : vector<24x128xf32>
    %c0_11 = arith.constant 0 : index
    %c0_12 = arith.constant 0 : index
    %17 = vector.load %arg7[%c0_11, %c0_12] : memref<24x128xf32, #tpu.memory_space<vmem>>, vector<24x128xf32>
    tpu.vector_store %arg7[%c0_11, %c0_12], %16 {strides = array<i32>} : memref<24x128xf32, #tpu.memory_space<vmem>>, vector<24x128xf32>,
    %c0_i32_13 = arith.constant 0 : i32
    %18 = arith.cmpi eq, %arg1, %c0_i32_13 : i32
    %19 = arith.extui %18 : i1 to i32
    %c0_i32_14 = arith.constant 0 : i32
    %20 = arith.cmpi ne, %19, %c0_i32_14 : i32
    scf.if %20 {
      %c0_15 = arith.constant 0 : index
      %c0_16 = arith.constant 0 : index
      %21 = vector.load %arg7[%c0_15, %c0_16] : memref<24x128xf32, #tpu.memory_space<vmem>>, vector<24x128xf32>
      %c0_17 = arith.constant 0 : index
      %c0_18 = arith.constant 0 : index
      %22 = vector.load %arg6[%c0_17, %c0_18] : memref<24x128xf32, #tpu.memory_space<vmem>>, vector<24x128xf32>
      tpu.vector_store %arg6[%c0_17, %c0_18], %21 {strides = array<i32>} : memref<24x128xf32, #tpu.memory_space<vmem>>, vector<24x128xf32>,
    } else {
    }
    return
  }
  func.func @transform_0(%arg0: i32, %arg1: i32) -> (i32, i32) {
    %c0_i32 = arith.constant 0 : i32
    return %arg0, %arg1 : i32, i32
  }
  func.func @transform_1(%arg0: i32, %arg1: i32) -> (i32, i32) {
    %c0_i32 = arith.constant 0 : i32
    %c0_i32_0 = arith.constant 0 : i32
    return %c0_i32, %arg1 : i32, i32
  }
  func.func @transform_2(%arg0: i32, %arg1: i32) -> (i32, i32) {
    %c0_i32 = arith.constant 0 : i32
    %c0_i32_0 = arith.constant 0 : i32
    return %c0_i32, %arg1 : i32, i32
  }
  func.func @transform_3(%arg0: i32, %arg1: i32) -> (i32, i32) {
    %c0_i32 = arith.constant 0 : i32
    %c0_i32_0 = arith.constant 0 : i32
    return %arg1, %c0_i32 : i32, i32
  }
  func.func @transform_4(%arg0: i32, %arg1: i32) -> (i32, i32) {
    %c0_i32 = arith.constant 0 : i32
    %c0_i32_0 = arith.constant 0 : i32
    return %arg0, %c0_i32 : i32, i32
  }
}

module attributes {stable_mosaic.version = 11 : i64} {
  func.func @_norm_relu_kernel(%arg0: i32, %arg1: memref<24x16xf32, #tpu.memory_space<vmem>>, %arg2: memref<1x16xf32, #tpu.memory_space<vmem>>, %arg3: memref<1x16xf32, #tpu.memory_space<vmem>>, %arg4: memref<24x16xf32, #tpu.memory_space<vmem>>) attributes {dimension_semantics = [#tpu.dimension_semantics<parallel>], iteration_bounds = array<i64: 1>, scalar_prefetch = 0 : i64, scratch_operands = 0 : i64, tpu.core_type = #tpu.core_type<tc>, window_params = [{transform_indices = @transform_0, window_bounds = array<i64: 24, 16>}, {pipeline_mode = #tpu.pipeline_mode<synchronous>, transform_indices = @transform_1, window_bounds = array<i64: 1, 16>}, {pipeline_mode = #tpu.pipeline_mode<synchronous>, transform_indices = @transform_2, window_bounds = array<i64: 1, 16>}, {transform_indices = @transform_3, window_bounds = array<i64: 24, 16>}]} {
    %c0 = arith.constant 0 : index
    %c0_0 = arith.constant 0 : index
    %0 = vector.load %arg1[%c0, %c0_0] : memref<24x16xf32, #tpu.memory_space<vmem>>, vector<24x16xf32>
    %c0_1 = arith.constant 0 : index
    %c0_2 = arith.constant 0 : index
    %1 = vector.load %arg2[%c0_1, %c0_2] : memref<1x16xf32, #tpu.memory_space<vmem>>, vector<1x16xf32>
    %2 = vector.broadcast %1 : vector<1x16xf32> to vector<24x16xf32>
    %3 = arith.mulf %0, %2 : vector<24x16xf32>
    %c0_3 = arith.constant 0 : index
    %c0_4 = arith.constant 0 : index
    %4 = vector.load %arg3[%c0_3, %c0_4] : memref<1x16xf32, #tpu.memory_space<vmem>>, vector<1x16xf32>
    %5 = vector.broadcast %4 : vector<1x16xf32> to vector<24x16xf32>
    %6 = arith.addf %3, %5 : vector<24x16xf32>
    %cst = arith.constant 0.000000e+00 : f32
    %7 = vector.broadcast %cst : f32 to vector<24x16xf32>
    %8 = arith.maximumf %6, %7 : vector<24x16xf32>
    %c0_5 = arith.constant 0 : index
    %c0_6 = arith.constant 0 : index
    %9 = vector.load %arg4[%c0_5, %c0_6] : memref<24x16xf32, #tpu.memory_space<vmem>>, vector<24x16xf32>
    tpu.vector_store %arg4[%c0_5, %c0_6], %8 {strides = array<i32>} : memref<24x16xf32, #tpu.memory_space<vmem>>, vector<24x16xf32>,
    return
  }
  func.func @transform_0(%arg0: i32) -> (i32, i32) {
    %c0_i32 = arith.constant 0 : i32
    %c0_i32_0 = arith.constant 0 : i32
    return %arg0, %c0_i32 : i32, i32
  }
  func.func @transform_1(%arg0: i32) -> (i32, i32) {
    %c0_i32 = arith.constant 0 : i32
    %c0_i32_0 = arith.constant 0 : i32
    %c0_i32_1 = arith.constant 0 : i32
    return %c0_i32, %c0_i32_0 : i32, i32
  }
  func.func @transform_2(%arg0: i32) -> (i32, i32) {
    %c0_i32 = arith.constant 0 : i32
    %c0_i32_0 = arith.constant 0 : i32
    %c0_i32_1 = arith.constant 0 : i32
    return %c0_i32, %c0_i32_0 : i32, i32
  }
  func.func @transform_3(%arg0: i32) -> (i32, i32) {
    %c0_i32 = arith.constant 0 : i32
    %c0_i32_0 = arith.constant 0 : i32
    return %arg0, %c0_i32 : i32, i32
  }
}

module attributes {stable_mosaic.version = 11 : i64} {
  func.func @_mm_kernel(%arg0: i32, %arg1: i32, %arg2: memref<24x144xbf16, #tpu.memory_space<vmem>>, %arg3: memref<144x128xbf16, #tpu.memory_space<vmem>>, %arg4: memref<24x128xf32, #tpu.memory_space<vmem>>, %arg5: memref<24x128xf32, #tpu.memory_space<vmem>>) attributes {dimension_semantics = [#tpu.dimension_semantics<parallel>, #tpu.dimension_semantics<arbitrary>], iteration_bounds = array<i64: 1, 1>, scalar_prefetch = 0 : i64, scratch_operands = 1 : i64, tpu.core_type = #tpu.core_type<tc>, window_params = [{transform_indices = @transform_0, window_bounds = array<i64: 24, 144>}, {transform_indices = @transform_1, window_bounds = array<i64: 144, 128>}, {transform_indices = @transform_2, window_bounds = array<i64: 24, 128>}]} {
    %c0_i32 = arith.constant 0 : i32
    %0 = arith.cmpi eq, %arg1, %c0_i32 : i32
    %1 = arith.extui %0 : i1 to i32
    %c0_i32_0 = arith.constant 0 : i32
    %2 = arith.cmpi ne, %1, %c0_i32_0 : i32
    scf.if %2 {
      %cst_10 = arith.constant 0.000000e+00 : f32
      %12 = vector.broadcast %cst_10 : f32 to vector<24x128xf32>
      %c0_11 = arith.constant 0 : index
      %c0_12 = arith.constant 0 : index
      %13 = vector.load %arg5[%c0_11, %c0_12] : memref<24x128xf32, #tpu.memory_space<vmem>>, vector<24x128xf32>
      tpu.vector_store %arg5[%c0_11, %c0_12], %12 {strides = array<i32>} : memref<24x128xf32, #tpu.memory_space<vmem>>, vector<24x128xf32>,
    } else {
    }
    %c0 = arith.constant 0 : index
    %c0_1 = arith.constant 0 : index
    %3 = vector.load %arg5[%c0, %c0_1] : memref<24x128xf32, #tpu.memory_space<vmem>>, vector<24x128xf32>
    %c0_2 = arith.constant 0 : index
    %c0_3 = arith.constant 0 : index
    %4 = vector.load %arg2[%c0_2, %c0_3] : memref<24x144xbf16, #tpu.memory_space<vmem>>, vector<24x144xbf16>
    %c0_4 = arith.constant 0 : index
    %c0_5 = arith.constant 0 : index
    %5 = vector.load %arg3[%c0_4, %c0_5] : memref<144x128xbf16, #tpu.memory_space<vmem>>, vector<144x128xbf16>
    %cst = arith.constant dense<0.000000e+00> : vector<24x128xf32>
    %6 = tpu.matmul %4, %5, %cst {dimension_numbers = #tpu.dot_dimension_numbers<[1], [0], [0], [1], [0, 0, 1, 1], [], []>} : vector<24x144xbf16>, vector<144x128xbf16>, vector<24x128xf32> -> vector<24x128xf32>
    %7 = arith.addf %3, %6 : vector<24x128xf32>
    %c0_6 = arith.constant 0 : index
    %c0_7 = arith.constant 0 : index
    %8 = vector.load %arg5[%c0_6, %c0_7] : memref<24x128xf32, #tpu.memory_space<vmem>>, vector<24x128xf32>
    tpu.vector_store %arg5[%c0_6, %c0_7], %7 {strides = array<i32>} : memref<24x128xf32, #tpu.memory_space<vmem>>, vector<24x128xf32>,
    %c0_i32_8 = arith.constant 0 : i32
    %9 = arith.cmpi eq, %arg1, %c0_i32_8 : i32
    %10 = arith.extui %9 : i1 to i32
    %c0_i32_9 = arith.constant 0 : i32
    %11 = arith.cmpi ne, %10, %c0_i32_9 : i32
    scf.if %11 {
      %c0_10 = arith.constant 0 : index
      %c0_11 = arith.constant 0 : index
      %12 = vector.load %arg5[%c0_10, %c0_11] : memref<24x128xf32, #tpu.memory_space<vmem>>, vector<24x128xf32>
      %c0_12 = arith.constant 0 : index
      %c0_13 = arith.constant 0 : index
      %13 = vector.load %arg4[%c0_12, %c0_13] : memref<24x128xf32, #tpu.memory_space<vmem>>, vector<24x128xf32>
      tpu.vector_store %arg4[%c0_12, %c0_13], %12 {strides = array<i32>} : memref<24x128xf32, #tpu.memory_space<vmem>>, vector<24x128xf32>,
    } else {
    }
    return
  }
  func.func @transform_0(%arg0: i32, %arg1: i32) -> (i32, i32) {
    %c0_i32 = arith.constant 0 : i32
    return %arg0, %arg1 : i32, i32
  }
  func.func @transform_1(%arg0: i32, %arg1: i32) -> (i32, i32) {
    %c0_i32 = arith.constant 0 : i32
    %c0_i32_0 = arith.constant 0 : i32
    return %arg1, %c0_i32 : i32, i32
  }
  func.func @transform_2(%arg0: i32, %arg1: i32) -> (i32, i32) {
    %c0_i32 = arith.constant 0 : i32
    %c0_i32_0 = arith.constant 0 : i32
    return %arg0, %c0_i32 : i32, i32
  }
}

module attributes {stable_mosaic.version = 11 : i64} {
  func.func @kernel(%arg0: i32, %arg1: memref<24x24xf32, #tpu.memory_space<vmem>>, %arg2: memref<1x24xf32, #tpu.memory_space<vmem>>, %arg3: memref<1x24xf32, #tpu.memory_space<vmem>>, %arg4: memref<1x24xf32, #tpu.memory_space<vmem>>, %arg5: memref<1x24xf32, #tpu.memory_space<vmem>>) attributes {dimension_semantics = [#tpu.dimension_semantics<arbitrary>], iteration_bounds = array<i64: 1>, scalar_prefetch = 0 : i64, scratch_operands = 2 : i64, tpu.core_type = #tpu.core_type<tc>, window_params = [{transform_indices = @transform_0, window_bounds = array<i64: 24, 24>}, {pipeline_mode = #tpu.pipeline_mode<synchronous>, transform_indices = @transform_1, window_bounds = array<i64: 1, 24>}, {pipeline_mode = #tpu.pipeline_mode<synchronous>, transform_indices = @transform_2, window_bounds = array<i64: 1, 24>}]} {
    %c0_i32 = arith.constant 0 : i32
    %0 = arith.cmpi eq, %arg0, %c0_i32 : i32
    %1 = arith.extui %0 : i1 to i32
    %c0_i32_0 = arith.constant 0 : i32
    %2 = arith.cmpi ne, %1, %c0_i32_0 : i32
    scf.if %2 {
      %cst_13 = arith.constant 0.000000e+00 : f32
      %18 = vector.broadcast %cst_13 : f32 to vector<1x24xf32>
      %c0_14 = arith.constant 0 : index
      %c0_15 = arith.constant 0 : index
      %19 = vector.load %arg4[%c0_14, %c0_15] : memref<1x24xf32, #tpu.memory_space<vmem>>, vector<1x24xf32>
      tpu.vector_store %arg4[%c0_14, %c0_15], %18 {strides = array<i32>} : memref<1x24xf32, #tpu.memory_space<vmem>>, vector<1x24xf32>,
      %cst_16 = arith.constant 0.000000e+00 : f32
      %20 = vector.broadcast %cst_16 : f32 to vector<1x24xf32>
      %c0_17 = arith.constant 0 : index
      %c0_18 = arith.constant 0 : index
      %21 = vector.load %arg5[%c0_17, %c0_18] : memref<1x24xf32, #tpu.memory_space<vmem>>, vector<1x24xf32>
      tpu.vector_store %arg5[%c0_17, %c0_18], %20 {strides = array<i32>} : memref<1x24xf32, #tpu.memory_space<vmem>>, vector<1x24xf32>,
    } else {
    }
    %c0 = arith.constant 0 : index
    %c0_1 = arith.constant 0 : index
    %3 = vector.load %arg1[%c0, %c0_1] : memref<24x24xf32, #tpu.memory_space<vmem>>, vector<24x24xf32>
    %c0_2 = arith.constant 0 : index
    %c0_3 = arith.constant 0 : index
    %4 = vector.load %arg4[%c0_2, %c0_3] : memref<1x24xf32, #tpu.memory_space<vmem>>, vector<1x24xf32>
    %cst = arith.constant dense<0.000000e+00> : vector<24xf32>
    %5 = vector.multi_reduction <add>, %3, %cst [0] : vector<24x24xf32> to vector<24xf32>
    %6 = vector.shape_cast %5 : vector<24xf32> to vector<1x24xf32>
    %7 = arith.addf %4, %6 : vector<1x24xf32>
    %c0_4 = arith.constant 0 : index
    %c0_5 = arith.constant 0 : index
    %8 = vector.load %arg4[%c0_4, %c0_5] : memref<1x24xf32, #tpu.memory_space<vmem>>, vector<1x24xf32>
    tpu.vector_store %arg4[%c0_4, %c0_5], %7 {strides = array<i32>} : memref<1x24xf32, #tpu.memory_space<vmem>>, vector<1x24xf32>,
    %c0_6 = arith.constant 0 : index
    %c0_7 = arith.constant 0 : index
    %9 = vector.load %arg5[%c0_6, %c0_7] : memref<1x24xf32, #tpu.memory_space<vmem>>, vector<1x24xf32>
    %10 = arith.mulf %3, %3 : vector<24x24xf32>
    %cst_8 = arith.constant dense<0.000000e+00> : vector<24xf32>
    %11 = vector.multi_reduction <add>, %10, %cst_8 [0] : vector<24x24xf32> to vector<24xf32>
    %12 = vector.shape_cast %11 : vector<24xf32> to vector<1x24xf32>
    %13 = arith.addf %9, %12 : vector<1x24xf32>
    %c0_9 = arith.constant 0 : index
    %c0_10 = arith.constant 0 : index
    %14 = vector.load %arg5[%c0_9, %c0_10] : memref<1x24xf32, #tpu.memory_space<vmem>>, vector<1x24xf32>
    tpu.vector_store %arg5[%c0_9, %c0_10], %13 {strides = array<i32>} : memref<1x24xf32, #tpu.memory_space<vmem>>, vector<1x24xf32>,
    %c0_i32_11 = arith.constant 0 : i32
    %15 = arith.cmpi eq, %arg0, %c0_i32_11 : i32
    %16 = arith.extui %15 : i1 to i32
    %c0_i32_12 = arith.constant 0 : i32
    %17 = arith.cmpi ne, %16, %c0_i32_12 : i32
    scf.if %17 {
      %c0_13 = arith.constant 0 : index
      %c0_14 = arith.constant 0 : index
      %18 = vector.load %arg4[%c0_13, %c0_14] : memref<1x24xf32, #tpu.memory_space<vmem>>, vector<1x24xf32>
      %cst_15 = arith.constant 0.055555556 : f32
      %19 = vector.broadcast %cst_15 : f32 to vector<1x24xf32>
      %20 = arith.mulf %18, %19 : vector<1x24xf32>
      %c0_16 = arith.constant 0 : index
      %c0_17 = arith.constant 0 : index
      %21 = vector.load %arg5[%c0_16, %c0_17] : memref<1x24xf32, #tpu.memory_space<vmem>>, vector<1x24xf32>
      %cst_18 = arith.constant 0.055555556 : f32
      %22 = vector.broadcast %cst_18 : f32 to vector<1x24xf32>
      %23 = arith.mulf %21, %22 : vector<1x24xf32>
      %24 = arith.mulf %20, %20 : vector<1x24xf32>
      %25 = arith.subf %23, %24 : vector<1x24xf32>
      %cst_19 = arith.constant 0.000000e+00 : f32
      %26 = vector.broadcast %cst_19 : f32 to vector<1x24xf32>
      %27 = arith.maximumf %25, %26 : vector<1x24xf32>
      %cst_20 = arith.constant 9.99999974E-6 : f32
      %28 = vector.broadcast %cst_20 : f32 to vector<1x24xf32>
      %29 = arith.addf %27, %28 : vector<1x24xf32>
      %30 = math.rsqrt %29 : vector<1x24xf32>
      %c0_21 = arith.constant 0 : index
      %c0_22 = arith.constant 0 : index
      %31 = vector.load %arg2[%c0_21, %c0_22] : memref<1x24xf32, #tpu.memory_space<vmem>>, vector<1x24xf32>
      tpu.vector_store %arg2[%c0_21, %c0_22], %30 {strides = array<i32>} : memref<1x24xf32, #tpu.memory_space<vmem>>, vector<1x24xf32>,
      %cst_23 = arith.constant 0.000000e+00 : f32
      %32 = vector.broadcast %cst_23 : f32 to vector<1x24xf32>
      %33 = arith.subf %32, %20 : vector<1x24xf32>
      %34 = arith.mulf %33, %30 : vector<1x24xf32>
      %c0_24 = arith.constant 0 : index
      %c0_25 = arith.constant 0 : index
      %35 = vector.load %arg3[%c0_24, %c0_25] : memref<1x24xf32, #tpu.memory_space<vmem>>, vector<1x24xf32>
      tpu.vector_store %arg3[%c0_24, %c0_25], %34 {strides = array<i32>} : memref<1x24xf32, #tpu.memory_space<vmem>>, vector<1x24xf32>,
    } else {
    }
    return
  }
  func.func @transform_0(%arg0: i32) -> (i32, i32) {
    %c0_i32 = arith.constant 0 : i32
    %c0_i32_0 = arith.constant 0 : i32
    return %arg0, %c0_i32 : i32, i32
  }
  func.func @transform_1(%arg0: i32) -> (i32, i32) {
    %c0_i32 = arith.constant 0 : i32
    %c0_i32_0 = arith.constant 0 : i32
    %c0_i32_1 = arith.constant 0 : i32
    return %c0_i32, %c0_i32_0 : i32, i32
  }
  func.func @transform_2(%arg0: i32) -> (i32, i32) {
    %c0_i32 = arith.constant 0 : i32
    %c0_i32_0 = arith.constant 0 : i32
    %c0_i32_1 = arith.constant 0 : i32
    return %c0_i32, %c0_i32_0 : i32, i32
  }
}

module attributes {stable_mosaic.version = 11 : i64} {
  func.func @_norm_relu_mm_kernel(%arg0: i32, %arg1: i32, %arg2: memref<24x24xf32, #tpu.memory_space<vmem>>, %arg3: memref<1x24xf32, #tpu.memory_space<vmem>>, %arg4: memref<1x24xf32, #tpu.memory_space<vmem>>, %arg5: memref<24x128xbf16, #tpu.memory_space<vmem>>, %arg6: memref<24x128xf32, #tpu.memory_space<vmem>>, %arg7: memref<24x128xf32, #tpu.memory_space<vmem>>) attributes {dimension_semantics = [#tpu.dimension_semantics<parallel>, #tpu.dimension_semantics<arbitrary>], iteration_bounds = array<i64: 1, 1>, scalar_prefetch = 0 : i64, scratch_operands = 1 : i64, tpu.core_type = #tpu.core_type<tc>, window_params = [{transform_indices = @transform_0, window_bounds = array<i64: 24, 24>}, {transform_indices = @transform_1, window_bounds = array<i64: 1, 24>}, {transform_indices = @transform_2, window_bounds = array<i64: 1, 24>}, {transform_indices = @transform_3, window_bounds = array<i64: 24, 128>}, {transform_indices = @transform_4, window_bounds = array<i64: 24, 128>}]} {
    %c0_i32 = arith.constant 0 : i32
    %0 = arith.cmpi eq, %arg1, %c0_i32 : i32
    %1 = arith.extui %0 : i1 to i32
    %c0_i32_0 = arith.constant 0 : i32
    %2 = arith.cmpi ne, %1, %c0_i32_0 : i32
    scf.if %2 {
      %cst_15 = arith.constant 0.000000e+00 : f32
      %21 = vector.broadcast %cst_15 : f32 to vector<24x128xf32>
      %c0_16 = arith.constant 0 : index
      %c0_17 = arith.constant 0 : index
      %22 = vector.load %arg7[%c0_16, %c0_17] : memref<24x128xf32, #tpu.memory_space<vmem>>, vector<24x128xf32>
      tpu.vector_store %arg7[%c0_16, %c0_17], %21 {strides = array<i32>} : memref<24x128xf32, #tpu.memory_space<vmem>>, vector<24x128xf32>,
    } else {
    }
    %c0 = arith.constant 0 : index
    %c0_1 = arith.constant 0 : index
    %3 = vector.load %arg2[%c0, %c0_1] : memref<24x24xf32, #tpu.memory_space<vmem>>, vector<24x24xf32>
    %c0_2 = arith.constant 0 : index
    %c0_3 = arith.constant 0 : index
    %4 = vector.load %arg3[%c0_2, %c0_3] : memref<1x24xf32, #tpu.memory_space<vmem>>, vector<1x24xf32>
    %5 = vector.broadcast %4 : vector<1x24xf32> to vector<24x24xf32>
    %6 = arith.mulf %3, %5 : vector<24x24xf32>
    %c0_4 = arith.constant 0 : index
    %c0_5 = arith.constant 0 : index
    %7 = vector.load %arg4[%c0_4, %c0_5] : memref<1x24xf32, #tpu.memory_space<vmem>>, vector<1x24xf32>
    %8 = vector.broadcast %7 : vector<1x24xf32> to vector<24x24xf32>
    %9 = arith.addf %6, %8 : vector<24x24xf32>
    %cst = arith.constant 0.000000e+00 : f32
    %10 = vector.broadcast %cst : f32 to vector<24x24xf32>
    %11 = arith.maximumf %9, %10 : vector<24x24xf32>
    %c0_6 = arith.constant 0 : index
    %c0_7 = arith.constant 0 : index
    %12 = vector.load %arg7[%c0_6, %c0_7] : memref<24x128xf32, #tpu.memory_space<vmem>>, vector<24x128xf32>
    %13 = arith.truncf %11 : vector<24x24xf32> to vector<24x24xbf16>
    %c0_8 = arith.constant 0 : index
    %c0_9 = arith.constant 0 : index
    %14 = vector.load %arg5[%c0_8, %c0_9] : memref<24x128xbf16, #tpu.memory_space<vmem>>, vector<24x128xbf16>
    %cst_10 = arith.constant dense<0.000000e+00> : vector<24x128xf32>
    %15 = tpu.matmul %13, %14, %cst_10 {dimension_numbers = #tpu.dot_dimension_numbers<[1], [0], [0], [1], [0, 0, 1, 1], [], []>} : vector<24x24xbf16>, vector<24x128xbf16>, vector<24x128xf32> -> vector<24x128xf32>
    %16 = arith.addf %12, %15 : vector<24x128xf32>
    %c0_11 = arith.constant 0 : index
    %c0_12 = arith.constant 0 : index
    %17 = vector.load %arg7[%c0_11, %c0_12] : memref<24x128xf32, #tpu.memory_space<vmem>>, vector<24x128xf32>
    tpu.vector_store %arg7[%c0_11, %c0_12], %16 {strides = array<i32>} : memref<24x128xf32, #tpu.memory_space<vmem>>, vector<24x128xf32>,
    %c0_i32_13 = arith.constant 0 : i32
    %18 = arith.cmpi eq, %arg1, %c0_i32_13 : i32
    %19 = arith.extui %18 : i1 to i32
    %c0_i32_14 = arith.constant 0 : i32
    %20 = arith.cmpi ne, %19, %c0_i32_14 : i32
    scf.if %20 {
      %c0_15 = arith.constant 0 : index
      %c0_16 = arith.constant 0 : index
      %21 = vector.load %arg7[%c0_15, %c0_16] : memref<24x128xf32, #tpu.memory_space<vmem>>, vector<24x128xf32>
      %c0_17 = arith.constant 0 : index
      %c0_18 = arith.constant 0 : index
      %22 = vector.load %arg6[%c0_17, %c0_18] : memref<24x128xf32, #tpu.memory_space<vmem>>, vector<24x128xf32>
      tpu.vector_store %arg6[%c0_17, %c0_18], %21 {strides = array<i32>} : memref<24x128xf32, #tpu.memory_space<vmem>>, vector<24x128xf32>,
    } else {
    }
    return
  }
  func.func @transform_0(%arg0: i32, %arg1: i32) -> (i32, i32) {
    %c0_i32 = arith.constant 0 : i32
    return %arg0, %arg1 : i32, i32
  }
  func.func @transform_1(%arg0: i32, %arg1: i32) -> (i32, i32) {
    %c0_i32 = arith.constant 0 : i32
    %c0_i32_0 = arith.constant 0 : i32
    return %c0_i32, %arg1 : i32, i32
  }
  func.func @transform_2(%arg0: i32, %arg1: i32) -> (i32, i32) {
    %c0_i32 = arith.constant 0 : i32
    %c0_i32_0 = arith.constant 0 : i32
    return %c0_i32, %arg1 : i32, i32
  }
  func.func @transform_3(%arg0: i32, %arg1: i32) -> (i32, i32) {
    %c0_i32 = arith.constant 0 : i32
    %c0_i32_0 = arith.constant 0 : i32
    return %arg1, %c0_i32 : i32, i32
  }
  func.func @transform_4(%arg0: i32, %arg1: i32) -> (i32, i32) {
    %c0_i32 = arith.constant 0 : i32
    %c0_i32_0 = arith.constant 0 : i32
    return %arg0, %c0_i32 : i32, i32
  }
}

module attributes {stable_mosaic.version = 11 : i64} {
  func.func @kernel(%arg0: i32, %arg1: memref<24x32xf32, #tpu.memory_space<vmem>>, %arg2: memref<1x32xf32, #tpu.memory_space<vmem>>, %arg3: memref<1x32xf32, #tpu.memory_space<vmem>>, %arg4: memref<1x32xf32, #tpu.memory_space<vmem>>, %arg5: memref<1x32xf32, #tpu.memory_space<vmem>>) attributes {dimension_semantics = [#tpu.dimension_semantics<arbitrary>], iteration_bounds = array<i64: 1>, scalar_prefetch = 0 : i64, scratch_operands = 2 : i64, tpu.core_type = #tpu.core_type<tc>, window_params = [{transform_indices = @transform_0, window_bounds = array<i64: 24, 32>}, {pipeline_mode = #tpu.pipeline_mode<synchronous>, transform_indices = @transform_1, window_bounds = array<i64: 1, 32>}, {pipeline_mode = #tpu.pipeline_mode<synchronous>, transform_indices = @transform_2, window_bounds = array<i64: 1, 32>}]} {
    %c0_i32 = arith.constant 0 : i32
    %0 = arith.cmpi eq, %arg0, %c0_i32 : i32
    %1 = arith.extui %0 : i1 to i32
    %c0_i32_0 = arith.constant 0 : i32
    %2 = arith.cmpi ne, %1, %c0_i32_0 : i32
    scf.if %2 {
      %cst_13 = arith.constant 0.000000e+00 : f32
      %18 = vector.broadcast %cst_13 : f32 to vector<1x32xf32>
      %c0_14 = arith.constant 0 : index
      %c0_15 = arith.constant 0 : index
      %19 = vector.load %arg4[%c0_14, %c0_15] : memref<1x32xf32, #tpu.memory_space<vmem>>, vector<1x32xf32>
      tpu.vector_store %arg4[%c0_14, %c0_15], %18 {strides = array<i32>} : memref<1x32xf32, #tpu.memory_space<vmem>>, vector<1x32xf32>,
      %cst_16 = arith.constant 0.000000e+00 : f32
      %20 = vector.broadcast %cst_16 : f32 to vector<1x32xf32>
      %c0_17 = arith.constant 0 : index
      %c0_18 = arith.constant 0 : index
      %21 = vector.load %arg5[%c0_17, %c0_18] : memref<1x32xf32, #tpu.memory_space<vmem>>, vector<1x32xf32>
      tpu.vector_store %arg5[%c0_17, %c0_18], %20 {strides = array<i32>} : memref<1x32xf32, #tpu.memory_space<vmem>>, vector<1x32xf32>,
    } else {
    }
    %c0 = arith.constant 0 : index
    %c0_1 = arith.constant 0 : index
    %3 = vector.load %arg1[%c0, %c0_1] : memref<24x32xf32, #tpu.memory_space<vmem>>, vector<24x32xf32>
    %c0_2 = arith.constant 0 : index
    %c0_3 = arith.constant 0 : index
    %4 = vector.load %arg4[%c0_2, %c0_3] : memref<1x32xf32, #tpu.memory_space<vmem>>, vector<1x32xf32>
    %cst = arith.constant dense<0.000000e+00> : vector<32xf32>
    %5 = vector.multi_reduction <add>, %3, %cst [0] : vector<24x32xf32> to vector<32xf32>
    %6 = vector.shape_cast %5 : vector<32xf32> to vector<1x32xf32>
    %7 = arith.addf %4, %6 : vector<1x32xf32>
    %c0_4 = arith.constant 0 : index
    %c0_5 = arith.constant 0 : index
    %8 = vector.load %arg4[%c0_4, %c0_5] : memref<1x32xf32, #tpu.memory_space<vmem>>, vector<1x32xf32>
    tpu.vector_store %arg4[%c0_4, %c0_5], %7 {strides = array<i32>} : memref<1x32xf32, #tpu.memory_space<vmem>>, vector<1x32xf32>,
    %c0_6 = arith.constant 0 : index
    %c0_7 = arith.constant 0 : index
    %9 = vector.load %arg5[%c0_6, %c0_7] : memref<1x32xf32, #tpu.memory_space<vmem>>, vector<1x32xf32>
    %10 = arith.mulf %3, %3 : vector<24x32xf32>
    %cst_8 = arith.constant dense<0.000000e+00> : vector<32xf32>
    %11 = vector.multi_reduction <add>, %10, %cst_8 [0] : vector<24x32xf32> to vector<32xf32>
    %12 = vector.shape_cast %11 : vector<32xf32> to vector<1x32xf32>
    %13 = arith.addf %9, %12 : vector<1x32xf32>
    %c0_9 = arith.constant 0 : index
    %c0_10 = arith.constant 0 : index
    %14 = vector.load %arg5[%c0_9, %c0_10] : memref<1x32xf32, #tpu.memory_space<vmem>>, vector<1x32xf32>
    tpu.vector_store %arg5[%c0_9, %c0_10], %13 {strides = array<i32>} : memref<1x32xf32, #tpu.memory_space<vmem>>, vector<1x32xf32>,
    %c0_i32_11 = arith.constant 0 : i32
    %15 = arith.cmpi eq, %arg0, %c0_i32_11 : i32
    %16 = arith.extui %15 : i1 to i32
    %c0_i32_12 = arith.constant 0 : i32
    %17 = arith.cmpi ne, %16, %c0_i32_12 : i32
    scf.if %17 {
      %c0_13 = arith.constant 0 : index
      %c0_14 = arith.constant 0 : index
      %18 = vector.load %arg4[%c0_13, %c0_14] : memref<1x32xf32, #tpu.memory_space<vmem>>, vector<1x32xf32>
      %cst_15 = arith.constant 0.055555556 : f32
      %19 = vector.broadcast %cst_15 : f32 to vector<1x32xf32>
      %20 = arith.mulf %18, %19 : vector<1x32xf32>
      %c0_16 = arith.constant 0 : index
      %c0_17 = arith.constant 0 : index
      %21 = vector.load %arg5[%c0_16, %c0_17] : memref<1x32xf32, #tpu.memory_space<vmem>>, vector<1x32xf32>
      %cst_18 = arith.constant 0.055555556 : f32
      %22 = vector.broadcast %cst_18 : f32 to vector<1x32xf32>
      %23 = arith.mulf %21, %22 : vector<1x32xf32>
      %24 = arith.mulf %20, %20 : vector<1x32xf32>
      %25 = arith.subf %23, %24 : vector<1x32xf32>
      %cst_19 = arith.constant 0.000000e+00 : f32
      %26 = vector.broadcast %cst_19 : f32 to vector<1x32xf32>
      %27 = arith.maximumf %25, %26 : vector<1x32xf32>
      %cst_20 = arith.constant 9.99999974E-6 : f32
      %28 = vector.broadcast %cst_20 : f32 to vector<1x32xf32>
      %29 = arith.addf %27, %28 : vector<1x32xf32>
      %30 = math.rsqrt %29 : vector<1x32xf32>
      %c0_21 = arith.constant 0 : index
      %c0_22 = arith.constant 0 : index
      %31 = vector.load %arg2[%c0_21, %c0_22] : memref<1x32xf32, #tpu.memory_space<vmem>>, vector<1x32xf32>
      tpu.vector_store %arg2[%c0_21, %c0_22], %30 {strides = array<i32>} : memref<1x32xf32, #tpu.memory_space<vmem>>, vector<1x32xf32>,
      %cst_23 = arith.constant 0.000000e+00 : f32
      %32 = vector.broadcast %cst_23 : f32 to vector<1x32xf32>
      %33 = arith.subf %32, %20 : vector<1x32xf32>
      %34 = arith.mulf %33, %30 : vector<1x32xf32>
      %c0_24 = arith.constant 0 : index
      %c0_25 = arith.constant 0 : index
      %35 = vector.load %arg3[%c0_24, %c0_25] : memref<1x32xf32, #tpu.memory_space<vmem>>, vector<1x32xf32>
      tpu.vector_store %arg3[%c0_24, %c0_25], %34 {strides = array<i32>} : memref<1x32xf32, #tpu.memory_space<vmem>>, vector<1x32xf32>,
    } else {
    }
    return
  }
  func.func @transform_0(%arg0: i32) -> (i32, i32) {
    %c0_i32 = arith.constant 0 : i32
    %c0_i32_0 = arith.constant 0 : i32
    return %arg0, %c0_i32 : i32, i32
  }
  func.func @transform_1(%arg0: i32) -> (i32, i32) {
    %c0_i32 = arith.constant 0 : i32
    %c0_i32_0 = arith.constant 0 : i32
    %c0_i32_1 = arith.constant 0 : i32
    return %c0_i32, %c0_i32_0 : i32, i32
  }
  func.func @transform_2(%arg0: i32) -> (i32, i32) {
    %c0_i32 = arith.constant 0 : i32
    %c0_i32_0 = arith.constant 0 : i32
    %c0_i32_1 = arith.constant 0 : i32
    return %c0_i32, %c0_i32_0 : i32, i32
  }
}

module attributes {stable_mosaic.version = 11 : i64} {
  func.func @_norm_relu_mm_kernel(%arg0: i32, %arg1: i32, %arg2: memref<24x32xf32, #tpu.memory_space<vmem>>, %arg3: memref<1x32xf32, #tpu.memory_space<vmem>>, %arg4: memref<1x32xf32, #tpu.memory_space<vmem>>, %arg5: memref<32x128xbf16, #tpu.memory_space<vmem>>, %arg6: memref<24x128xf32, #tpu.memory_space<vmem>>, %arg7: memref<24x128xf32, #tpu.memory_space<vmem>>) attributes {dimension_semantics = [#tpu.dimension_semantics<parallel>, #tpu.dimension_semantics<arbitrary>], iteration_bounds = array<i64: 1, 1>, scalar_prefetch = 0 : i64, scratch_operands = 1 : i64, tpu.core_type = #tpu.core_type<tc>, window_params = [{transform_indices = @transform_0, window_bounds = array<i64: 24, 32>}, {transform_indices = @transform_1, window_bounds = array<i64: 1, 32>}, {transform_indices = @transform_2, window_bounds = array<i64: 1, 32>}, {transform_indices = @transform_3, window_bounds = array<i64: 32, 128>}, {transform_indices = @transform_4, window_bounds = array<i64: 24, 128>}]} {
    %c0_i32 = arith.constant 0 : i32
    %0 = arith.cmpi eq, %arg1, %c0_i32 : i32
    %1 = arith.extui %0 : i1 to i32
    %c0_i32_0 = arith.constant 0 : i32
    %2 = arith.cmpi ne, %1, %c0_i32_0 : i32
    scf.if %2 {
      %cst_15 = arith.constant 0.000000e+00 : f32
      %21 = vector.broadcast %cst_15 : f32 to vector<24x128xf32>
      %c0_16 = arith.constant 0 : index
      %c0_17 = arith.constant 0 : index
      %22 = vector.load %arg7[%c0_16, %c0_17] : memref<24x128xf32, #tpu.memory_space<vmem>>, vector<24x128xf32>
      tpu.vector_store %arg7[%c0_16, %c0_17], %21 {strides = array<i32>} : memref<24x128xf32, #tpu.memory_space<vmem>>, vector<24x128xf32>,
    } else {
    }
    %c0 = arith.constant 0 : index
    %c0_1 = arith.constant 0 : index
    %3 = vector.load %arg2[%c0, %c0_1] : memref<24x32xf32, #tpu.memory_space<vmem>>, vector<24x32xf32>
    %c0_2 = arith.constant 0 : index
    %c0_3 = arith.constant 0 : index
    %4 = vector.load %arg3[%c0_2, %c0_3] : memref<1x32xf32, #tpu.memory_space<vmem>>, vector<1x32xf32>
    %5 = vector.broadcast %4 : vector<1x32xf32> to vector<24x32xf32>
    %6 = arith.mulf %3, %5 : vector<24x32xf32>
    %c0_4 = arith.constant 0 : index
    %c0_5 = arith.constant 0 : index
    %7 = vector.load %arg4[%c0_4, %c0_5] : memref<1x32xf32, #tpu.memory_space<vmem>>, vector<1x32xf32>
    %8 = vector.broadcast %7 : vector<1x32xf32> to vector<24x32xf32>
    %9 = arith.addf %6, %8 : vector<24x32xf32>
    %cst = arith.constant 0.000000e+00 : f32
    %10 = vector.broadcast %cst : f32 to vector<24x32xf32>
    %11 = arith.maximumf %9, %10 : vector<24x32xf32>
    %c0_6 = arith.constant 0 : index
    %c0_7 = arith.constant 0 : index
    %12 = vector.load %arg7[%c0_6, %c0_7] : memref<24x128xf32, #tpu.memory_space<vmem>>, vector<24x128xf32>
    %13 = arith.truncf %11 : vector<24x32xf32> to vector<24x32xbf16>
    %c0_8 = arith.constant 0 : index
    %c0_9 = arith.constant 0 : index
    %14 = vector.load %arg5[%c0_8, %c0_9] : memref<32x128xbf16, #tpu.memory_space<vmem>>, vector<32x128xbf16>
    %cst_10 = arith.constant dense<0.000000e+00> : vector<24x128xf32>
    %15 = tpu.matmul %13, %14, %cst_10 {dimension_numbers = #tpu.dot_dimension_numbers<[1], [0], [0], [1], [0, 0, 1, 1], [], []>} : vector<24x32xbf16>, vector<32x128xbf16>, vector<24x128xf32> -> vector<24x128xf32>
    %16 = arith.addf %12, %15 : vector<24x128xf32>
    %c0_11 = arith.constant 0 : index
    %c0_12 = arith.constant 0 : index
    %17 = vector.load %arg7[%c0_11, %c0_12] : memref<24x128xf32, #tpu.memory_space<vmem>>, vector<24x128xf32>
    tpu.vector_store %arg7[%c0_11, %c0_12], %16 {strides = array<i32>} : memref<24x128xf32, #tpu.memory_space<vmem>>, vector<24x128xf32>,
    %c0_i32_13 = arith.constant 0 : i32
    %18 = arith.cmpi eq, %arg1, %c0_i32_13 : i32
    %19 = arith.extui %18 : i1 to i32
    %c0_i32_14 = arith.constant 0 : i32
    %20 = arith.cmpi ne, %19, %c0_i32_14 : i32
    scf.if %20 {
      %c0_15 = arith.constant 0 : index
      %c0_16 = arith.constant 0 : index
      %21 = vector.load %arg7[%c0_15, %c0_16] : memref<24x128xf32, #tpu.memory_space<vmem>>, vector<24x128xf32>
      %c0_17 = arith.constant 0 : index
      %c0_18 = arith.constant 0 : index
      %22 = vector.load %arg6[%c0_17, %c0_18] : memref<24x128xf32, #tpu.memory_space<vmem>>, vector<24x128xf32>
      tpu.vector_store %arg6[%c0_17, %c0_18], %21 {strides = array<i32>} : memref<24x128xf32, #tpu.memory_space<vmem>>, vector<24x128xf32>,
    } else {
    }
    return
  }
  func.func @transform_0(%arg0: i32, %arg1: i32) -> (i32, i32) {
    %c0_i32 = arith.constant 0 : i32
    return %arg0, %arg1 : i32, i32
  }
  func.func @transform_1(%arg0: i32, %arg1: i32) -> (i32, i32) {
    %c0_i32 = arith.constant 0 : i32
    %c0_i32_0 = arith.constant 0 : i32
    return %c0_i32, %arg1 : i32, i32
  }
  func.func @transform_2(%arg0: i32, %arg1: i32) -> (i32, i32) {
    %c0_i32 = arith.constant 0 : i32
    %c0_i32_0 = arith.constant 0 : i32
    return %c0_i32, %arg1 : i32, i32
  }
  func.func @transform_3(%arg0: i32, %arg1: i32) -> (i32, i32) {
    %c0_i32 = arith.constant 0 : i32
    %c0_i32_0 = arith.constant 0 : i32
    return %arg1, %c0_i32 : i32, i32
  }
  func.func @transform_4(%arg0: i32, %arg1: i32) -> (i32, i32) {
    %c0_i32 = arith.constant 0 : i32
    %c0_i32_0 = arith.constant 0 : i32
    return %arg0, %c0_i32 : i32, i32
  }
}

module attributes {stable_mosaic.version = 11 : i64} {
  func.func @kernel(%arg0: i32, %arg1: memref<8x16xf32, #tpu.memory_space<vmem>>, %arg2: memref<1x16xf32, #tpu.memory_space<vmem>>, %arg3: memref<1x16xf32, #tpu.memory_space<vmem>>, %arg4: memref<1x16xf32, #tpu.memory_space<vmem>>, %arg5: memref<1x16xf32, #tpu.memory_space<vmem>>) attributes {dimension_semantics = [#tpu.dimension_semantics<arbitrary>], iteration_bounds = array<i64: 1>, scalar_prefetch = 0 : i64, scratch_operands = 2 : i64, tpu.core_type = #tpu.core_type<tc>, window_params = [{transform_indices = @transform_0, window_bounds = array<i64: 8, 16>}, {pipeline_mode = #tpu.pipeline_mode<synchronous>, transform_indices = @transform_1, window_bounds = array<i64: 1, 16>}, {pipeline_mode = #tpu.pipeline_mode<synchronous>, transform_indices = @transform_2, window_bounds = array<i64: 1, 16>}]} {
    %c0_i32 = arith.constant 0 : i32
    %0 = arith.cmpi eq, %arg0, %c0_i32 : i32
    %1 = arith.extui %0 : i1 to i32
    %c0_i32_0 = arith.constant 0 : i32
    %2 = arith.cmpi ne, %1, %c0_i32_0 : i32
    scf.if %2 {
      %cst_13 = arith.constant 0.000000e+00 : f32
      %18 = vector.broadcast %cst_13 : f32 to vector<1x16xf32>
      %c0_14 = arith.constant 0 : index
      %c0_15 = arith.constant 0 : index
      %19 = vector.load %arg4[%c0_14, %c0_15] : memref<1x16xf32, #tpu.memory_space<vmem>>, vector<1x16xf32>
      tpu.vector_store %arg4[%c0_14, %c0_15], %18 {strides = array<i32>} : memref<1x16xf32, #tpu.memory_space<vmem>>, vector<1x16xf32>,
      %cst_16 = arith.constant 0.000000e+00 : f32
      %20 = vector.broadcast %cst_16 : f32 to vector<1x16xf32>
      %c0_17 = arith.constant 0 : index
      %c0_18 = arith.constant 0 : index
      %21 = vector.load %arg5[%c0_17, %c0_18] : memref<1x16xf32, #tpu.memory_space<vmem>>, vector<1x16xf32>
      tpu.vector_store %arg5[%c0_17, %c0_18], %20 {strides = array<i32>} : memref<1x16xf32, #tpu.memory_space<vmem>>, vector<1x16xf32>,
    } else {
    }
    %c0 = arith.constant 0 : index
    %c0_1 = arith.constant 0 : index
    %3 = vector.load %arg1[%c0, %c0_1] : memref<8x16xf32, #tpu.memory_space<vmem>>, vector<8x16xf32>
    %c0_2 = arith.constant 0 : index
    %c0_3 = arith.constant 0 : index
    %4 = vector.load %arg4[%c0_2, %c0_3] : memref<1x16xf32, #tpu.memory_space<vmem>>, vector<1x16xf32>
    %cst = arith.constant dense<0.000000e+00> : vector<16xf32>
    %5 = vector.multi_reduction <add>, %3, %cst [0] : vector<8x16xf32> to vector<16xf32>
    %6 = vector.shape_cast %5 : vector<16xf32> to vector<1x16xf32>
    %7 = arith.addf %4, %6 : vector<1x16xf32>
    %c0_4 = arith.constant 0 : index
    %c0_5 = arith.constant 0 : index
    %8 = vector.load %arg4[%c0_4, %c0_5] : memref<1x16xf32, #tpu.memory_space<vmem>>, vector<1x16xf32>
    tpu.vector_store %arg4[%c0_4, %c0_5], %7 {strides = array<i32>} : memref<1x16xf32, #tpu.memory_space<vmem>>, vector<1x16xf32>,
    %c0_6 = arith.constant 0 : index
    %c0_7 = arith.constant 0 : index
    %9 = vector.load %arg5[%c0_6, %c0_7] : memref<1x16xf32, #tpu.memory_space<vmem>>, vector<1x16xf32>
    %10 = arith.mulf %3, %3 : vector<8x16xf32>
    %cst_8 = arith.constant dense<0.000000e+00> : vector<16xf32>
    %11 = vector.multi_reduction <add>, %10, %cst_8 [0] : vector<8x16xf32> to vector<16xf32>
    %12 = vector.shape_cast %11 : vector<16xf32> to vector<1x16xf32>
    %13 = arith.addf %9, %12 : vector<1x16xf32>
    %c0_9 = arith.constant 0 : index
    %c0_10 = arith.constant 0 : index
    %14 = vector.load %arg5[%c0_9, %c0_10] : memref<1x16xf32, #tpu.memory_space<vmem>>, vector<1x16xf32>
    tpu.vector_store %arg5[%c0_9, %c0_10], %13 {strides = array<i32>} : memref<1x16xf32, #tpu.memory_space<vmem>>, vector<1x16xf32>,
    %c0_i32_11 = arith.constant 0 : i32
    %15 = arith.cmpi eq, %arg0, %c0_i32_11 : i32
    %16 = arith.extui %15 : i1 to i32
    %c0_i32_12 = arith.constant 0 : i32
    %17 = arith.cmpi ne, %16, %c0_i32_12 : i32
    scf.if %17 {
      %c0_13 = arith.constant 0 : index
      %c0_14 = arith.constant 0 : index
      %18 = vector.load %arg4[%c0_13, %c0_14] : memref<1x16xf32, #tpu.memory_space<vmem>>, vector<1x16xf32>
      %cst_15 = arith.constant 5.000000e-01 : f32
      %19 = vector.broadcast %cst_15 : f32 to vector<1x16xf32>
      %20 = arith.mulf %18, %19 : vector<1x16xf32>
      %c0_16 = arith.constant 0 : index
      %c0_17 = arith.constant 0 : index
      %21 = vector.load %arg5[%c0_16, %c0_17] : memref<1x16xf32, #tpu.memory_space<vmem>>, vector<1x16xf32>
      %cst_18 = arith.constant 5.000000e-01 : f32
      %22 = vector.broadcast %cst_18 : f32 to vector<1x16xf32>
      %23 = arith.mulf %21, %22 : vector<1x16xf32>
      %24 = arith.mulf %20, %20 : vector<1x16xf32>
      %25 = arith.subf %23, %24 : vector<1x16xf32>
      %cst_19 = arith.constant 0.000000e+00 : f32
      %26 = vector.broadcast %cst_19 : f32 to vector<1x16xf32>
      %27 = arith.maximumf %25, %26 : vector<1x16xf32>
      %cst_20 = arith.constant 9.99999974E-6 : f32
      %28 = vector.broadcast %cst_20 : f32 to vector<1x16xf32>
      %29 = arith.addf %27, %28 : vector<1x16xf32>
      %30 = math.rsqrt %29 : vector<1x16xf32>
      %c0_21 = arith.constant 0 : index
      %c0_22 = arith.constant 0 : index
      %31 = vector.load %arg2[%c0_21, %c0_22] : memref<1x16xf32, #tpu.memory_space<vmem>>, vector<1x16xf32>
      tpu.vector_store %arg2[%c0_21, %c0_22], %30 {strides = array<i32>} : memref<1x16xf32, #tpu.memory_space<vmem>>, vector<1x16xf32>,
      %cst_23 = arith.constant 0.000000e+00 : f32
      %32 = vector.broadcast %cst_23 : f32 to vector<1x16xf32>
      %33 = arith.subf %32, %20 : vector<1x16xf32>
      %34 = arith.mulf %33, %30 : vector<1x16xf32>
      %c0_24 = arith.constant 0 : index
      %c0_25 = arith.constant 0 : index
      %35 = vector.load %arg3[%c0_24, %c0_25] : memref<1x16xf32, #tpu.memory_space<vmem>>, vector<1x16xf32>
      tpu.vector_store %arg3[%c0_24, %c0_25], %34 {strides = array<i32>} : memref<1x16xf32, #tpu.memory_space<vmem>>, vector<1x16xf32>,
    } else {
    }
    return
  }
  func.func @transform_0(%arg0: i32) -> (i32, i32) {
    %c0_i32 = arith.constant 0 : i32
    %c0_i32_0 = arith.constant 0 : i32
    return %arg0, %c0_i32 : i32, i32
  }
  func.func @transform_1(%arg0: i32) -> (i32, i32) {
    %c0_i32 = arith.constant 0 : i32
    %c0_i32_0 = arith.constant 0 : i32
    %c0_i32_1 = arith.constant 0 : i32
    return %c0_i32, %c0_i32_0 : i32, i32
  }
  func.func @transform_2(%arg0: i32) -> (i32, i32) {
    %c0_i32 = arith.constant 0 : i32
    %c0_i32_0 = arith.constant 0 : i32
    %c0_i32_1 = arith.constant 0 : i32
    return %c0_i32, %c0_i32_0 : i32, i32
  }
}

module attributes {stable_mosaic.version = 11 : i64} {
  func.func @_norm_relu_mm_kernel(%arg0: i32, %arg1: i32, %arg2: memref<8x16xf32, #tpu.memory_space<vmem>>, %arg3: memref<1x16xf32, #tpu.memory_space<vmem>>, %arg4: memref<1x16xf32, #tpu.memory_space<vmem>>, %arg5: memref<16x128xbf16, #tpu.memory_space<vmem>>, %arg6: memref<8x128xf32, #tpu.memory_space<vmem>>, %arg7: memref<8x128xf32, #tpu.memory_space<vmem>>) attributes {dimension_semantics = [#tpu.dimension_semantics<parallel>, #tpu.dimension_semantics<arbitrary>], iteration_bounds = array<i64: 1, 1>, scalar_prefetch = 0 : i64, scratch_operands = 1 : i64, tpu.core_type = #tpu.core_type<tc>, window_params = [{transform_indices = @transform_0, window_bounds = array<i64: 8, 16>}, {transform_indices = @transform_1, window_bounds = array<i64: 1, 16>}, {transform_indices = @transform_2, window_bounds = array<i64: 1, 16>}, {transform_indices = @transform_3, window_bounds = array<i64: 16, 128>}, {transform_indices = @transform_4, window_bounds = array<i64: 8, 128>}]} {
    %c0_i32 = arith.constant 0 : i32
    %0 = arith.cmpi eq, %arg1, %c0_i32 : i32
    %1 = arith.extui %0 : i1 to i32
    %c0_i32_0 = arith.constant 0 : i32
    %2 = arith.cmpi ne, %1, %c0_i32_0 : i32
    scf.if %2 {
      %cst_15 = arith.constant 0.000000e+00 : f32
      %21 = vector.broadcast %cst_15 : f32 to vector<8x128xf32>
      %c0_16 = arith.constant 0 : index
      %c0_17 = arith.constant 0 : index
      %22 = vector.load %arg7[%c0_16, %c0_17] : memref<8x128xf32, #tpu.memory_space<vmem>>, vector<8x128xf32>
      tpu.vector_store %arg7[%c0_16, %c0_17], %21 {strides = array<i32>} : memref<8x128xf32, #tpu.memory_space<vmem>>, vector<8x128xf32>,
    } else {
    }
    %c0 = arith.constant 0 : index
    %c0_1 = arith.constant 0 : index
    %3 = vector.load %arg2[%c0, %c0_1] : memref<8x16xf32, #tpu.memory_space<vmem>>, vector<8x16xf32>
    %c0_2 = arith.constant 0 : index
    %c0_3 = arith.constant 0 : index
    %4 = vector.load %arg3[%c0_2, %c0_3] : memref<1x16xf32, #tpu.memory_space<vmem>>, vector<1x16xf32>
    %5 = vector.broadcast %4 : vector<1x16xf32> to vector<8x16xf32>
    %6 = arith.mulf %3, %5 : vector<8x16xf32>
    %c0_4 = arith.constant 0 : index
    %c0_5 = arith.constant 0 : index
    %7 = vector.load %arg4[%c0_4, %c0_5] : memref<1x16xf32, #tpu.memory_space<vmem>>, vector<1x16xf32>
    %8 = vector.broadcast %7 : vector<1x16xf32> to vector<8x16xf32>
    %9 = arith.addf %6, %8 : vector<8x16xf32>
    %cst = arith.constant 0.000000e+00 : f32
    %10 = vector.broadcast %cst : f32 to vector<8x16xf32>
    %11 = arith.maximumf %9, %10 : vector<8x16xf32>
    %c0_6 = arith.constant 0 : index
    %c0_7 = arith.constant 0 : index
    %12 = vector.load %arg7[%c0_6, %c0_7] : memref<8x128xf32, #tpu.memory_space<vmem>>, vector<8x128xf32>
    %13 = arith.truncf %11 : vector<8x16xf32> to vector<8x16xbf16>
    %c0_8 = arith.constant 0 : index
    %c0_9 = arith.constant 0 : index
    %14 = vector.load %arg5[%c0_8, %c0_9] : memref<16x128xbf16, #tpu.memory_space<vmem>>, vector<16x128xbf16>
    %cst_10 = arith.constant dense<0.000000e+00> : vector<8x128xf32>
    %15 = tpu.matmul %13, %14, %cst_10 {dimension_numbers = #tpu.dot_dimension_numbers<[1], [0], [0], [1], [0, 0, 1, 1], [], []>} : vector<8x16xbf16>, vector<16x128xbf16>, vector<8x128xf32> -> vector<8x128xf32>
    %16 = arith.addf %12, %15 : vector<8x128xf32>
    %c0_11 = arith.constant 0 : index
    %c0_12 = arith.constant 0 : index
    %17 = vector.load %arg7[%c0_11, %c0_12] : memref<8x128xf32, #tpu.memory_space<vmem>>, vector<8x128xf32>
    tpu.vector_store %arg7[%c0_11, %c0_12], %16 {strides = array<i32>} : memref<8x128xf32, #tpu.memory_space<vmem>>, vector<8x128xf32>,
    %c0_i32_13 = arith.constant 0 : i32
    %18 = arith.cmpi eq, %arg1, %c0_i32_13 : i32
    %19 = arith.extui %18 : i1 to i32
    %c0_i32_14 = arith.constant 0 : i32
    %20 = arith.cmpi ne, %19, %c0_i32_14 : i32
    scf.if %20 {
      %c0_15 = arith.constant 0 : index
      %c0_16 = arith.constant 0 : index
      %21 = vector.load %arg7[%c0_15, %c0_16] : memref<8x128xf32, #tpu.memory_space<vmem>>, vector<8x128xf32>
      %c0_17 = arith.constant 0 : index
      %c0_18 = arith.constant 0 : index
      %22 = vector.load %arg6[%c0_17, %c0_18] : memref<8x128xf32, #tpu.memory_space<vmem>>, vector<8x128xf32>
      tpu.vector_store %arg6[%c0_17, %c0_18], %21 {strides = array<i32>} : memref<8x128xf32, #tpu.memory_space<vmem>>, vector<8x128xf32>,
    } else {
    }
    return
  }
  func.func @transform_0(%arg0: i32, %arg1: i32) -> (i32, i32) {
    %c0_i32 = arith.constant 0 : i32
    return %arg0, %arg1 : i32, i32
  }
  func.func @transform_1(%arg0: i32, %arg1: i32) -> (i32, i32) {
    %c0_i32 = arith.constant 0 : i32
    %c0_i32_0 = arith.constant 0 : i32
    return %c0_i32, %arg1 : i32, i32
  }
  func.func @transform_2(%arg0: i32, %arg1: i32) -> (i32, i32) {
    %c0_i32 = arith.constant 0 : i32
    %c0_i32_0 = arith.constant 0 : i32
    return %c0_i32, %arg1 : i32, i32
  }
  func.func @transform_3(%arg0: i32, %arg1: i32) -> (i32, i32) {
    %c0_i32 = arith.constant 0 : i32
    %c0_i32_0 = arith.constant 0 : i32
    return %arg1, %c0_i32 : i32, i32
  }
  func.func @transform_4(%arg0: i32, %arg1: i32) -> (i32, i32) {
    %c0_i32 = arith.constant 0 : i32
    %c0_i32_0 = arith.constant 0 : i32
    return %arg0, %c0_i32 : i32, i32
  }
}

module attributes {stable_mosaic.version = 11 : i64} {
  func.func @_norm_relu_kernel(%arg0: i32, %arg1: memref<8x16xf32, #tpu.memory_space<vmem>>, %arg2: memref<1x16xf32, #tpu.memory_space<vmem>>, %arg3: memref<1x16xf32, #tpu.memory_space<vmem>>, %arg4: memref<8x16xf32, #tpu.memory_space<vmem>>) attributes {dimension_semantics = [#tpu.dimension_semantics<parallel>], iteration_bounds = array<i64: 1>, scalar_prefetch = 0 : i64, scratch_operands = 0 : i64, tpu.core_type = #tpu.core_type<tc>, window_params = [{transform_indices = @transform_0, window_bounds = array<i64: 8, 16>}, {pipeline_mode = #tpu.pipeline_mode<synchronous>, transform_indices = @transform_1, window_bounds = array<i64: 1, 16>}, {pipeline_mode = #tpu.pipeline_mode<synchronous>, transform_indices = @transform_2, window_bounds = array<i64: 1, 16>}, {transform_indices = @transform_3, window_bounds = array<i64: 8, 16>}]} {
    %c0 = arith.constant 0 : index
    %c0_0 = arith.constant 0 : index
    %0 = vector.load %arg1[%c0, %c0_0] : memref<8x16xf32, #tpu.memory_space<vmem>>, vector<8x16xf32>
    %c0_1 = arith.constant 0 : index
    %c0_2 = arith.constant 0 : index
    %1 = vector.load %arg2[%c0_1, %c0_2] : memref<1x16xf32, #tpu.memory_space<vmem>>, vector<1x16xf32>
    %2 = vector.broadcast %1 : vector<1x16xf32> to vector<8x16xf32>
    %3 = arith.mulf %0, %2 : vector<8x16xf32>
    %c0_3 = arith.constant 0 : index
    %c0_4 = arith.constant 0 : index
    %4 = vector.load %arg3[%c0_3, %c0_4] : memref<1x16xf32, #tpu.memory_space<vmem>>, vector<1x16xf32>
    %5 = vector.broadcast %4 : vector<1x16xf32> to vector<8x16xf32>
    %6 = arith.addf %3, %5 : vector<8x16xf32>
    %cst = arith.constant 0.000000e+00 : f32
    %7 = vector.broadcast %cst : f32 to vector<8x16xf32>
    %8 = arith.maximumf %6, %7 : vector<8x16xf32>
    %c0_5 = arith.constant 0 : index
    %c0_6 = arith.constant 0 : index
    %9 = vector.load %arg4[%c0_5, %c0_6] : memref<8x16xf32, #tpu.memory_space<vmem>>, vector<8x16xf32>
    tpu.vector_store %arg4[%c0_5, %c0_6], %8 {strides = array<i32>} : memref<8x16xf32, #tpu.memory_space<vmem>>, vector<8x16xf32>,
    return
  }
  func.func @transform_0(%arg0: i32) -> (i32, i32) {
    %c0_i32 = arith.constant 0 : i32
    %c0_i32_0 = arith.constant 0 : i32
    return %arg0, %c0_i32 : i32, i32
  }
  func.func @transform_1(%arg0: i32) -> (i32, i32) {
    %c0_i32 = arith.constant 0 : i32
    %c0_i32_0 = arith.constant 0 : i32
    %c0_i32_1 = arith.constant 0 : i32
    return %c0_i32, %c0_i32_0 : i32, i32
  }
  func.func @transform_2(%arg0: i32) -> (i32, i32) {
    %c0_i32 = arith.constant 0 : i32
    %c0_i32_0 = arith.constant 0 : i32
    %c0_i32_1 = arith.constant 0 : i32
    return %c0_i32, %c0_i32_0 : i32, i32
  }
  func.func @transform_3(%arg0: i32) -> (i32, i32) {
    %c0_i32 = arith.constant 0 : i32
    %c0_i32_0 = arith.constant 0 : i32
    return %arg0, %c0_i32 : i32, i32
  }
}

module attributes {stable_mosaic.version = 11 : i64} {
  func.func @_mm_kernel(%arg0: i32, %arg1: i32, %arg2: memref<8x144xbf16, #tpu.memory_space<vmem>>, %arg3: memref<144x128xbf16, #tpu.memory_space<vmem>>, %arg4: memref<8x128xf32, #tpu.memory_space<vmem>>, %arg5: memref<8x128xf32, #tpu.memory_space<vmem>>) attributes {dimension_semantics = [#tpu.dimension_semantics<parallel>, #tpu.dimension_semantics<arbitrary>], iteration_bounds = array<i64: 1, 1>, scalar_prefetch = 0 : i64, scratch_operands = 1 : i64, tpu.core_type = #tpu.core_type<tc>, window_params = [{transform_indices = @transform_0, window_bounds = array<i64: 8, 144>}, {transform_indices = @transform_1, window_bounds = array<i64: 144, 128>}, {transform_indices = @transform_2, window_bounds = array<i64: 8, 128>}]} {
    %c0_i32 = arith.constant 0 : i32
    %0 = arith.cmpi eq, %arg1, %c0_i32 : i32
    %1 = arith.extui %0 : i1 to i32
    %c0_i32_0 = arith.constant 0 : i32
    %2 = arith.cmpi ne, %1, %c0_i32_0 : i32
    scf.if %2 {
      %cst_10 = arith.constant 0.000000e+00 : f32
      %12 = vector.broadcast %cst_10 : f32 to vector<8x128xf32>
      %c0_11 = arith.constant 0 : index
      %c0_12 = arith.constant 0 : index
      %13 = vector.load %arg5[%c0_11, %c0_12] : memref<8x128xf32, #tpu.memory_space<vmem>>, vector<8x128xf32>
      tpu.vector_store %arg5[%c0_11, %c0_12], %12 {strides = array<i32>} : memref<8x128xf32, #tpu.memory_space<vmem>>, vector<8x128xf32>,
    } else {
    }
    %c0 = arith.constant 0 : index
    %c0_1 = arith.constant 0 : index
    %3 = vector.load %arg5[%c0, %c0_1] : memref<8x128xf32, #tpu.memory_space<vmem>>, vector<8x128xf32>
    %c0_2 = arith.constant 0 : index
    %c0_3 = arith.constant 0 : index
    %4 = vector.load %arg2[%c0_2, %c0_3] : memref<8x144xbf16, #tpu.memory_space<vmem>>, vector<8x144xbf16>
    %c0_4 = arith.constant 0 : index
    %c0_5 = arith.constant 0 : index
    %5 = vector.load %arg3[%c0_4, %c0_5] : memref<144x128xbf16, #tpu.memory_space<vmem>>, vector<144x128xbf16>
    %cst = arith.constant dense<0.000000e+00> : vector<8x128xf32>
    %6 = tpu.matmul %4, %5, %cst {dimension_numbers = #tpu.dot_dimension_numbers<[1], [0], [0], [1], [0, 0, 1, 1], [], []>} : vector<8x144xbf16>, vector<144x128xbf16>, vector<8x128xf32> -> vector<8x128xf32>
    %7 = arith.addf %3, %6 : vector<8x128xf32>
    %c0_6 = arith.constant 0 : index
    %c0_7 = arith.constant 0 : index
    %8 = vector.load %arg5[%c0_6, %c0_7] : memref<8x128xf32, #tpu.memory_space<vmem>>, vector<8x128xf32>
    tpu.vector_store %arg5[%c0_6, %c0_7], %7 {strides = array<i32>} : memref<8x128xf32, #tpu.memory_space<vmem>>, vector<8x128xf32>,
    %c0_i32_8 = arith.constant 0 : i32
    %9 = arith.cmpi eq, %arg1, %c0_i32_8 : i32
    %10 = arith.extui %9 : i1 to i32
    %c0_i32_9 = arith.constant 0 : i32
    %11 = arith.cmpi ne, %10, %c0_i32_9 : i32
    scf.if %11 {
      %c0_10 = arith.constant 0 : index
      %c0_11 = arith.constant 0 : index
      %12 = vector.load %arg5[%c0_10, %c0_11] : memref<8x128xf32, #tpu.memory_space<vmem>>, vector<8x128xf32>
      %c0_12 = arith.constant 0 : index
      %c0_13 = arith.constant 0 : index
      %13 = vector.load %arg4[%c0_12, %c0_13] : memref<8x128xf32, #tpu.memory_space<vmem>>, vector<8x128xf32>
      tpu.vector_store %arg4[%c0_12, %c0_13], %12 {strides = array<i32>} : memref<8x128xf32, #tpu.memory_space<vmem>>, vector<8x128xf32>,
    } else {
    }
    return
  }
  func.func @transform_0(%arg0: i32, %arg1: i32) -> (i32, i32) {
    %c0_i32 = arith.constant 0 : i32
    return %arg0, %arg1 : i32, i32
  }
  func.func @transform_1(%arg0: i32, %arg1: i32) -> (i32, i32) {
    %c0_i32 = arith.constant 0 : i32
    %c0_i32_0 = arith.constant 0 : i32
    return %arg1, %c0_i32 : i32, i32
  }
  func.func @transform_2(%arg0: i32, %arg1: i32) -> (i32, i32) {
    %c0_i32 = arith.constant 0 : i32
    %c0_i32_0 = arith.constant 0 : i32
    return %arg0, %c0_i32 : i32, i32
  }
}

module attributes {stable_mosaic.version = 11 : i64} {
  func.func @kernel(%arg0: i32, %arg1: memref<8x24xf32, #tpu.memory_space<vmem>>, %arg2: memref<1x24xf32, #tpu.memory_space<vmem>>, %arg3: memref<1x24xf32, #tpu.memory_space<vmem>>, %arg4: memref<1x24xf32, #tpu.memory_space<vmem>>, %arg5: memref<1x24xf32, #tpu.memory_space<vmem>>) attributes {dimension_semantics = [#tpu.dimension_semantics<arbitrary>], iteration_bounds = array<i64: 1>, scalar_prefetch = 0 : i64, scratch_operands = 2 : i64, tpu.core_type = #tpu.core_type<tc>, window_params = [{transform_indices = @transform_0, window_bounds = array<i64: 8, 24>}, {pipeline_mode = #tpu.pipeline_mode<synchronous>, transform_indices = @transform_1, window_bounds = array<i64: 1, 24>}, {pipeline_mode = #tpu.pipeline_mode<synchronous>, transform_indices = @transform_2, window_bounds = array<i64: 1, 24>}]} {
    %c0_i32 = arith.constant 0 : i32
    %0 = arith.cmpi eq, %arg0, %c0_i32 : i32
    %1 = arith.extui %0 : i1 to i32
    %c0_i32_0 = arith.constant 0 : i32
    %2 = arith.cmpi ne, %1, %c0_i32_0 : i32
    scf.if %2 {
      %cst_13 = arith.constant 0.000000e+00 : f32
      %18 = vector.broadcast %cst_13 : f32 to vector<1x24xf32>
      %c0_14 = arith.constant 0 : index
      %c0_15 = arith.constant 0 : index
      %19 = vector.load %arg4[%c0_14, %c0_15] : memref<1x24xf32, #tpu.memory_space<vmem>>, vector<1x24xf32>
      tpu.vector_store %arg4[%c0_14, %c0_15], %18 {strides = array<i32>} : memref<1x24xf32, #tpu.memory_space<vmem>>, vector<1x24xf32>,
      %cst_16 = arith.constant 0.000000e+00 : f32
      %20 = vector.broadcast %cst_16 : f32 to vector<1x24xf32>
      %c0_17 = arith.constant 0 : index
      %c0_18 = arith.constant 0 : index
      %21 = vector.load %arg5[%c0_17, %c0_18] : memref<1x24xf32, #tpu.memory_space<vmem>>, vector<1x24xf32>
      tpu.vector_store %arg5[%c0_17, %c0_18], %20 {strides = array<i32>} : memref<1x24xf32, #tpu.memory_space<vmem>>, vector<1x24xf32>,
    } else {
    }
    %c0 = arith.constant 0 : index
    %c0_1 = arith.constant 0 : index
    %3 = vector.load %arg1[%c0, %c0_1] : memref<8x24xf32, #tpu.memory_space<vmem>>, vector<8x24xf32>
    %c0_2 = arith.constant 0 : index
    %c0_3 = arith.constant 0 : index
    %4 = vector.load %arg4[%c0_2, %c0_3] : memref<1x24xf32, #tpu.memory_space<vmem>>, vector<1x24xf32>
    %cst = arith.constant dense<0.000000e+00> : vector<24xf32>
    %5 = vector.multi_reduction <add>, %3, %cst [0] : vector<8x24xf32> to vector<24xf32>
    %6 = vector.shape_cast %5 : vector<24xf32> to vector<1x24xf32>
    %7 = arith.addf %4, %6 : vector<1x24xf32>
    %c0_4 = arith.constant 0 : index
    %c0_5 = arith.constant 0 : index
    %8 = vector.load %arg4[%c0_4, %c0_5] : memref<1x24xf32, #tpu.memory_space<vmem>>, vector<1x24xf32>
    tpu.vector_store %arg4[%c0_4, %c0_5], %7 {strides = array<i32>} : memref<1x24xf32, #tpu.memory_space<vmem>>, vector<1x24xf32>,
    %c0_6 = arith.constant 0 : index
    %c0_7 = arith.constant 0 : index
    %9 = vector.load %arg5[%c0_6, %c0_7] : memref<1x24xf32, #tpu.memory_space<vmem>>, vector<1x24xf32>
    %10 = arith.mulf %3, %3 : vector<8x24xf32>
    %cst_8 = arith.constant dense<0.000000e+00> : vector<24xf32>
    %11 = vector.multi_reduction <add>, %10, %cst_8 [0] : vector<8x24xf32> to vector<24xf32>
    %12 = vector.shape_cast %11 : vector<24xf32> to vector<1x24xf32>
    %13 = arith.addf %9, %12 : vector<1x24xf32>
    %c0_9 = arith.constant 0 : index
    %c0_10 = arith.constant 0 : index
    %14 = vector.load %arg5[%c0_9, %c0_10] : memref<1x24xf32, #tpu.memory_space<vmem>>, vector<1x24xf32>
    tpu.vector_store %arg5[%c0_9, %c0_10], %13 {strides = array<i32>} : memref<1x24xf32, #tpu.memory_space<vmem>>, vector<1x24xf32>,
    %c0_i32_11 = arith.constant 0 : i32
    %15 = arith.cmpi eq, %arg0, %c0_i32_11 : i32
    %16 = arith.extui %15 : i1 to i32
    %c0_i32_12 = arith.constant 0 : i32
    %17 = arith.cmpi ne, %16, %c0_i32_12 : i32
    scf.if %17 {
      %c0_13 = arith.constant 0 : index
      %c0_14 = arith.constant 0 : index
      %18 = vector.load %arg4[%c0_13, %c0_14] : memref<1x24xf32, #tpu.memory_space<vmem>>, vector<1x24xf32>
      %cst_15 = arith.constant 5.000000e-01 : f32
      %19 = vector.broadcast %cst_15 : f32 to vector<1x24xf32>
      %20 = arith.mulf %18, %19 : vector<1x24xf32>
      %c0_16 = arith.constant 0 : index
      %c0_17 = arith.constant 0 : index
      %21 = vector.load %arg5[%c0_16, %c0_17] : memref<1x24xf32, #tpu.memory_space<vmem>>, vector<1x24xf32>
      %cst_18 = arith.constant 5.000000e-01 : f32
      %22 = vector.broadcast %cst_18 : f32 to vector<1x24xf32>
      %23 = arith.mulf %21, %22 : vector<1x24xf32>
      %24 = arith.mulf %20, %20 : vector<1x24xf32>
      %25 = arith.subf %23, %24 : vector<1x24xf32>
      %cst_19 = arith.constant 0.000000e+00 : f32
      %26 = vector.broadcast %cst_19 : f32 to vector<1x24xf32>
      %27 = arith.maximumf %25, %26 : vector<1x24xf32>
      %cst_20 = arith.constant 9.99999974E-6 : f32
      %28 = vector.broadcast %cst_20 : f32 to vector<1x24xf32>
      %29 = arith.addf %27, %28 : vector<1x24xf32>
      %30 = math.rsqrt %29 : vector<1x24xf32>
      %c0_21 = arith.constant 0 : index
      %c0_22 = arith.constant 0 : index
      %31 = vector.load %arg2[%c0_21, %c0_22] : memref<1x24xf32, #tpu.memory_space<vmem>>, vector<1x24xf32>
      tpu.vector_store %arg2[%c0_21, %c0_22], %30 {strides = array<i32>} : memref<1x24xf32, #tpu.memory_space<vmem>>, vector<1x24xf32>,
      %cst_23 = arith.constant 0.000000e+00 : f32
      %32 = vector.broadcast %cst_23 : f32 to vector<1x24xf32>
      %33 = arith.subf %32, %20 : vector<1x24xf32>
      %34 = arith.mulf %33, %30 : vector<1x24xf32>
      %c0_24 = arith.constant 0 : index
      %c0_25 = arith.constant 0 : index
      %35 = vector.load %arg3[%c0_24, %c0_25] : memref<1x24xf32, #tpu.memory_space<vmem>>, vector<1x24xf32>
      tpu.vector_store %arg3[%c0_24, %c0_25], %34 {strides = array<i32>} : memref<1x24xf32, #tpu.memory_space<vmem>>, vector<1x24xf32>,
    } else {
    }
    return
  }
  func.func @transform_0(%arg0: i32) -> (i32, i32) {
    %c0_i32 = arith.constant 0 : i32
    %c0_i32_0 = arith.constant 0 : i32
    return %arg0, %c0_i32 : i32, i32
  }
  func.func @transform_1(%arg0: i32) -> (i32, i32) {
    %c0_i32 = arith.constant 0 : i32
    %c0_i32_0 = arith.constant 0 : i32
    %c0_i32_1 = arith.constant 0 : i32
    return %c0_i32, %c0_i32_0 : i32, i32
  }
  func.func @transform_2(%arg0: i32) -> (i32, i32) {
    %c0_i32 = arith.constant 0 : i32
    %c0_i32_0 = arith.constant 0 : i32
    %c0_i32_1 = arith.constant 0 : i32
    return %c0_i32, %c0_i32_0 : i32, i32
  }
}

module attributes {stable_mosaic.version = 11 : i64} {
  func.func @_norm_relu_mm_kernel(%arg0: i32, %arg1: i32, %arg2: memref<8x24xf32, #tpu.memory_space<vmem>>, %arg3: memref<1x24xf32, #tpu.memory_space<vmem>>, %arg4: memref<1x24xf32, #tpu.memory_space<vmem>>, %arg5: memref<24x128xbf16, #tpu.memory_space<vmem>>, %arg6: memref<8x128xf32, #tpu.memory_space<vmem>>, %arg7: memref<8x128xf32, #tpu.memory_space<vmem>>) attributes {dimension_semantics = [#tpu.dimension_semantics<parallel>, #tpu.dimension_semantics<arbitrary>], iteration_bounds = array<i64: 1, 1>, scalar_prefetch = 0 : i64, scratch_operands = 1 : i64, tpu.core_type = #tpu.core_type<tc>, window_params = [{transform_indices = @transform_0, window_bounds = array<i64: 8, 24>}, {transform_indices = @transform_1, window_bounds = array<i64: 1, 24>}, {transform_indices = @transform_2, window_bounds = array<i64: 1, 24>}, {transform_indices = @transform_3, window_bounds = array<i64: 24, 128>}, {transform_indices = @transform_4, window_bounds = array<i64: 8, 128>}]} {
    %c0_i32 = arith.constant 0 : i32
    %0 = arith.cmpi eq, %arg1, %c0_i32 : i32
    %1 = arith.extui %0 : i1 to i32
    %c0_i32_0 = arith.constant 0 : i32
    %2 = arith.cmpi ne, %1, %c0_i32_0 : i32
    scf.if %2 {
      %cst_15 = arith.constant 0.000000e+00 : f32
      %21 = vector.broadcast %cst_15 : f32 to vector<8x128xf32>
      %c0_16 = arith.constant 0 : index
      %c0_17 = arith.constant 0 : index
      %22 = vector.load %arg7[%c0_16, %c0_17] : memref<8x128xf32, #tpu.memory_space<vmem>>, vector<8x128xf32>
      tpu.vector_store %arg7[%c0_16, %c0_17], %21 {strides = array<i32>} : memref<8x128xf32, #tpu.memory_space<vmem>>, vector<8x128xf32>,
    } else {
    }
    %c0 = arith.constant 0 : index
    %c0_1 = arith.constant 0 : index
    %3 = vector.load %arg2[%c0, %c0_1] : memref<8x24xf32, #tpu.memory_space<vmem>>, vector<8x24xf32>
    %c0_2 = arith.constant 0 : index
    %c0_3 = arith.constant 0 : index
    %4 = vector.load %arg3[%c0_2, %c0_3] : memref<1x24xf32, #tpu.memory_space<vmem>>, vector<1x24xf32>
    %5 = vector.broadcast %4 : vector<1x24xf32> to vector<8x24xf32>
    %6 = arith.mulf %3, %5 : vector<8x24xf32>
    %c0_4 = arith.constant 0 : index
    %c0_5 = arith.constant 0 : index
    %7 = vector.load %arg4[%c0_4, %c0_5] : memref<1x24xf32, #tpu.memory_space<vmem>>, vector<1x24xf32>
    %8 = vector.broadcast %7 : vector<1x24xf32> to vector<8x24xf32>
    %9 = arith.addf %6, %8 : vector<8x24xf32>
    %cst = arith.constant 0.000000e+00 : f32
    %10 = vector.broadcast %cst : f32 to vector<8x24xf32>
    %11 = arith.maximumf %9, %10 : vector<8x24xf32>
    %c0_6 = arith.constant 0 : index
    %c0_7 = arith.constant 0 : index
    %12 = vector.load %arg7[%c0_6, %c0_7] : memref<8x128xf32, #tpu.memory_space<vmem>>, vector<8x128xf32>
    %13 = arith.truncf %11 : vector<8x24xf32> to vector<8x24xbf16>
    %c0_8 = arith.constant 0 : index
    %c0_9 = arith.constant 0 : index
    %14 = vector.load %arg5[%c0_8, %c0_9] : memref<24x128xbf16, #tpu.memory_space<vmem>>, vector<24x128xbf16>
    %cst_10 = arith.constant dense<0.000000e+00> : vector<8x128xf32>
    %15 = tpu.matmul %13, %14, %cst_10 {dimension_numbers = #tpu.dot_dimension_numbers<[1], [0], [0], [1], [0, 0, 1, 1], [], []>} : vector<8x24xbf16>, vector<24x128xbf16>, vector<8x128xf32> -> vector<8x128xf32>
    %16 = arith.addf %12, %15 : vector<8x128xf32>
    %c0_11 = arith.constant 0 : index
    %c0_12 = arith.constant 0 : index
    %17 = vector.load %arg7[%c0_11, %c0_12] : memref<8x128xf32, #tpu.memory_space<vmem>>, vector<8x128xf32>
    tpu.vector_store %arg7[%c0_11, %c0_12], %16 {strides = array<i32>} : memref<8x128xf32, #tpu.memory_space<vmem>>, vector<8x128xf32>,
    %c0_i32_13 = arith.constant 0 : i32
    %18 = arith.cmpi eq, %arg1, %c0_i32_13 : i32
    %19 = arith.extui %18 : i1 to i32
    %c0_i32_14 = arith.constant 0 : i32
    %20 = arith.cmpi ne, %19, %c0_i32_14 : i32
    scf.if %20 {
      %c0_15 = arith.constant 0 : index
      %c0_16 = arith.constant 0 : index
      %21 = vector.load %arg7[%c0_15, %c0_16] : memref<8x128xf32, #tpu.memory_space<vmem>>, vector<8x128xf32>
      %c0_17 = arith.constant 0 : index
      %c0_18 = arith.constant 0 : index
      %22 = vector.load %arg6[%c0_17, %c0_18] : memref<8x128xf32, #tpu.memory_space<vmem>>, vector<8x128xf32>
      tpu.vector_store %arg6[%c0_17, %c0_18], %21 {strides = array<i32>} : memref<8x128xf32, #tpu.memory_space<vmem>>, vector<8x128xf32>,
    } else {
    }
    return
  }
  func.func @transform_0(%arg0: i32, %arg1: i32) -> (i32, i32) {
    %c0_i32 = arith.constant 0 : i32
    return %arg0, %arg1 : i32, i32
  }
  func.func @transform_1(%arg0: i32, %arg1: i32) -> (i32, i32) {
    %c0_i32 = arith.constant 0 : i32
    %c0_i32_0 = arith.constant 0 : i32
    return %c0_i32, %arg1 : i32, i32
  }
  func.func @transform_2(%arg0: i32, %arg1: i32) -> (i32, i32) {
    %c0_i32 = arith.constant 0 : i32
    %c0_i32_0 = arith.constant 0 : i32
    return %c0_i32, %arg1 : i32, i32
  }
  func.func @transform_3(%arg0: i32, %arg1: i32) -> (i32, i32) {
    %c0_i32 = arith.constant 0 : i32
    %c0_i32_0 = arith.constant 0 : i32
    return %arg1, %c0_i32 : i32, i32
  }
  func.func @transform_4(%arg0: i32, %arg1: i32) -> (i32, i32) {
    %c0_i32 = arith.constant 0 : i32
    %c0_i32_0 = arith.constant 0 : i32
    return %arg0, %c0_i32 : i32, i32
  }
}

module attributes {stable_mosaic.version = 11 : i64} {
  func.func @kernel(%arg0: i32, %arg1: memref<8x32xf32, #tpu.memory_space<vmem>>, %arg2: memref<1x32xf32, #tpu.memory_space<vmem>>, %arg3: memref<1x32xf32, #tpu.memory_space<vmem>>, %arg4: memref<1x32xf32, #tpu.memory_space<vmem>>, %arg5: memref<1x32xf32, #tpu.memory_space<vmem>>) attributes {dimension_semantics = [#tpu.dimension_semantics<arbitrary>], iteration_bounds = array<i64: 1>, scalar_prefetch = 0 : i64, scratch_operands = 2 : i64, tpu.core_type = #tpu.core_type<tc>, window_params = [{transform_indices = @transform_0, window_bounds = array<i64: 8, 32>}, {pipeline_mode = #tpu.pipeline_mode<synchronous>, transform_indices = @transform_1, window_bounds = array<i64: 1, 32>}, {pipeline_mode = #tpu.pipeline_mode<synchronous>, transform_indices = @transform_2, window_bounds = array<i64: 1, 32>}]} {
    %c0_i32 = arith.constant 0 : i32
    %0 = arith.cmpi eq, %arg0, %c0_i32 : i32
    %1 = arith.extui %0 : i1 to i32
    %c0_i32_0 = arith.constant 0 : i32
    %2 = arith.cmpi ne, %1, %c0_i32_0 : i32
    scf.if %2 {
      %cst_13 = arith.constant 0.000000e+00 : f32
      %18 = vector.broadcast %cst_13 : f32 to vector<1x32xf32>
      %c0_14 = arith.constant 0 : index
      %c0_15 = arith.constant 0 : index
      %19 = vector.load %arg4[%c0_14, %c0_15] : memref<1x32xf32, #tpu.memory_space<vmem>>, vector<1x32xf32>
      tpu.vector_store %arg4[%c0_14, %c0_15], %18 {strides = array<i32>} : memref<1x32xf32, #tpu.memory_space<vmem>>, vector<1x32xf32>,
      %cst_16 = arith.constant 0.000000e+00 : f32
      %20 = vector.broadcast %cst_16 : f32 to vector<1x32xf32>
      %c0_17 = arith.constant 0 : index
      %c0_18 = arith.constant 0 : index
      %21 = vector.load %arg5[%c0_17, %c0_18] : memref<1x32xf32, #tpu.memory_space<vmem>>, vector<1x32xf32>
      tpu.vector_store %arg5[%c0_17, %c0_18], %20 {strides = array<i32>} : memref<1x32xf32, #tpu.memory_space<vmem>>, vector<1x32xf32>,
    } else {
    }
    %c0 = arith.constant 0 : index
    %c0_1 = arith.constant 0 : index
    %3 = vector.load %arg1[%c0, %c0_1] : memref<8x32xf32, #tpu.memory_space<vmem>>, vector<8x32xf32>
    %c0_2 = arith.constant 0 : index
    %c0_3 = arith.constant 0 : index
    %4 = vector.load %arg4[%c0_2, %c0_3] : memref<1x32xf32, #tpu.memory_space<vmem>>, vector<1x32xf32>
    %cst = arith.constant dense<0.000000e+00> : vector<32xf32>
    %5 = vector.multi_reduction <add>, %3, %cst [0] : vector<8x32xf32> to vector<32xf32>
    %6 = vector.shape_cast %5 : vector<32xf32> to vector<1x32xf32>
    %7 = arith.addf %4, %6 : vector<1x32xf32>
    %c0_4 = arith.constant 0 : index
    %c0_5 = arith.constant 0 : index
    %8 = vector.load %arg4[%c0_4, %c0_5] : memref<1x32xf32, #tpu.memory_space<vmem>>, vector<1x32xf32>
    tpu.vector_store %arg4[%c0_4, %c0_5], %7 {strides = array<i32>} : memref<1x32xf32, #tpu.memory_space<vmem>>, vector<1x32xf32>,
    %c0_6 = arith.constant 0 : index
    %c0_7 = arith.constant 0 : index
    %9 = vector.load %arg5[%c0_6, %c0_7] : memref<1x32xf32, #tpu.memory_space<vmem>>, vector<1x32xf32>
    %10 = arith.mulf %3, %3 : vector<8x32xf32>
    %cst_8 = arith.constant dense<0.000000e+00> : vector<32xf32>
    %11 = vector.multi_reduction <add>, %10, %cst_8 [0] : vector<8x32xf32> to vector<32xf32>
    %12 = vector.shape_cast %11 : vector<32xf32> to vector<1x32xf32>
    %13 = arith.addf %9, %12 : vector<1x32xf32>
    %c0_9 = arith.constant 0 : index
    %c0_10 = arith.constant 0 : index
    %14 = vector.load %arg5[%c0_9, %c0_10] : memref<1x32xf32, #tpu.memory_space<vmem>>, vector<1x32xf32>
    tpu.vector_store %arg5[%c0_9, %c0_10], %13 {strides = array<i32>} : memref<1x32xf32, #tpu.memory_space<vmem>>, vector<1x32xf32>,
    %c0_i32_11 = arith.constant 0 : i32
    %15 = arith.cmpi eq, %arg0, %c0_i32_11 : i32
    %16 = arith.extui %15 : i1 to i32
    %c0_i32_12 = arith.constant 0 : i32
    %17 = arith.cmpi ne, %16, %c0_i32_12 : i32
    scf.if %17 {
      %c0_13 = arith.constant 0 : index
      %c0_14 = arith.constant 0 : index
      %18 = vector.load %arg4[%c0_13, %c0_14] : memref<1x32xf32, #tpu.memory_space<vmem>>, vector<1x32xf32>
      %cst_15 = arith.constant 5.000000e-01 : f32
      %19 = vector.broadcast %cst_15 : f32 to vector<1x32xf32>
      %20 = arith.mulf %18, %19 : vector<1x32xf32>
      %c0_16 = arith.constant 0 : index
      %c0_17 = arith.constant 0 : index
      %21 = vector.load %arg5[%c0_16, %c0_17] : memref<1x32xf32, #tpu.memory_space<vmem>>, vector<1x32xf32>
      %cst_18 = arith.constant 5.000000e-01 : f32
      %22 = vector.broadcast %cst_18 : f32 to vector<1x32xf32>
      %23 = arith.mulf %21, %22 : vector<1x32xf32>
      %24 = arith.mulf %20, %20 : vector<1x32xf32>
      %25 = arith.subf %23, %24 : vector<1x32xf32>
      %cst_19 = arith.constant 0.000000e+00 : f32
      %26 = vector.broadcast %cst_19 : f32 to vector<1x32xf32>
      %27 = arith.maximumf %25, %26 : vector<1x32xf32>
      %cst_20 = arith.constant 9.99999974E-6 : f32
      %28 = vector.broadcast %cst_20 : f32 to vector<1x32xf32>
      %29 = arith.addf %27, %28 : vector<1x32xf32>
      %30 = math.rsqrt %29 : vector<1x32xf32>
      %c0_21 = arith.constant 0 : index
      %c0_22 = arith.constant 0 : index
      %31 = vector.load %arg2[%c0_21, %c0_22] : memref<1x32xf32, #tpu.memory_space<vmem>>, vector<1x32xf32>
      tpu.vector_store %arg2[%c0_21, %c0_22], %30 {strides = array<i32>} : memref<1x32xf32, #tpu.memory_space<vmem>>, vector<1x32xf32>,
      %cst_23 = arith.constant 0.000000e+00 : f32
      %32 = vector.broadcast %cst_23 : f32 to vector<1x32xf32>
      %33 = arith.subf %32, %20 : vector<1x32xf32>
      %34 = arith.mulf %33, %30 : vector<1x32xf32>
      %c0_24 = arith.constant 0 : index
      %c0_25 = arith.constant 0 : index
      %35 = vector.load %arg3[%c0_24, %c0_25] : memref<1x32xf32, #tpu.memory_space<vmem>>, vector<1x32xf32>
      tpu.vector_store %arg3[%c0_24, %c0_25], %34 {strides = array<i32>} : memref<1x32xf32, #tpu.memory_space<vmem>>, vector<1x32xf32>,
    } else {
    }
    return
  }
  func.func @transform_0(%arg0: i32) -> (i32, i32) {
    %c0_i32 = arith.constant 0 : i32
    %c0_i32_0 = arith.constant 0 : i32
    return %arg0, %c0_i32 : i32, i32
  }
  func.func @transform_1(%arg0: i32) -> (i32, i32) {
    %c0_i32 = arith.constant 0 : i32
    %c0_i32_0 = arith.constant 0 : i32
    %c0_i32_1 = arith.constant 0 : i32
    return %c0_i32, %c0_i32_0 : i32, i32
  }
  func.func @transform_2(%arg0: i32) -> (i32, i32) {
    %c0_i32 = arith.constant 0 : i32
    %c0_i32_0 = arith.constant 0 : i32
    %c0_i32_1 = arith.constant 0 : i32
    return %c0_i32, %c0_i32_0 : i32, i32
  }
}

module attributes {stable_mosaic.version = 11 : i64} {
  func.func @kernel(%arg0: i32, %arg1: memref<2x1x32xf32, #tpu.memory_space<vmem>>, %arg2: memref<1x1x32xf32, #tpu.memory_space<vmem>>, %arg3: memref<1x1x32xf32, #tpu.memory_space<vmem>>, %arg4: memref<32x128xf32, #tpu.memory_space<vmem>>, %arg5: memref<1x128xf32, #tpu.memory_space<vmem>>, %arg6: memref<2x128xf32, #tpu.memory_space<vmem>>, %arg7: memref<2x32xf32, #tpu.memory_space<vmem>>) attributes {dimension_semantics = [#tpu.dimension_semantics<arbitrary>], iteration_bounds = array<i64: 1>, scalar_prefetch = 0 : i64, scratch_operands = 1 : i64, tpu.core_type = #tpu.core_type<tc>, window_params = [{transform_indices = @transform_0, window_bounds = array<i64: 2, 1, 32>}, {pipeline_mode = #tpu.pipeline_mode<synchronous>, transform_indices = @transform_1, window_bounds = array<i64: 1, 1, 32>}, {pipeline_mode = #tpu.pipeline_mode<synchronous>, transform_indices = @transform_2, window_bounds = array<i64: 1, 1, 32>}, {pipeline_mode = #tpu.pipeline_mode<synchronous>, transform_indices = @transform_3, window_bounds = array<i64: 32, 128>}, {pipeline_mode = #tpu.pipeline_mode<synchronous>, transform_indices = @transform_4, window_bounds = array<i64: 1, 128>}, {pipeline_mode = #tpu.pipeline_mode<synchronous>, transform_indices = @transform_5, window_bounds = array<i64: 2, 128>}]} {
    %c0_i32 = arith.constant 0 : i32
    %0 = arith.cmpi eq, %arg0, %c0_i32 : i32
    %1 = arith.extui %0 : i1 to i32
    %c0_i32_0 = arith.constant 0 : i32
    %2 = arith.cmpi ne, %1, %c0_i32_0 : i32
    scf.if %2 {
      %cst_16 = arith.constant 0.000000e+00 : f32
      %19 = vector.broadcast %cst_16 : f32 to vector<2x32xf32>
      %c0_17 = arith.constant 0 : index
      %c0_18 = arith.constant 0 : index
      %20 = vector.load %arg7[%c0_17, %c0_18] : memref<2x32xf32, #tpu.memory_space<vmem>>, vector<2x32xf32>
      tpu.vector_store %arg7[%c0_17, %c0_18], %19 {strides = array<i32>} : memref<2x32xf32, #tpu.memory_space<vmem>>, vector<2x32xf32>,
    } else {
    }
    %c0 = arith.constant 0 : index
    %c0_1 = arith.constant 0 : index
    %c0_2 = arith.constant 0 : index
    %3 = vector.load %arg1[%c0, %c0_1, %c0_2] : memref<2x1x32xf32, #tpu.memory_space<vmem>>, vector<2x1x32xf32>
    %c0_3 = arith.constant 0 : index
    %c0_4 = arith.constant 0 : index
    %c0_5 = arith.constant 0 : index
    %4 = vector.load %arg2[%c0_3, %c0_4, %c0_5] : memref<1x1x32xf32, #tpu.memory_space<vmem>>, vector<1x1x32xf32>
    %5 = vector.broadcast %4 : vector<1x1x32xf32> to vector<2x1x32xf32>
    %6 = arith.mulf %3, %5 : vector<2x1x32xf32>
    %c0_6 = arith.constant 0 : index
    %c0_7 = arith.constant 0 : index
    %c0_8 = arith.constant 0 : index
    %7 = vector.load %arg3[%c0_6, %c0_7, %c0_8] : memref<1x1x32xf32, #tpu.memory_space<vmem>>, vector<1x1x32xf32>
    %8 = vector.broadcast %7 : vector<1x1x32xf32> to vector<2x1x32xf32>
    %9 = arith.addf %6, %8 : vector<2x1x32xf32>
    %cst = arith.constant 0.000000e+00 : f32
    %10 = vector.broadcast %cst : f32 to vector<2x1x32xf32>
    %11 = arith.maximumf %9, %10 : vector<2x1x32xf32>
    %c0_9 = arith.constant 0 : index
    %c0_10 = arith.constant 0 : index
    %12 = vector.load %arg7[%c0_9, %c0_10] : memref<2x32xf32, #tpu.memory_space<vmem>>, vector<2x32xf32>
    %cst_11 = arith.constant dense<0.000000e+00> : vector<2x32xf32>
    %13 = vector.multi_reduction <add>, %11, %cst_11 [1] : vector<2x1x32xf32> to vector<2x32xf32>
    %14 = arith.addf %12, %13 : vector<2x32xf32>
    %c0_12 = arith.constant 0 : index
    %c0_13 = arith.constant 0 : index
    %15 = vector.load %arg7[%c0_12, %c0_13] : memref<2x32xf32, #tpu.memory_space<vmem>>, vector<2x32xf32>
    tpu.vector_store %arg7[%c0_12, %c0_13], %14 {strides = array<i32>} : memref<2x32xf32, #tpu.memory_space<vmem>>, vector<2x32xf32>,
    %c0_i32_14 = arith.constant 0 : i32
    %16 = arith.cmpi eq, %arg0, %c0_i32_14 : i32
    %17 = arith.extui %16 : i1 to i32
    %c0_i32_15 = arith.constant 0 : i32
    %18 = arith.cmpi ne, %17, %c0_i32_15 : i32
    scf.if %18 {
      %c0_16 = arith.constant 0 : index
      %c0_17 = arith.constant 0 : index
      %19 = vector.load %arg7[%c0_16, %c0_17] : memref<2x32xf32, #tpu.memory_space<vmem>>, vector<2x32xf32>
      %cst_18 = arith.constant 1.000000e+00 : f32
      %20 = vector.broadcast %cst_18 : f32 to vector<2x32xf32>
      %21 = arith.mulf %19, %20 : vector<2x32xf32>
      %c0_19 = arith.constant 0 : index
      %c0_20 = arith.constant 0 : index
      %22 = vector.load %arg4[%c0_19, %c0_20] : memref<32x128xf32, #tpu.memory_space<vmem>>, vector<32x128xf32>
      %cst_21 = arith.constant dense<0.000000e+00> : vector<2x128xf32>
      %23 = tpu.matmul %21, %22, %cst_21 {dimension_numbers = #tpu.dot_dimension_numbers<[1], [0], [0], [1], [0, 0, 1, 1], [], []>} : vector<2x32xf32>, vector<32x128xf32>, vector<2x128xf32> -> vector<2x128xf32>
      %c0_22 = arith.constant 0 : index
      %c0_23 = arith.constant 0 : index
      %24 = vector.load %arg5[%c0_22, %c0_23] : memref<1x128xf32, #tpu.memory_space<vmem>>, vector<1x128xf32>
      %25 = vector.broadcast %24 : vector<1x128xf32> to vector<2x128xf32>
      %26 = arith.addf %23, %25 : vector<2x128xf32>
      %c0_24 = arith.constant 0 : index
      %c0_25 = arith.constant 0 : index
      %27 = vector.load %arg6[%c0_24, %c0_25] : memref<2x128xf32, #tpu.memory_space<vmem>>, vector<2x128xf32>
      tpu.vector_store %arg6[%c0_24, %c0_25], %26 {strides = array<i32>} : memref<2x128xf32, #tpu.memory_space<vmem>>, vector<2x128xf32>,
    } else {
    }
    return
  }
  func.func @transform_0(%arg0: i32) -> (i32, i32, i32) {
    %c0_i32 = arith.constant 0 : i32
    %c0_i32_0 = arith.constant 0 : i32
    %c0_i32_1 = arith.constant 0 : i32
    return %c0_i32, %arg0, %c0_i32_0 : i32, i32, i32
  }
  func.func @transform_1(%arg0: i32) -> (i32, i32, i32) {
    %c0_i32 = arith.constant 0 : i32
    %c0_i32_0 = arith.constant 0 : i32
    %c0_i32_1 = arith.constant 0 : i32
    %c0_i32_2 = arith.constant 0 : i32
    return %c0_i32, %c0_i32_0, %c0_i32_1 : i32, i32, i32
  }
  func.func @transform_2(%arg0: i32) -> (i32, i32, i32) {
    %c0_i32 = arith.constant 0 : i32
    %c0_i32_0 = arith.constant 0 : i32
    %c0_i32_1 = arith.constant 0 : i32
    %c0_i32_2 = arith.constant 0 : i32
    return %c0_i32, %c0_i32_0, %c0_i32_1 : i32, i32, i32
  }
  func.func @transform_3(%arg0: i32) -> (i32, i32) {
    %c0_i32 = arith.constant 0 : i32
    %c0_i32_0 = arith.constant 0 : i32
    %c0_i32_1 = arith.constant 0 : i32
    return %c0_i32, %c0_i32_0 : i32, i32
  }
  func.func @transform_4(%arg0: i32) -> (i32, i32) {
    %c0_i32 = arith.constant 0 : i32
    %c0_i32_0 = arith.constant 0 : i32
    %c0_i32_1 = arith.constant 0 : i32
    return %c0_i32, %c0_i32_0 : i32, i32
  }
  func.func @transform_5(%arg0: i32) -> (i32, i32) {
    %c0_i32 = arith.constant 0 : i32
    %c0_i32_0 = arith.constant 0 : i32
    %c0_i32_1 = arith.constant 0 : i32
    return %c0_i32, %c0_i32_0 : i32, i32
  }
}

</mosaic_0001>

<bundles_post_ra>
// kernel: mixstyle_densenet_forward.53
= control target key start
LH: loop header
LB: loop body
LE: loop exit
PB: predicated region body
PF: predicated region fallthrough
CT: control target
= control target key end

     0   :  { %vm284_vm0 = vcmask 130048   ;;  %s961_s0 = inlined_call_operand.vmem [shape: f32[512,16], index: 0, kind: input, shape index: {}]   ;;  %s962_s1 = inlined_call_operand.vmem [shape: f32[1,16], index: 1, kind: input, shape index: {}]   ;;  %s963_s2 = inlined_call_operand.vmem [shape: f32[1,16], index: 2, kind: input, shape index: {}]   ;;  %s964_s3 = inlined_call_operand.vmem [shape: f32[512,16], index: 3, kind: output, shape index: {}]  }
   0x1   :  { %v14_v0 = vld [vmem:[%s961_s0] sm:$0xff]  ;;  %v15_v4 = vld [vmem:[%s961_s0 + $0x8] sm:$0xff]  ;;  %v16_v5 = vld [vmem:[%s961_s0 + $0x10] sm:$0xff] }
   0x2   :  { %v381_v1 = vld [vmem:[%s962_s1] ss:$0 sm:$0xff]  ;;  %v17_v6 = vld [vmem:[%s961_s0 + $0x18] sm:$0xff]  ;;  %v19_v11 = vld [vmem:[%s961_s0 + $0x28] sm:$0xff] }
   0x3   :  { %v386_v2 = vld [vmem:[%s963_s2] ss:$0 sm:$0xff]  ;;  %v85_v3 = vmul.f32 %v381_v1, %v14_v0  ;;  %v86_v7 = vmul.f32 %v381_v1, %v15_v4  ;;  %v87_v8 = vmul.f32 %v381_v1, %v16_v5  ;;  %v88_v9 = vmul.f32 %v381_v1, %v17_v6  ;;  %v20_v12 = vld [vmem:[%s961_s0 + $0x30] sm:$0xff]  ;;  %v21_v17 = vld [vmem:[%s961_s0 + $0x38] sm:$0xff] }
   0x4   :  { %v18_v10 = vld [vmem:[%s961_s0 + $0x20] sm:$0xff]  ;;  %v90_v15 = vmul.f32 %v381_v1, %v19_v11  ;;  %v91_v16 = vmul.f32 %v381_v1, %v20_v12  ;;  %v92_v21 = vmul.f32 %v381_v1, %v21_v17  ;;  %v23_v27 = vld [vmem:[%s961_s0 + $0x48] sm:$0xff]  ;;  %v24_v28 = vld [vmem:[%s961_s0 + $0x50] sm:$0xff] }
   0x5   :  { %v156_v13 = vadd.f32 %v386_v2, %v85_v3  ;;  %v89_v14 = vmul.f32 %v381_v1, %v18_v10  ;;  %v157_v18 = vadd.f32 %v386_v2, %v86_v7  ;;  %v158_v19 = vadd.f32 %v386_v2, %v87_v8  ;;  %v22_v22 = vld [vmem:[%s961_s0 + $0x40] sm:$0xff]  ;;  %v25_v29 = vld [vmem:[%s961_s0 + $0x58] sm:$0xff]  ;;  %v27_v35 = vld [vmem:[%s961_s0 + $0x68] sm:$0xff] }
   0x6   :  { %v159_v20 = vadd.f32 %v386_v2, %v88_v9  ;;  %v161_v25 = vadd.f32 %v386_v2, %v90_v15  ;;  %v162_v26 = vadd.f32 %v386_v2, %v91_v16  ;;  %v163_v33 = vadd.f32 %v386_v2, %v92_v21  ;;  %v26_v34 = vld [vmem:[%s961_s0 + $0x60] sm:$0xff]  ;;  %v28_v36 = vld [vmem:[%s961_s0 + $0x70] sm:$0xff]  ;;  %v29_v41 = vld [vmem:[%s961_s0 + $0x78] sm:$0xff] }
   0x7   :  { %v220_v23 = vmax.f32 %v156_v13, 0.0  ;;  %v160_v24 = vadd.f32 %v386_v2, %v89_v14  ;;  %v221_v30 = vmax.f32 %v157_v18, 0.0  ;;  %v222_v31 = vmax.f32 %v158_v19, 0.0  ;;  %v30_v54 = vld [vmem:[%s961_s0 + $0x80] sm:$0xff]  ;;  %v31_v59 = vld [vmem:[%s961_s0 + $0x88] sm:$0xff]  ;;  %v32_v60 = vld [vmem:[%s961_s0 + $0x90] sm:$0xff] }
   0x8   :  { %v223_v32 = vmax.f32 %v159_v20, 0.0  ;;  %v225_v38 = vmax.f32 %v161_v25, 0.0  ;;  %v226_v39 = vmax.f32 %v162_v26, 0.0  ;;  %v93_v40 = vmul.f32 %v381_v1, %v22_v22  ;;  %v33_v61 = vld [vmem:[%s961_s0 + $0x98] sm:$0xff]  ;;  %v34_v4 = vld [vmem:[%s961_s0 + $0xa0] sm:$0xff]  ;;  %v35_v5 = vld [vmem:[%s961_s0 + $0xa8] sm:$0xff] }
   0x9   :  { %285 = vst.msk [vmem:[%s964_s3] sm:$0xff] %vm284_vm0, %v220_v23  ;;  %v224_v37 = vmax.f32 %v160_v24, 0.0  ;;  %286 = vst.msk [vmem:[%s964_s3 + $0x8] sm:$0xff] %vm284_vm0, %v221_v30  ;;  %v227_v42 = vmax.f32 %v163_v33, 0.0  ;;  %v94_v43 = vmul.f32 %v381_v1, %v23_v27  ;;  %v95_v44 = vmul.f32 %v381_v1, %v24_v28  ;;  %v36_v6 = vld [vmem:[%s961_s0 + $0xb0] sm:$0xff]  ;;  %v37_v11 = vld [vmem:[%s961_s0 + $0xb8] sm:$0xff] }
   0xa   :  { %287 = vst.msk [vmem:[%s964_s3 + $0x10] sm:$0xff] %vm284_vm0, %v222_v31  ;;  %288 = vst.msk [vmem:[%s964_s3 + $0x18] sm:$0xff] %vm284_vm0, %v223_v32  ;;  %v96_v45 = vmul.f32 %v381_v1, %v25_v29  ;;  %v164_v46 = vadd.f32 %v386_v2, %v93_v40  ;;  %v97_v47 = vmul.f32 %v381_v1, %v26_v34  ;;  %v38_v24 = vld [vmem:[%s961_s0 + $0xc0] sm:$0xff]  ;;  %v39_v29 = vld [vmem:[%s961_s0 + $0xc8] sm:$0xff] }
   0xb   :  { %289 = vst.msk [vmem:[%s964_s3 + $0x20] sm:$0xff] %vm284_vm0, %v224_v37  ;;  %290 = vst.msk [vmem:[%s964_s3 + $0x28] sm:$0xff] %vm284_vm0, %v225_v38  ;;  %v98_v48 = vmul.f32 %v381_v1, %v27_v35  ;;  %v99_v49 = vmul.f32 %v381_v1, %v28_v36  ;;  %v165_v50 = vadd.f32 %v386_v2, %v94_v43  ;;  %v40_v30 = vld [vmem:[%s961_s0 + $0xd0] sm:$0xff]  ;;  %v41_v31 = vld [vmem:[%s961_s0 + $0xd8] sm:$0xff] }
   0xc   :  { %291 = vst.msk [vmem:[%s964_s3 + $0x30] sm:$0xff] %vm284_vm0, %v226_v39  ;;  %292 = vst.msk [vmem:[%s964_s3 + $0x38] sm:$0xff] %vm284_vm0, %v227_v42  ;;  %v166_v51 = vadd.f32 %v386_v2, %v95_v44  ;;  %v167_v52 = vadd.f32 %v386_v2, %v96_v45  ;;  %v100_v53 = vmul.f32 %v381_v1, %v29_v41  ;;  %v228_v55 = vmax.f32 %v164_v46, 0.0  ;;  %v42_v36 = vld [vmem:[%s961_s0 + $0xe0] sm:$0xff]  ;;  %v43_v37 = vld [vmem:[%s961_s0 + $0xe8] sm:$0xff] }
   0xd   :  { %v168_v56 = vadd.f32 %v386_v2, %v97_v47  ;;  %v169_v57 = vadd.f32 %v386_v2, %v98_v48  ;;  %v170_v58 = vadd.f32 %v386_v2, %v99_v49  ;;  %v229_v62 = vmax.f32 %v165_v50, 0.0  ;;  %v44_v38 = vld [vmem:[%s961_s0 + $0xf0] sm:$0xff]  ;;  %v45_v43 = vld [vmem:[%s961_s0 + $0xf8] sm:$0xff] }
   0xe   :  { %v230_v63 = vmax.f32 %v166_v51, 0.0  ;;  %v231_v0 = vmax.f32 %v167_v52, 0.0  ;;  %v171_v3 = vadd.f32 %v386_v2, %v100_v53  ;;  %293 = vst.msk [vmem:[%s964_s3 + $0x40] sm:$0xff] %vm284_vm0, %v228_v55  ;;  %v101_v10 = vmul.f32 %v381_v1, %v30_v54 }
   0xf   :  { %v232_v7 = vmax.f32 %v168_v56, 0.0  ;;  %v233_v8 = vmax.f32 %v169_v57, 0.0  ;;  %v234_v9 = vmax.f32 %v170_v58, 0.0  ;;  %294 = vst.msk [vmem:[%s964_s3 + $0x48] sm:$0xff] %vm284_vm0, %v229_v62  ;;  %v102_v13 = vmul.f32 %v381_v1, %v31_v59  ;;  %v46_v56 = vld [vmem:[%s961_s0 + $0x100] sm:$0xff]  ;;  %v48_v62 = vld [vmem:[%s961_s0 + $0x110] sm:$0xff] }
  0x10   :  { %295 = vst.msk [vmem:[%s964_s3 + $0x50] sm:$0xff] %vm284_vm0, %v230_v63  ;;  %296 = vst.msk [vmem:[%s964_s3 + $0x58] sm:$0xff] %vm284_vm0, %v231_v0  ;;  %v235_v12 = vmax.f32 %v171_v3, 0.0  ;;  %v103_v14 = vmul.f32 %v381_v1, %v32_v60  ;;  %v104_v15 = vmul.f32 %v381_v1, %v33_v61  ;;  %v172_v16 = vadd.f32 %v386_v2, %v101_v10  ;;  %v47_v61 = vld [vmem:[%s961_s0 + $0x108] sm:$0xff]  ;;  %v49_v63 = vld [vmem:[%s961_s0 + $0x118] sm:$0xff] }
  0x11   :  { %297 = vst.msk [vmem:[%s964_s3 + $0x60] sm:$0xff] %vm284_vm0, %v232_v7  ;;  %298 = vst.msk [vmem:[%s964_s3 + $0x68] sm:$0xff] %vm284_vm0, %v233_v8  ;;  %v105_v17 = vmul.f32 %v381_v1, %v34_v4  ;;  %v106_v18 = vmul.f32 %v381_v1, %v35_v5  ;;  %v107_v19 = vmul.f32 %v381_v1, %v36_v6  ;;  %v50_v6 = vld [vmem:[%s961_s0 + $0x120] sm:$0xff]  ;;  %v51_v7 = vld [vmem:[%s961_s0 + $0x128] sm:$0xff] }
  0x12   :  { %299 = vst.msk [vmem:[%s964_s3 + $0x70] sm:$0xff] %vm284_vm0, %v234_v9  ;;  %300 = vst.msk [vmem:[%s964_s3 + $0x78] sm:$0xff] %vm284_vm0, %v235_v12  ;;  %v173_v20 = vadd.f32 %v386_v2, %v102_v13  ;;  %v174_v21 = vadd.f32 %v386_v2, %v103_v14  ;;  %v175_v22 = vadd.f32 %v386_v2, %v104_v15  ;;  %v236_v25 = vmax.f32 %v172_v16, 0.0  ;;  %v52_v8 = vld [vmem:[%s961_s0 + $0x130] sm:$0xff]  ;;  %v53_v13 = vld [vmem:[%s961_s0 + $0x138] sm:$0xff] }
  0x13   :  { %v108_v23 = vmul.f32 %v381_v1, %v37_v11  ;;  %v176_v26 = vadd.f32 %v386_v2, %v105_v17  ;;  %v177_v27 = vadd.f32 %v386_v2, %v106_v18  ;;  %v178_v28 = vadd.f32 %v386_v2, %v107_v19 }
  0x14   :  { %v237_v32 = vmax.f32 %v173_v20, 0.0  ;;  %v238_v33 = vmax.f32 %v174_v21, 0.0  ;;  %v239_v34 = vmax.f32 %v175_v22, 0.0  ;;  %301 = vst.msk [vmem:[%s964_s3 + $0x80] sm:$0xff] %vm284_vm0, %v236_v25  ;;  %v109_v42 = vmul.f32 %v381_v1, %v38_v24 }
  0x15   :  { %v179_v35 = vadd.f32 %v386_v2, %v108_v23  ;;  %v240_v39 = vmax.f32 %v176_v26, 0.0  ;;  %v241_v40 = vmax.f32 %v177_v27, 0.0  ;;  %v242_v41 = vmax.f32 %v178_v28, 0.0  ;;  %v54_v26 = vld [vmem:[%s961_s0 + $0x140] sm:$0xff] }
  0x16   :  { %302 = vst.msk [vmem:[%s964_s3 + $0x88] sm:$0xff] %vm284_vm0, %v237_v32  ;;  %303 = vst.msk [vmem:[%s964_s3 + $0x90] sm:$0xff] %vm284_vm0, %v238_v33  ;;  %v110_v45 = vmul.f32 %v381_v1, %v39_v29  ;;  %v111_v46 = vmul.f32 %v381_v1, %v40_v30  ;;  %v112_v47 = vmul.f32 %v381_v1, %v41_v31  ;;  %v55_v31 = vld [vmem:[%s961_s0 + $0x148] sm:$0xff]  ;;  %v56_v32 = vld [vmem:[%s961_s0 + $0x150] sm:$0xff] }
  0x17   :  { %304 = vst.msk [vmem:[%s964_s3 + $0x98] sm:$0xff] %vm284_vm0, %v239_v34  ;;  %v243_v44 = vmax.f32 %v179_v35, 0.0  ;;  %305 = vst.msk [vmem:[%s964_s3 + $0xa0] sm:$0xff] %vm284_vm0, %v240_v39  ;;  %v180_v48 = vadd.f32 %v386_v2, %v109_v42  ;;  %v113_v49 = vmul.f32 %v381_v1, %v42_v36  ;;  %v114_v50 = vmul.f32 %v381_v1, %v43_v37  ;;  %v57_v33 = vld [vmem:[%s961_s0 + $0x158] sm:$0xff]  ;;  %v59_v39 = vld [vmem:[%s961_s0 + $0x168] sm:$0xff] }
  0x18   :  { %306 = vst.msk [vmem:[%s964_s3 + $0xa8] sm:$0xff] %vm284_vm0, %v241_v40  ;;  %307 = vst.msk [vmem:[%s964_s3 + $0xb0] sm:$0xff] %vm284_vm0, %v242_v41  ;;  %v115_v51 = vmul.f32 %v381_v1, %v44_v38  ;;  %v181_v52 = vadd.f32 %v386_v2, %v110_v45  ;;  %v182_v53 = vadd.f32 %v386_v2, %v111_v46  ;;  %v58_v38 = vld [vmem:[%s961_s0 + $0x160] sm:$0xff]  ;;  %v60_v40 = vld [vmem:[%s961_s0 + $0x170] sm:$0xff] }
  0x19   :  { %308 = vst.msk [vmem:[%s964_s3 + $0xb8] sm:$0xff] %vm284_vm0, %v243_v44  ;;  %v183_v54 = vadd.f32 %v386_v2, %v112_v47  ;;  %v116_v55 = vmul.f32 %v381_v1, %v45_v43  ;;  %v244_v57 = vmax.f32 %v180_v48, 0.0  ;;  %v184_v58 = vadd.f32 %v386_v2, %v113_v49  ;;  %v61_v45 = vld [vmem:[%s961_s0 + $0x178] sm:$0xff] }
  0x1a   :  { %v185_v59 = vadd.f32 %v386_v2, %v114_v50  ;;  %v186_v60 = vadd.f32 %v386_v2, %v115_v51  ;;  %v245_v0 = vmax.f32 %v181_v52, 0.0  ;;  %v246_v3 = vmax.f32 %v182_v53, 0.0 }
  0x1b   :  { %v247_v4 = vmax.f32 %v183_v54, 0.0  ;;  %v187_v5 = vadd.f32 %v386_v2, %v116_v55  ;;  %309 = vst.msk [vmem:[%s964_s3 + $0xc0] sm:$0xff] %vm284_vm0, %v244_v57  ;;  %v248_v9 = vmax.f32 %v184_v58, 0.0  ;;  %v117_v12 = vmul.f32 %v381_v1, %v46_v56  ;;  %v62_v58 = vld [vmem:[%s961_s0 + $0x180] sm:$0xff] }
  0x1c   :  { %v249_v10 = vmax.f32 %v185_v59, 0.0  ;;  %v250_v11 = vmax.f32 %v186_v60, 0.0  ;;  %310 = vst.msk [vmem:[%s964_s3 + $0xc8] sm:$0xff] %vm284_vm0, %v245_v0  ;;  %311 = vst.msk [vmem:[%s964_s3 + $0xd0] sm:$0xff] %vm284_vm0, %v246_v3  ;;  %v118_v15 = vmul.f32 %v381_v1, %v47_v61  ;;  %v119_v16 = vmul.f32 %v381_v1, %v48_v62  ;;  %v64_v0 = vld [vmem:[%s961_s0 + $0x190] sm:$0xff]  ;;  %v65_v3 = vld [vmem:[%s961_s0 + $0x198] sm:$0xff] }
  0x1d   :  { %312 = vst.msk [vmem:[%s964_s3 + $0xd8] sm:$0xff] %vm284_vm0, %v247_v4  ;;  %v251_v14 = vmax.f32 %v187_v5, 0.0  ;;  %v120_v17 = vmul.f32 %v381_v1, %v49_v63  ;;  %313 = vst.msk [vmem:[%s964_s3 + $0xe0] sm:$0xff] %vm284_vm0, %v248_v9  ;;  %v188_v18 = vadd.f32 %v386_v2, %v117_v12  ;;  %v121_v19 = vmul.f32 %v381_v1, %v50_v6  ;;  %v63_v63 = vld [vmem:[%s961_s0 + $0x188] sm:$0xff] }
  0x1e   :  { %314 = vst.msk [vmem:[%s964_s3 + $0xe8] sm:$0xff] %vm284_vm0, %v249_v10  ;;  %315 = vst.msk [vmem:[%s964_s3 + $0xf0] sm:$0xff] %vm284_vm0, %v250_v11  ;;  %v122_v20 = vmul.f32 %v381_v1, %v51_v7  ;;  %v123_v21 = vmul.f32 %v381_v1, %v52_v8  ;;  %v189_v22 = vadd.f32 %v386_v2, %v118_v15  ;;  %v66_v8 = vld [vmem:[%s961_s0 + $0x1a0] sm:$0xff]  ;;  %v67_v9 = vld [vmem:[%s961_s0 + $0x1a8] sm:$0xff] }
  0x1f   :  { %316 = vst.msk [vmem:[%s964_s3 + $0xf8] sm:$0xff] %vm284_vm0, %v251_v14  ;;  %v190_v23 = vadd.f32 %v386_v2, %v119_v16  ;;  %v191_v24 = vadd.f32 %v386_v2, %v120_v17  ;;  %v124_v25 = vmul.f32 %v381_v1, %v53_v13  ;;  %v252_v27 = vmax.f32 %v188_v18, 0.0  ;;  %v68_v10 = vld [vmem:[%s961_s0 + $0x1b0] sm:$0xff]  ;;  %v69_v15 = vld [vmem:[%s961_s0 + $0x1b8] sm:$0xff] }
  0x20   :  { %v192_v28 = vadd.f32 %v386_v2, %v121_v19  ;;  %v193_v29 = vadd.f32 %v386_v2, %v122_v20  ;;  %v194_v30 = vadd.f32 %v386_v2, %v123_v21  ;;  %v253_v34 = vmax.f32 %v189_v22, 0.0 }
  0x21   :  { %v254_v35 = vmax.f32 %v190_v23, 0.0  ;;  %v255_v36 = vmax.f32 %v191_v24, 0.0  ;;  %v195_v37 = vadd.f32 %v386_v2, %v124_v25  ;;  %317 = vst.msk [vmem:[%s964_s3 + $0x100] sm:$0xff] %vm284_vm0, %v252_v27  ;;  %v125_v44 = vmul.f32 %v381_v1, %v54_v26 }
  0x22   :  { %v256_v41 = vmax.f32 %v192_v28, 0.0  ;;  %v257_v42 = vmax.f32 %v193_v29, 0.0  ;;  %v258_v43 = vmax.f32 %v194_v30, 0.0  ;;  %318 = vst.msk [vmem:[%s964_s3 + $0x108] sm:$0xff] %vm284_vm0, %v253_v34  ;;  %v126_v47 = vmul.f32 %v381_v1, %v55_v31  ;;  %v70_v28 = vld [vmem:[%s961_s0 + $0x1c0] sm:$0xff]  ;;  %v72_v34 = vld [vmem:[%s961_s0 + $0x1d0] sm:$0xff] }
  0x23   :  { %319 = vst.msk [vmem:[%s964_s3 + $0x110] sm:$0xff] %vm284_vm0, %v254_v35  ;;  %320 = vst.msk [vmem:[%s964_s3 + $0x118] sm:$0xff] %vm284_vm0, %v255_v36  ;;  %v259_v46 = vmax.f32 %v195_v37, 0.0  ;;  %v127_v48 = vmul.f32 %v381_v1, %v56_v32  ;;  %v128_v49 = vmul.f32 %v381_v1, %v57_v33  ;;  %v196_v50 = vadd.f32 %v386_v2, %v125_v44  ;;  %v71_v33 = vld [vmem:[%s961_s0 + $0x1c8] sm:$0xff]  ;;  %v73_v35 = vld [vmem:[%s961_s0 + $0x1d8] sm:$0xff] }
  0x24   :  { %321 = vst.msk [vmem:[%s964_s3 + $0x120] sm:$0xff] %vm284_vm0, %v256_v41  ;;  %322 = vst.msk [vmem:[%s964_s3 + $0x128] sm:$0xff] %vm284_vm0, %v257_v42  ;;  %v129_v51 = vmul.f32 %v381_v1, %v58_v38  ;;  %v130_v52 = vmul.f32 %v381_v1, %v59_v39  ;;  %v131_v53 = vmul.f32 %v381_v1, %v60_v40  ;;  %v74_v40 = vld [vmem:[%s961_s0 + $0x1e0] sm:$0xff]  ;;  %v75_v41 = vld [vmem:[%s961_s0 + $0x1e8] sm:$0xff] }
  0x25   :  { %323 = vst.msk [vmem:[%s964_s3 + $0x130] sm:$0xff] %vm284_vm0, %v258_v43  ;;  %324 = vst.msk [vmem:[%s964_s3 + $0x138] sm:$0xff] %vm284_vm0, %v259_v46  ;;  %v197_v54 = vadd.f32 %v386_v2, %v126_v47  ;;  %v198_v55 = vadd.f32 %v386_v2, %v127_v48  ;;  %v199_v56 = vadd.f32 %v386_v2, %v128_v49  ;;  %v260_v59 = vmax.f32 %v196_v50, 0.0  ;;  %v76_v42 = vld [vmem:[%s961_s0 + $0x1f0] sm:$0xff]  ;;  %v77_v47 = vld [vmem:[%s961_s0 + $0x1f8] sm:$0xff] }
  0x26   :  { %v132_v57 = vmul.f32 %v381_v1, %v61_v45  ;;  %v200_v60 = vadd.f32 %v386_v2, %v129_v51  ;;  %v201_v61 = vadd.f32 %v386_v2, %v130_v52  ;;  %v202_v62 = vadd.f32 %v386_v2, %v131_v53 }
  0x27   :  { %v261_v4 = vmax.f32 %v197_v54, 0.0  ;;  %v262_v5 = vmax.f32 %v198_v55, 0.0  ;;  %v263_v6 = vmax.f32 %v199_v56, 0.0  ;;  %325 = vst.msk [vmem:[%s964_s3 + $0x140] sm:$0xff] %vm284_vm0, %v260_v59  ;;  %v133_v14 = vmul.f32 %v381_v1, %v62_v58 }
  0x28   :  { %v203_v7 = vadd.f32 %v386_v2, %v132_v57  ;;  %v264_v11 = vmax.f32 %v200_v60, 0.0  ;;  %v265_v12 = vmax.f32 %v201_v61, 0.0  ;;  %v266_v13 = vmax.f32 %v202_v62, 0.0 }
  0x29   :  { %326 = vst.msk [vmem:[%s964_s3 + $0x148] sm:$0xff] %vm284_vm0, %v261_v4  ;;  %327 = vst.msk [vmem:[%s964_s3 + $0x150] sm:$0xff] %vm284_vm0, %v262_v5  ;;  %v134_v17 = vmul.f32 %v381_v1, %v63_v63  ;;  %v135_v18 = vmul.f32 %v381_v1, %v64_v0  ;;  %v136_v19 = vmul.f32 %v381_v1, %v65_v3 }
  0x2a   :  { %328 = vst.msk [vmem:[%s964_s3 + $0x158] sm:$0xff] %vm284_vm0, %v263_v6  ;;  %v267_v16 = vmax.f32 %v203_v7, 0.0  ;;  %329 = vst.msk [vmem:[%s964_s3 + $0x160] sm:$0xff] %vm284_vm0, %v264_v11  ;;  %v204_v20 = vadd.f32 %v386_v2, %v133_v14  ;;  %v137_v21 = vmul.f32 %v381_v1, %v66_v8  ;;  %v138_v22 = vmul.f32 %v381_v1, %v67_v9 }
  0x2b   :  { %330 = vst.msk [vmem:[%s964_s3 + $0x168] sm:$0xff] %vm284_vm0, %v265_v12  ;;  %331 = vst.msk [vmem:[%s964_s3 + $0x170] sm:$0xff] %vm284_vm0, %v266_v13  ;;  %v139_v23 = vmul.f32 %v381_v1, %v68_v10  ;;  %v205_v24 = vadd.f32 %v386_v2, %v134_v17  ;;  %v206_v25 = vadd.f32 %v386_v2, %v135_v18 }
  0x2c   :  { %332 = vst.msk [vmem:[%s964_s3 + $0x178] sm:$0xff] %vm284_vm0, %v267_v16  ;;  %v207_v26 = vadd.f32 %v386_v2, %v136_v19  ;;  %v140_v27 = vmul.f32 %v381_v1, %v69_v15  ;;  %v268_v29 = vmax.f32 %v204_v20, 0.0  ;;  %v208_v30 = vadd.f32 %v386_v2, %v137_v21 }
  0x2d   :  { %v209_v31 = vadd.f32 %v386_v2, %v138_v22  ;;  %v210_v32 = vadd.f32 %v386_v2, %v139_v23  ;;  %v269_v36 = vmax.f32 %v205_v24, 0.0  ;;  %v270_v37 = vmax.f32 %v206_v25, 0.0 }
  0x2e   :  { %v271_v38 = vmax.f32 %v207_v26, 0.0  ;;  %v211_v39 = vadd.f32 %v386_v2, %v140_v27  ;;  %333 = vst.msk [vmem:[%s964_s3 + $0x180] sm:$0xff] %vm284_vm0, %v268_v29  ;;  %v272_v43 = vmax.f32 %v208_v30, 0.0  ;;  %v141_v46 = vmul.f32 %v381_v1, %v70_v28 }
  0x2f   :  { %v273_v44 = vmax.f32 %v209_v31, 0.0  ;;  %v274_v45 = vmax.f32 %v210_v32, 0.0  ;;  %334 = vst.msk [vmem:[%s964_s3 + $0x188] sm:$0xff] %vm284_vm0, %v269_v36  ;;  %335 = vst.msk [vmem:[%s964_s3 + $0x190] sm:$0xff] %vm284_vm0, %v270_v37  ;;  %v142_v49 = vmul.f32 %v381_v1, %v71_v33  ;;  %v143_v50 = vmul.f32 %v381_v1, %v72_v34 }
  0x30   :  { %336 = vst.msk [vmem:[%s964_s3 + $0x198] sm:$0xff] %vm284_vm0, %v271_v38  ;;  %v275_v48 = vmax.f32 %v211_v39, 0.0  ;;  %v144_v51 = vmul.f32 %v381_v1, %v73_v35  ;;  %337 = vst.msk [vmem:[%s964_s3 + $0x1a0] sm:$0xff] %vm284_vm0, %v272_v43  ;;  %v212_v52 = vadd.f32 %v386_v2, %v141_v46  ;;  %v145_v53 = vmul.f32 %v381_v1, %v74_v40 }
  0x31   :  { %338 = vst.msk [vmem:[%s964_s3 + $0x1a8] sm:$0xff] %vm284_vm0, %v273_v44  ;;  %339 = vst.msk [vmem:[%s964_s3 + $0x1b0] sm:$0xff] %vm284_vm0, %v274_v45  ;;  %v146_v54 = vmul.f32 %v381_v1, %v75_v41  ;;  %v147_v55 = vmul.f32 %v381_v1, %v76_v42  ;;  %v213_v56 = vadd.f32 %v386_v2, %v142_v49 }
  0x32   :  { %340 = vst.msk [vmem:[%s964_s3 + $0x1b8] sm:$0xff] %vm284_vm0, %v275_v48  ;;  %v214_v57 = vadd.f32 %v386_v2, %v143_v50  ;;  %v215_v58 = vadd.f32 %v386_v2, %v144_v51  ;;  %v148_v59 = vmul.f32 %v381_v1, %v77_v47  ;;  %v276_v60 = vmax.f32 %v212_v52, 0.0 }
  0x33   :  { %v216_v61 = vadd.f32 %v386_v2, %v145_v53  ;;  %v217_v62 = vadd.f32 %v386_v2, %v146_v54  ;;  %v218_v63 = vadd.f32 %v386_v2, %v147_v55  ;;  %v277_v0 = vmax.f32 %v213_v56, 0.0 }
  0x34   :  { %v278_v3 = vmax.f32 %v214_v57, 0.0  ;;  %v279_v4 = vmax.f32 %v215_v58, 0.0  ;;  %v219_v5 = vadd.f32 %v386_v2, %v148_v59  ;;  %341 = vst.msk [vmem:[%s964_s3 + $0x1c0] sm:$0xff] %vm284_vm0, %v276_v60 }
  0x35   :  { %v280_v6 = vmax.f32 %v216_v61, 0.0  ;;  %v281_v7 = vmax.f32 %v217_v62, 0.0  ;;  %v282_v1 = vmax.f32 %v218_v63, 0.0  ;;  %342 = vst.msk [vmem:[%s964_s3 + $0x1c8] sm:$0xff] %vm284_vm0, %v277_v0 }
  0x36   :  { %343 = vst.msk [vmem:[%s964_s3 + $0x1d0] sm:$0xff] %vm284_vm0, %v278_v3  ;;  %344 = vst.msk [vmem:[%s964_s3 + $0x1d8] sm:$0xff] %vm284_vm0, %v279_v4  ;;  %v283_v2 = vmax.f32 %v219_v5, 0.0 }
  0x37   :  { %345 = vst.msk [vmem:[%s964_s3 + $0x1e0] sm:$0xff] %vm284_vm0, %v280_v6  ;;  %346 = vst.msk [vmem:[%s964_s3 + $0x1e8] sm:$0xff] %vm284_vm0, %v281_v7 }
  0x38   :  { %347 = vst.msk [vmem:[%s964_s3 + $0x1f0] sm:$0xff] %vm284_vm0, %v282_v1  ;;  %348 = vst.msk [vmem:[%s964_s3 + $0x1f8] sm:$0xff] %vm284_vm0, %v283_v2 }

// kernel: mixstyle_densenet_forward.52
= control target key start
LH: loop header
LB: loop body
LE: loop exit
PB: predicated region body
PF: predicated region fallthrough
CT: control target
= control target key end

     0   :  { %vm14_vm0 = vcmask 122880   ;;  %vm82_vm1 = vcmask 130048   ;;  %v446_v0 = vmov 0.0   ;;  %s1328_s0 = inlined_call_operand.vmem [shape: f32[512,16], index: 0, kind: input, shape index: {}]   ;;  %s1329_s1 = inlined_call_operand.vmem [shape: f32[1,16], index: 1, kind: output, shape index: {0}]   ;;  %s1330_s2 = inlined_call_operand.vmem [shape: f32[1,16], index: 2, kind: output, shape index: {1}]  }
   0x1   :  { %15 = vst.msk [vmem:[#allocation2] sm:$0x1] %vm14_vm0, %v446_v0  ;;  %16 = vst.msk [vmem:[#allocation3] sm:$0x1] %vm14_vm0, %v446_v0  ;;  %v467_v1 = vld [vmem:[%s1328_s0] sm:$0xff]  ;;  %v472_v2 = vld [vmem:[%s1328_s0 + $0x8] sm:$0xff] }
   0x2   :  { %v477_v3 = vld [vmem:[%s1328_s0 + $0x10] sm:$0xff]  ;;  %v482_v4 = vld [vmem:[%s1328_s0 + $0x18] sm:$0xff]  ;;  %v83_v5 = vsel %vm82_vm1, %v467_v1, 0.0  ;;  %v84_v6 = vsel %vm82_vm1, %v472_v2, 0.0  ;;  %v493_v8 = vld [vmem:[%s1328_s0 + $0x20] sm:$0xff] }
   0x3   :  { %v86_v7 = vsel %vm82_vm1, %v477_v3, 0.0  ;;  %v85_v9 = vadd.f32 %v84_v6, %v83_v5  ;;  %v88_v10 = vsel %vm82_vm1, %v482_v4, 0.0  ;;  %v500_v11 = vld [vmem:[%s1328_s0 + $0x28] sm:$0xff]  ;;  %v90_v13 = vsel %vm82_vm1, %v493_v8, 0.0  ;;  %v507_v14 = vld [vmem:[%s1328_s0 + $0x30] sm:$0xff]  ;;  %v512_v16 = vld [vmem:[%s1328_s0 + $0x38] sm:$0xff] }
   0x4   :  { %v517_v17 = vld [vmem:[%s1328_s0 + $0x40] sm:$0xff]  ;;  %v92_v18 = vsel %vm82_vm1, %v500_v11, 0.0  ;;  %v524_v19 = vld [vmem:[%s1328_s0 + $0x48] sm:$0xff]  ;;  %v529_v20 = vld [vmem:[%s1328_s0 + $0x50] sm:$0xff]  ;;  %v94_v23 = vsel %vm82_vm1, %v507_v14, 0.0  ;;  %v96_v25 = vsel %vm82_vm1, %v512_v16, 0.0 }
   0x5   :  { %v87_v12 = vadd.f32 %v86_v7, %v85_v9  ;;  %v534_v21 = vld [vmem:[%s1328_s0 + $0x58] sm:$0xff]  ;;  %v98_v26 = vsel %vm82_vm1, %v517_v17, 0.0  ;;  %v545_v27 = vld [vmem:[%s1328_s0 + $0x108] sm:$0xff]  ;;  %v550_v28 = vld [vmem:[%s1328_s0 + $0x110] sm:$0xff]  ;;  %v100_v30 = vsel %vm82_vm1, %v524_v19, 0.0  ;;  %v102_v31 = vsel %vm82_vm1, %v529_v20, 0.0 }
   0x6   :  { %v555_v29 = vld [vmem:[%s1328_s0 + $0x118] sm:$0xff]  ;;  %v563_v32 = vsel %vm82_vm1, %v534_v21, 0.0  ;;  %v568_v33 = vld [vmem:[%s1328_s0 + $0x120] sm:$0xff]  ;;  %v573_v34 = vld [vmem:[%s1328_s0 + $0x128] sm:$0xff]  ;;  %v582_v37 = vsel %vm82_vm1, %v545_v27, 0.0  ;;  %v586_v38 = vsel %vm82_vm1, %v550_v28, 0.0 }
   0x7   :  { %v89_v15 = vadd.f32 %v88_v10, %v87_v12  ;;  %v578_v35 = vld [vmem:[%s1328_s0 + $0x130] sm:$0xff]  ;;  %1353 = vst [vmem:[#allocation4_spill] sm:$0xff] %v582_v37  ;;  %1354 = vst [vmem:[#allocation5_spill] sm:$0xff] %v586_v38  ;;  %v590_v39 = vsel %vm82_vm1, %v555_v29, 0.0  ;;  %v595_v40 = vld [vmem:[%s1328_s0 + $0x138] sm:$0xff]  ;;  %v609_v43 = vsel %vm82_vm1, %v568_v33, 0.0 }
   0x8   :  { %1355 = vst [vmem:[#allocation6_spill] sm:$0xff] %v590_v39  ;;  %v600_v41 = vld [vmem:[%s1328_s0 + $0x140] sm:$0xff]  ;;  %v605_v42 = vld [vmem:[%s1328_s0 + $0x148] sm:$0xff]  ;;  %1356 = vst [vmem:[#allocation7_spill] sm:$0xff] %v609_v43  ;;  %v613_v44 = vsel %vm82_vm1, %v573_v34, 0.0  ;;  %v617_v45 = vsel %vm82_vm1, %v578_v35, 0.0 }
   0x9   :  { %v91_v22 = vadd.f32 %v90_v13, %v89_v15  ;;  %1357 = vst [vmem:[#allocation8_spill] sm:$0xff] %v613_v44  ;;  %1358 = vst [vmem:[#allocation9_spill] sm:$0xff] %v617_v45  ;;  %v622_v46 = vld [vmem:[%s1328_s0 + $0x150] sm:$0xff]  ;;  %v627_v47 = vld [vmem:[%s1328_s0 + $0x158] sm:$0xff]  ;;  %v636_v50 = vsel %vm82_vm1, %v595_v40, 0.0  ;;  %v640_v51 = vsel %vm82_vm1, %v600_v41, 0.0 }
   0xa   :  { %v632_v48 = vld [vmem:[%s1328_s0 + $0x160] sm:$0xff]  ;;  %1359 = vst [vmem:[#allocation10_spill] sm:$0xff] %v636_v50  ;;  %1360 = vst [vmem:[#allocation11_spill] sm:$0xff] %v640_v51  ;;  %v644_v52 = vsel %vm82_vm1, %v605_v42, 0.0  ;;  %v649_v53 = vld [vmem:[%s1328_s0 + $0x168] sm:$0xff]  ;;  %v663_v56 = vsel %vm82_vm1, %v622_v46, 0.0 }
   0xb   :  { %v93_v24 = vadd.f32 %v92_v18, %v91_v22  ;;  %1361 = vst [vmem:[#allocation12_spill] sm:$0xff] %v644_v52  ;;  %v654_v54 = vld [vmem:[%s1328_s0 + $0x170] sm:$0xff]  ;;  %v659_v55 = vld [vmem:[%s1328_s0 + $0x178] sm:$0xff]  ;;  %1362 = vst [vmem:[#allocation13_spill] sm:$0xff] %v663_v56  ;;  %v667_v57 = vsel %vm82_vm1, %v627_v47, 0.0  ;;  %v671_v58 = vsel %vm82_vm1, %v632_v48, 0.0 }
   0xc   :  { %1363 = vst [vmem:[#allocation14_spill] sm:$0xff] %v667_v57  ;;  %1364 = vst [vmem:[#allocation15_spill] sm:$0xff] %v671_v58  ;;  %v676_v59 = vld [vmem:[%s1328_s0 + $0x60] sm:$0xff]  ;;  %v686_v61 = vld [vmem:[%s1328_s0 + $0x188] sm:$0xff]  ;;  %v695_v0 = vsel %vm82_vm1, %v649_v53, 0.0  ;;  %v699_v5 = vsel %vm82_vm1, %v654_v54, 0.0 }
   0xd   :  { %v95_v36 = vadd.f32 %v94_v23, %v93_v24  ;;  %v681_v60 = vld [vmem:[%s1328_s0 + $0x180] sm:$0xff]  ;;  %v691_v62 = vld [vmem:[%s1328_s0 + $0x190] sm:$0xff]  ;;  %1365 = vst [vmem:[#allocation16_spill] sm:$0xff] %v695_v0  ;;  %1366 = vst [vmem:[#allocation17_spill] sm:$0xff] %v699_v5  ;;  %v703_v6 = vsel %vm82_vm1, %v659_v55, 0.0  ;;  %v726_v13 = vsel %vm82_vm1, %v686_v61, 0.0 }
   0xe   :  { %1367 = vst [vmem:[#allocation18_spill] sm:$0xff] %v703_v6  ;;  %v708_v7 = vld [vmem:[%s1328_s0 + $0x198] sm:$0xff]  ;;  %v713_v9 = vld [vmem:[%s1328_s0 + $0x1a0] sm:$0xff]  ;;  %v718_v10 = vld [vmem:[%s1328_s0 + $0x1a8] sm:$0xff]  ;;  %v722_v12 = vsel %vm82_vm1, %v681_v60, 0.0  ;;  %v730_v15 = vsel %vm82_vm1, %v691_v62, 0.0 }
   0xf   :  { %v97_v49 = vadd.f32 %v96_v25, %v95_v36  ;;  %1368 = vst [vmem:[#allocation19_spill] sm:$0xff] %v722_v12  ;;  %1369 = vst [vmem:[#allocation20_spill] sm:$0xff] %v726_v13  ;;  %v735_v18 = vld [vmem:[%s1328_s0 + $0x68] sm:$0xff]  ;;  %v740_v22 = vld [vmem:[%s1328_s0 + $0x1b0] sm:$0xff]  ;;  %v758_v36 = vsel %vm82_vm1, %v713_v9, 0.0 }
  0x10   :  { %1370 = vst [vmem:[#allocation21_spill] sm:$0xff] %v730_v15  ;;  %v745_v23 = vld [vmem:[%s1328_s0 + $0x1b8] sm:$0xff]  ;;  %v750_v24 = vld [vmem:[%s1328_s0 + $0x1c0] sm:$0xff]  ;;  %1372 = vst [vmem:[#allocation23_spill] sm:$0xff] %v758_v36  ;;  %v781_v36 = vsel %vm82_vm1, %v740_v22, 0.0 }
  0x11   :  { %v99_v63 = vadd.f32 %v98_v26, %v97_v49  ;;  %v754_v26 = vsel %vm82_vm1, %v708_v7, 0.0  ;;  %v762_v49 = vsel %vm82_vm1, %v718_v10, 0.0  ;;  %v767_v15 = vld [vmem:[%s1328_s0 + $0x1c8] sm:$0xff]  ;;  %1376 = vst [vmem:[#allocation27_spill] sm:$0xff] %v781_v36  ;;  %v794_v13 = vld [vmem:[%s1328_s0 + $0x1e0] sm:$0xff]  ;;  %v804_v36 = vld [vmem:[%s1328_s0 + $0x1f0] sm:$0xff] }
  0x12   :  { %1371 = vst [vmem:[#allocation22_spill] sm:$0xff] %v754_v26  ;;  %1373 = vst [vmem:[#allocation24_spill] sm:$0xff] %v762_v49  ;;  %v785_v49 = vsel %vm82_vm1, %v745_v23, 0.0  ;;  %v789_v26 = vsel %vm82_vm1, %v750_v24, 0.0  ;;  %v799_v12 = vld [vmem:[%s1328_s0 + $0x1e8] sm:$0xff]  ;;  %v808_v6 = vsel %vm82_vm1, %v767_v15, 0.0 }
  0x13   :  { %v101_v25 = vadd.f32 %v100_v30, %v99_v63  ;;  %v772_v30 = vld [vmem:[%s1328_s0 + $0x1d0] sm:$0xff]  ;;  %v777_v63 = vld [vmem:[%s1328_s0 + $0x1d8] sm:$0xff]  ;;  %1377 = vst [vmem:[#allocation28_spill] sm:$0xff] %v785_v49  ;;  %1378 = vst [vmem:[#allocation29_spill] sm:$0xff] %v789_v26 }
  0x14   :  { %1374 = vst [vmem:[#allocation25_spill] sm:$0xff] %v772_v30  ;;  %1375 = vst [vmem:[#allocation26_spill] sm:$0xff] %v777_v63  ;;  %v812_v26 = vsel %vm82_vm1, %v772_v30, 0.0  ;;  %v816_v5 = vsel %vm82_vm1, %v777_v63, 0.0  ;;  %v821_v0 = vld [vmem:[%s1328_s0 + $0x1f8] sm:$0xff]  ;;  %v875_v56 = vld [vmem:[%s1328_s0 + $0xa0] sm:$0xff] }
  0x15   :  { %1379 = vst [vmem:[#allocation30_spill] sm:$0xff] %v794_v13  ;;  %1380 = vst [vmem:[#allocation31_spill] sm:$0xff] %v799_v12  ;;  %v103_v49 = vadd.f32 %v102_v31, %v101_v25  ;;  %v106_v31 = vsel %vm82_vm1, %v676_v59, 0.0  ;;  %v827_v25 = vsel %vm82_vm1, %v794_v13, 0.0  ;;  %v843_v57 = vsel %vm82_vm1, %v821_v0, 0.0  ;;  %v880_v51 = vld [vmem:[%s1328_s0 + $0xa8] sm:$0xff] }
  0x16   :  { %1381 = vst [vmem:[#allocation32_spill] sm:$0xff] %v804_v36  ;;  %1382 = vst [vmem:[#allocation33_spill] sm:$0xff] %v808_v6  ;;  %v831_v6 = vsel %vm82_vm1, %v799_v12, 0.0  ;;  %v885_v50 = vld [vmem:[%s1328_s0 + $0xb0] sm:$0xff]  ;;  %v890_v45 = vld [vmem:[%s1328_s0 + $0xb8] sm:$0xff] }
  0x17   :  { %1383 = vst [vmem:[#allocation34_spill] sm:$0xff] %v812_v26  ;;  %1384 = vst [vmem:[#allocation35_spill] sm:$0xff] %v816_v5  ;;  %v835_v26 = vsel %vm82_vm1, %v804_v36, 0.0  ;;  %v31_v5 = vld [vmem:[%s1328_s0 + $0x70] sm:$0xff]  ;;  %v105_v58 = vadd.f32 %v563_v32, %v103_v49  ;;  %v108_v32 = vsel %vm82_vm1, %v735_v18, 0.0  ;;  %v900_v43 = vld [vmem:[%s1328_s0 + $0xc0] sm:$0xff] }
  0x18   :  { %1385 = vst [vmem:[#allocation36_spill] sm:$0xff] %v821_v0  ;;  %1386 = vst [vmem:[#allocation37_spill] sm:$0xff] %v827_v25  ;;  %v848_v25 = vld [vmem:[%s1328_s0 + $0x78] sm:$0xff]  ;;  %v865_v49 = vld [vmem:[%s1328_s0 + $0x90] sm:$0xff]  ;;  %v110_v44 = vsel %vm82_vm1, %v31_v5, 0.0  ;;  %v222_v0 = vmul.f32 %v477_v3, %v477_v3  ;;  %v122_v3 = vsel %vm82_vm1, %v875_v56, 0.0 }
  0x19   :  { %1387 = vst [vmem:[#allocation38_spill] sm:$0xff] %v831_v6  ;;  %1388 = vst [vmem:[#allocation39_spill] sm:$0xff] %v835_v26  ;;  %v853_v6 = vld [vmem:[%s1328_s0 + $0x80] sm:$0xff]  ;;  %v858_v26 = vld [vmem:[%s1328_s0 + $0x88] sm:$0xff]  ;;  %v107_v52 = vadd.f32 %v106_v31, %v105_v58  ;;  %v220_v58 = vmul.f32 %v467_v1, %v467_v1  ;;  %v221_v31 = vmul.f32 %v472_v2, %v472_v2  ;;  %v112_v1 = vsel %vm82_vm1, %v848_v25, 0.0 }
  0x1a   :  { %1389 = vst [vmem:[#allocation40_spill] sm:$0xff] %v843_v57  ;;  %1390 = vst [vmem:[#allocation41_spill] sm:$0xff] %v848_v25  ;;  %v870_v57 = vld [vmem:[%s1328_s0 + $0x98] sm:$0xff]  ;;  %v905_v39 = vld [vmem:[%s1328_s0 + $0xc8] sm:$0xff]  ;;  %v114_v2 = vsel %vm82_vm1, %v853_v6, 0.0  ;;  %v954_v63 = vsel %vm82_vm1, %v890_v45, 0.0 }
  0x1b   :  { %1391 = vst [vmem:[#allocation42_spill] sm:$0xff] %v853_v6  ;;  %1392 = vst [vmem:[#allocation43_spill] sm:$0xff] %v858_v26  ;;  %v910_v38 = vld [vmem:[%s1328_s0 + $0xd0] sm:$0xff]  ;;  %v109_v37 = vadd.f32 %v108_v32, %v107_v52  ;;  %v921_v36 = vld [vmem:[%s1328_s0 + $0xd8] sm:$0xff]  ;;  %v116_v52 = vsel %vm82_vm1, %v858_v26, 0.0  ;;  %v118_v32 = vsel %vm82_vm1, %v865_v49, 0.0 }
  0x1c   :  { %1393 = vst [vmem:[#allocation44_spill] sm:$0xff] %v865_v49  ;;  %1394 = vst [vmem:[#allocation45_spill] sm:$0xff] %v870_v57  ;;  %v926_v12 = vld [vmem:[%s1328_s0 + $0xe0] sm:$0xff]  ;;  %v120_v6 = vsel %vm82_vm1, %v870_v57, 0.0  ;;  %v939_v25 = vld [vmem:[%s1328_s0 + $0xe8] sm:$0xff]  ;;  %v124_v49 = vsel %vm82_vm1, %v880_v51, 0.0 }
  0x1d   :  { %1395 = vst [vmem:[#allocation46_spill] sm:$0xff] %v875_v56  ;;  %1396 = vst [vmem:[#allocation47_spill] sm:$0xff] %v880_v51  ;;  %v944_v13 = vld [vmem:[%s1328_s0 + $0xf0] sm:$0xff]  ;;  %v111_v26 = vadd.f32 %v110_v44, %v109_v37  ;;  %v126_v57 = vsel %vm82_vm1, %v885_v50, 0.0  ;;  %v223_v56 = vmul.f32 %v482_v4, %v482_v4  ;;  %v958_v30 = vsel %vm82_vm1, %v900_v43, 0.0 }
  0x1e   :  { %1397 = vst [vmem:[#allocation48_spill] sm:$0xff] %v885_v50  ;;  %1398 = vst [vmem:[#allocation49_spill] sm:$0xff] %v890_v45  ;;  %v962_v37 = vsel %vm82_vm1, %v905_v39, 0.0  ;;  %v966_v44 = vsel %vm82_vm1, %v910_v38, 0.0  ;;  %v970_v4 = vsel %vm82_vm1, %v921_v36, 0.0  ;;  %v974_v45 = vsel %vm82_vm1, %v926_v12, 0.0 }
  0x1f   :  { %1399 = vst [vmem:[#allocation50_spill] sm:$0xff] %v900_v43  ;;  %1400 = vst [vmem:[#allocation51_spill] sm:$0xff] %v905_v39  ;;  %v113_v50 = vadd.f32 %v112_v1, %v111_v26  ;;  %v224_v43 = vmul.f32 %v493_v8, %v493_v8  ;;  %v980_v39 = vsel %vm82_vm1, %v939_v25, 0.0  ;;  %v225_v26 = vmul.f32 %v500_v11, %v500_v11 }
  0x20   :  { %1401 = vst [vmem:[#allocation52_spill] sm:$0xff] %v910_v38  ;;  %1402 = vst [vmem:[#allocation53_spill] sm:$0xff] %v921_v36  ;;  %v984_v38 = vsel %vm82_vm1, %v944_v13, 0.0  ;;  %v226_v1 = vmul.f32 %v507_v14, %v507_v14  ;;  %v228_v8 = vmul.f32 %v517_v17, %v517_v17  ;;  %v231_v51 = vmul.f32 %v534_v21, %v534_v21 }
  0x21   :  { %1403 = vst [vmem:[#allocation54_spill] sm:$0xff] %v926_v12  ;;  %1404 = vst [vmem:[#allocation55_spill] sm:$0xff] %v939_v25  ;;  %v115_v36 = vadd.f32 %v114_v2, %v113_v50  ;;  %v227_v12 = vmul.f32 %v512_v16, %v512_v16  ;;  %v229_v25 = vmul.f32 %v524_v19, %v524_v19 }
  0x22   :  { %1405 = vst [vmem:[#allocation56_spill] sm:$0xff] %v944_v13  ;;  %v230_v13 = vmul.f32 %v529_v20, %v529_v20  ;;  %v232_v11 = vmul.f32 %v676_v59, %v676_v59  ;;  %v1004_v14 = vmul.f32 %v735_v18, %v735_v18  ;;  %v1006_v50 = vmul.f32 %v31_v5, %v31_v5 }
  0x23   :  { %v117_v16 = vadd.f32 %v116_v52, %v115_v36  ;;  %v253_v17 = vmul.f32 %v545_v27, %v545_v27  ;;  %v254_v19 = vmul.f32 %v550_v28, %v550_v28  ;;  %v255_v20 = vmul.f32 %v555_v29, %v555_v29 }
  0x24   :  { %v256_v21 = vmul.f32 %v568_v33, %v568_v33  ;;  %v257_v59 = vmul.f32 %v573_v34, %v573_v34  ;;  %v258_v18 = vmul.f32 %v578_v35, %v578_v35  ;;  %v259_v36 = vmul.f32 %v595_v40, %v595_v40 }
  0x25   :  { %v119_v5 = vadd.f32 %v118_v32, %v117_v16  ;;  %v260_v27 = vmul.f32 %v600_v41, %v600_v41  ;;  %v261_v28 = vmul.f32 %v605_v42, %v605_v42  ;;  %v262_v29 = vmul.f32 %v622_v46, %v622_v46 }
  0x26   :  { %v263_v33 = vmul.f32 %v627_v47, %v627_v47  ;;  %v284_v34 = vsel %vm82_vm1, %v220_v58, 0.0  ;;  %v285_v35 = vsel %vm82_vm1, %v221_v31, 0.0  ;;  %v264_v40 = vmul.f32 %v632_v48, %v632_v48 }
  0x27   :  { %v121_v2 = vadd.f32 %v120_v6, %v119_v5  ;;  %v286_v52 = vadd.f32 %v285_v35, %v284_v34  ;;  %v287_v41 = vsel %vm82_vm1, %v222_v0, 0.0  ;;  %v265_v42 = vmul.f32 %v649_v53, %v649_v53  ;;  %v1408_v35 = vld [vmem:[#allocation30_spill] sm:$0xff] }
  0x28   :  { %v266_v46 = vmul.f32 %v654_v54, %v654_v54  ;;  %v267_v47 = vmul.f32 %v659_v55, %v659_v55  ;;  %v289_v58 = vsel %vm82_vm1, %v223_v56, 0.0  ;;  %v268_v6 = vmul.f32 %v681_v60, %v681_v60 }
  0x29   :  { %v123_v32 = vadd.f32 %v122_v3, %v121_v2  ;;  %v269_v48 = vmul.f32 %v686_v61, %v686_v61  ;;  %v288_v31 = vadd.f32 %v287_v41, %v286_v52  ;;  %v270_v0 = vmul.f32 %v691_v62, %v691_v62 }
  0x2a   :  { %v271_v53 = vmul.f32 %v708_v7, %v708_v7  ;;  %v272_v54 = vmul.f32 %v713_v9, %v713_v9  ;;  %v291_v55 = vsel %vm82_vm1, %v224_v43, 0.0  ;;  %v273_v3 = vmul.f32 %v718_v10, %v718_v10  ;;  %v1407_v10 = vld [vmem:[#allocation26_spill] sm:$0xff] }
  0x2b   :  { %v125_v56 = vadd.f32 %v124_v49, %v123_v32  ;;  %v274_v60 = vmul.f32 %v740_v22, %v740_v22  ;;  %v290_v61 = vadd.f32 %v289_v58, %v288_v31  ;;  %v275_v16 = vmul.f32 %v745_v23, %v745_v23  ;;  %v1406_v49 = vld [vmem:[#allocation25_spill] sm:$0xff]  ;;  %v1409_v23 = vld [vmem:[#allocation31_spill] sm:$0xff] }
  0x2c   :  { %v276_v62 = vmul.f32 %v750_v24, %v750_v24  ;;  %v277_v7 = vmul.f32 %v767_v15, %v767_v15  ;;  %v293_v9 = vsel %vm82_vm1, %v225_v26, 0.0  ;;  %v278_v5 = vmul.f32 %v1406_v49, %v1406_v49  ;;  %v1410_v24 = vld [vmem:[#allocation32_spill] sm:$0xff] }
  0x2d   :  { %v127_v43 = vadd.f32 %v126_v57, %v125_v56  ;;  %v279_v34 = vmul.f32 %v1407_v10, %v1407_v10  ;;  %v292_v22 = vadd.f32 %v291_v55, %v290_v61  ;;  %v280_v2 = vmul.f32 %v1408_v35, %v1408_v35  ;;  %v1411_v26 = vld [vmem:[#allocation36_spill] sm:$0xff] }
  0x2e   :  { %v281_v52 = vmul.f32 %v1409_v23, %v1409_v23  ;;  %v282_v41 = vmul.f32 %v1410_v24, %v1410_v24  ;;  %v295_v15 = vsel %vm82_vm1, %v226_v1, 0.0  ;;  %v283_v58 = vmul.f32 %v1411_v26, %v1411_v26  ;;  %v1412_v24 = vld [vmem:[#allocation41_spill] sm:$0xff] }
  0x2f   :  { %v129_v57 = vadd.f32 %v954_v63, %v127_v43  ;;  %v294_v32 = vadd.f32 %v293_v9, %v292_v22  ;;  %v297_v31 = vsel %vm82_vm1, %v227_v12, 0.0  ;;  %v299_v55 = vsel %vm82_vm1, %v228_v8, 0.0 }
  0x30   :  { %v301_v56 = vsel %vm82_vm1, %v229_v25, 0.0  ;;  %v303_v61 = vsel %vm82_vm1, %v230_v13, 0.0  ;;  %v305_v49 = vsel %vm82_vm1, %v231_v51, 0.0  ;;  %v307_v1 = vsel %vm82_vm1, %v232_v11, 0.0 }
  0x31   :  { %v131_v10 = vadd.f32 %v958_v30, %v129_v57  ;;  %v296_v35 = vadd.f32 %v295_v15, %v294_v32  ;;  %v1086_v63 = vsel %vm82_vm1, %v253_v17, 0.0  ;;  %v1089_v9 = vsel %vm82_vm1, %v254_v19, 0.0 }
  0x32   :  { %v1092_v12 = vsel %vm82_vm1, %v255_v20, 0.0  ;;  %v1095_v25 = vsel %vm82_vm1, %v256_v21, 0.0  ;;  %v1098_v13 = vsel %vm82_vm1, %v257_v59, 0.0  ;;  %v1102_v8 = vsel %vm82_vm1, %v258_v18, 0.0 }
  0x33   :  { %v133_v51 = vadd.f32 %v962_v37, %v131_v10  ;;  %v298_v30 = vadd.f32 %v297_v31, %v296_v35  ;;  %v1105_v11 = vsel %vm82_vm1, %v259_v36, 0.0  ;;  %v1108_v17 = vsel %vm82_vm1, %v260_v27, 0.0 }
  0x34   :  { %v1111_v19 = vsel %vm82_vm1, %v261_v28, 0.0  ;;  %v1114_v20 = vsel %vm82_vm1, %v262_v29, 0.0  ;;  %v1117_v21 = vsel %vm82_vm1, %v263_v33, 0.0  ;;  %v1121_v18 = vsel %vm82_vm1, %v264_v40, 0.0 }
  0x35   :  { %v135_v37 = vadd.f32 %v966_v44, %v133_v51  ;;  %v300_v59 = vadd.f32 %v299_v55, %v298_v30  ;;  %v1124_v36 = vsel %vm82_vm1, %v265_v42, 0.0  ;;  %v1127_v27 = vsel %vm82_vm1, %v266_v46, 0.0  ;;  %v1416_v51 = vld [vmem:[#allocation4_spill] sm:$0xff] }
  0x36   :  { %v1130_v28 = vsel %vm82_vm1, %v267_v47, 0.0  ;;  %v1133_v29 = vsel %vm82_vm1, %v268_v6, 0.0  ;;  %v1136_v33 = vsel %vm82_vm1, %v269_v48, 0.0  ;;  %v1140_v40 = vsel %vm82_vm1, %v270_v0, 0.0 }
  0x37   :  { %v137_v44 = vadd.f32 %v970_v4, %v135_v37  ;;  %v302_v43 = vadd.f32 %v301_v56, %v300_v59  ;;  %v1143_v42 = vsel %vm82_vm1, %v271_v53, 0.0  ;;  %v1146_v46 = vsel %vm82_vm1, %v272_v54, 0.0  ;;  %v1160_v4 = vld [vmem:[%s1328_s0 + $0xf8] sm:$0xff]  ;;  %v1417_v59 = vld [vmem:[#allocation45_spill] sm:$0xff] }
  0x38   :  { %v1149_v47 = vsel %vm82_vm1, %v273_v3, 0.0  ;;  %v1152_v6 = vsel %vm82_vm1, %v274_v60, 0.0  ;;  %v1155_v48 = vsel %vm82_vm1, %v275_v16, 0.0  ;;  %v1164_v54 = vsel %vm82_vm1, %v276_v62, 0.0  ;;  %v1414_v56 = vld [vmem:[#allocation43_spill] sm:$0xff] }
  0x39   :  { %v139_v0 = vadd.f32 %v974_v45, %v137_v44  ;;  %v304_v53 = vadd.f32 %v303_v61, %v302_v43  ;;  %v1167_v3 = vsel %vm82_vm1, %v277_v7, 0.0  ;;  %v1170_v60 = vsel %vm82_vm1, %v278_v5, 0.0  ;;  %v1184_v45 = vld [vmem:[%s1328_s0 + $0x100] sm:$0xff]  ;;  %v1418_v43 = vld [vmem:[#allocation5_spill] sm:$0xff] }
  0x3a   :  { %v1173_v16 = vsel %vm82_vm1, %v279_v34, 0.0  ;;  %v1176_v22 = vsel %vm82_vm1, %v280_v2, 0.0  ;;  %v1179_v23 = vsel %vm82_vm1, %v281_v52, 0.0  ;;  %v1188_v5 = vsel %vm82_vm1, %v282_v41, 0.0  ;;  %v1413_v41 = vld [vmem:[#allocation42_spill] sm:$0xff] }
  0x3b   :  { %v141_v62 = vadd.f32 %v980_v39, %v139_v0  ;;  %v306_v7 = vadd.f32 %v305_v49, %v304_v53  ;;  %v1191_v34 = vsel %vm82_vm1, %v283_v58, 0.0  ;;  %v144_v2 = vsel %vm82_vm1, %v1160_v4, 0.0 }
  0x3c   :  { %v235_v52 = vmul.f32 %v1412_v24, %v1412_v24  ;;  %v309_v15 = vsel %vm82_vm1, %v1004_v14, 0.0  ;;  %v146_v39 = vsel %vm82_vm1, %v1184_v45, 0.0  ;;  %v236_v32 = vmul.f32 %v1413_v41, %v1413_v41  ;;  %v1420_v24 = vld [vmem:[#allocation6_spill] sm:$0xff]  ;;  %v1422_v41 = vld [vmem:[#allocation7_spill] sm:$0xff] }
  0x3d   :  { %v143_v57 = vadd.f32 %v984_v38, %v141_v62  ;;  %v308_v26 = vadd.f32 %v307_v1, %v306_v7  ;;  %v311_v58 = vsel %vm82_vm1, %v1006_v50, 0.0  ;;  %v237_v61 = vmul.f32 %v1414_v56, %v1414_v56  ;;  %v1415_v38 = vld [vmem:[#allocation44_spill] sm:$0xff]  ;;  %v1419_v62 = vld [vmem:[#allocation46_spill] sm:$0xff] }
  0x3e   :  { %v313_v49 = vsel %vm82_vm1, %v235_v52, 0.0  ;;  %v238_v35 = vmul.f32 %v1415_v38, %v1415_v38  ;;  %v315_v1 = vsel %vm82_vm1, %v236_v32, 0.0  ;;  %v239_v50 = vmul.f32 %v1417_v59, %v1417_v59 }
  0x3f   :  { %v145_v31 = vadd.f32 %v144_v2, %v143_v57  ;;  %v310_v55 = vadd.f32 %v309_v15, %v308_v26  ;;  %v317_v44 = vsel %vm82_vm1, %v237_v61, 0.0  ;;  %v240_v7 = vmul.f32 %v1419_v62, %v1419_v62  ;;  %v1421_v57 = vld [vmem:[#allocation47_spill] sm:$0xff]  ;;  %v1424_v61 = vld [vmem:[#allocation8_spill] sm:$0xff] }
  0x40   :  { %v319_v2 = vsel %vm82_vm1, %v238_v35, 0.0  ;;  %v241_v26 = vmul.f32 %v1421_v57, %v1421_v57 }
  0x41   :  { %v147_v14 = vadd.f32 %v146_v39, %v145_v31  ;;  %v312_v10 = vadd.f32 %v311_v58, %v310_v55  ;;  %v321_v39 = vsel %vm82_vm1, %v239_v50, 0.0  ;;  %v1423_v31 = vld [vmem:[#allocation48_spill] sm:$0xff]  ;;  %v323_v56 = vsel %vm82_vm1, %v240_v7, 0.0 }
  0x42   :  { %v242_v55 = vmul.f32 %v1423_v31, %v1423_v31  ;;  %v325_v35 = vsel %vm82_vm1, %v241_v26, 0.0 }
  0x43   :  { %v149_v30 = vadd.f32 %v1416_v51, %v147_v14  ;;  %v314_v37 = vadd.f32 %v313_v49, %v312_v10  ;;  %v1425_v10 = vld [vmem:[#allocation49_spill] sm:$0xff] }
  0x44   :  { %v243_v38 = vmul.f32 %v1425_v10, %v1425_v10  ;;  %v327_v50 = vsel %vm82_vm1, %v242_v55, 0.0 }
  0x45   :  { %v151_v0 = vadd.f32 %v1418_v43, %v149_v30  ;;  %v316_v53 = vadd.f32 %v315_v1, %v314_v37  ;;  %v1426_v1 = vld [vmem:[#allocation9_spill] sm:$0xff]  ;;  %v1427_v37 = vld [vmem:[#allocation50_spill] sm:$0xff] }
  0x46   :  { %v244_v59 = vmul.f32 %v1427_v37, %v1427_v37  ;;  %v329_v7 = vsel %vm82_vm1, %v243_v38, 0.0 }
  0x47   :  { %v153_v52 = vadd.f32 %v1420_v24, %v151_v0  ;;  %v318_v15 = vadd.f32 %v317_v44, %v316_v53  ;;  %v1428_v44 = vld [vmem:[#allocation10_spill] sm:$0xff]  ;;  %v1429_v53 = vld [vmem:[#allocation51_spill] sm:$0xff] }
  0x48   :  { %v245_v62 = vmul.f32 %v1429_v53, %v1429_v53  ;;  %v331_v26 = vsel %vm82_vm1, %v244_v59, 0.0 }
  0x49   :  { %v155_v32 = vadd.f32 %v1422_v41, %v153_v52  ;;  %v320_v58 = vadd.f32 %v319_v2, %v318_v15  ;;  %v1430_v2 = vld [vmem:[#allocation11_spill] sm:$0xff]  ;;  %v1431_v15 = vld [vmem:[#allocation52_spill] sm:$0xff] }
  0x4a   :  { %v246_v57 = vmul.f32 %v1431_v15, %v1431_v15  ;;  %v333_v55 = vsel %vm82_vm1, %v245_v62, 0.0 }
  0x4b   :  { %v157_v49 = vadd.f32 %v1424_v61, %v155_v32  ;;  %v322_v14 = vadd.f32 %v321_v39, %v320_v58  ;;  %v1432_v39 = vld [vmem:[#allocation12_spill] sm:$0xff]  ;;  %v1433_v58 = vld [vmem:[#allocation53_spill] sm:$0xff] }
  0x4c   :  { %v247_v31 = vmul.f32 %v1433_v58, %v1433_v58  ;;  %v335_v38 = vsel %vm82_vm1, %v246_v57, 0.0  ;;  %v1441_v57 = vld [vmem:[#allocation17_spill] sm:$0xff]  ;;  %v1442_v58 = vld [vmem:[#allocation18_spill] sm:$0xff] }
  0x4d   :  { %v159_v51 = vadd.f32 %v1426_v1, %v157_v49  ;;  %v324_v30 = vadd.f32 %v323_v56, %v322_v14  ;;  %v1434_v56 = vld [vmem:[#allocation13_spill] sm:$0xff]  ;;  %v1435_v14 = vld [vmem:[#allocation54_spill] sm:$0xff] }
  0x4e   :  { %v248_v10 = vmul.f32 %v1435_v14, %v1435_v14  ;;  %v337_v59 = vsel %vm82_vm1, %v247_v31, 0.0 }
  0x4f   :  { %v161_v43 = vadd.f32 %v1428_v44, %v159_v51  ;;  %v326_v0 = vadd.f32 %v325_v35, %v324_v30  ;;  %v1436_v35 = vld [vmem:[#allocation14_spill] sm:$0xff]  ;;  %v1437_v30 = vld [vmem:[#allocation55_spill] sm:$0xff] }
  0x50   :  { %v249_v37 = vmul.f32 %v1437_v30, %v1437_v30  ;;  %v339_v62 = vsel %vm82_vm1, %v248_v10, 0.0  ;;  %v1444_v10 = vld [vmem:[#allocation20_spill] sm:$0xff] }
  0x51   :  { %v163_v24 = vadd.f32 %v1430_v2, %v161_v43  ;;  %v328_v52 = vadd.f32 %v327_v50, %v326_v0  ;;  %v1438_v50 = vld [vmem:[#allocation15_spill] sm:$0xff]  ;;  %v1439_v0 = vld [vmem:[#allocation56_spill] sm:$0xff] }
  0x52   :  { %v250_v53 = vmul.f32 %v1439_v0, %v1439_v0  ;;  %v341_v15 = vsel %vm82_vm1, %v249_v37, 0.0  ;;  %v1446_v37 = vld [vmem:[#allocation22_spill] sm:$0xff]  ;;  %v1448_v0 = vld [vmem:[#allocation24_spill] sm:$0xff] }
  0x53   :  { %v165_v41 = vadd.f32 %v1432_v39, %v163_v24  ;;  %v330_v32 = vadd.f32 %v329_v7, %v328_v52  ;;  %v1440_v7 = vld [vmem:[#allocation16_spill] sm:$0xff]  ;;  %v251_v52 = vmul.f32 %v1160_v4, %v1160_v4 }
  0x55   :  { %v167_v61 = vadd.f32 %v1434_v56, %v165_v41  ;;  %v332_v49 = vadd.f32 %v331_v26, %v330_v32  ;;  %v252_v41 = vmul.f32 %v1184_v45, %v1184_v45  ;;  %v343_v32 = vsel %vm82_vm1, %v250_v53, 0.0 }
  0x56   :  { %v345_v56 = vsel %vm82_vm1, %v251_v52, 0.0  ;;  %v1450_v52 = vld [vmem:[#allocation28_spill] sm:$0xff] }
  0x57   :  { %v169_v1 = vadd.f32 %v1436_v35, %v167_v61  ;;  %v334_v51 = vadd.f32 %v333_v55, %v332_v49  ;;  %v1443_v61 = vld [vmem:[#allocation19_spill] sm:$0xff]  ;;  %v347_v4 = vsel %vm82_vm1, %v252_v41, 0.0  ;;  %v1452_v41 = vld [vmem:[#allocation33_spill] sm:$0xff] }
  0x59   :  { %v171_v44 = vadd.f32 %v1438_v50, %v169_v1  ;;  %v336_v43 = vadd.f32 %v335_v38, %v334_v51  ;;  %v1445_v1 = vld [vmem:[#allocation21_spill] sm:$0xff]  ;;  %v1447_v50 = vld [vmem:[#allocation23_spill] sm:$0xff] }
  0x5b   :  { %v173_v2 = vadd.f32 %v1440_v7, %v171_v44  ;;  %v338_v24 = vadd.f32 %v337_v59, %v336_v43  ;;  %v1449_v7 = vld [vmem:[#allocation27_spill] sm:$0xff] }
  0x5d   :  { %v175_v26 = vadd.f32 %v1441_v57, %v173_v2  ;;  %v340_v39 = vadd.f32 %v339_v62, %v338_v24 }
  0x5f   :  { %v177_v31 = vadd.f32 %v1442_v58, %v175_v26  ;;  %v342_v55 = vadd.f32 %v341_v15, %v340_v39  ;;  %v1451_v26 = vld [vmem:[#allocation29_spill] sm:$0xff]  ;;  %v1453_v58 = vld [vmem:[#allocation34_spill] sm:$0xff] }
  0x61   :  { %v179_v49 = vadd.f32 %v1443_v61, %v177_v31  ;;  %v344_v14 = vadd.f32 %v343_v32, %v342_v55  ;;  %v1454_v55 = vld [vmem:[#allocation35_spill] sm:$0xff]  ;;  %v1455_v61 = vld [vmem:[#allocation37_spill] sm:$0xff] }
  0x63   :  { %v181_v38 = vadd.f32 %v1444_v10, %v179_v49  ;;  %v346_v35 = vadd.f32 %v345_v56, %v344_v14  ;;  %v1456_v14 = vld [vmem:[#allocation38_spill] sm:$0xff]  ;;  %v1457_v10 = vld [vmem:[#allocation39_spill] sm:$0xff] }
  0x65   :  { %v183_v51 = vadd.f32 %v1445_v1, %v181_v38  ;;  %v348_v30 = vadd.f32 %v347_v4, %v346_v35  ;;  %v1458_v35 = vld [vmem:[#allocation40_spill] sm:$0xff] }
  0x67   :  { %v185_v45 = vadd.f32 %v1446_v37, %v183_v51  ;;  %v350_v59 = vadd.f32 %v1086_v63, %v348_v30 }
  0x69   :  { %v187_v44 = vadd.f32 %v1447_v50, %v185_v45  ;;  %v352_v43 = vadd.f32 %v1089_v9, %v350_v59 }
  0x6b   :  { %v189_v53 = vadd.f32 %v1448_v0, %v187_v44  ;;  %v354_v62 = vadd.f32 %v1092_v12, %v352_v43 }
  0x6d   :  { %v191_v2 = vadd.f32 %v1449_v7, %v189_v53  ;;  %v356_v24 = vadd.f32 %v1095_v25, %v354_v62 }
  0x6f   :  { %v193_v15 = vadd.f32 %v1450_v52, %v191_v2  ;;  %v358_v57 = vadd.f32 %v1098_v13, %v356_v24 }
  0x71   :  { %v195_v39 = vadd.f32 %v1451_v26, %v193_v15  ;;  %v360_v63 = vadd.f32 %v1102_v8, %v358_v57 }
  0x73   :  { %v197_v32 = vadd.f32 %v1452_v41, %v195_v39  ;;  %v362_v9 = vadd.f32 %v1105_v11, %v360_v63 }
  0x75   :  { %v199_v31 = vadd.f32 %v1453_v58, %v197_v32  ;;  %v364_v12 = vadd.f32 %v1108_v17, %v362_v9 }
  0x77   :  { %v201_v56 = vadd.f32 %v1454_v55, %v199_v31  ;;  %v366_v25 = vadd.f32 %v1111_v19, %v364_v12 }
  0x79   :  { %v203_v49 = vadd.f32 %v1455_v61, %v201_v56  ;;  %v368_v13 = vadd.f32 %v1114_v20, %v366_v25 }
  0x7b   :  { %v205_v4 = vadd.f32 %v1456_v14, %v203_v49  ;;  %v370_v8 = vadd.f32 %v1117_v21, %v368_v13 }
  0x7d   :  { %v207_v38 = vadd.f32 %v1457_v10, %v205_v4  ;;  %v372_v11 = vadd.f32 %v1121_v18, %v370_v8  ;;  %v81_v18 = vld [vmem:[#allocation2] sm:$0x1] }
  0x7f   :  { %v209_v1 = vadd.f32 %v1458_v35, %v207_v38  ;;  %v374_v17 = vadd.f32 %v1124_v36, %v372_v11 }
  0x81   :  { %v210_v51 = vrot.slane %v209_v1, 4  ;;  %v376_v30 = vadd.f32 %v1127_v27, %v374_v17 }
  0x83   :  { %v211_v19 = vadd.f32 %v210_v51, %v209_v1  ;;  %v378_v37 = vadd.f32 %v1130_v28, %v376_v30 }
  0x85   :  { %v212_v45 = vrot.slane %v211_v19, 2  ;;  %v380_v20 = vadd.f32 %v1133_v29, %v378_v37 }
  0x87   :  { %v213_v59 = vadd.f32 %v212_v45, %v211_v19  ;;  %v382_v21 = vadd.f32 %v1136_v33, %v380_v20 }
  0x89   :  { %v214_v50 = vrot.slane %v213_v59, 1  ;;  %v384_v44 = vadd.f32 %v1140_v40, %v382_v21 }
  0x8b   :  { %v215_v43 = vadd.f32 %v214_v50, %v213_v59  ;;  %v386_v0 = vadd.f32 %v1143_v42, %v384_v44 }
  0x8d   :  { %v216_v36 = vadd.f32 %v215_v43, %v81_v18  ;;  %v388_v53 = vadd.f32 %v1146_v46, %v386_v0 }
  0x8f   :  { %218 = vst.msk [vmem:[#allocation2] sm:$0x1] %vm14_vm0, %v216_v36  ;;  %v390_v27 = vadd.f32 %v1149_v47, %v388_v53 }
  0x91   :  { %v392_v28 = vadd.f32 %v1152_v6, %v390_v27 }
  0x93   :  { %v394_v29 = vadd.f32 %v1155_v48, %v392_v28 }
  0x95   :  { %v396_v33 = vadd.f32 %v1164_v54, %v394_v29  ;;  %v219_v54 = vld [vmem:[#allocation3] sm:$0x1] }
  0x96   :  { %v422_v26 = vld [vmem:[#allocation2] sm:$0x1] }
  0x97   :  { %v398_v62 = vadd.f32 %v1167_v3, %v396_v33 }
  0x99   :  { %v400_v40 = vadd.f32 %v1170_v60, %v398_v62  ;;  %v423_v60 = vmul.f32 0.001953125, %v422_v26 }
  0x9b   :  { %v402_v7 = vadd.f32 %v1173_v16, %v400_v40  ;;  %v426_v16 = vmul.f32 %v423_v60, %v423_v60 }
  0x9d   :  { %v404_v42 = vadd.f32 %v1176_v22, %v402_v7 }
  0x9f   :  { %v406_v46 = vadd.f32 %v1179_v23, %v404_v42 }
  0xa1   :  { %v408_v2 = vadd.f32 %v1188_v5, %v406_v46 }
  0xa3   :  { %v410_v47 = vadd.f32 %v1191_v34, %v408_v2  ;;  %v432_v34 = vsub.f32 0.0, %v423_v60 }
  0xa5   :  { %v411_v24 = vrot.slane %v410_v47, 4 }
  0xa7   :  { %v412_v6 = vadd.f32 %v411_v24, %v410_v47 }
  0xa9   :  { %v413_v52 = vrot.slane %v412_v6, 2 }
  0xab   :  { %v414_v48 = vadd.f32 %v413_v52, %v412_v6 }
  0xad   :  { %v415_v15 = vrot.slane %v414_v48, 1 }
  0xaf   :  { %v416_v57 = vadd.f32 %v415_v15, %v414_v48 }
  0xb1   :  { %v417_v3 = vadd.f32 %v416_v57, %v219_v54 }
  0xb3   :  { %418 = vst.msk [vmem:[#allocation3] sm:$0x1] %vm14_vm0, %v417_v3 }
  0xba   :  { %v424_v22 = vld [vmem:[#allocation3] sm:$0x1] }
  0xbb   :  { %v425_v39 = vmul.f32 0.001953125, %v424_v22 }
  0xbd   :  { %v427_v23 = vsub.f32 %v425_v39, %v426_v16 }
  0xbf   :  { %v428_v63 = vmax.f32 %v427_v23, 0.0 }
  0xc1   :  { %v429_v5 = vadd.f32 1e-05, %v428_v63 }
  0xc3   :  { %444 = vrsqrt.f32 %v429_v5 }
  0xcd   :  { %v445_v41 = vpop.eup %444 }
  0xce   :  { %431 = vst.msk [vmem:[%s1329_s1] sm:$0x1] %vm14_vm0, %v445_v41  ;;  %v433_v32 = vmul.f32 %v445_v41, %v432_v34 }
  0xd0   :  { %434 = vst.msk [vmem:[%s1330_s2] sm:$0x1] %vm14_vm0, %v433_v32 }

// kernel: mixstyle_densenet_forward.51
= control target key start
LH: loop header
LB: loop body
LE: loop exit
PB: predicated region body
PF: predicated region fallthrough
CT: control target
= control target key end

     0   :  { %v1462_v0 = vmov 0   ;;  %vm572_vm0 = vcmask 154624   ;;  %vm669_vm1 = vcmask 1040384   ;;  %vm670_vm2 = vcmask 1041408   ;;  %s1925_s1 = inlined_call_operand.vmem [shape: bf16[147,128], index: 1, kind: input, shape index: {}]   ;;  %s1926_s0 = inlined_call_operand.vmem [shape: bf16[512,147], index: 0, kind: input, shape index: {}]   ;;  %s1927_s2 = inlined_call_operand.vmem [shape: f32[512,128], index: 2, kind: output, shape index: {}]  }
   0x1   :  { %676 = vmatprep.subr.bf16.mxu0 %v1462_v0  ;;  %1334 = vmatprep.subr.bf16.mxu1 %v1462_v0  ;;  %v1356_v1 = vld [vmem:[%s1925_s1] sm:$0xff]   ;;  %v1357_v2 = vld [vmem:[%s1925_s1 + $0x8] sm:$0xff]   ;;  %v1358_v3 = vld [vmem:[%s1925_s1 + $0x10] sm:$0xff]   ;;  %v1463_v11 = vmov 65535  }
   0x2   :  { %677 = vmatpush1.bf16.msra.mxu0 %v1356_v1  ;;  %1344 = vmatpush1.bf16.msra.mxu1 %v1356_v1  ;;  %v1359_v4 = vld [vmem:[%s1925_s1 + $0x18] sm:$0xff]   ;;  %v1368_v5 = vld [vmem:[%s1926_s0 + $0x4] ss:$8 sps:$4 sm:$0xff]   ;;  %v1362_v9 = vld [vmem:[%s1925_s1 + $0x30] sm:$0xff]   ;;  %v671_v12 = vsel %vm669_vm1, 4294967295, %v1463_v11 }
   0x3   :  { %678 = vmatprep.subr.bf16.mxu0 %v1462_v0  ;;  %1335 = vmatprep.subr.bf16.mxu1 %v1462_v0  ;;  %v1371_v6 = vld [vmem:[%s1926_s0 + $0x104] ss:$8 sps:$4 sm:$0xff]   ;;  %v1363_v10 = vld [vmem:[%s1925_s1 + $0x38] sm:$0xff]   ;;  %v1365_v14 = vld [vmem:[%s1925_s1 + $0x48] ss:$0 sps:$4 sm:$0x33]  }
   0x4   :  { %1302 = vmatprep.mubr.msk.bf16.mxu0 %vm572_vm0, %v1368_v5  ;;  %v1360_v7 = vld [vmem:[%s1925_s1 + $0x20] sm:$0xff]   ;;  %1318 = vmatprep.mubr.msk.bf16.mxu1 %vm572_vm0, %v1371_v6  ;;  %v1361_v8 = vld [vmem:[%s1925_s1 + $0x28] sm:$0xff]   ;;  %v672_v15 = vsel %vm670_vm2, %v671_v12, 0  ;;  %v1372_v19 = vld [vmem:[%s1926_s0 + $0x14] ss:$8 sps:$4 sm:$0xff]  }
   0x5   :  { %v1364_v13 = vld [vmem:[%s1925_s1 + $0x40] sm:$0xff]   ;;  %v674_v16 = vand.u32 %v1365_v14, %v672_v15  ;;  %v1374_v20 = vld [vmem:[%s1926_s0 + $0x114] ss:$8 sps:$4 sm:$0xff]   ;;  %v1376_v21 = vld [vmem:[%s1926_s0 + $0x10] ss:$8 sps:$4 sm:$0xff]  }
   0x6   :  { %679 = vmatpush1.bf16.msra.mxu0 %v1357_v2  ;;  %1345 = vmatpush1.bf16.msra.mxu1 %v1357_v2  ;;  %v1366_v17 = vld [vmem:[%s1926_s0] ss:$8 sps:$4 sm:$0xff]   ;;  %v1377_v22 = vld [vmem:[%s1926_s0 + $0x110] ss:$8 sps:$4 sm:$0xff]   ;;  %v1378_v23 = vld [vmem:[%s1926_s0 + $0x24] ss:$8 sps:$4 sm:$0xff]  }
   0x7   :  { %680 = vmatprep.subr.bf16.mxu0 %v1462_v0  ;;  %1336 = vmatprep.subr.bf16.mxu1 %v1462_v0  ;;  %v1369_v18 = vld [vmem:[%s1926_s0 + $0x100] ss:$8 sps:$4 sm:$0xff]   ;;  %v1380_v24 = vld [vmem:[%s1926_s0 + $0x124] ss:$8 sps:$4 sm:$0xff]   ;;  %v1384_v27 = vld [vmem:[%s1926_s0 + $0x34] ss:$8 sps:$4 sm:$0xff]  }
   0x8   :  { %v1382_v25 = vld [vmem:[%s1926_s0 + $0x20] ss:$8 sps:$4 sm:$0xff]   ;;  %v1386_v28 = vld [vmem:[%s1926_s0 + $0x134] ss:$8 sps:$4 sm:$0xff]   ;;  %v1388_v29 = vld [vmem:[%s1926_s0 + $0x30] ss:$8 sps:$4 sm:$0xff]  }
   0x9   :  { %v1383_v26 = vld [vmem:[%s1926_s0 + $0x120] ss:$8 sps:$4 sm:$0xff]   ;;  %v1389_v30 = vld [vmem:[%s1926_s0 + $0x130] ss:$8 sps:$4 sm:$0xff]   ;;  %v1390_v31 = vld [vmem:[%s1926_s0 + $0x44] ss:$8 sps:$4 sm:$0xff]  }
   0xa   :  { %681 = vmatpush1.bf16.msra.mxu0 %v1358_v3  ;;  %1346 = vmatpush1.bf16.msra.mxu1 %v1358_v3  ;;  %v1392_v32 = vld [vmem:[%s1926_s0 + $0x144] ss:$8 sps:$4 sm:$0xff]   ;;  %v1394_v33 = vld [vmem:[%s1926_s0 + $0x40] ss:$8 sps:$4 sm:$0xff]   ;;  %v1396_v35 = vld [vmem:[%s1926_s0 + $0x54] ss:$8 sps:$4 sm:$0xff]  }
   0xb   :  { %682 = vmatprep.subr.bf16.mxu0 %v1462_v0  ;;  %1337 = vmatprep.subr.bf16.mxu1 %v1462_v0  ;;  %v1395_v34 = vld [vmem:[%s1926_s0 + $0x140] ss:$8 sps:$4 sm:$0xff]   ;;  %v1398_v36 = vld [vmem:[%s1926_s0 + $0x154] ss:$8 sps:$4 sm:$0xff]   ;;  %v1400_v37 = vld [vmem:[%s1926_s0 + $0x50] ss:$8 sps:$4 sm:$0xff]  }
   0xc   :  { %v1401_v38 = vld [vmem:[%s1926_s0 + $0x150] ss:$8 sps:$4 sm:$0xff]   ;;  %v1402_v39 = vld [vmem:[%s1926_s0 + $0x64] ss:$8 sps:$4 sm:$0xff]   ;;  %v1406_v41 = vld [vmem:[%s1926_s0 + $0x60] ss:$8 sps:$4 sm:$0xff]  }
   0xd   :  { %v1404_v40 = vld [vmem:[%s1926_s0 + $0x164] ss:$8 sps:$4 sm:$0xff]   ;;  %v1407_v42 = vld [vmem:[%s1926_s0 + $0x160] ss:$8 sps:$4 sm:$0xff]   ;;  %v1408_v43 = vld [vmem:[%s1926_s0 + $0x74] ss:$8 sps:$4 sm:$0xff]  }
   0xe   :  { %683 = vmatpush1.bf16.msra.mxu0 %v1359_v4  ;;  %1347 = vmatpush1.bf16.msra.mxu1 %v1359_v4  ;;  %v1410_v44 = vld [vmem:[%s1926_s0 + $0x174] ss:$8 sps:$4 sm:$0xff]   ;;  %v1412_v45 = vld [vmem:[%s1926_s0 + $0x70] ss:$8 sps:$4 sm:$0xff]   ;;  %v1414_v47 = vld [vmem:[%s1926_s0 + $0x84] ss:$8 sps:$4 sm:$0xff]  }
   0xf   :  { %684 = vmatprep.subr.bf16.mxu0 %v1462_v0  ;;  %1338 = vmatprep.subr.bf16.mxu1 %v1462_v0  ;;  %v1413_v46 = vld [vmem:[%s1926_s0 + $0x170] ss:$8 sps:$4 sm:$0xff]   ;;  %v1416_v48 = vld [vmem:[%s1926_s0 + $0x184] ss:$8 sps:$4 sm:$0xff]   ;;  %v1418_v49 = vld [vmem:[%s1926_s0 + $0x80] ss:$8 sps:$4 sm:$0xff]  }
  0x10   :  { %v1419_v50 = vld [vmem:[%s1926_s0 + $0x180] ss:$8 sps:$4 sm:$0xff]   ;;  %v1420_v51 = vld [vmem:[%s1926_s0 + $0x94] ss:$8 sps:$4 sm:$0xff]   ;;  %v1424_v53 = vld [vmem:[%s1926_s0 + $0x90] ss:$8 sps:$4 sm:$0xff]  }
  0x11   :  { %v1422_v52 = vld [vmem:[%s1926_s0 + $0x194] ss:$8 sps:$4 sm:$0xff]   ;;  %v1425_v54 = vld [vmem:[%s1926_s0 + $0x190] ss:$8 sps:$4 sm:$0xff]   ;;  %v1426_v55 = vld [vmem:[%s1926_s0 + $0xa4] ss:$8 sps:$4 sm:$0xff]  }
  0x12   :  { %685 = vmatpush1.bf16.msra.mxu0 %v1360_v7  ;;  %1348 = vmatpush1.bf16.msra.mxu1 %v1360_v7  ;;  %v1428_v56 = vld [vmem:[%s1926_s0 + $0x1a4] ss:$8 sps:$4 sm:$0xff]   ;;  %v1430_v57 = vld [vmem:[%s1926_s0 + $0xa0] ss:$8 sps:$4 sm:$0xff]   ;;  %v1432_v59 = vld [vmem:[%s1926_s0 + $0xb4] ss:$8 sps:$4 sm:$0xff]  }
  0x13   :  { %686 = vmatprep.subr.bf16.mxu0 %v1462_v0  ;;  %1339 = vmatprep.subr.bf16.mxu1 %v1462_v0  ;;  %v1431_v58 = vld [vmem:[%s1926_s0 + $0x1a0] ss:$8 sps:$4 sm:$0xff]   ;;  %v1434_v60 = vld [vmem:[%s1926_s0 + $0x1b4] ss:$8 sps:$4 sm:$0xff]   ;;  %v1436_v61 = vld [vmem:[%s1926_s0 + $0xb0] ss:$8 sps:$4 sm:$0xff]  }
  0x14   :  { %v1437_v62 = vld [vmem:[%s1926_s0 + $0x1b0] ss:$8 sps:$4 sm:$0xff]   ;;  %v1438_v63 = vld [vmem:[%s1926_s0 + $0xc4] ss:$8 sps:$4 sm:$0xff]   ;;  %v1442_v1 = vld [vmem:[%s1926_s0 + $0xc0] ss:$8 sps:$4 sm:$0xff]  }
  0x15   :  { %v1443_v2 = vld [vmem:[%s1926_s0 + $0x1c0] ss:$8 sps:$4 sm:$0xff]   ;;  %v1444_v3 = vld [vmem:[%s1926_s0 + $0xd4] ss:$8 sps:$4 sm:$0xff]   ;;  %v1448_v5 = vld [vmem:[%s1926_s0 + $0xd0] ss:$8 sps:$4 sm:$0xff]  }
  0x16   :  { %687 = vmatpush1.bf16.msra.mxu0 %v1361_v8  ;;  %1349 = vmatpush1.bf16.msra.mxu1 %v1361_v8  ;;  %v1446_v4 = vld [vmem:[%s1926_s0 + $0x1d4] ss:$8 sps:$4 sm:$0xff]   ;;  %v1449_v6 = vld [vmem:[%s1926_s0 + $0x1d0] ss:$8 sps:$4 sm:$0xff]   ;;  %v1450_v7 = vld [vmem:[%s1926_s0 + $0xe4] ss:$8 sps:$4 sm:$0xff]  }
  0x17   :  { %688 = vmatprep.subr.bf16.mxu0 %v1462_v0  ;;  %1340 = vmatprep.subr.bf16.mxu1 %v1462_v0  ;;  %v1452_v8 = vld [vmem:[%s1926_s0 + $0x1e4] ss:$8 sps:$4 sm:$0xff]   ;;  %v1456_v11 = vld [vmem:[%s1926_s0 + $0xf4] ss:$8 sps:$4 sm:$0xff]   ;;  %v1461_v14 = vld [vmem:[%s1926_s0 + $0x1f0] ss:$8 sps:$4 sm:$0xff]  }
  0x18   :  { %v1458_v12 = vld [vmem:[%s1926_s0 + $0x1f4] ss:$8 sps:$4 sm:$0xff]  }
  0x1a   :  { %689 = vmatpush1.bf16.msra.mxu0 %v1362_v9  ;;  %1350 = vmatpush1.bf16.msra.mxu1 %v1362_v9  ;;  %v1454_v9 = vld [vmem:[%s1926_s0 + $0xe0] ss:$8 sps:$4 sm:$0xff]  }
  0x1b   :  { %690 = vmatprep.subr.bf16.mxu0 %v1462_v0  ;;  %1341 = vmatprep.subr.bf16.mxu1 %v1462_v0 }
  0x1e   :  { %691 = vmatpush1.bf16.msra.mxu0 %v1363_v10  ;;  %1351 = vmatpush1.bf16.msra.mxu1 %v1363_v10  ;;  %v1455_v10 = vld [vmem:[%s1926_s0 + $0x1e0] ss:$8 sps:$4 sm:$0xff]  }
  0x1f   :  { %692 = vmatprep.subr.bf16.mxu0 %v1462_v0  ;;  %1342 = vmatprep.subr.bf16.mxu1 %v1462_v0 }
  0x22   :  { %693 = vmatpush1.bf16.msra.mxu0 %v1364_v13  ;;  %1352 = vmatpush1.bf16.msra.mxu1 %v1364_v13  ;;  %v1460_v13 = vld [vmem:[%s1926_s0 + $0xf0] ss:$8 sps:$4 sm:$0xff]  }
  0x23   :  { %694 = vmatprep.subr.bf16.mxu0 %v1462_v0  ;;  %1343 = vmatprep.subr.bf16.mxu1 %v1462_v0  ;;  %v1440_v0 = vld [vmem:[%s1926_s0 + $0x1c4] ss:$8 sps:$4 sm:$0xff]  }
  0x26   :  { %695 = vmatpush1.bf16.msra.mxu0 %v674_v16  ;;  %1353 = vmatpush1.bf16.msra.mxu1 %v674_v16 }
  0x29   :  { %709 = vmatmul.mubr.bf16.vlgmr.msra.gmra.mrb[0].mxu0 %v1366_v17  ;;  %837 = vmatmul.mubr.bf16.vlgmr.msra.gmra.mrb[0].mxu1 %v1369_v18 }
  0x2a   :  { %1303 = vmatprep.mubr.msk.bf16.mxu0 %vm572_vm0, %v1372_v19  ;;  %1319 = vmatprep.mubr.msk.bf16.mxu1 %vm572_vm0, %v1374_v20 }
  0x31   :  { %717 = vmatmul.mubr.bf16.gmra.mrb[4].mxu0 %v1376_v21  ;;  %845 = vmatmul.mubr.bf16.gmra.mrb[4].mxu1 %v1377_v22 }
  0x32   :  { %1304 = vmatprep.mubr.msk.bf16.mxu0 %vm572_vm0, %v1378_v23  ;;  %1320 = vmatprep.mubr.msk.bf16.mxu1 %vm572_vm0, %v1380_v24 }
  0x39   :  { %725 = vmatmul.mubr.bf16.gmra.mrb[8].mxu0 %v1382_v25  ;;  %853 = vmatmul.mubr.bf16.gmra.mrb[8].mxu1 %v1383_v26 }
  0x3a   :  { %1305 = vmatprep.mubr.msk.bf16.mxu0 %vm572_vm0, %v1384_v27  ;;  %1321 = vmatprep.mubr.msk.bf16.mxu1 %vm572_vm0, %v1386_v28 }
  0x41   :  { %733 = vmatmul.mubr.bf16.gmra.mrb[12].mxu0 %v1388_v29  ;;  %861 = vmatmul.mubr.bf16.gmra.mrb[12].mxu1 %v1389_v30 }
  0x42   :  { %1306 = vmatprep.mubr.msk.bf16.mxu0 %vm572_vm0, %v1390_v31  ;;  %1322 = vmatprep.mubr.msk.bf16.mxu1 %vm572_vm0, %v1392_v32 }
  0x49   :  { %741 = vmatmul.mubr.bf16.gmra.mrb[16].mxu0 %v1394_v33  ;;  %869 = vmatmul.mubr.bf16.gmra.mrb[16].mxu1 %v1395_v34 }
  0x4a   :  { %1307 = vmatprep.mubr.msk.bf16.mxu0 %vm572_vm0, %v1396_v35  ;;  %1323 = vmatprep.mubr.msk.bf16.mxu1 %vm572_vm0, %v1398_v36 }
  0x51   :  { %749 = vmatmul.mubr.bf16.gmra.mrb[20].mxu0 %v1400_v37  ;;  %877 = vmatmul.mubr.bf16.gmra.mrb[20].mxu1 %v1401_v38 }
  0x52   :  { %1308 = vmatprep.mubr.msk.bf16.mxu0 %vm572_vm0, %v1402_v39  ;;  %1324 = vmatprep.mubr.msk.bf16.mxu1 %vm572_vm0, %v1404_v40 }
  0x59   :  { %757 = vmatmul.mubr.bf16.gmra.mrb[24].mxu0 %v1406_v41  ;;  %885 = vmatmul.mubr.bf16.gmra.mrb[24].mxu1 %v1407_v42 }
  0x5a   :  { %1309 = vmatprep.mubr.msk.bf16.mxu0 %vm572_vm0, %v1408_v43  ;;  %1325 = vmatprep.mubr.msk.bf16.mxu1 %vm572_vm0, %v1410_v44 }
  0x61   :  { %765 = vmatmul.mubr.bf16.gmra.mrb[28].mxu0 %v1412_v45  ;;  %893 = vmatmul.mubr.bf16.gmra.mrb[28].mxu1 %v1413_v46 }
  0x62   :  { %1310 = vmatprep.mubr.msk.bf16.mxu0 %vm572_vm0, %v1414_v47  ;;  %1326 = vmatprep.mubr.msk.bf16.mxu1 %vm572_vm0, %v1416_v48 }
  0x69   :  { %773 = vmatmul.mubr.bf16.gmra.mrb[32].mxu0 %v1418_v49  ;;  %901 = vmatmul.mubr.bf16.gmra.mrb[32].mxu1 %v1419_v50 }
  0x6a   :  { %1311 = vmatprep.mubr.msk.bf16.mxu0 %vm572_vm0, %v1420_v51  ;;  %1327 = vmatprep.mubr.msk.bf16.mxu1 %vm572_vm0, %v1422_v52 }
  0x71   :  { %781 = vmatmul.mubr.bf16.gmra.mrb[36].mxu0 %v1424_v53  ;;  %909 = vmatmul.mubr.bf16.gmra.mrb[36].mxu1 %v1425_v54 }
  0x72   :  { %1312 = vmatprep.mubr.msk.bf16.mxu0 %vm572_vm0, %v1426_v55  ;;  %1328 = vmatprep.mubr.msk.bf16.mxu1 %vm572_vm0, %v1428_v56 }
  0x79   :  { %789 = vmatmul.mubr.bf16.gmra.mrb[40].mxu0 %v1430_v57  ;;  %917 = vmatmul.mubr.bf16.gmra.mrb[40].mxu1 %v1431_v58 }
  0x7a   :  { %1313 = vmatprep.mubr.msk.bf16.mxu0 %vm572_vm0, %v1432_v59  ;;  %1329 = vmatprep.mubr.msk.bf16.mxu1 %vm572_vm0, %v1434_v60 }
  0x81   :  { %797 = vmatmul.mubr.bf16.gmra.mrb[44].mxu0 %v1436_v61  ;;  %925 = vmatmul.mubr.bf16.gmra.mrb[44].mxu1 %v1437_v62 }
  0x82   :  { %1314 = vmatprep.mubr.msk.bf16.mxu0 %vm572_vm0, %v1438_v63  ;;  %1330 = vmatprep.mubr.msk.bf16.mxu1 %vm572_vm0, %v1440_v0 }
  0x89   :  { %805 = vmatmul.mubr.bf16.gmra.mrb[48].mxu0 %v1442_v1  ;;  %933 = vmatmul.mubr.bf16.gmra.mrb[48].mxu1 %v1443_v2 }
  0x8a   :  { %1315 = vmatprep.mubr.msk.bf16.mxu0 %vm572_vm0, %v1444_v3  ;;  %1331 = vmatprep.mubr.msk.bf16.mxu1 %vm572_vm0, %v1446_v4 }
  0x91   :  { %813 = vmatmul.mubr.bf16.gmra.mrb[52].mxu0 %v1448_v5  ;;  %941 = vmatmul.mubr.bf16.gmra.mrb[52].mxu1 %v1449_v6 }
  0x92   :  { %1316 = vmatprep.mubr.msk.bf16.mxu0 %vm572_vm0, %v1450_v7  ;;  %1332 = vmatprep.mubr.msk.bf16.mxu1 %vm572_vm0, %v1452_v8 }
  0x99   :  { %821 = vmatmul.mubr.bf16.gmra.mrb[56].mxu0 %v1454_v9  ;;  %949 = vmatmul.mubr.bf16.gmra.mrb[56].mxu1 %v1455_v10 }
  0x9a   :  { %1317 = vmatprep.mubr.msk.bf16.mxu0 %vm572_vm0, %v1456_v11  ;;  %1333 = vmatprep.mubr.msk.bf16.mxu1 %vm572_vm0, %v1458_v12 }
  0xa1   :  { %829 = vmatmul.mubr.bf16.gmra.mrb[60].mxu0 %v1460_v13  ;;  %957 = vmatmul.mubr.bf16.gmra.mrb[60].mxu1 %v1461_v14 }
  0xfc   :  { %v710_v15 = vpop.f32.mrb[0].mxu0  ;;  %v838_v16 = vpop.f32.mrb[0].mxu1 }
  0xfd   :  { %1160 = vst [vmem:[%s1927_s2] sm:$0xff] %v710_v15  ;;  %1192 = vst [vmem:[%s1927_s2 + $0x100] sm:$0xff] %v838_v16  ;;  %v712_v17 = vpop.f32.mrb[1].mxu0  ;;  %v840_v18 = vpop.f32.mrb[1].mxu1 }
  0xfe   :  { %v713_v19 = vpop.f32.mrb[2].mxu0  ;;  %v841_v20 = vpop.f32.mrb[2].mxu1 }
  0xff   :  { %1161 = vst [vmem:[%s1927_s2 + $0x8] sm:$0xff] %v713_v19  ;;  %1193 = vst [vmem:[%s1927_s2 + $0x108] sm:$0xff] %v841_v20  ;;  %v715_v21 = vpop.f32.mrb[3].mxu0  ;;  %v843_v22 = vpop.f32.mrb[3].mxu1 }
 0x104   :  { %v718_v23 = vpop.f32.mrb[4].mxu0  ;;  %v846_v24 = vpop.f32.mrb[4].mxu1 }
 0x105   :  { %1162 = vst [vmem:[%s1927_s2 + $0x10] sm:$0xff] %v718_v23  ;;  %1194 = vst [vmem:[%s1927_s2 + $0x110] sm:$0xff] %v846_v24  ;;  %v720_v25 = vpop.f32.mrb[5].mxu0  ;;  %v848_v26 = vpop.f32.mrb[5].mxu1 }
 0x106   :  { %v721_v27 = vpop.f32.mrb[6].mxu0  ;;  %v849_v28 = vpop.f32.mrb[6].mxu1 }
 0x107   :  { %1163 = vst [vmem:[%s1927_s2 + $0x18] sm:$0xff] %v721_v27  ;;  %1195 = vst [vmem:[%s1927_s2 + $0x118] sm:$0xff] %v849_v28  ;;  %v723_v29 = vpop.f32.mrb[7].mxu0  ;;  %v851_v30 = vpop.f32.mrb[7].mxu1 }
 0x10c   :  { %v726_v31 = vpop.f32.mrb[8].mxu0  ;;  %v854_v32 = vpop.f32.mrb[8].mxu1 }
 0x10d   :  { %1164 = vst [vmem:[%s1927_s2 + $0x20] sm:$0xff] %v726_v31  ;;  %1196 = vst [vmem:[%s1927_s2 + $0x120] sm:$0xff] %v854_v32  ;;  %v728_v33 = vpop.f32.mrb[9].mxu0  ;;  %v856_v34 = vpop.f32.mrb[9].mxu1 }
 0x10e   :  { %v729_v35 = vpop.f32.mrb[10].mxu0  ;;  %v857_v36 = vpop.f32.mrb[10].mxu1 }
 0x10f   :  { %1165 = vst [vmem:[%s1927_s2 + $0x28] sm:$0xff] %v729_v35  ;;  %1197 = vst [vmem:[%s1927_s2 + $0x128] sm:$0xff] %v857_v36  ;;  %v731_v37 = vpop.f32.mrb[11].mxu0  ;;  %v859_v38 = vpop.f32.mrb[11].mxu1 }
 0x114   :  { %v734_v39 = vpop.f32.mrb[12].mxu0  ;;  %v862_v40 = vpop.f32.mrb[12].mxu1 }
 0x115   :  { %1166 = vst [vmem:[%s1927_s2 + $0x30] sm:$0xff] %v734_v39  ;;  %1198 = vst [vmem:[%s1927_s2 + $0x130] sm:$0xff] %v862_v40  ;;  %v736_v41 = vpop.f32.mrb[13].mxu0  ;;  %v864_v42 = vpop.f32.mrb[13].mxu1 }
 0x116   :  { %v737_v43 = vpop.f32.mrb[14].mxu0  ;;  %v865_v44 = vpop.f32.mrb[14].mxu1 }
 0x117   :  { %1167 = vst [vmem:[%s1927_s2 + $0x38] sm:$0xff] %v737_v43  ;;  %1199 = vst [vmem:[%s1927_s2 + $0x138] sm:$0xff] %v865_v44  ;;  %v739_v45 = vpop.f32.mrb[15].mxu0  ;;  %v867_v46 = vpop.f32.mrb[15].mxu1 }
 0x11c   :  { %v742_v47 = vpop.f32.mrb[16].mxu0  ;;  %v870_v48 = vpop.f32.mrb[16].mxu1 }
 0x11d   :  { %1168 = vst [vmem:[%s1927_s2 + $0x40] sm:$0xff] %v742_v47  ;;  %1200 = vst [vmem:[%s1927_s2 + $0x140] sm:$0xff] %v870_v48  ;;  %v744_v49 = vpop.f32.mrb[17].mxu0  ;;  %v872_v50 = vpop.f32.mrb[17].mxu1 }
 0x11e   :  { %v745_v51 = vpop.f32.mrb[18].mxu0  ;;  %v873_v52 = vpop.f32.mrb[18].mxu1 }
 0x11f   :  { %1169 = vst [vmem:[%s1927_s2 + $0x48] sm:$0xff] %v745_v51  ;;  %1201 = vst [vmem:[%s1927_s2 + $0x148] sm:$0xff] %v873_v52  ;;  %v747_v53 = vpop.f32.mrb[19].mxu0  ;;  %v875_v54 = vpop.f32.mrb[19].mxu1 }
 0x124   :  { %v750_v55 = vpop.f32.mrb[20].mxu0  ;;  %v878_v56 = vpop.f32.mrb[20].mxu1 }
 0x125   :  { %1170 = vst [vmem:[%s1927_s2 + $0x50] sm:$0xff] %v750_v55  ;;  %1202 = vst [vmem:[%s1927_s2 + $0x150] sm:$0xff] %v878_v56  ;;  %v752_v57 = vpop.f32.mrb[21].mxu0  ;;  %v880_v58 = vpop.f32.mrb[21].mxu1 }
 0x126   :  { %v753_v59 = vpop.f32.mrb[22].mxu0  ;;  %v881_v60 = vpop.f32.mrb[22].mxu1 }
 0x127   :  { %1171 = vst [vmem:[%s1927_s2 + $0x58] sm:$0xff] %v753_v59  ;;  %1203 = vst [vmem:[%s1927_s2 + $0x158] sm:$0xff] %v881_v60  ;;  %v755_v61 = vpop.f32.mrb[23].mxu0  ;;  %v883_v62 = vpop.f32.mrb[23].mxu1 }
 0x12c   :  { %v758_v63 = vpop.f32.mrb[24].mxu0  ;;  %v886_v0 = vpop.f32.mrb[24].mxu1 }
 0x12d   :  { %1172 = vst [vmem:[%s1927_s2 + $0x60] sm:$0xff] %v758_v63  ;;  %1204 = vst [vmem:[%s1927_s2 + $0x160] sm:$0xff] %v886_v0  ;;  %v760_v1 = vpop.f32.mrb[25].mxu0  ;;  %v888_v2 = vpop.f32.mrb[25].mxu1 }
 0x12e   :  { %v761_v3 = vpop.f32.mrb[26].mxu0  ;;  %v889_v4 = vpop.f32.mrb[26].mxu1 }
 0x12f   :  { %1173 = vst [vmem:[%s1927_s2 + $0x68] sm:$0xff] %v761_v3  ;;  %1205 = vst [vmem:[%s1927_s2 + $0x168] sm:$0xff] %v889_v4  ;;  %v763_v5 = vpop.f32.mrb[27].mxu0  ;;  %v891_v6 = vpop.f32.mrb[27].mxu1 }
 0x134   :  { %v766_v7 = vpop.f32.mrb[28].mxu0  ;;  %v894_v8 = vpop.f32.mrb[28].mxu1 }
 0x135   :  { %1174 = vst [vmem:[%s1927_s2 + $0x70] sm:$0xff] %v766_v7  ;;  %1206 = vst [vmem:[%s1927_s2 + $0x170] sm:$0xff] %v894_v8  ;;  %v768_v9 = vpop.f32.mrb[29].mxu0  ;;  %v896_v10 = vpop.f32.mrb[29].mxu1 }
 0x136   :  { %v769_v11 = vpop.f32.mrb[30].mxu0  ;;  %v897_v12 = vpop.f32.mrb[30].mxu1 }
 0x137   :  { %1175 = vst [vmem:[%s1927_s2 + $0x78] sm:$0xff] %v769_v11  ;;  %1207 = vst [vmem:[%s1927_s2 + $0x178] sm:$0xff] %v897_v12  ;;  %v771_v13 = vpop.f32.mrb[31].mxu0  ;;  %v899_v14 = vpop.f32.mrb[31].mxu1 }
 0x13c   :  { %v774_v15 = vpop.f32.mrb[32].mxu0  ;;  %v902_v16 = vpop.f32.mrb[32].mxu1 }
 0x13d   :  { %1176 = vst [vmem:[%s1927_s2 + $0x80] sm:$0xff] %v774_v15  ;;  %1208 = vst [vmem:[%s1927_s2 + $0x180] sm:$0xff] %v902_v16  ;;  %v776_v17 = vpop.f32.mrb[33].mxu0  ;;  %v904_v18 = vpop.f32.mrb[33].mxu1 }
 0x13e   :  { %v777_v19 = vpop.f32.mrb[34].mxu0  ;;  %v905_v20 = vpop.f32.mrb[34].mxu1 }
 0x13f   :  { %1177 = vst [vmem:[%s1927_s2 + $0x88] sm:$0xff] %v777_v19  ;;  %1209 = vst [vmem:[%s1927_s2 + $0x188] sm:$0xff] %v905_v20  ;;  %v779_v21 = vpop.f32.mrb[35].mxu0  ;;  %v907_v22 = vpop.f32.mrb[35].mxu1 }
 0x144   :  { %v782_v23 = vpop.f32.mrb[36].mxu0  ;;  %v910_v24 = vpop.f32.mrb[36].mxu1 }
 0x145   :  { %1178 = vst [vmem:[%s1927_s2 + $0x90] sm:$0xff] %v782_v23  ;;  %1210 = vst [vmem:[%s1927_s2 + $0x190] sm:$0xff] %v910_v24  ;;  %v784_v25 = vpop.f32.mrb[37].mxu0  ;;  %v912_v26 = vpop.f32.mrb[37].mxu1 }
 0x146   :  { %v785_v27 = vpop.f32.mrb[38].mxu0  ;;  %v913_v28 = vpop.f32.mrb[38].mxu1 }
 0x147   :  { %1179 = vst [vmem:[%s1927_s2 + $0x98] sm:$0xff] %v785_v27  ;;  %1211 = vst [vmem:[%s1927_s2 + $0x198] sm:$0xff] %v913_v28  ;;  %v787_v29 = vpop.f32.mrb[39].mxu0  ;;  %v915_v30 = vpop.f32.mrb[39].mxu1 }
 0x14c   :  { %v790_v31 = vpop.f32.mrb[40].mxu0  ;;  %v918_v32 = vpop.f32.mrb[40].mxu1 }
 0x14d   :  { %1180 = vst [vmem:[%s1927_s2 + $0xa0] sm:$0xff] %v790_v31  ;;  %1212 = vst [vmem:[%s1927_s2 + $0x1a0] sm:$0xff] %v918_v32  ;;  %v792_v33 = vpop.f32.mrb[41].mxu0  ;;  %v920_v34 = vpop.f32.mrb[41].mxu1 }
 0x14e   :  { %v793_v35 = vpop.f32.mrb[42].mxu0  ;;  %v921_v36 = vpop.f32.mrb[42].mxu1 }
 0x14f   :  { %1181 = vst [vmem:[%s1927_s2 + $0xa8] sm:$0xff] %v793_v35  ;;  %1213 = vst [vmem:[%s1927_s2 + $0x1a8] sm:$0xff] %v921_v36  ;;  %v795_v37 = vpop.f32.mrb[43].mxu0  ;;  %v923_v38 = vpop.f32.mrb[43].mxu1 }
 0x154   :  { %v798_v39 = vpop.f32.mrb[44].mxu0  ;;  %v926_v40 = vpop.f32.mrb[44].mxu1 }
 0x155   :  { %1182 = vst [vmem:[%s1927_s2 + $0xb0] sm:$0xff] %v798_v39  ;;  %1214 = vst [vmem:[%s1927_s2 + $0x1b0] sm:$0xff] %v926_v40  ;;  %v800_v41 = vpop.f32.mrb[45].mxu0  ;;  %v928_v42 = vpop.f32.mrb[45].mxu1 }
 0x156   :  { %v801_v43 = vpop.f32.mrb[46].mxu0  ;;  %v929_v44 = vpop.f32.mrb[46].mxu1 }
 0x157   :  { %1183 = vst [vmem:[%s1927_s2 + $0xb8] sm:$0xff] %v801_v43  ;;  %1215 = vst [vmem:[%s1927_s2 + $0x1b8] sm:$0xff] %v929_v44  ;;  %v803_v45 = vpop.f32.mrb[47].mxu0  ;;  %v931_v46 = vpop.f32.mrb[47].mxu1 }
 0x15c   :  { %v806_v47 = vpop.f32.mrb[48].mxu0  ;;  %v934_v48 = vpop.f32.mrb[48].mxu1 }
 0x15d   :  { %1184 = vst [vmem:[%s1927_s2 + $0xc0] sm:$0xff] %v806_v47  ;;  %1216 = vst [vmem:[%s1927_s2 + $0x1c0] sm:$0xff] %v934_v48  ;;  %v808_v49 = vpop.f32.mrb[49].mxu0  ;;  %v936_v50 = vpop.f32.mrb[49].mxu1 }
 0x15e   :  { %v809_v51 = vpop.f32.mrb[50].mxu0  ;;  %v937_v52 = vpop.f32.mrb[50].mxu1 }
 0x15f   :  { %1185 = vst [vmem:[%s1927_s2 + $0xc8] sm:$0xff] %v809_v51  ;;  %1217 = vst [vmem:[%s1927_s2 + $0x1c8] sm:$0xff] %v937_v52  ;;  %v811_v53 = vpop.f32.mrb[51].mxu0  ;;  %v939_v54 = vpop.f32.mrb[51].mxu1 }
 0x164   :  { %v814_v55 = vpop.f32.mrb[52].mxu0  ;;  %v942_v56 = vpop.f32.mrb[52].mxu1 }
 0x165   :  { %1186 = vst [vmem:[%s1927_s2 + $0xd0] sm:$0xff] %v814_v55  ;;  %1218 = vst [vmem:[%s1927_s2 + $0x1d0] sm:$0xff] %v942_v56  ;;  %v816_v57 = vpop.f32.mrb[53].mxu0  ;;  %v944_v58 = vpop.f32.mrb[53].mxu1 }
 0x166   :  { %v817_v59 = vpop.f32.mrb[54].mxu0  ;;  %v945_v60 = vpop.f32.mrb[54].mxu1 }
 0x167   :  { %1187 = vst [vmem:[%s1927_s2 + $0xd8] sm:$0xff] %v817_v59  ;;  %1219 = vst [vmem:[%s1927_s2 + $0x1d8] sm:$0xff] %v945_v60  ;;  %v819_v61 = vpop.f32.mrb[55].mxu0  ;;  %v947_v62 = vpop.f32.mrb[55].mxu1 }
 0x16c   :  { %v822_v63 = vpop.f32.mrb[56].mxu0  ;;  %v950_v0 = vpop.f32.mrb[56].mxu1 }
 0x16d   :  { %1188 = vst [vmem:[%s1927_s2 + $0xe0] sm:$0xff] %v822_v63  ;;  %1220 = vst [vmem:[%s1927_s2 + $0x1e0] sm:$0xff] %v950_v0  ;;  %v824_v1 = vpop.f32.mrb[57].mxu0  ;;  %v952_v2 = vpop.f32.mrb[57].mxu1 }
 0x16e   :  { %v825_v3 = vpop.f32.mrb[58].mxu0  ;;  %v953_v4 = vpop.f32.mrb[58].mxu1 }
 0x16f   :  { %1189 = vst [vmem:[%s1927_s2 + $0xe8] sm:$0xff] %v825_v3  ;;  %1221 = vst [vmem:[%s1927_s2 + $0x1e8] sm:$0xff] %v953_v4  ;;  %v827_v5 = vpop.f32.mrb[59].mxu0  ;;  %v955_v6 = vpop.f32.mrb[59].mxu1 }
 0x174   :  { %v830_v7 = vpop.f32.mrb[60].mxu0  ;;  %v958_v8 = vpop.f32.mrb[60].mxu1 }
 0x175   :  { %1190 = vst [vmem:[%s1927_s2 + $0xf0] sm:$0xff] %v830_v7  ;;  %1222 = vst [vmem:[%s1927_s2 + $0x1f0] sm:$0xff] %v958_v8  ;;  %v832_v9 = vpop.f32.mrb[61].mxu0  ;;  %v960_v10 = vpop.f32.mrb[61].mxu1 }
 0x176   :  { %v833_v11 = vpop.f32.mrb[62].mxu0  ;;  %v961_v12 = vpop.f32.mrb[62].mxu1 }
 0x177   :  { %1191 = vst [vmem:[%s1927_s2 + $0xf8] sm:$0xff] %v833_v11  ;;  %1223 = vst [vmem:[%s1927_s2 + $0x1f8] sm:$0xff] %v961_v12  ;;  %v835_v13 = vpop.f32.mrb[63].mxu0  ;;  %v963_v14 = vpop.f32.mrb[63].mxu1 }

// kernel: mixstyle_densenet_forward.54
= control target key start
LH: loop header
LB: loop body
LE: loop exit
PB: predicated region body
PF: predicated region fallthrough
CT: control target
= control target key end

     0   :  { %vm14_vm0 = vcmask 122880   ;;  %vm34_vm1 = vcmask 130048   ;;  %v158_v0 = vmov 0.0   ;;  %s266_s0 = inlined_call_operand.vmem [shape: f32[128,16], index: 0, kind: input, shape index: {}]   ;;  %s267_s1 = inlined_call_operand.vmem [shape: f32[1,16], index: 1, kind: output, shape index: {0}]   ;;  %s268_s2 = inlined_call_operand.vmem [shape: f32[1,16], index: 2, kind: output, shape index: {1}]  }
   0x1   :  { %15 = vst.msk [vmem:[#allocation2] sm:$0x1] %vm14_vm0, %v158_v0  ;;  %16 = vst.msk [vmem:[#allocation3] sm:$0x1] %vm14_vm0, %v158_v0  ;;  %v17_v1 = vld [vmem:[%s266_s0] sm:$0xff]  ;;  %v18_v2 = vld [vmem:[%s266_s0 + $0x8] sm:$0xff] }
   0x2   :  { %v19_v3 = vld [vmem:[%s266_s0 + $0x10] sm:$0xff]  ;;  %v20_v4 = vld [vmem:[%s266_s0 + $0x18] sm:$0xff]  ;;  %v35_v5 = vsel %vm34_vm1, %v17_v1, 0.0  ;;  %v36_v6 = vsel %vm34_vm1, %v18_v2, 0.0  ;;  %v21_v8 = vld [vmem:[%s266_s0 + $0x20] sm:$0xff]  ;;  %v76_v16 = vmul.f32 %v17_v1, %v17_v1  ;;  %v77_v17 = vmul.f32 %v18_v2, %v18_v2 }
   0x3   :  { %v38_v7 = vsel %vm34_vm1, %v19_v3, 0.0  ;;  %v37_v9 = vadd.f32 %v36_v6, %v35_v5  ;;  %v40_v10 = vsel %vm34_vm1, %v20_v4, 0.0  ;;  %v22_v11 = vld [vmem:[%s266_s0 + $0x28] sm:$0xff]  ;;  %v42_v13 = vsel %vm34_vm1, %v21_v8, 0.0  ;;  %v23_v14 = vld [vmem:[%s266_s0 + $0x30] sm:$0xff]  ;;  %v24_v20 = vld [vmem:[%s266_s0 + $0x38] sm:$0xff] }
   0x4   :  { %v78_v18 = vmul.f32 %v19_v3, %v19_v3  ;;  %v44_v19 = vsel %vm34_vm1, %v22_v11, 0.0  ;;  %v79_v22 = vmul.f32 %v20_v4, %v20_v4  ;;  %v46_v23 = vsel %vm34_vm1, %v23_v14, 0.0  ;;  %v25_v25 = vld [vmem:[%s266_s0 + $0x40] sm:$0xff]  ;;  %v26_v32 = vld [vmem:[%s266_s0 + $0x48] sm:$0xff]  ;;  %v27_v38 = vld [vmem:[%s266_s0 + $0x50] sm:$0xff] }
   0x5   :  { %v39_v12 = vadd.f32 %v38_v7, %v37_v9  ;;  %v80_v24 = vmul.f32 %v21_v8, %v21_v8  ;;  %v92_v27 = vsel %vm34_vm1, %v76_v16, 0.0  ;;  %v93_v28 = vsel %vm34_vm1, %v77_v17, 0.0  ;;  %v28_v44 = vld [vmem:[%s266_s0 + $0x58] sm:$0xff]  ;;  %v29_v50 = vld [vmem:[%s266_s0 + $0x60] sm:$0xff]  ;;  %v30_v56 = vld [vmem:[%s266_s0 + $0x68] sm:$0xff] }
   0x6   :  { %v95_v29 = vsel %vm34_vm1, %v78_v18, 0.0  ;;  %v48_v30 = vsel %vm34_vm1, %v24_v20, 0.0  ;;  %v94_v31 = vadd.f32 %v93_v28, %v92_v27  ;;  %v81_v34 = vmul.f32 %v22_v11, %v22_v11  ;;  %v31_v62 = vld [vmem:[%s266_s0 + $0x70] sm:$0xff]  ;;  %v32_v4 = vld [vmem:[%s266_s0 + $0x78] sm:$0xff] }
   0x7   :  { %v41_v15 = vadd.f32 %v40_v10, %v39_v12  ;;  %v97_v35 = vsel %vm34_vm1, %v79_v22, 0.0  ;;  %v50_v36 = vsel %vm34_vm1, %v25_v25, 0.0  ;;  %v82_v40 = vmul.f32 %v23_v14, %v23_v14 }
   0x8   :  { %v96_v37 = vadd.f32 %v95_v29, %v94_v31  ;;  %v99_v41 = vsel %vm34_vm1, %v80_v24, 0.0  ;;  %v52_v42 = vsel %vm34_vm1, %v26_v32, 0.0  ;;  %v83_v46 = vmul.f32 %v24_v20, %v24_v20 }
   0x9   :  { %v43_v21 = vadd.f32 %v42_v13, %v41_v15  ;;  %v101_v47 = vsel %vm34_vm1, %v81_v34, 0.0  ;;  %v54_v48 = vsel %vm34_vm1, %v27_v38, 0.0  ;;  %v84_v52 = vmul.f32 %v25_v25, %v25_v25 }
   0xa   :  { %v98_v43 = vadd.f32 %v97_v35, %v96_v37  ;;  %v103_v53 = vsel %vm34_vm1, %v82_v40, 0.0  ;;  %v56_v54 = vsel %vm34_vm1, %v28_v44, 0.0  ;;  %v85_v58 = vmul.f32 %v26_v32, %v26_v32 }
   0xb   :  { %v45_v26 = vadd.f32 %v44_v19, %v43_v21  ;;  %v105_v59 = vsel %vm34_vm1, %v83_v46, 0.0  ;;  %v58_v60 = vsel %vm34_vm1, %v29_v50, 0.0  ;;  %v86_v0 = vmul.f32 %v27_v38, %v27_v38 }
   0xc   :  { %v100_v49 = vadd.f32 %v99_v41, %v98_v43  ;;  %v107_v1 = vsel %vm34_vm1, %v84_v52, 0.0  ;;  %v60_v2 = vsel %vm34_vm1, %v30_v56, 0.0  ;;  %v87_v6 = vmul.f32 %v28_v44, %v28_v44  ;;  %v75_v44 = vld [vmem:[#allocation3] sm:$0x1] }
   0xd   :  { %v47_v33 = vadd.f32 %v46_v23, %v45_v26  ;;  %v109_v7 = vsel %vm34_vm1, %v85_v58, 0.0  ;;  %v62_v8 = vsel %vm34_vm1, %v31_v62, 0.0  ;;  %v88_v11 = vmul.f32 %v29_v50, %v29_v50 }
   0xe   :  { %v102_v55 = vadd.f32 %v101_v47, %v100_v49  ;;  %v111_v12 = vsel %vm34_vm1, %v86_v0, 0.0  ;;  %v64_v13 = vsel %vm34_vm1, %v32_v4, 0.0  ;;  %v89_v16 = vmul.f32 %v30_v56, %v30_v56 }
   0xf   :  { %v49_v39 = vadd.f32 %v48_v30, %v47_v33  ;;  %v113_v17 = vsel %vm34_vm1, %v87_v6, 0.0  ;;  %v90_v20 = vmul.f32 %v31_v62, %v31_v62  ;;  %v115_v21 = vsel %vm34_vm1, %v88_v11, 0.0 }
  0x10   :  { %v104_v61 = vadd.f32 %v103_v53, %v102_v55  ;;  %v91_v24 = vmul.f32 %v32_v4, %v32_v4  ;;  %v117_v25 = vsel %vm34_vm1, %v89_v16, 0.0 }
  0x11   :  { %v51_v45 = vadd.f32 %v50_v36, %v49_v39  ;;  %v119_v28 = vsel %vm34_vm1, %v90_v20, 0.0  ;;  %v33_v36 = vld [vmem:[#allocation2] sm:$0x1] }
  0x12   :  { %v106_v3 = vadd.f32 %v105_v59, %v104_v61  ;;  %v121_v31 = vsel %vm34_vm1, %v91_v24, 0.0 }
  0x13   :  { %v53_v51 = vadd.f32 %v52_v42, %v51_v45 }
  0x14   :  { %v108_v9 = vadd.f32 %v107_v1, %v106_v3 }
  0x15   :  { %v55_v57 = vadd.f32 %v54_v48, %v53_v51 }
  0x16   :  { %v110_v14 = vadd.f32 %v109_v7, %v108_v9 }
  0x17   :  { %v57_v63 = vadd.f32 %v56_v54, %v55_v57 }
  0x18   :  { %v112_v18 = vadd.f32 %v111_v12, %v110_v14 }
  0x19   :  { %v59_v5 = vadd.f32 %v58_v60, %v57_v63 }
  0x1a   :  { %v114_v22 = vadd.f32 %v113_v17, %v112_v18 }
  0x1b   :  { %v61_v10 = vadd.f32 %v60_v2, %v59_v5 }
  0x1c   :  { %v116_v26 = vadd.f32 %v115_v21, %v114_v22 }
  0x1d   :  { %v63_v15 = vadd.f32 %v62_v8, %v61_v10 }
  0x1e   :  { %v118_v29 = vadd.f32 %v117_v25, %v116_v26 }
  0x1f   :  { %v65_v19 = vadd.f32 %v64_v13, %v63_v15 }
  0x20   :  { %v120_v32 = vadd.f32 %v119_v28, %v118_v29 }
  0x21   :  { %v66_v23 = vrot.slane %v65_v19, 4 }
  0x22   :  { %v122_v34 = vadd.f32 %v121_v31, %v120_v32 }
  0x23   :  { %v67_v27 = vadd.f32 %v66_v23, %v65_v19 }
  0x24   :  { %v123_v37 = vrot.slane %v122_v34, 4 }
  0x25   :  { %v68_v30 = vrot.slane %v67_v27, 2 }
  0x26   :  { %v124_v39 = vadd.f32 %v123_v37, %v122_v34 }
  0x27   :  { %v69_v33 = vadd.f32 %v68_v30, %v67_v27 }
  0x28   :  { %v125_v41 = vrot.slane %v124_v39, 2 }
  0x29   :  { %v70_v35 = vrot.slane %v69_v33, 1 }
  0x2a   :  { %v126_v42 = vadd.f32 %v125_v41, %v124_v39 }
  0x2b   :  { %v71_v38 = vadd.f32 %v70_v35, %v69_v33 }
  0x2c   :  { %v127_v43 = vrot.slane %v126_v42, 1 }
  0x2d   :  { %v72_v40 = vadd.f32 %v71_v38, %v33_v36 }
  0x2e   :  { %v128_v45 = vadd.f32 %v127_v43, %v126_v42 }
  0x2f   :  { %74 = vst.msk [vmem:[#allocation2] sm:$0x1] %vm14_vm0, %v72_v40 }
  0x30   :  { %v129_v46 = vadd.f32 %v128_v45, %v75_v44 }
  0x32   :  { %130 = vst.msk [vmem:[#allocation3] sm:$0x1] %vm14_vm0, %v129_v46 }
  0x36   :  { %v134_v47 = vld [vmem:[#allocation2] sm:$0x1] }
  0x37   :  { %v135_v48 = vmul.f32 0.0078125, %v134_v47 }
  0x39   :  { %v138_v49 = vmul.f32 %v135_v48, %v135_v48  ;;  %v136_v50 = vld [vmem:[#allocation3] sm:$0x1]  ;;  %v144_v55 = vsub.f32 0.0, %v135_v48 }
  0x3a   :  { %v137_v51 = vmul.f32 0.0078125, %v136_v50 }
  0x3c   :  { %v139_v52 = vsub.f32 %v137_v51, %v138_v49 }
  0x3e   :  { %v140_v53 = vmax.f32 %v139_v52, 0.0 }
  0x40   :  { %v141_v54 = vadd.f32 1e-05, %v140_v53 }
  0x42   :  { %156 = vrsqrt.f32 %v141_v54 }
  0x4c   :  { %v157_v56 = vpop.eup %156 }
  0x4d   :  { %143 = vst.msk [vmem:[%s267_s1] sm:$0x1] %vm14_vm0, %v157_v56  ;;  %v145_v57 = vmul.f32 %v157_v56, %v144_v55 }
  0x4f   :  { %146 = vst.msk [vmem:[%s268_s2] sm:$0x1] %vm14_vm0, %v145_v57 }

// kernel: mixstyle_densenet_forward.57
= control target key start
LH: loop header
LB: loop body
LE: loop exit
PB: predicated region body
PF: predicated region fallthrough
CT: control target
= control target key end

     0   :  { %vm92_vm0 = vcmask 130048   ;;  %s271_s0 = inlined_call_operand.vmem [shape: f32[128,16], index: 0, kind: input, shape index: {}]   ;;  %s272_s1 = inlined_call_operand.vmem [shape: f32[1,16], index: 1, kind: input, shape index: {}]   ;;  %s273_s2 = inlined_call_operand.vmem [shape: f32[1,16], index: 2, kind: input, shape index: {}]   ;;  %s274_s3 = inlined_call_operand.vmem [shape: f32[128,16], index: 3, kind: output, shape index: {}]  }
   0x1   :  { %v14_v0 = vld [vmem:[%s271_s0] sm:$0xff]  ;;  %v15_v4 = vld [vmem:[%s271_s0 + $0x8] sm:$0xff]  ;;  %v16_v5 = vld [vmem:[%s271_s0 + $0x10] sm:$0xff] }
   0x2   :  { %v113_v1 = vld [vmem:[%s272_s1] ss:$0 sm:$0xff]  ;;  %v17_v6 = vld [vmem:[%s271_s0 + $0x18] sm:$0xff]  ;;  %v19_v11 = vld [vmem:[%s271_s0 + $0x28] sm:$0xff] }
   0x3   :  { %v144_v2 = vld [vmem:[%s273_s2] ss:$0 sm:$0xff]  ;;  %v37_v3 = vmul.f32 %v113_v1, %v14_v0  ;;  %v38_v7 = vmul.f32 %v113_v1, %v15_v4  ;;  %v39_v8 = vmul.f32 %v113_v1, %v16_v5  ;;  %v40_v9 = vmul.f32 %v113_v1, %v17_v6  ;;  %v20_v12 = vld [vmem:[%s271_s0 + $0x30] sm:$0xff]  ;;  %v21_v17 = vld [vmem:[%s271_s0 + $0x38] sm:$0xff] }
   0x4   :  { %v18_v10 = vld [vmem:[%s271_s0 + $0x20] sm:$0xff]  ;;  %v42_v15 = vmul.f32 %v113_v1, %v19_v11  ;;  %v43_v16 = vmul.f32 %v113_v1, %v20_v12  ;;  %v44_v21 = vmul.f32 %v113_v1, %v21_v17  ;;  %v23_v27 = vld [vmem:[%s271_s0 + $0x48] sm:$0xff]  ;;  %v24_v28 = vld [vmem:[%s271_s0 + $0x50] sm:$0xff] }
   0x5   :  { %v60_v13 = vadd.f32 %v144_v2, %v37_v3  ;;  %v41_v14 = vmul.f32 %v113_v1, %v18_v10  ;;  %v61_v18 = vadd.f32 %v144_v2, %v38_v7  ;;  %v62_v19 = vadd.f32 %v144_v2, %v39_v8  ;;  %v22_v22 = vld [vmem:[%s271_s0 + $0x40] sm:$0xff]  ;;  %v25_v29 = vld [vmem:[%s271_s0 + $0x58] sm:$0xff]  ;;  %v27_v35 = vld [vmem:[%s271_s0 + $0x68] sm:$0xff] }
   0x6   :  { %v63_v20 = vadd.f32 %v144_v2, %v40_v9  ;;  %v65_v25 = vadd.f32 %v144_v2, %v42_v15  ;;  %v66_v26 = vadd.f32 %v144_v2, %v43_v16  ;;  %v67_v33 = vadd.f32 %v144_v2, %v44_v21  ;;  %v26_v34 = vld [vmem:[%s271_s0 + $0x60] sm:$0xff]  ;;  %v28_v36 = vld [vmem:[%s271_s0 + $0x70] sm:$0xff]  ;;  %v29_v41 = vld [vmem:[%s271_s0 + $0x78] sm:$0xff] }
   0x7   :  { %v76_v23 = vmax.f32 %v60_v13, 0.0  ;;  %v64_v24 = vadd.f32 %v144_v2, %v41_v14  ;;  %v77_v30 = vmax.f32 %v61_v18, 0.0  ;;  %v78_v31 = vmax.f32 %v62_v19, 0.0 }
   0x8   :  { %v79_v32 = vmax.f32 %v63_v20, 0.0  ;;  %v81_v38 = vmax.f32 %v65_v25, 0.0  ;;  %v82_v39 = vmax.f32 %v66_v26, 0.0  ;;  %v45_v40 = vmul.f32 %v113_v1, %v22_v22 }
   0x9   :  { %93 = vst.msk [vmem:[%s274_s3] sm:$0xff] %vm92_vm0, %v76_v23  ;;  %v80_v37 = vmax.f32 %v64_v24, 0.0  ;;  %94 = vst.msk [vmem:[%s274_s3 + $0x8] sm:$0xff] %vm92_vm0, %v77_v30  ;;  %v83_v42 = vmax.f32 %v67_v33, 0.0  ;;  %v46_v43 = vmul.f32 %v113_v1, %v23_v27  ;;  %v47_v44 = vmul.f32 %v113_v1, %v24_v28 }
   0xa   :  { %95 = vst.msk [vmem:[%s274_s3 + $0x10] sm:$0xff] %vm92_vm0, %v78_v31  ;;  %96 = vst.msk [vmem:[%s274_s3 + $0x18] sm:$0xff] %vm92_vm0, %v79_v32  ;;  %v48_v45 = vmul.f32 %v113_v1, %v25_v29  ;;  %v68_v46 = vadd.f32 %v144_v2, %v45_v40  ;;  %v49_v47 = vmul.f32 %v113_v1, %v26_v34 }
   0xb   :  { %97 = vst.msk [vmem:[%s274_s3 + $0x20] sm:$0xff] %vm92_vm0, %v80_v37  ;;  %98 = vst.msk [vmem:[%s274_s3 + $0x28] sm:$0xff] %vm92_vm0, %v81_v38  ;;  %v50_v48 = vmul.f32 %v113_v1, %v27_v35  ;;  %v51_v49 = vmul.f32 %v113_v1, %v28_v36  ;;  %v69_v50 = vadd.f32 %v144_v2, %v46_v43 }
   0xc   :  { %99 = vst.msk [vmem:[%s274_s3 + $0x30] sm:$0xff] %vm92_vm0, %v82_v39  ;;  %100 = vst.msk [vmem:[%s274_s3 + $0x38] sm:$0xff] %vm92_vm0, %v83_v42  ;;  %v70_v51 = vadd.f32 %v144_v2, %v47_v44  ;;  %v71_v52 = vadd.f32 %v144_v2, %v48_v45  ;;  %v52_v53 = vmul.f32 %v113_v1, %v29_v41  ;;  %v84_v54 = vmax.f32 %v68_v46, 0.0 }
   0xd   :  { %v72_v55 = vadd.f32 %v144_v2, %v49_v47  ;;  %v73_v56 = vadd.f32 %v144_v2, %v50_v48  ;;  %v74_v57 = vadd.f32 %v144_v2, %v51_v49  ;;  %v85_v58 = vmax.f32 %v69_v50, 0.0 }
   0xe   :  { %v86_v59 = vmax.f32 %v70_v51, 0.0  ;;  %v87_v60 = vmax.f32 %v71_v52, 0.0  ;;  %v75_v61 = vadd.f32 %v144_v2, %v52_v53  ;;  %101 = vst.msk [vmem:[%s274_s3 + $0x40] sm:$0xff] %vm92_vm0, %v84_v54 }
   0xf   :  { %v88_v62 = vmax.f32 %v72_v55, 0.0  ;;  %v89_v63 = vmax.f32 %v73_v56, 0.0  ;;  %v90_v0 = vmax.f32 %v74_v57, 0.0  ;;  %102 = vst.msk [vmem:[%s274_s3 + $0x48] sm:$0xff] %vm92_vm0, %v85_v58 }
  0x10   :  { %103 = vst.msk [vmem:[%s274_s3 + $0x50] sm:$0xff] %vm92_vm0, %v86_v59  ;;  %104 = vst.msk [vmem:[%s274_s3 + $0x58] sm:$0xff] %vm92_vm0, %v87_v60  ;;  %v91_v1 = vmax.f32 %v75_v61, 0.0 }
  0x11   :  { %105 = vst.msk [vmem:[%s274_s3 + $0x60] sm:$0xff] %vm92_vm0, %v88_v62  ;;  %106 = vst.msk [vmem:[%s274_s3 + $0x68] sm:$0xff] %vm92_vm0, %v89_v63 }
  0x12   :  { %107 = vst.msk [vmem:[%s274_s3 + $0x70] sm:$0xff] %vm92_vm0, %v90_v0  ;;  %108 = vst.msk [vmem:[%s274_s3 + $0x78] sm:$0xff] %vm92_vm0, %v91_v1 }

// kernel: mixstyle_densenet_forward.55
= control target key start
LH: loop header
LB: loop body
LE: loop exit
PB: predicated region body
PF: predicated region fallthrough
CT: control target
= control target key end

     0   :  { %vm148_vm0 = vcmask 130048   ;;  %s556_s3 = inlined_call_operand.vmem [shape: bf16[16,128], index: 3, kind: input, shape index: {}]   ;;  %s557_s0 = inlined_call_operand.vmem [shape: f32[128,16], index: 0, kind: input, shape index: {}]   ;;  %s558_s1 = inlined_call_operand.vmem [shape: f32[1,16], index: 1, kind: input, shape index: {}]   ;;  %s559_s2 = inlined_call_operand.vmem [shape: f32[1,16], index: 2, kind: input, shape index: {}]   ;;  %s560_s4 = inlined_call_operand.vmem [shape: f32[128,128], index: 4, kind: output, shape index: {}]  }
   0x1   :  { %v381_v0 = vld [vmem:[%s556_s3] sm:$0xff]   ;;  %v39_v2 = vld [vmem:[%s557_s0 + $0x8] sm:$0xff]  ;;  %v40_v11 = vld [vmem:[%s557_s0 + $0x10] sm:$0xff] }
   0x2   :  { %v38_v1 = vld [vmem:[%s557_s0] sm:$0xff]  ;;  %361 = vmatprep.subr.bf16.mxu0 %v381_v0  ;;  %379 = vmatprep.subr.bf16.mxu1 %v381_v0  ;;  %v47_v8 = vld [vmem:[%s557_s0 + $0x48] sm:$0xff]  ;;  %v41_v12 = vld [vmem:[%s557_s0 + $0x18] sm:$0xff] }
   0x3   :  { %v419_v3 = vld [vmem:[%s558_s1] ss:$0 sm:$0xff]  ;;  %362 = vmatpush3.bf16.msra.mxu0 %v381_v0  ;;  %380 = vmatpush3.bf16.msra.mxu1 %v381_v0  ;;  %v48_v13 = vld [vmem:[%s557_s0 + $0x50] sm:$0xff]  ;;  %v49_v18 = vld [vmem:[%s557_s0 + $0x58] sm:$0xff] }
   0x4   :  { %v61_v4 = vmul.f32 %v419_v3, %v38_v1  ;;  %v62_v5 = vmul.f32 %v419_v3, %v39_v2  ;;  %v426_v6 = vld [vmem:[%s559_s2] ss:$0 sm:$0xff]  ;;  %v70_v10 = vmul.f32 %v419_v3, %v47_v8  ;;  %v63_v16 = vmul.f32 %v419_v3, %v40_v11  ;;  %v43_v28 = vld [vmem:[%s557_s0 + $0x28] sm:$0xff]  ;;  %v44_v39 = vld [vmem:[%s557_s0 + $0x30] sm:$0xff] }
   0x5   :  { %v46_v7 = vld [vmem:[%s557_s0 + $0x40] sm:$0xff]  ;;  %v64_v17 = vmul.f32 %v419_v3, %v41_v12  ;;  %v71_v21 = vmul.f32 %v419_v3, %v48_v13  ;;  %v72_v22 = vmul.f32 %v419_v3, %v49_v18  ;;  %v51_v34 = vld [vmem:[%s557_s0 + $0x68] sm:$0xff]  ;;  %v45_v40 = vld [vmem:[%s557_s0 + $0x38] sm:$0xff]  ;;  %v66_v44 = vmul.f32 %v419_v3, %v43_v28 }
   0x6   :  { %v69_v9 = vmul.f32 %v419_v3, %v46_v7  ;;  %v84_v14 = vadd.f32 %v426_v6, %v61_v4  ;;  %v85_v15 = vadd.f32 %v426_v6, %v62_v5  ;;  %v93_v20 = vadd.f32 %v426_v6, %v70_v10  ;;  %v42_v23 = vld [vmem:[%s557_s0 + $0x20] sm:$0xff]  ;;  %v52_v45 = vld [vmem:[%s557_s0 + $0x70] sm:$0xff]  ;;  %v53_v50 = vld [vmem:[%s557_s0 + $0x78] sm:$0xff] }
   0x7   :  { %v86_v26 = vadd.f32 %v426_v6, %v63_v16  ;;  %v87_v27 = vadd.f32 %v426_v6, %v64_v17  ;;  %v94_v31 = vadd.f32 %v426_v6, %v71_v21  ;;  %v95_v32 = vadd.f32 %v426_v6, %v72_v22  ;;  %v50_v33 = vld [vmem:[%s557_s0 + $0x60] sm:$0xff] }
   0x8   :  { %v92_v19 = vadd.f32 %v426_v6, %v69_v9  ;;  %v100_v24 = vmax.f32 %v84_v14, 0.0  ;;  %v101_v25 = vmax.f32 %v85_v15, 0.0  ;;  %v109_v30 = vmax.f32 %v93_v20, 0.0 }
   0x9   :  { %v102_v36 = vmax.f32 %v86_v26, 0.0  ;;  %v103_v37 = vmax.f32 %v87_v27, 0.0  ;;  %v65_v38 = vmul.f32 %v419_v3, %v42_v23  ;;  %v110_v42 = vmax.f32 %v94_v31, 0.0 }
   0xa   :  { %v108_v29 = vmax.f32 %v92_v19, 0.0  ;;  %v132_v35 = vpack.c.bf16 %v101_v25, %v100_v24  ;;  %v111_v43 = vmax.f32 %v95_v32, 0.0  ;;  %v73_v48 = vmul.f32 %v419_v3, %v50_v33 }
   0xb   :  { %v133_v46 = vpack.c.bf16 %v103_v37, %v102_v36  ;;  %v88_v47 = vadd.f32 %v426_v6, %v65_v38  ;;  %v74_v49 = vmul.f32 %v419_v3, %v51_v34  ;;  %v89_v52 = vadd.f32 %v426_v6, %v66_v44 }
   0xc   :  { %v136_v41 = vpack.c.bf16 %v109_v30, %v108_v29  ;;  %363 = vmatprep.mubr.msk.bf16.mxu0 %vm148_vm0, %v132_v35  ;;  %v137_v51 = vpack.c.bf16 %v111_v43, %v110_v42  ;;  %v67_v53 = vmul.f32 %v419_v3, %v44_v39  ;;  %v68_v54 = vmul.f32 %v419_v3, %v45_v40 }
   0xd   :  { %364 = vmatmul.mubr.msk.bf16.vlgmr.msra.gmra.mrb[0].mxu0 %vm148_vm0, %v133_v46  ;;  %v104_v55 = vmax.f32 %v88_v47, 0.0  ;;  %v96_v56 = vadd.f32 %v426_v6, %v73_v48  ;;  %v97_v57 = vadd.f32 %v426_v6, %v74_v49  ;;  %v75_v58 = vmul.f32 %v419_v3, %v52_v45 }
   0xe   :  { %371 = vmatprep.mubr.msk.bf16.mxu1 %vm148_vm0, %v136_v41  ;;  %v105_v59 = vmax.f32 %v89_v52, 0.0  ;;  %v90_v60 = vadd.f32 %v426_v6, %v67_v53  ;;  %v91_v61 = vadd.f32 %v426_v6, %v68_v54  ;;  %v76_v62 = vmul.f32 %v419_v3, %v53_v50 }
   0xf   :  { %372 = vmatmul.mubr.msk.bf16.vlgmr.msra.gmra.mrb[0].mxu1 %vm148_vm0, %v137_v51  ;;  %v112_v63 = vmax.f32 %v96_v56, 0.0  ;;  %v113_v0 = vmax.f32 %v97_v57, 0.0  ;;  %v98_v1 = vadd.f32 %v426_v6, %v75_v58 }
  0x10   :  { %v134_v2 = vpack.c.bf16 %v105_v59, %v104_v55  ;;  %v106_v4 = vmax.f32 %v90_v60, 0.0  ;;  %v107_v5 = vmax.f32 %v91_v61, 0.0  ;;  %v99_v7 = vadd.f32 %v426_v6, %v76_v62 }
  0x11   :  { %v138_v8 = vpack.c.bf16 %v113_v0, %v112_v63  ;;  %v114_v9 = vmax.f32 %v98_v1, 0.0 }
  0x12   :  { %367 = vmatprep.mubr.msk.bf16.mxu0 %vm148_vm0, %v134_v2  ;;  %v135_v10 = vpack.c.bf16 %v107_v5, %v106_v4  ;;  %v115_v11 = vmax.f32 %v99_v7, 0.0 }
  0x13   :  { %375 = vmatprep.mubr.msk.bf16.mxu1 %vm148_vm0, %v138_v8 }
  0x14   :  { %v139_v12 = vpack.c.bf16 %v115_v11, %v114_v9 }
  0x15   :  { %368 = vmatmul.mubr.msk.bf16.gmra.mrb[4].mxu0 %vm148_vm0, %v135_v10 }
  0x17   :  { %376 = vmatmul.mubr.msk.bf16.gmra.mrb[4].mxu1 %vm148_vm0, %v139_v12 }
  0xe0   :  { %v365_v3 = vpop.f32.mrb[0].mxu0 }
  0xe1   :  { %323 = vst [vmem:[%s560_s4 + $0x10] sm:$0xff] %v365_v3  ;;  %v207_v6 = vpop.f32.mrb[1].mxu0 }
  0xe2   :  { %v373_v13 = vpop.f32.mrb[0].mxu1  ;;  %321 = vst [vmem:[%s560_s4] sm:$0xff] %v207_v6  ;;  %v366_v15 = vpop.f32.mrb[2].mxu0 }
  0xe3   :  { %331 = vst [vmem:[%s560_s4 + $0x50] sm:$0xff] %v373_v13  ;;  %v239_v14 = vpop.f32.mrb[1].mxu1  ;;  %324 = vst [vmem:[%s560_s4 + $0x18] sm:$0xff] %v366_v15  ;;  %v210_v17 = vpop.f32.mrb[3].mxu0 }
  0xe4   :  { %329 = vst [vmem:[%s560_s4 + $0x40] sm:$0xff] %v239_v14  ;;  %v374_v16 = vpop.f32.mrb[2].mxu1  ;;  %322 = vst [vmem:[%s560_s4 + $0x8] sm:$0xff] %v210_v17 }
  0xe5   :  { %332 = vst [vmem:[%s560_s4 + $0x58] sm:$0xff] %v374_v16  ;;  %v242_v18 = vpop.f32.mrb[3].mxu1 }
  0xe6   :  { %330 = vst [vmem:[%s560_s4 + $0x48] sm:$0xff] %v242_v18 }
  0xe8   :  { %v369_v19 = vpop.f32.mrb[4].mxu0 }
  0xe9   :  { %327 = vst [vmem:[%s560_s4 + $0x30] sm:$0xff] %v369_v19  ;;  %v223_v21 = vpop.f32.mrb[5].mxu0 }
  0xea   :  { %v377_v20 = vpop.f32.mrb[4].mxu1  ;;  %325 = vst [vmem:[%s560_s4 + $0x20] sm:$0xff] %v223_v21  ;;  %v370_v23 = vpop.f32.mrb[6].mxu0 }
  0xeb   :  { %335 = vst [vmem:[%s560_s4 + $0x70] sm:$0xff] %v377_v20  ;;  %v255_v22 = vpop.f32.mrb[5].mxu1  ;;  %328 = vst [vmem:[%s560_s4 + $0x38] sm:$0xff] %v370_v23  ;;  %v226_v25 = vpop.f32.mrb[7].mxu0 }
  0xec   :  { %333 = vst [vmem:[%s560_s4 + $0x60] sm:$0xff] %v255_v22  ;;  %v378_v24 = vpop.f32.mrb[6].mxu1  ;;  %326 = vst [vmem:[%s560_s4 + $0x28] sm:$0xff] %v226_v25 }
  0xed   :  { %336 = vst [vmem:[%s560_s4 + $0x78] sm:$0xff] %v378_v24  ;;  %v258_v26 = vpop.f32.mrb[7].mxu1 }
  0xee   :  { %334 = vst [vmem:[%s560_s4 + $0x68] sm:$0xff] %v258_v26 }

// kernel: mixstyle_densenet_forward.58
= control target key start
LH: loop header
LB: loop body
LE: loop exit
PB: predicated region body
PF: predicated region fallthrough
CT: control target
= control target key end

     0   :  { %v486_v0 = vmov 0   ;;  %vm208_vm0 = vcmask 130048   ;;  %s633_s1 = inlined_call_operand.vmem [shape: bf16[144,128], index: 1, kind: input, shape index: {}]   ;;  %s634_s0 = inlined_call_operand.vmem [shape: bf16[128,144], index: 0, kind: input, shape index: {}]   ;;  %s635_s2 = inlined_call_operand.vmem [shape: f32[128,128], index: 2, kind: output, shape index: {}]  }
   0x1   :  { %233 = vmatprep.subr.bf16.mxu0 %v486_v0  ;;  %434 = vmatprep.subr.bf16.mxu1 %v486_v0  ;;  %v453_v1 = vld [vmem:[%s633_s1] sm:$0xff]   ;;  %v454_v2 = vld [vmem:[%s633_s1 + $0x8] sm:$0xff]   ;;  %v455_v3 = vld [vmem:[%s633_s1 + $0x10] sm:$0xff]  }
   0x2   :  { %234 = vmatpush1.bf16.msra.mxu0 %v453_v1  ;;  %443 = vmatpush1.bf16.msra.mxu1 %v453_v1  ;;  %v456_v4 = vld [vmem:[%s633_s1 + $0x18] sm:$0xff]   ;;  %v464_v5 = vld [vmem:[%s634_s0 + $0x4] ss:$8 sps:$4 sm:$0xff]   ;;  %v459_v9 = vld [vmem:[%s633_s1 + $0x30] sm:$0xff]  }
   0x3   :  { %235 = vmatprep.subr.bf16.mxu0 %v486_v0  ;;  %435 = vmatprep.subr.bf16.mxu1 %v486_v0  ;;  %v467_v6 = vld [vmem:[%s634_s0 + $0x44] ss:$8 sps:$4 sm:$0xff]   ;;  %v460_v10 = vld [vmem:[%s633_s1 + $0x38] sm:$0xff]   ;;  %v462_v12 = vld [vmem:[%s634_s0] ss:$8 sps:$4 sm:$0xff]  }
   0x4   :  { %426 = vmatprep.mubr.msk.bf16.mxu0 %vm208_vm0, %v464_v5  ;;  %430 = vmatprep.mubr.msk.bf16.mxu1 %vm208_vm0, %v467_v6  ;;  %v457_v7 = vld [vmem:[%s633_s1 + $0x20] sm:$0xff]   ;;  %v458_v8 = vld [vmem:[%s633_s1 + $0x28] sm:$0xff]   ;;  %v468_v14 = vld [vmem:[%s634_s0 + $0x14] ss:$8 sps:$4 sm:$0xff]  }
   0x5   :  { %v461_v11 = vld [vmem:[%s633_s1 + $0x40] sm:$0xff]   ;;  %v470_v15 = vld [vmem:[%s634_s0 + $0x54] ss:$8 sps:$4 sm:$0xff]   ;;  %v472_v16 = vld [vmem:[%s634_s0 + $0x10] ss:$8 sps:$4 sm:$0xff]  }
   0x6   :  { %236 = vmatpush1.bf16.msra.mxu0 %v454_v2  ;;  %444 = vmatpush1.bf16.msra.mxu1 %v454_v2  ;;  %v465_v13 = vld [vmem:[%s634_s0 + $0x40] ss:$8 sps:$4 sm:$0xff]   ;;  %v473_v17 = vld [vmem:[%s634_s0 + $0x50] ss:$8 sps:$4 sm:$0xff]   ;;  %v474_v18 = vld [vmem:[%s634_s0 + $0x24] ss:$8 sps:$4 sm:$0xff]  }
   0x7   :  { %237 = vmatprep.subr.bf16.mxu0 %v486_v0  ;;  %436 = vmatprep.subr.bf16.mxu1 %v486_v0  ;;  %v476_v19 = vld [vmem:[%s634_s0 + $0x64] ss:$8 sps:$4 sm:$0xff]   ;;  %v478_v20 = vld [vmem:[%s634_s0 + $0x20] ss:$8 sps:$4 sm:$0xff]   ;;  %v480_v22 = vld [vmem:[%s634_s0 + $0x34] ss:$8 sps:$4 sm:$0xff]  }
   0x8   :  { %v479_v21 = vld [vmem:[%s634_s0 + $0x60] ss:$8 sps:$4 sm:$0xff]   ;;  %v482_v23 = vld [vmem:[%s634_s0 + $0x74] ss:$8 sps:$4 sm:$0xff]   ;;  %v484_v24 = vld [vmem:[%s634_s0 + $0x30] ss:$8 sps:$4 sm:$0xff]  }
   0x9   :  { %v485_v25 = vld [vmem:[%s634_s0 + $0x70] ss:$8 sps:$4 sm:$0xff]  }
   0xa   :  { %238 = vmatpush1.bf16.msra.mxu0 %v455_v3  ;;  %445 = vmatpush1.bf16.msra.mxu1 %v455_v3 }
   0xb   :  { %239 = vmatprep.subr.bf16.mxu0 %v486_v0  ;;  %437 = vmatprep.subr.bf16.mxu1 %v486_v0 }
   0xe   :  { %240 = vmatpush1.bf16.msra.mxu0 %v456_v4  ;;  %446 = vmatpush1.bf16.msra.mxu1 %v456_v4 }
   0xf   :  { %241 = vmatprep.subr.bf16.mxu0 %v486_v0  ;;  %438 = vmatprep.subr.bf16.mxu1 %v486_v0 }
  0x12   :  { %242 = vmatpush1.bf16.msra.mxu0 %v457_v7  ;;  %447 = vmatpush1.bf16.msra.mxu1 %v457_v7 }
  0x13   :  { %243 = vmatprep.subr.bf16.mxu0 %v486_v0  ;;  %439 = vmatprep.subr.bf16.mxu1 %v486_v0 }
  0x16   :  { %244 = vmatpush1.bf16.msra.mxu0 %v458_v8  ;;  %448 = vmatpush1.bf16.msra.mxu1 %v458_v8 }
  0x17   :  { %245 = vmatprep.subr.bf16.mxu0 %v486_v0  ;;  %440 = vmatprep.subr.bf16.mxu1 %v486_v0 }
  0x1a   :  { %246 = vmatpush1.bf16.msra.mxu0 %v459_v9  ;;  %449 = vmatpush1.bf16.msra.mxu1 %v459_v9 }
  0x1b   :  { %247 = vmatprep.subr.bf16.mxu0 %v486_v0  ;;  %441 = vmatprep.subr.bf16.mxu1 %v486_v0 }
  0x1e   :  { %248 = vmatpush1.bf16.msra.mxu0 %v460_v10  ;;  %450 = vmatpush1.bf16.msra.mxu1 %v460_v10 }
  0x1f   :  { %249 = vmatprep.subr.bf16.mxu0 %v486_v0  ;;  %442 = vmatprep.subr.bf16.mxu1 %v486_v0 }
  0x22   :  { %250 = vmatpush1.bf16.msra.mxu0 %v461_v11  ;;  %451 = vmatpush1.bf16.msra.mxu1 %v461_v11 }
  0x25   :  { %266 = vmatmul.mubr.bf16.vlgmr.msra.gmra.mrb[0].mxu0 %v462_v12  ;;  %298 = vmatmul.mubr.bf16.vlgmr.msra.gmra.mrb[0].mxu1 %v465_v13 }
  0x26   :  { %427 = vmatprep.mubr.msk.bf16.mxu0 %vm208_vm0, %v468_v14  ;;  %431 = vmatprep.mubr.msk.bf16.mxu1 %vm208_vm0, %v470_v15 }
  0x2d   :  { %274 = vmatmul.mubr.bf16.gmra.mrb[4].mxu0 %v472_v16  ;;  %306 = vmatmul.mubr.bf16.gmra.mrb[4].mxu1 %v473_v17 }
  0x2e   :  { %428 = vmatprep.mubr.msk.bf16.mxu0 %vm208_vm0, %v474_v18  ;;  %432 = vmatprep.mubr.msk.bf16.mxu1 %vm208_vm0, %v476_v19 }
  0x35   :  { %282 = vmatmul.mubr.bf16.gmra.mrb[8].mxu0 %v478_v20  ;;  %314 = vmatmul.mubr.bf16.gmra.mrb[8].mxu1 %v479_v21 }
  0x36   :  { %429 = vmatprep.mubr.msk.bf16.mxu0 %vm208_vm0, %v480_v22  ;;  %433 = vmatprep.mubr.msk.bf16.mxu1 %vm208_vm0, %v482_v23 }
  0x3d   :  { %290 = vmatmul.mubr.bf16.gmra.mrb[12].mxu0 %v484_v24  ;;  %322 = vmatmul.mubr.bf16.gmra.mrb[12].mxu1 %v485_v25 }
  0xf8   :  { %v267_v26 = vpop.f32.mrb[0].mxu0  ;;  %v299_v27 = vpop.f32.mrb[0].mxu1 }
  0xf9   :  { %381 = vst [vmem:[%s635_s2] sm:$0xff] %v267_v26  ;;  %389 = vst [vmem:[%s635_s2 + $0x40] sm:$0xff] %v299_v27  ;;  %v269_v28 = vpop.f32.mrb[1].mxu0  ;;  %v301_v29 = vpop.f32.mrb[1].mxu1 }
  0xfa   :  { %v270_v30 = vpop.f32.mrb[2].mxu0  ;;  %v302_v31 = vpop.f32.mrb[2].mxu1 }
  0xfb   :  { %382 = vst [vmem:[%s635_s2 + $0x8] sm:$0xff] %v270_v30  ;;  %390 = vst [vmem:[%s635_s2 + $0x48] sm:$0xff] %v302_v31  ;;  %v272_v32 = vpop.f32.mrb[3].mxu0  ;;  %v304_v33 = vpop.f32.mrb[3].mxu1 }
 0x100   :  { %v275_v34 = vpop.f32.mrb[4].mxu0  ;;  %v307_v35 = vpop.f32.mrb[4].mxu1 }
 0x101   :  { %383 = vst [vmem:[%s635_s2 + $0x10] sm:$0xff] %v275_v34  ;;  %391 = vst [vmem:[%s635_s2 + $0x50] sm:$0xff] %v307_v35  ;;  %v277_v36 = vpop.f32.mrb[5].mxu0  ;;  %v309_v37 = vpop.f32.mrb[5].mxu1 }
 0x102   :  { %v278_v38 = vpop.f32.mrb[6].mxu0  ;;  %v310_v39 = vpop.f32.mrb[6].mxu1 }
 0x103   :  { %384 = vst [vmem:[%s635_s2 + $0x18] sm:$0xff] %v278_v38  ;;  %392 = vst [vmem:[%s635_s2 + $0x58] sm:$0xff] %v310_v39  ;;  %v280_v40 = vpop.f32.mrb[7].mxu0  ;;  %v312_v41 = vpop.f32.mrb[7].mxu1 }
 0x108   :  { %v283_v42 = vpop.f32.mrb[8].mxu0  ;;  %v315_v43 = vpop.f32.mrb[8].mxu1 }
 0x109   :  { %385 = vst [vmem:[%s635_s2 + $0x20] sm:$0xff] %v283_v42  ;;  %393 = vst [vmem:[%s635_s2 + $0x60] sm:$0xff] %v315_v43  ;;  %v285_v44 = vpop.f32.mrb[9].mxu0  ;;  %v317_v45 = vpop.f32.mrb[9].mxu1 }
 0x10a   :  { %v286_v46 = vpop.f32.mrb[10].mxu0  ;;  %v318_v47 = vpop.f32.mrb[10].mxu1 }
 0x10b   :  { %386 = vst [vmem:[%s635_s2 + $0x28] sm:$0xff] %v286_v46  ;;  %394 = vst [vmem:[%s635_s2 + $0x68] sm:$0xff] %v318_v47  ;;  %v288_v48 = vpop.f32.mrb[11].mxu0  ;;  %v320_v49 = vpop.f32.mrb[11].mxu1 }
 0x110   :  { %v291_v50 = vpop.f32.mrb[12].mxu0  ;;  %v323_v51 = vpop.f32.mrb[12].mxu1 }
 0x111   :  { %387 = vst [vmem:[%s635_s2 + $0x30] sm:$0xff] %v291_v50  ;;  %395 = vst [vmem:[%s635_s2 + $0x70] sm:$0xff] %v323_v51  ;;  %v293_v52 = vpop.f32.mrb[13].mxu0  ;;  %v325_v53 = vpop.f32.mrb[13].mxu1 }
 0x112   :  { %v294_v54 = vpop.f32.mrb[14].mxu0  ;;  %v326_v55 = vpop.f32.mrb[14].mxu1 }
 0x113   :  { %388 = vst [vmem:[%s635_s2 + $0x38] sm:$0xff] %v294_v54  ;;  %396 = vst [vmem:[%s635_s2 + $0x78] sm:$0xff] %v326_v55  ;;  %v296_v56 = vpop.f32.mrb[15].mxu0  ;;  %v328_v57 = vpop.f32.mrb[15].mxu1 }

// kernel: mixstyle_densenet_forward.59
= control target key start
LH: loop header
LB: loop body
LE: loop exit
PB: predicated region body
PF: predicated region fallthrough
CT: control target
= control target key end

     0   :  { %vm14_vm0 = vcmask 188416   ;;  %vm34_vm1 = vcmask 195584   ;;  %v158_v0 = vmov 0.0   ;;  %s266_s0 = inlined_call_operand.vmem [shape: f32[128,24], index: 0, kind: input, shape index: {}]   ;;  %s267_s1 = inlined_call_operand.vmem [shape: f32[1,24], index: 1, kind: output, shape index: {0}]   ;;  %s268_s2 = inlined_call_operand.vmem [shape: f32[1,24], index: 2, kind: output, shape index: {1}]  }
   0x1   :  { %15 = vst.msk [vmem:[#allocation2] sm:$0x1] %vm14_vm0, %v158_v0  ;;  %16 = vst.msk [vmem:[#allocation3] sm:$0x1] %vm14_vm0, %v158_v0  ;;  %v17_v1 = vld [vmem:[%s266_s0] sm:$0xff]  ;;  %v18_v2 = vld [vmem:[%s266_s0 + $0x8] sm:$0xff] }
   0x2   :  { %v19_v3 = vld [vmem:[%s266_s0 + $0x10] sm:$0xff]  ;;  %v20_v4 = vld [vmem:[%s266_s0 + $0x18] sm:$0xff]  ;;  %v35_v5 = vsel %vm34_vm1, %v17_v1, 0.0  ;;  %v36_v6 = vsel %vm34_vm1, %v18_v2, 0.0  ;;  %v21_v8 = vld [vmem:[%s266_s0 + $0x20] sm:$0xff]  ;;  %v76_v16 = vmul.f32 %v17_v1, %v17_v1  ;;  %v77_v17 = vmul.f32 %v18_v2, %v18_v2 }
   0x3   :  { %v38_v7 = vsel %vm34_vm1, %v19_v3, 0.0  ;;  %v37_v9 = vadd.f32 %v36_v6, %v35_v5  ;;  %v40_v10 = vsel %vm34_vm1, %v20_v4, 0.0  ;;  %v22_v11 = vld [vmem:[%s266_s0 + $0x28] sm:$0xff]  ;;  %v42_v13 = vsel %vm34_vm1, %v21_v8, 0.0  ;;  %v23_v14 = vld [vmem:[%s266_s0 + $0x30] sm:$0xff]  ;;  %v24_v20 = vld [vmem:[%s266_s0 + $0x38] sm:$0xff] }
   0x4   :  { %v78_v18 = vmul.f32 %v19_v3, %v19_v3  ;;  %v44_v19 = vsel %vm34_vm1, %v22_v11, 0.0  ;;  %v79_v22 = vmul.f32 %v20_v4, %v20_v4  ;;  %v46_v23 = vsel %vm34_vm1, %v23_v14, 0.0  ;;  %v25_v25 = vld [vmem:[%s266_s0 + $0x40] sm:$0xff]  ;;  %v26_v32 = vld [vmem:[%s266_s0 + $0x48] sm:$0xff]  ;;  %v27_v38 = vld [vmem:[%s266_s0 + $0x50] sm:$0xff] }
   0x5   :  { %v39_v12 = vadd.f32 %v38_v7, %v37_v9  ;;  %v80_v24 = vmul.f32 %v21_v8, %v21_v8  ;;  %v92_v27 = vsel %vm34_vm1, %v76_v16, 0.0  ;;  %v93_v28 = vsel %vm34_vm1, %v77_v17, 0.0  ;;  %v28_v44 = vld [vmem:[%s266_s0 + $0x58] sm:$0xff]  ;;  %v29_v50 = vld [vmem:[%s266_s0 + $0x60] sm:$0xff]  ;;  %v30_v56 = vld [vmem:[%s266_s0 + $0x68] sm:$0xff] }
   0x6   :  { %v95_v29 = vsel %vm34_vm1, %v78_v18, 0.0  ;;  %v48_v30 = vsel %vm34_vm1, %v24_v20, 0.0  ;;  %v94_v31 = vadd.f32 %v93_v28, %v92_v27  ;;  %v81_v34 = vmul.f32 %v22_v11, %v22_v11  ;;  %v31_v62 = vld [vmem:[%s266_s0 + $0x70] sm:$0xff]  ;;  %v32_v4 = vld [vmem:[%s266_s0 + $0x78] sm:$0xff] }
   0x7   :  { %v41_v15 = vadd.f32 %v40_v10, %v39_v12  ;;  %v97_v35 = vsel %vm34_vm1, %v79_v22, 0.0  ;;  %v50_v36 = vsel %vm34_vm1, %v25_v25, 0.0  ;;  %v82_v40 = vmul.f32 %v23_v14, %v23_v14 }
   0x8   :  { %v96_v37 = vadd.f32 %v95_v29, %v94_v31  ;;  %v99_v41 = vsel %vm34_vm1, %v80_v24, 0.0  ;;  %v52_v42 = vsel %vm34_vm1, %v26_v32, 0.0  ;;  %v83_v46 = vmul.f32 %v24_v20, %v24_v20 }
   0x9   :  { %v43_v21 = vadd.f32 %v42_v13, %v41_v15  ;;  %v101_v47 = vsel %vm34_vm1, %v81_v34, 0.0  ;;  %v54_v48 = vsel %vm34_vm1, %v27_v38, 0.0  ;;  %v84_v52 = vmul.f32 %v25_v25, %v25_v25 }
   0xa   :  { %v98_v43 = vadd.f32 %v97_v35, %v96_v37  ;;  %v103_v53 = vsel %vm34_vm1, %v82_v40, 0.0  ;;  %v56_v54 = vsel %vm34_vm1, %v28_v44, 0.0  ;;  %v85_v58 = vmul.f32 %v26_v32, %v26_v32 }
   0xb   :  { %v45_v26 = vadd.f32 %v44_v19, %v43_v21  ;;  %v105_v59 = vsel %vm34_vm1, %v83_v46, 0.0  ;;  %v58_v60 = vsel %vm34_vm1, %v29_v50, 0.0  ;;  %v86_v0 = vmul.f32 %v27_v38, %v27_v38 }
   0xc   :  { %v100_v49 = vadd.f32 %v99_v41, %v98_v43  ;;  %v107_v1 = vsel %vm34_vm1, %v84_v52, 0.0  ;;  %v60_v2 = vsel %vm34_vm1, %v30_v56, 0.0  ;;  %v87_v6 = vmul.f32 %v28_v44, %v28_v44  ;;  %v75_v44 = vld [vmem:[#allocation3] sm:$0x1] }
   0xd   :  { %v47_v33 = vadd.f32 %v46_v23, %v45_v26  ;;  %v109_v7 = vsel %vm34_vm1, %v85_v58, 0.0  ;;  %v62_v8 = vsel %vm34_vm1, %v31_v62, 0.0  ;;  %v88_v11 = vmul.f32 %v29_v50, %v29_v50 }
   0xe   :  { %v102_v55 = vadd.f32 %v101_v47, %v100_v49  ;;  %v111_v12 = vsel %vm34_vm1, %v86_v0, 0.0  ;;  %v64_v13 = vsel %vm34_vm1, %v32_v4, 0.0  ;;  %v89_v16 = vmul.f32 %v30_v56, %v30_v56 }
   0xf   :  { %v49_v39 = vadd.f32 %v48_v30, %v47_v33  ;;  %v113_v17 = vsel %vm34_vm1, %v87_v6, 0.0  ;;  %v90_v20 = vmul.f32 %v31_v62, %v31_v62  ;;  %v115_v21 = vsel %vm34_vm1, %v88_v11, 0.0 }
  0x10   :  { %v104_v61 = vadd.f32 %v103_v53, %v102_v55  ;;  %v91_v24 = vmul.f32 %v32_v4, %v32_v4  ;;  %v117_v25 = vsel %vm34_vm1, %v89_v16, 0.0 }
  0x11   :  { %v51_v45 = vadd.f32 %v50_v36, %v49_v39  ;;  %v119_v28 = vsel %vm34_vm1, %v90_v20, 0.0  ;;  %v33_v36 = vld [vmem:[#allocation2] sm:$0x1] }
  0x12   :  { %v106_v3 = vadd.f32 %v105_v59, %v104_v61  ;;  %v121_v31 = vsel %vm34_vm1, %v91_v24, 0.0 }
  0x13   :  { %v53_v51 = vadd.f32 %v52_v42, %v51_v45 }
  0x14   :  { %v108_v9 = vadd.f32 %v107_v1, %v106_v3 }
  0x15   :  { %v55_v57 = vadd.f32 %v54_v48, %v53_v51 }
  0x16   :  { %v110_v14 = vadd.f32 %v109_v7, %v108_v9 }
  0x17   :  { %v57_v63 = vadd.f32 %v56_v54, %v55_v57 }
  0x18   :  { %v112_v18 = vadd.f32 %v111_v12, %v110_v14 }
  0x19   :  { %v59_v5 = vadd.f32 %v58_v60, %v57_v63 }
  0x1a   :  { %v114_v22 = vadd.f32 %v113_v17, %v112_v18 }
  0x1b   :  { %v61_v10 = vadd.f32 %v60_v2, %v59_v5 }
  0x1c   :  { %v116_v26 = vadd.f32 %v115_v21, %v114_v22 }
  0x1d   :  { %v63_v15 = vadd.f32 %v62_v8, %v61_v10 }
  0x1e   :  { %v118_v29 = vadd.f32 %v117_v25, %v116_v26 }
  0x1f   :  { %v65_v19 = vadd.f32 %v64_v13, %v63_v15 }
  0x20   :  { %v120_v32 = vadd.f32 %v119_v28, %v118_v29 }
  0x21   :  { %v66_v23 = vrot.slane %v65_v19, 4 }
  0x22   :  { %v122_v34 = vadd.f32 %v121_v31, %v120_v32 }
  0x23   :  { %v67_v27 = vadd.f32 %v66_v23, %v65_v19 }
  0x24   :  { %v123_v37 = vrot.slane %v122_v34, 4 }
  0x25   :  { %v68_v30 = vrot.slane %v67_v27, 2 }
  0x26   :  { %v124_v39 = vadd.f32 %v123_v37, %v122_v34 }
  0x27   :  { %v69_v33 = vadd.f32 %v68_v30, %v67_v27 }
  0x28   :  { %v125_v41 = vrot.slane %v124_v39, 2 }
  0x29   :  { %v70_v35 = vrot.slane %v69_v33, 1 }
  0x2a   :  { %v126_v42 = vadd.f32 %v125_v41, %v124_v39 }
  0x2b   :  { %v71_v38 = vadd.f32 %v70_v35, %v69_v33 }
  0x2c   :  { %v127_v43 = vrot.slane %v126_v42, 1 }
  0x2d   :  { %v72_v40 = vadd.f32 %v71_v38, %v33_v36 }
  0x2e   :  { %v128_v45 = vadd.f32 %v127_v43, %v126_v42 }
  0x2f   :  { %74 = vst.msk [vmem:[#allocation2] sm:$0x1] %vm14_vm0, %v72_v40 }
  0x30   :  { %v129_v46 = vadd.f32 %v128_v45, %v75_v44 }
  0x32   :  { %130 = vst.msk [vmem:[#allocation3] sm:$0x1] %vm14_vm0, %v129_v46 }
  0x36   :  { %v134_v47 = vld [vmem:[#allocation2] sm:$0x1] }
  0x37   :  { %v135_v48 = vmul.f32 0.0078125, %v134_v47 }
  0x39   :  { %v138_v49 = vmul.f32 %v135_v48, %v135_v48  ;;  %v136_v50 = vld [vmem:[#allocation3] sm:$0x1]  ;;  %v144_v55 = vsub.f32 0.0, %v135_v48 }
  0x3a   :  { %v137_v51 = vmul.f32 0.0078125, %v136_v50 }
  0x3c   :  { %v139_v52 = vsub.f32 %v137_v51, %v138_v49 }
  0x3e   :  { %v140_v53 = vmax.f32 %v139_v52, 0.0 }
  0x40   :  { %v141_v54 = vadd.f32 1e-05, %v140_v53 }
  0x42   :  { %156 = vrsqrt.f32 %v141_v54 }
  0x4c   :  { %v157_v56 = vpop.eup %156 }
  0x4d   :  { %143 = vst.msk [vmem:[%s267_s1] sm:$0x1] %vm14_vm0, %v157_v56  ;;  %v145_v57 = vmul.f32 %v157_v56, %v144_v55 }
  0x4f   :  { %146 = vst.msk [vmem:[%s268_s2] sm:$0x1] %vm14_vm0, %v145_v57 }

// kernel: mixstyle_densenet_forward.60
= control target key start
LH: loop header
LB: loop body
LE: loop exit
PB: predicated region body
PF: predicated region fallthrough
CT: control target
= control target key end

     0   :  { %vm177_vm0 = vcmask 1043456   ;;  %vm152_vm1 = vcmask 195584   ;;  %s579_s3 = inlined_call_operand.vmem [shape: bf16[24,128], index: 3, kind: input, shape index: {}]   ;;  %s580_s0 = inlined_call_operand.vmem [shape: f32[128,24], index: 0, kind: input, shape index: {}]   ;;  %s581_s1 = inlined_call_operand.vmem [shape: f32[1,24], index: 1, kind: input, shape index: {}]   ;;  %s582_s2 = inlined_call_operand.vmem [shape: f32[1,24], index: 2, kind: input, shape index: {}]   ;;  %s583_s4 = inlined_call_operand.vmem [shape: f32[128,128], index: 4, kind: output, shape index: {}]  }
   0x1   :  { %v397_v0 = vld [vmem:[%s579_s3] sm:$0xff]   ;;  %v398_v1 = vld [vmem:[%s579_s3 + $0x8] ss:$0 sps:$4 sm:$0xff]   ;;  %v40_v10 = vld [vmem:[%s580_s0 + $0x10] sm:$0xff] }
   0x2   :  { %v38_v2 = vld [vmem:[%s580_s0] sm:$0xff]  ;;  %371 = vmatprep.subr.bf16.mxu0 %v397_v0  ;;  %391 = vmatprep.subr.bf16.mxu1 %v397_v0  ;;  %v39_v3 = vld [vmem:[%s580_s0 + $0x8] sm:$0xff]  ;;  %v179_v11 = vsel %vm177_vm0, %v398_v1, 0  ;;  %v41_v14 = vld [vmem:[%s580_s0 + $0x18] sm:$0xff] }
   0x3   :  { %v439_v4 = vld [vmem:[%s581_s1] ss:$0 sm:$0xff]  ;;  %372 = vmatpush3.bf16.msra.mxu0 %v397_v0  ;;  %393 = vmatpush3.bf16.msra.mxu1 %v397_v0  ;;  %v47_v9 = vld [vmem:[%s580_s0 + $0x48] sm:$0xff]  ;;  %v48_v16 = vld [vmem:[%s580_s0 + $0x50] sm:$0xff] }
   0x4   :  { %v444_v5 = vld [vmem:[%s582_s2] ss:$0 sm:$0xff]  ;;  %v61_v6 = vmul.f32 %v439_v4, %v38_v2  ;;  %v62_v7 = vmul.f32 %v439_v4, %v39_v3  ;;  %395 = vmatprep.subr.msk.bf16.mxu0 %vm177_vm0, %v398_v1  ;;  %396 = vmatprep.subr.msk.bf16.mxu1 %vm177_vm0, %v398_v1  ;;  %v70_v13 = vmul.f32 %v439_v4, %v47_v9  ;;  %v49_v17 = vld [vmem:[%s580_s0 + $0x58] sm:$0xff]  ;;  %v43_v31 = vld [vmem:[%s580_s0 + $0x28] sm:$0xff] }
   0x5   :  { %v46_v8 = vld [vmem:[%s580_s0 + $0x40] sm:$0xff]  ;;  %v63_v15 = vmul.f32 %v439_v4, %v40_v10  ;;  %v64_v20 = vmul.f32 %v439_v4, %v41_v14  ;;  %v71_v21 = vmul.f32 %v439_v4, %v48_v16  ;;  %v72_v25 = vmul.f32 %v439_v4, %v49_v17  ;;  %v51_v37 = vld [vmem:[%s580_s0 + $0x68] sm:$0xff]  ;;  %v44_v38 = vld [vmem:[%s580_s0 + $0x30] sm:$0xff] }
   0x6   :  { %v69_v12 = vmul.f32 %v439_v4, %v46_v8  ;;  %v84_v18 = vadd.f32 %v444_v5, %v61_v6  ;;  %v85_v19 = vadd.f32 %v444_v5, %v62_v7  ;;  %v93_v23 = vadd.f32 %v444_v5, %v70_v13  ;;  %v42_v26 = vld [vmem:[%s580_s0 + $0x20] sm:$0xff]  ;;  %v45_v43 = vld [vmem:[%s580_s0 + $0x38] sm:$0xff]  ;;  %v52_v48 = vld [vmem:[%s580_s0 + $0x70] sm:$0xff] }
   0x7   :  { %v86_v24 = vadd.f32 %v444_v5, %v63_v15  ;;  %374 = vmatpush3.bf16.msra.mxu0 %v179_v11  ;;  %394 = vmatpush3.bf16.msra.mxu1 %v179_v11  ;;  %v87_v29 = vadd.f32 %v444_v5, %v64_v20  ;;  %v94_v30 = vadd.f32 %v444_v5, %v71_v21  ;;  %v50_v32 = vld [vmem:[%s580_s0 + $0x60] sm:$0xff]  ;;  %v53_v53 = vld [vmem:[%s580_s0 + $0x78] sm:$0xff] }
   0x8   :  { %v92_v22 = vadd.f32 %v444_v5, %v69_v12  ;;  %v100_v27 = vmax.f32 %v84_v18, 0.0  ;;  %v101_v28 = vmax.f32 %v85_v19, 0.0  ;;  %v109_v34 = vmax.f32 %v93_v23, 0.0 }
   0x9   :  { %v102_v35 = vmax.f32 %v86_v24, 0.0  ;;  %v95_v36 = vadd.f32 %v444_v5, %v72_v25  ;;  %v103_v40 = vmax.f32 %v87_v29, 0.0  ;;  %v110_v41 = vmax.f32 %v94_v30, 0.0 }
   0xa   :  { %v108_v33 = vmax.f32 %v92_v22, 0.0  ;;  %v132_v39 = vpack.c.bf16 %v101_v28, %v100_v27  ;;  %v65_v42 = vmul.f32 %v439_v4, %v42_v26  ;;  %v66_v46 = vmul.f32 %v439_v4, %v43_v31 }
   0xb   :  { %v111_v45 = vmax.f32 %v95_v36, 0.0  ;;  %v73_v47 = vmul.f32 %v439_v4, %v50_v32  ;;  %v133_v49 = vpack.c.bf16 %v103_v40, %v102_v35  ;;  %v74_v51 = vmul.f32 %v439_v4, %v51_v37 }
   0xc   :  { %v136_v44 = vpack.c.bf16 %v109_v34, %v108_v33  ;;  %375 = vmatprep.mubr.msk.bf16.mxu0 %vm152_vm1, %v132_v39  ;;  %v88_v50 = vadd.f32 %v444_v5, %v65_v42  ;;  %v67_v52 = vmul.f32 %v439_v4, %v44_v38  ;;  %v89_v55 = vadd.f32 %v444_v5, %v66_v46 }
   0xd   :  { %v137_v54 = vpack.c.bf16 %v111_v45, %v110_v41  ;;  %v96_v56 = vadd.f32 %v444_v5, %v73_v47  ;;  %v68_v57 = vmul.f32 %v439_v4, %v45_v43  ;;  %376 = vmatmul.mubr.msk.bf16.vlgmr.msra.gmra.mrb[0].mxu0 %vm152_vm1, %v133_v49  ;;  %v97_v59 = vadd.f32 %v444_v5, %v74_v51 }
   0xe   :  { %383 = vmatprep.mubr.msk.bf16.mxu1 %vm152_vm1, %v136_v44  ;;  %v104_v58 = vmax.f32 %v88_v50, 0.0  ;;  %v90_v60 = vadd.f32 %v444_v5, %v67_v52  ;;  %v75_v61 = vmul.f32 %v439_v4, %v52_v48  ;;  %v105_v62 = vmax.f32 %v89_v55, 0.0 }
   0xf   :  { %384 = vmatmul.mubr.msk.bf16.vlgmr.msra.gmra.mrb[0].mxu1 %vm152_vm1, %v137_v54  ;;  %v112_v63 = vmax.f32 %v96_v56, 0.0  ;;  %v91_v0 = vadd.f32 %v444_v5, %v68_v57  ;;  %v76_v1 = vmul.f32 %v439_v4, %v53_v53  ;;  %v113_v2 = vmax.f32 %v97_v59, 0.0 }
  0x10   :  { %v106_v3 = vmax.f32 %v90_v60, 0.0  ;;  %v98_v6 = vadd.f32 %v444_v5, %v75_v61  ;;  %v134_v7 = vpack.c.bf16 %v105_v62, %v104_v58 }
  0x11   :  { %v107_v8 = vmax.f32 %v91_v0, 0.0  ;;  %v99_v9 = vadd.f32 %v444_v5, %v76_v1  ;;  %v138_v10 = vpack.c.bf16 %v113_v2, %v112_v63 }
  0x12   :  { %v114_v11 = vmax.f32 %v98_v6, 0.0  ;;  %379 = vmatprep.mubr.msk.bf16.mxu0 %vm152_vm1, %v134_v7 }
  0x13   :  { %v135_v12 = vpack.c.bf16 %v107_v8, %v106_v3  ;;  %v115_v13 = vmax.f32 %v99_v9, 0.0  ;;  %387 = vmatprep.mubr.msk.bf16.mxu1 %vm152_vm1, %v138_v10 }
  0x15   :  { %v139_v14 = vpack.c.bf16 %v115_v13, %v114_v11  ;;  %380 = vmatmul.mubr.msk.bf16.gmra.mrb[4].mxu0 %vm152_vm1, %v135_v12 }
  0x17   :  { %388 = vmatmul.mubr.msk.bf16.gmra.mrb[4].mxu1 %vm152_vm1, %v139_v14 }
  0xe0   :  { %v377_v4 = vpop.f32.mrb[0].mxu0 }
  0xe1   :  { %331 = vst [vmem:[%s583_s4 + $0x10] sm:$0xff] %v377_v4  ;;  %v215_v5 = vpop.f32.mrb[1].mxu0 }
  0xe2   :  { %v385_v15 = vpop.f32.mrb[0].mxu1  ;;  %329 = vst [vmem:[%s583_s4] sm:$0xff] %v215_v5  ;;  %v378_v17 = vpop.f32.mrb[2].mxu0 }
  0xe3   :  { %339 = vst [vmem:[%s583_s4 + $0x50] sm:$0xff] %v385_v15  ;;  %v247_v16 = vpop.f32.mrb[1].mxu1  ;;  %332 = vst [vmem:[%s583_s4 + $0x18] sm:$0xff] %v378_v17  ;;  %v218_v19 = vpop.f32.mrb[3].mxu0 }
  0xe4   :  { %337 = vst [vmem:[%s583_s4 + $0x40] sm:$0xff] %v247_v16  ;;  %v386_v18 = vpop.f32.mrb[2].mxu1  ;;  %330 = vst [vmem:[%s583_s4 + $0x8] sm:$0xff] %v218_v19 }
  0xe5   :  { %340 = vst [vmem:[%s583_s4 + $0x58] sm:$0xff] %v386_v18  ;;  %v250_v20 = vpop.f32.mrb[3].mxu1 }
  0xe6   :  { %338 = vst [vmem:[%s583_s4 + $0x48] sm:$0xff] %v250_v20 }
  0xe8   :  { %v381_v21 = vpop.f32.mrb[4].mxu0 }
  0xe9   :  { %335 = vst [vmem:[%s583_s4 + $0x30] sm:$0xff] %v381_v21  ;;  %v231_v23 = vpop.f32.mrb[5].mxu0 }
  0xea   :  { %v389_v22 = vpop.f32.mrb[4].mxu1  ;;  %333 = vst [vmem:[%s583_s4 + $0x20] sm:$0xff] %v231_v23  ;;  %v382_v25 = vpop.f32.mrb[6].mxu0 }
  0xeb   :  { %343 = vst [vmem:[%s583_s4 + $0x70] sm:$0xff] %v389_v22  ;;  %v263_v24 = vpop.f32.mrb[5].mxu1  ;;  %336 = vst [vmem:[%s583_s4 + $0x38] sm:$0xff] %v382_v25  ;;  %v234_v27 = vpop.f32.mrb[7].mxu0 }
  0xec   :  { %341 = vst [vmem:[%s583_s4 + $0x60] sm:$0xff] %v263_v24  ;;  %v390_v26 = vpop.f32.mrb[6].mxu1  ;;  %334 = vst [vmem:[%s583_s4 + $0x28] sm:$0xff] %v234_v27 }
  0xed   :  { %344 = vst [vmem:[%s583_s4 + $0x78] sm:$0xff] %v390_v26  ;;  %v266_v28 = vpop.f32.mrb[7].mxu1 }
  0xee   :  { %342 = vst [vmem:[%s583_s4 + $0x68] sm:$0xff] %v266_v28 }

// kernel: mixstyle_densenet_forward.64
= control target key start
LH: loop header
LB: loop body
LE: loop exit
PB: predicated region body
PF: predicated region fallthrough
CT: control target
= control target key end

     0   :  { %vm14_vm0 = vcmask 253952   ;;  %vm54_vm1 = vcmask 261120   ;;  %v278_v0 = vmov 0.0   ;;  %s544_s0 = inlined_call_operand.vmem [shape: f32[288,32], index: 0, kind: input, shape index: {}]   ;;  %s545_s1 = inlined_call_operand.vmem [shape: f32[1,32], index: 1, kind: output, shape index: {0}]   ;;  %s546_s2 = inlined_call_operand.vmem [shape: f32[1,32], index: 2, kind: output, shape index: {1}]  }
   0x1   :  { %15 = vst.msk [vmem:[#allocation2] sm:$0x1] %vm14_vm0, %v278_v0  ;;  %16 = vst.msk [vmem:[#allocation3] sm:$0x1] %vm14_vm0, %v278_v0  ;;  %v17_v1 = vld [vmem:[%s544_s0] sm:$0xff]  ;;  %v18_v2 = vld [vmem:[%s544_s0 + $0x8] sm:$0xff] }
   0x2   :  { %v19_v3 = vld [vmem:[%s544_s0 + $0x10] sm:$0xff]  ;;  %v20_v4 = vld [vmem:[%s544_s0 + $0x18] sm:$0xff]  ;;  %v55_v5 = vsel %vm54_vm1, %v17_v1, 0.0  ;;  %v56_v6 = vsel %vm54_vm1, %v18_v2, 0.0  ;;  %v21_v8 = vld [vmem:[%s544_s0 + $0x20] sm:$0xff]  ;;  %v136_v38 = vmul.f32 %v17_v1, %v17_v1  ;;  %v137_v39 = vmul.f32 %v18_v2, %v18_v2 }
   0x3   :  { %v58_v7 = vsel %vm54_vm1, %v19_v3, 0.0  ;;  %v57_v9 = vadd.f32 %v56_v6, %v55_v5  ;;  %v60_v10 = vsel %vm54_vm1, %v20_v4, 0.0  ;;  %v22_v11 = vld [vmem:[%s544_s0 + $0x28] sm:$0xff]  ;;  %v62_v13 = vsel %vm54_vm1, %v21_v8, 0.0  ;;  %v23_v14 = vld [vmem:[%s544_s0 + $0x30] sm:$0xff]  ;;  %v24_v17 = vld [vmem:[%s544_s0 + $0x38] sm:$0xff] }
   0x4   :  { %v64_v16 = vsel %vm54_vm1, %v22_v11, 0.0  ;;  %v66_v19 = vsel %vm54_vm1, %v23_v14, 0.0  ;;  %v25_v20 = vld [vmem:[%s544_s0 + $0x40] sm:$0xff]  ;;  %v50_v22 = vld [vmem:[%s544_s0 + $0x108] sm:$0xff]  ;;  %v51_v23 = vld [vmem:[%s544_s0 + $0x110] sm:$0xff]  ;;  %v68_v25 = vsel %vm54_vm1, %v24_v17, 0.0  ;;  %v138_v42 = vmul.f32 %v19_v3, %v19_v3 }
   0x5   :  { %v59_v12 = vadd.f32 %v58_v7, %v57_v9  ;;  %v52_v24 = vld [vmem:[%s544_s0 + $0x118] sm:$0xff]  ;;  %v26_v26 = vld [vmem:[%s544_s0 + $0x48] sm:$0xff]  ;;  %v344_v28 = vsel %vm54_vm1, %v50_v22, 0.0  ;;  %v347_v29 = vsel %vm54_vm1, %v51_v23, 0.0  ;;  %v70_v31 = vsel %vm54_vm1, %v25_v20, 0.0  ;;  %v27_v32 = vld [vmem:[%s544_s0 + $0x50] sm:$0xff] }
   0x6   :  { %v350_v30 = vsel %vm54_vm1, %v52_v24, 0.0  ;;  %v72_v34 = vsel %vm54_vm1, %v26_v26, 0.0  ;;  %v360_v35 = vld [vmem:[%s544_s0 + $0x58] sm:$0xff]  ;;  %v74_v37 = vsel %vm54_vm1, %v27_v32, 0.0  ;;  %v366_v40 = vld [vmem:[%s544_s0 + $0x60] sm:$0xff]  ;;  %v139_v44 = vmul.f32 %v20_v4, %v20_v4  ;;  %v373_v45 = vld [vmem:[%s544_s0 + $0x68] sm:$0xff] }
   0x7   :  { %v61_v15 = vadd.f32 %v60_v10, %v59_v12  ;;  %v76_v43 = vsel %vm54_vm1, %v360_v35, 0.0  ;;  %v78_v47 = vsel %vm54_vm1, %v366_v40, 0.0  ;;  %v140_v48 = vmul.f32 %v21_v8, %v21_v8  ;;  %v382_v51 = vld [vmem:[%s544_s0 + $0x70] sm:$0xff]  ;;  %v391_v58 = vld [vmem:[%s544_s0 + $0x78] sm:$0xff]  ;;  %v396_v61 = vld [vmem:[%s544_s0 + $0x80] sm:$0xff] }
   0x8   :  { %v172_v49 = vsel %vm54_vm1, %v136_v38, 0.0  ;;  %v173_v50 = vsel %vm54_vm1, %v137_v39, 0.0  ;;  %v175_v54 = vsel %vm54_vm1, %v138_v42, 0.0  ;;  %v80_v55 = vsel %vm54_vm1, %v373_v45, 0.0  ;;  %v407_v6 = vld [vmem:[%s544_s0 + $0x88] sm:$0xff] }
   0x9   :  { %v63_v18 = vadd.f32 %v62_v13, %v61_v15  ;;  %v174_v53 = vadd.f32 %v173_v50, %v172_v49  ;;  %v141_v56 = vmul.f32 %v22_v11, %v22_v11  ;;  %v177_v57 = vsel %vm54_vm1, %v139_v44, 0.0  ;;  %v414_v11 = vld [vmem:[%s544_s0 + $0x90] sm:$0xff] }
   0xa   :  { %v82_v62 = vsel %vm54_vm1, %v382_v51, 0.0  ;;  %v142_v63 = vmul.f32 %v23_v14, %v23_v14  ;;  %v179_v0 = vsel %vm54_vm1, %v140_v48, 0.0  ;;  %v84_v3 = vsel %vm54_vm1, %v391_v58, 0.0  ;;  %v39_v48 = vld [vmem:[%s544_s0 + $0xb0] sm:$0xff] }
   0xb   :  { %v65_v21 = vadd.f32 %v64_v16, %v63_v18  ;;  %v176_v60 = vadd.f32 %v175_v54, %v174_v53  ;;  %v143_v4 = vmul.f32 %v24_v17, %v24_v17  ;;  %v181_v5 = vsel %vm54_vm1, %v141_v56, 0.0  ;;  %v40_v54 = vld [vmem:[%s544_s0 + $0xb8] sm:$0xff] }
   0xc   :  { %v86_v8 = vsel %vm54_vm1, %v396_v61, 0.0  ;;  %v169_v9 = vmul.f32 %v50_v22, %v50_v22  ;;  %v144_v12 = vmul.f32 %v25_v20, %v25_v20  ;;  %v170_v13 = vmul.f32 %v51_v23, %v51_v23  ;;  %v36_v22 = vld [vmem:[%s544_s0 + $0x98] sm:$0xff] }
   0xd   :  { %v67_v27 = vadd.f32 %v66_v19, %v65_v21  ;;  %v178_v2 = vadd.f32 %v177_v57, %v176_v60  ;;  %v171_v14 = vmul.f32 %v52_v24, %v52_v24  ;;  %v183_v15 = vsel %vm54_vm1, %v142_v63, 0.0  ;;  %v41_v60 = vld [vmem:[%s544_s0 + $0xc0] sm:$0xff] }
   0xe   :  { %v88_v18 = vsel %vm54_vm1, %v407_v6, 0.0  ;;  %v145_v19 = vmul.f32 %v26_v26, %v26_v26  ;;  %v185_v21 = vsel %vm54_vm1, %v143_v4, 0.0  ;;  %v90_v20 = vsel %vm54_vm1, %v414_v11, 0.0 }
   0xf   :  { %v69_v33 = vadd.f32 %v68_v25, %v67_v27  ;;  %v180_v10 = vadd.f32 %v179_v0, %v178_v2  ;;  %v426_v24 = vsel %vm54_vm1, %v169_v9, 0.0  ;;  %v146_v27 = vmul.f32 %v27_v32, %v27_v32  ;;  %v42_v2 = vld [vmem:[%s544_s0 + $0xc8] sm:$0xff] }
  0x10   :  { %v433_v26 = vsel %vm54_vm1, %v171_v14, 0.0  ;;  %v92_v38 = vsel %vm54_vm1, %v36_v22, 0.0  ;;  %v147_v39 = vmul.f32 %v360_v35, %v360_v35  ;;  %v189_v32 = vsel %vm54_vm1, %v145_v19, 0.0  ;;  %v44_v14 = vld [vmem:[%s544_s0 + $0xd8] sm:$0xff]  ;;  %v45_v19 = vld [vmem:[%s544_s0 + $0xe0] sm:$0xff] }
  0x11   :  { %v71_v36 = vadd.f32 %v70_v31, %v69_v33  ;;  %v182_v17 = vadd.f32 %v181_v5, %v180_v10  ;;  %v187_v31 = vsel %vm54_vm1, %v144_v12, 0.0  ;;  %v430_v33 = vsel %vm54_vm1, %v170_v13, 0.0 }
  0x12   :  { %v193_v53 = vsel %vm54_vm1, %v147_v39, 0.0  ;;  %v98_v56 = vsel %vm54_vm1, %v39_v48, 0.0  ;;  %v150_v57 = vmul.f32 %v382_v51, %v382_v51  ;;  %v100_v63 = vsel %vm54_vm1, %v40_v54, 0.0  ;;  %v47_v39 = vld [vmem:[%s544_s0 + $0xf0] sm:$0xff] }
  0x13   :  { %v73_v41 = vadd.f32 %v72_v34, %v71_v36  ;;  %v184_v23 = vadd.f32 %v183_v15, %v182_v17  ;;  %v37_v34 = vld [vmem:[%s544_s0 + $0xa0] sm:$0xff]  ;;  %v151_v0 = vmul.f32 %v391_v58, %v391_v58  ;;  %v102_v4 = vsel %vm54_vm1, %v41_v60, 0.0 }
  0x14   :  { %v94_v44 = vsel %vm54_vm1, %v37_v34, 0.0  ;;  %v152_v5 = vmul.f32 %v396_v61, %v396_v61  ;;  %v104_v10 = vsel %vm54_vm1, %v42_v2, 0.0  ;;  %v153_v12 = vmul.f32 %v407_v6, %v407_v6 }
  0x15   :  { %v75_v46 = vadd.f32 %v74_v37, %v73_v41  ;;  %v186_v37 = vadd.f32 %v185_v21, %v184_v23  ;;  %v38_v41 = vld [vmem:[%s544_s0 + $0xa8] sm:$0xff]  ;;  %v201_v13 = vsel %vm54_vm1, %v151_v0, 0.0  ;;  %v154_v17 = vmul.f32 %v414_v11, %v414_v11 }
  0x16   :  { %v96_v50 = vsel %vm54_vm1, %v38_v41, 0.0  ;;  %v205_v23 = vsel %vm54_vm1, %v153_v12, 0.0  ;;  %v110_v11 = vsel %vm54_vm1, %v45_v19, 0.0 }
  0x17   :  { %v77_v52 = vadd.f32 %v76_v43, %v75_v46  ;;  %v188_v43 = vadd.f32 %v187_v31, %v186_v37  ;;  %v148_v46 = vmul.f32 %v366_v40, %v366_v40  ;;  %v156_v37 = vmul.f32 %v37_v34, %v37_v34 }
  0x18   :  { %v114_v34 = vsel %vm54_vm1, %v47_v39, 0.0 }
  0x19   :  { %v79_v59 = vadd.f32 %v78_v47, %v77_v52  ;;  %v191_v47 = vsel %vm54_vm1, %v146_v27, 0.0  ;;  %v190_v49 = vadd.f32 %v189_v32, %v188_v43  ;;  %v149_v52 = vmul.f32 %v373_v45, %v373_v45  ;;  %v46_v27 = vld [vmem:[%s544_s0 + $0xe8] sm:$0xff] }
  0x1a   :  { %v157_v43 = vmul.f32 %v38_v41, %v38_v41 }
  0x1b   :  { %v81_v1 = vadd.f32 %v80_v55, %v79_v59  ;;  %v192_v55 = vadd.f32 %v191_v47, %v190_v49  ;;  %v195_v59 = vsel %vm54_vm1, %v148_v46, 0.0  ;;  %v48_v46 = vld [vmem:[%s544_s0 + $0xf8] sm:$0xff]  ;;  %v158_v49 = vmul.f32 %v39_v48, %v39_v48 }
  0x1c   :  { %v116_v41 = vsel %vm54_vm1, %v48_v46, 0.0 }
  0x1d   :  { %v83_v7 = vadd.f32 %v82_v62, %v81_v1  ;;  %v194_v62 = vadd.f32 %v193_v53, %v192_v55  ;;  %v197_v1 = vsel %vm54_vm1, %v149_v52, 0.0  ;;  %v49_v52 = vld [vmem:[%s544_s0 + $0x100] sm:$0xff]  ;;  %v159_v55 = vmul.f32 %v40_v54, %v40_v54 }
  0x1e   :  { %v215_v48 = vsel %vm54_vm1, %v158_v49, 0.0 }
  0x1f   :  { %v85_v16 = vadd.f32 %v84_v3, %v83_v7  ;;  %v196_v3 = vadd.f32 %v195_v59, %v194_v62  ;;  %v199_v7 = vsel %vm54_vm1, %v150_v57, 0.0  ;;  %v160_v62 = vmul.f32 %v41_v60, %v41_v60 }
  0x21   :  { %v87_v25 = vadd.f32 %v86_v8, %v85_v16  ;;  %v43_v8 = vld [vmem:[%s544_s0 + $0xd0] sm:$0xff]  ;;  %v198_v9 = vadd.f32 %v197_v1, %v196_v3  ;;  %v161_v1 = vmul.f32 %v42_v2, %v42_v2 }
  0x22   :  { %v106_v16 = vsel %vm54_vm1, %v43_v8, 0.0 }
  0x23   :  { %v89_v36 = vadd.f32 %v88_v18, %v87_v25  ;;  %v200_v15 = vadd.f32 %v199_v7, %v198_v9  ;;  %v203_v18 = vsel %vm54_vm1, %v152_v5, 0.0  ;;  %v108_v25 = vsel %vm54_vm1, %v44_v14, 0.0 }
  0x24   :  { %v162_v5 = vmul.f32 %v43_v8, %v43_v8  ;;  %v219_v7 = vsel %vm54_vm1, %v160_v62, 0.0  ;;  %v163_v9 = vmul.f32 %v44_v14, %v44_v14 }
  0x25   :  { %v91_v42 = vadd.f32 %v90_v20, %v89_v36  ;;  %v202_v21 = vadd.f32 %v201_v13, %v200_v15  ;;  %v155_v20 = vmul.f32 %v36_v22, %v36_v22  ;;  %v112_v22 = vsel %vm54_vm1, %v46_v27, 0.0 }
  0x26   :  { %v164_v13 = vmul.f32 %v45_v19, %v45_v19  ;;  %v225_v8 = vsel %vm54_vm1, %v163_v9, 0.0 }
  0x27   :  { %v93_v35 = vadd.f32 %v92_v38, %v91_v42  ;;  %v204_v36 = vadd.f32 %v203_v18, %v202_v21  ;;  %v207_v38 = vsel %vm54_vm1, %v154_v17, 0.0 }
  0x29   :  { %v95_v40 = vadd.f32 %v94_v44, %v93_v35  ;;  %v206_v42 = vadd.f32 %v205_v23, %v204_v36  ;;  %v209_v44 = vsel %vm54_vm1, %v155_v20, 0.0  ;;  %v168_v23 = vmul.f32 %v49_v52, %v49_v52 }
  0x2b   :  { %v97_v45 = vadd.f32 %v96_v50, %v95_v40  ;;  %v208_v35 = vadd.f32 %v207_v38, %v206_v42  ;;  %v211_v50 = vsel %vm54_vm1, %v156_v37, 0.0  ;;  %v53_v38 = vld [vmem:[#allocation2] sm:$0x1] }
  0x2d   :  { %v99_v51 = vadd.f32 %v98_v56, %v97_v45  ;;  %v210_v40 = vadd.f32 %v209_v44, %v208_v35  ;;  %v213_v56 = vsel %vm54_vm1, %v157_v43, 0.0  ;;  %v118_v45 = vsel %vm54_vm1, %v49_v52, 0.0 }
  0x2f   :  { %v101_v58 = vadd.f32 %v100_v63, %v99_v51  ;;  %v212_v59 = vadd.f32 %v211_v50, %v210_v40  ;;  %v217_v51 = vsel %vm54_vm1, %v159_v55, 0.0 }
  0x31   :  { %v103_v61 = vadd.f32 %v102_v4, %v101_v58  ;;  %v214_v0 = vadd.f32 %v213_v56, %v212_v59 }
  0x33   :  { %v105_v6 = vadd.f32 %v104_v10, %v103_v61  ;;  %v216_v4 = vadd.f32 %v215_v48, %v214_v0  ;;  %v221_v10 = vsel %vm54_vm1, %v161_v1, 0.0  ;;  %v223_v61 = vsel %vm54_vm1, %v162_v5, 0.0 }
  0x35   :  { %v107_v31 = vadd.f32 %v106_v16, %v105_v6  ;;  %v218_v58 = vadd.f32 %v217_v51, %v216_v4  ;;  %v165_v16 = vmul.f32 %v46_v27, %v46_v27  ;;  %v166_v6 = vmul.f32 %v47_v39, %v47_v39 }
  0x36   :  { %v235_v39 = vsel %vm54_vm1, %v168_v23, 0.0 }
  0x37   :  { %v109_v32 = vadd.f32 %v108_v25, %v107_v31  ;;  %v220_v12 = vadd.f32 %v219_v7, %v218_v58  ;;  %v167_v25 = vmul.f32 %v48_v46, %v48_v46  ;;  %v231_v31 = vsel %vm54_vm1, %v166_v6, 0.0 }
  0x39   :  { %v111_v47 = vadd.f32 %v110_v11, %v109_v32  ;;  %v222_v15 = vadd.f32 %v221_v10, %v220_v12  ;;  %v233_v27 = vsel %vm54_vm1, %v167_v25, 0.0 }
  0x3b   :  { %v113_v53 = vadd.f32 %v112_v22, %v111_v47  ;;  %v224_v18 = vadd.f32 %v223_v61, %v222_v15 }
  0x3d   :  { %v115_v57 = vadd.f32 %v114_v34, %v113_v53  ;;  %v226_v21 = vadd.f32 %v225_v8, %v224_v18  ;;  %v135_v53 = vld [vmem:[#allocation3] sm:$0x1] }
  0x3f   :  { %v117_v63 = vadd.f32 %v116_v41, %v115_v57 }
  0x41   :  { %v119_v3 = vadd.f32 %v118_v45, %v117_v63 }
  0x43   :  { %v121_v54 = vadd.f32 %v344_v28, %v119_v3  ;;  %v227_v28 = vsel %vm54_vm1, %v164_v13, 0.0 }
  0x44   :  { %v228_v19 = vadd.f32 %v227_v28, %v226_v21 }
  0x45   :  { %v123_v60 = vadd.f32 %v347_v29, %v121_v54  ;;  %v229_v29 = vsel %vm54_vm1, %v165_v16, 0.0 }
  0x46   :  { %v230_v36 = vadd.f32 %v229_v29, %v228_v19 }
  0x47   :  { %v125_v2 = vadd.f32 %v350_v30, %v123_v60 }
  0x48   :  { %v232_v37 = vadd.f32 %v231_v31, %v230_v36 }
  0x49   :  { %v126_v17 = vrot.slane %v125_v2, 4 }
  0x4a   :  { %v234_v42 = vadd.f32 %v233_v27, %v232_v37 }
  0x4b   :  { %v127_v14 = vadd.f32 %v126_v17, %v125_v2 }
  0x4c   :  { %v236_v43 = vadd.f32 %v235_v39, %v234_v42 }
  0x4d   :  { %v128_v20 = vrot.slane %v127_v14, 2 }
  0x4e   :  { %v238_v44 = vadd.f32 %v426_v24, %v236_v43 }
  0x4f   :  { %v129_v30 = vadd.f32 %v128_v20, %v127_v14 }
  0x50   :  { %v240_v46 = vadd.f32 %v430_v33, %v238_v44 }
  0x51   :  { %v130_v11 = vrot.slane %v129_v30, 1 }
  0x52   :  { %v242_v47 = vadd.f32 %v433_v26, %v240_v46 }
  0x53   :  { %v131_v32 = vadd.f32 %v130_v11, %v129_v30 }
  0x54   :  { %v243_v35 = vrot.slane %v242_v47, 4 }
  0x55   :  { %v132_v22 = vadd.f32 %v131_v32, %v53_v38 }
  0x56   :  { %v244_v34 = vadd.f32 %v243_v35, %v242_v47 }
  0x57   :  { %134 = vst.msk [vmem:[#allocation2] sm:$0x1] %vm14_vm0, %v132_v22 }
  0x58   :  { %v245_v49 = vrot.slane %v244_v34, 2 }
  0x5a   :  { %v246_v50 = vadd.f32 %v245_v49, %v244_v34 }
  0x5c   :  { %v247_v52 = vrot.slane %v246_v50, 1 }
  0x5e   :  { %v248_v40 = vadd.f32 %v247_v52, %v246_v50  ;;  %v254_v55 = vld [vmem:[#allocation2] sm:$0x1] }
  0x5f   :  { %v255_v56 = vmul.f32 0.0034722222, %v254_v55 }
  0x60   :  { %v249_v41 = vadd.f32 %v248_v40, %v135_v53 }
  0x61   :  { %v258_v57 = vmul.f32 %v255_v56, %v255_v56  ;;  %v264_v26 = vsub.f32 0.0, %v255_v56 }
  0x62   :  { %250 = vst.msk [vmem:[#allocation3] sm:$0x1] %vm14_vm0, %v249_v41 }
  0x69   :  { %v256_v59 = vld [vmem:[#allocation3] sm:$0x1] }
  0x6a   :  { %v257_v45 = vmul.f32 0.0034722222, %v256_v59 }
  0x6c   :  { %v259_v24 = vsub.f32 %v257_v45, %v258_v57 }
  0x6e   :  { %v260_v62 = vmax.f32 %v259_v24, 0.0 }
  0x70   :  { %v261_v33 = vadd.f32 1e-05, %v260_v62 }
  0x72   :  { %276 = vrsqrt.f32 %v261_v33 }
  0x7c   :  { %v277_v48 = vpop.eup %276 }
  0x7d   :  { %263 = vst.msk [vmem:[%s545_s1] sm:$0x1] %vm14_vm0, %v277_v48  ;;  %v265_v63 = vmul.f32 %v277_v48, %v264_v26 }
  0x7f   :  { %266 = vst.msk [vmem:[%s546_s2] sm:$0x1] %vm14_vm0, %v265_v63 }

// kernel: mixstyle_densenet_forward.65
= control target key start
LH: loop header
LB: loop body
LE: loop exit
PB: predicated region body
PF: predicated region fallthrough
CT: control target
= control target key end

     0   :  { %vm286_vm0 = vcmask 261120   ;;  %s1104_s3 = inlined_call_operand.vmem [shape: bf16[32,128], index: 3, kind: input, shape index: {}]   ;;  %s1105_s0 = inlined_call_operand.vmem [shape: f32[288,32], index: 0, kind: input, shape index: {}]   ;;  %s1106_s1 = inlined_call_operand.vmem [shape: f32[1,32], index: 1, kind: input, shape index: {}]   ;;  %s1107_s2 = inlined_call_operand.vmem [shape: f32[1,32], index: 2, kind: input, shape index: {}]   ;;  %s1108_s4 = inlined_call_operand.vmem [shape: f32[288,128], index: 4, kind: output, shape index: {}]  }
   0x1   :  { %v755_v0 = vld [vmem:[%s1104_s3] sm:$0xff]   ;;  %v756_v1 = vld [vmem:[%s1104_s3 + $0x8] sm:$0xff]   ;;  %v60_v8 = vld [vmem:[%s1105_s0 + $0x10] sm:$0xff] }
   0x2   :  { %711 = vmatprep.subr.bf16.mxu0 %v755_v0  ;;  %751 = vmatprep.subr.bf16.mxu1 %v755_v0  ;;  %v58_v2 = vld [vmem:[%s1105_s0] sm:$0xff]  ;;  %v59_v3 = vld [vmem:[%s1105_s0 + $0x8] sm:$0xff]  ;;  %v61_v9 = vld [vmem:[%s1105_s0 + $0x18] sm:$0xff] }
   0x3   :  { %v797_v4 = vld [vmem:[%s1106_s1] ss:$0 sm:$0xff]  ;;  %712 = vmatpush3.bf16.msra.mxu0 %v755_v0  ;;  %753 = vmatpush3.bf16.msra.mxu1 %v755_v0  ;;  %v79_v13 = vld [vmem:[%s1105_s0 + $0xa8] sm:$0xff]  ;;  %v80_v14 = vld [vmem:[%s1105_s0 + $0xb0] sm:$0xff] }
   0x4   :  { %v101_v5 = vmul.f32 %v797_v4, %v58_v2  ;;  %v102_v6 = vmul.f32 %v797_v4, %v59_v3  ;;  %v804_v7 = vld [vmem:[%s1107_s2] ss:$0 sm:$0xff]  ;;  %713 = vmatprep.subr.bf16.mxu0 %v756_v1  ;;  %v103_v10 = vmul.f32 %v797_v4, %v60_v8  ;;  %v104_v11 = vmul.f32 %v797_v4, %v61_v9  ;;  %v81_v19 = vld [vmem:[%s1105_s0 + $0xb8] sm:$0xff]  ;;  %v63_v29 = vld [vmem:[%s1105_s0 + $0x28] sm:$0xff] }
   0x5   :  { %752 = vmatprep.subr.bf16.mxu1 %v756_v1  ;;  %v78_v12 = vld [vmem:[%s1105_s0 + $0xa0] sm:$0xff]  ;;  %v122_v18 = vmul.f32 %v797_v4, %v79_v13  ;;  %v123_v22 = vmul.f32 %v797_v4, %v80_v14  ;;  %v124_v23 = vmul.f32 %v797_v4, %v81_v19  ;;  %v64_v34 = vld [vmem:[%s1105_s0 + $0x30] sm:$0xff]  ;;  %v65_v35 = vld [vmem:[%s1105_s0 + $0x38] sm:$0xff]  ;;  %v106_v45 = vmul.f32 %v797_v4, %v63_v29 }
   0x6   :  { %v144_v15 = vadd.f32 %v804_v7, %v101_v5  ;;  %v145_v16 = vadd.f32 %v804_v7, %v102_v6  ;;  %v121_v17 = vmul.f32 %v797_v4, %v78_v12  ;;  %v146_v20 = vadd.f32 %v804_v7, %v103_v10  ;;  %v62_v24 = vld [vmem:[%s1105_s0 + $0x20] sm:$0xff]  ;;  %v83_v41 = vld [vmem:[%s1105_s0 + $0xc8] sm:$0xff]  ;;  %v84_v46 = vld [vmem:[%s1105_s0 + $0xd0] sm:$0xff] }
   0x7   :  { %v147_v21 = vadd.f32 %v804_v7, %v104_v11  ;;  %714 = vmatpush3.bf16.msra.mxu0 %v756_v1  ;;  %754 = vmatpush3.bf16.msra.mxu1 %v756_v1  ;;  %v165_v28 = vadd.f32 %v804_v7, %v122_v18  ;;  %v166_v32 = vadd.f32 %v804_v7, %v123_v22  ;;  %v82_v40 = vld [vmem:[%s1105_s0 + $0xc0] sm:$0xff]  ;;  %v85_v51 = vld [vmem:[%s1105_s0 + $0xd8] sm:$0xff]  ;;  %v67_v1 = vld [vmem:[%s1105_s0 + $0x48] sm:$0xff] }
   0x8   :  { %v180_v25 = vmax.f32 %v144_v15, 0.0  ;;  %v181_v26 = vmax.f32 %v145_v16, 0.0  ;;  %v164_v27 = vadd.f32 %v804_v7, %v121_v17  ;;  %v182_v30 = vmax.f32 %v146_v20, 0.0  ;;  %v66_v56 = vld [vmem:[%s1105_s0 + $0x40] sm:$0xff]  ;;  %v68_v8 = vld [vmem:[%s1105_s0 + $0x50] sm:$0xff]  ;;  %v69_v9 = vld [vmem:[%s1105_s0 + $0x58] sm:$0xff] }
   0x9   :  { %v183_v31 = vmax.f32 %v147_v21, 0.0  ;;  %v167_v33 = vadd.f32 %v804_v7, %v124_v23  ;;  %v201_v38 = vmax.f32 %v165_v28, 0.0  ;;  %v105_v39 = vmul.f32 %v797_v4, %v62_v24  ;;  %v86_v14 = vld [vmem:[%s1105_s0 + $0xe0] sm:$0xff]  ;;  %v87_v15 = vld [vmem:[%s1105_s0 + $0xe8] sm:$0xff]  ;;  %v88_v24 = vld [vmem:[%s1105_s0 + $0xf0] sm:$0xff] }
   0xa   :  { %v252_v36 = vpack.c.bf16 %v181_v26, %v180_v25  ;;  %v200_v37 = vmax.f32 %v164_v27, 0.0  ;;  %v202_v43 = vmax.f32 %v166_v32, 0.0  ;;  %v107_v49 = vmul.f32 %v797_v4, %v64_v34  ;;  %v89_v29 = vld [vmem:[%s1105_s0 + $0xf8] sm:$0xff] }
   0xb   :  { %v253_v42 = vpack.c.bf16 %v183_v31, %v182_v30  ;;  %v203_v44 = vmax.f32 %v167_v33, 0.0  ;;  %v148_v48 = vadd.f32 %v804_v7, %v105_v39  ;;  %v108_v50 = vmul.f32 %v797_v4, %v65_v35  ;;  %v70_v30 = vld [vmem:[%s1105_s0 + $0x60] sm:$0xff] }
   0xc   :  { %715 = vmatprep.mubr.msk.bf16.mxu0 %vm286_vm0, %v252_v36  ;;  %v262_v47 = vpack.c.bf16 %v201_v38, %v200_v37  ;;  %v149_v53 = vadd.f32 %v804_v7, %v106_v45  ;;  %v125_v54 = vmul.f32 %v797_v4, %v82_v40  ;;  %v126_v55 = vmul.f32 %v797_v4, %v83_v41  ;;  %v71_v38 = vld [vmem:[%s1105_s0 + $0x68] sm:$0xff] }
   0xd   :  { %716 = vmatmul.mubr.msk.bf16.vlgmr.msra.gmra.mrb[0].mxu0 %vm286_vm0, %v253_v42  ;;  %v263_v52 = vpack.c.bf16 %v203_v44, %v202_v43  ;;  %v184_v57 = vmax.f32 %v148_v48, 0.0  ;;  %v150_v58 = vadd.f32 %v804_v7, %v107_v49  ;;  %v151_v59 = vadd.f32 %v804_v7, %v108_v50  ;;  %v72_v43 = vld [vmem:[%s1105_s0 + $0x70] sm:$0xff]  ;;  %v73_v44 = vld [vmem:[%s1105_s0 + $0x78] sm:$0xff]  ;;  %v90_v49 = vld [vmem:[%s1105_s0 + $0x100] sm:$0xff] }
   0xe   :  { %735 = vmatprep.mubr.msk.bf16.mxu1 %vm286_vm0, %v262_v47  ;;  %v127_v60 = vmul.f32 %v797_v4, %v84_v46  ;;  %v185_v61 = vmax.f32 %v149_v53, 0.0  ;;  %v168_v62 = vadd.f32 %v804_v7, %v125_v54  ;;  %v169_v63 = vadd.f32 %v804_v7, %v126_v55  ;;  %v91_v54 = vld [vmem:[%s1105_s0 + $0x108] sm:$0xff]  ;;  %v92_v55 = vld [vmem:[%s1105_s0 + $0x110] sm:$0xff] }
   0xf   :  { %736 = vmatmul.mubr.msk.bf16.vlgmr.msra.gmra.mrb[0].mxu1 %vm286_vm0, %v263_v52  ;;  %v128_v0 = vmul.f32 %v797_v4, %v85_v51  ;;  %v186_v2 = vmax.f32 %v150_v58, 0.0  ;;  %v187_v3 = vmax.f32 %v151_v59, 0.0  ;;  %v109_v6 = vmul.f32 %v797_v4, %v66_v56 }
  0x10   :  { %v170_v5 = vadd.f32 %v804_v7, %v127_v60  ;;  %v254_v10 = vpack.c.bf16 %v185_v61, %v184_v57  ;;  %v204_v11 = vmax.f32 %v168_v62, 0.0  ;;  %v205_v12 = vmax.f32 %v169_v63, 0.0  ;;  %v93_v60 = vld [vmem:[%s1105_s0 + $0x118] sm:$0xff] }
  0x11   :  { %v171_v13 = vadd.f32 %v804_v7, %v128_v0  ;;  %v255_v16 = vpack.c.bf16 %v187_v3, %v186_v2  ;;  %v110_v18 = vmul.f32 %v797_v4, %v67_v1  ;;  %v152_v19 = vadd.f32 %v804_v7, %v109_v6  ;;  %v74_v6 = vld [vmem:[%s1105_s0 + $0x80] sm:$0xff] }
  0x12   :  { %v206_v17 = vmax.f32 %v170_v5, 0.0  ;;  %719 = vmatprep.mubr.msk.bf16.mxu0 %vm286_vm0, %v254_v10  ;;  %v264_v20 = vpack.c.bf16 %v205_v12, %v204_v11  ;;  %v111_v22 = vmul.f32 %v797_v4, %v68_v8  ;;  %v112_v23 = vmul.f32 %v797_v4, %v69_v9  ;;  %v75_v12 = vld [vmem:[%s1105_s0 + $0x88] sm:$0xff] }
  0x13   :  { %v207_v21 = vmax.f32 %v171_v13, 0.0  ;;  %v153_v25 = vadd.f32 %v804_v7, %v110_v18  ;;  %v188_v26 = vmax.f32 %v152_v19, 0.0  ;;  %v129_v27 = vmul.f32 %v797_v4, %v86_v14  ;;  %v77_v18 = vld [vmem:[%s1105_s0 + $0x98] sm:$0xff] }
  0x14   :  { %v130_v28 = vmul.f32 %v797_v4, %v87_v15  ;;  %739 = vmatprep.mubr.msk.bf16.mxu1 %vm286_vm0, %v264_v20  ;;  %v154_v32 = vadd.f32 %v804_v7, %v111_v22  ;;  %v155_v33 = vadd.f32 %v804_v7, %v112_v23  ;;  %v131_v37 = vmul.f32 %v797_v4, %v88_v24 }
  0x15   :  { %720 = vmatmul.mubr.msk.bf16.gmra.mrb[4].mxu0 %vm286_vm0, %v255_v16  ;;  %v265_v31 = vpack.c.bf16 %v207_v21, %v206_v17  ;;  %v189_v34 = vmax.f32 %v153_v25, 0.0  ;;  %v172_v35 = vadd.f32 %v804_v7, %v129_v27  ;;  %v132_v41 = vmul.f32 %v797_v4, %v89_v29  ;;  %v76_v17 = vld [vmem:[%s1105_s0 + $0x90] sm:$0xff] }
  0x16   :  { %v173_v36 = vadd.f32 %v804_v7, %v130_v28  ;;  %v190_v39 = vmax.f32 %v154_v32, 0.0  ;;  %v191_v40 = vmax.f32 %v155_v33, 0.0  ;;  %v113_v42 = vmul.f32 %v797_v4, %v70_v30 }
  0x17   :  { %740 = vmatmul.mubr.msk.bf16.gmra.mrb[4].mxu1 %vm286_vm0, %v265_v31  ;;  %v256_v45 = vpack.c.bf16 %v189_v34, %v188_v26  ;;  %v208_v46 = vmax.f32 %v172_v35, 0.0  ;;  %v174_v48 = vadd.f32 %v804_v7, %v131_v37  ;;  %v175_v51 = vadd.f32 %v804_v7, %v132_v41 }
  0x18   :  { %v209_v47 = vmax.f32 %v173_v36, 0.0  ;;  %v257_v50 = vpack.c.bf16 %v191_v40, %v190_v39  ;;  %v114_v52 = vmul.f32 %v797_v4, %v71_v38  ;;  %v156_v53 = vadd.f32 %v804_v7, %v113_v42 }
  0x19   :  { %723 = vmatprep.mubr.msk.bf16.mxu0 %vm286_vm0, %v256_v45  ;;  %v210_v57 = vmax.f32 %v174_v48, 0.0  ;;  %v115_v58 = vmul.f32 %v797_v4, %v72_v43  ;;  %v116_v59 = vmul.f32 %v797_v4, %v73_v44  ;;  %v211_v61 = vmax.f32 %v175_v51, 0.0 }
  0x1a   :  { %v266_v56 = vpack.c.bf16 %v209_v47, %v208_v46  ;;  %v157_v62 = vadd.f32 %v804_v7, %v114_v52  ;;  %v192_v63 = vmax.f32 %v156_v53, 0.0  ;;  %v133_v0 = vmul.f32 %v797_v4, %v90_v49 }
  0x1b   :  { %v158_v1 = vadd.f32 %v804_v7, %v115_v58  ;;  %v159_v2 = vadd.f32 %v804_v7, %v116_v59  ;;  %v134_v3 = vmul.f32 %v797_v4, %v91_v54  ;;  %v135_v5 = vmul.f32 %v797_v4, %v92_v55 }
  0x1c   :  { %743 = vmatprep.mubr.msk.bf16.mxu1 %vm286_vm0, %v266_v56  ;;  %v267_v8 = vpack.c.bf16 %v211_v61, %v210_v57  ;;  %v193_v9 = vmax.f32 %v157_v62, 0.0  ;;  %v176_v10 = vadd.f32 %v804_v7, %v133_v0  ;;  %v136_v11 = vmul.f32 %v797_v4, %v93_v60 }
  0x1d   :  { %724 = vmatmul.mubr.msk.bf16.gmra.mrb[8].mxu0 %vm286_vm0, %v257_v50  ;;  %v194_v13 = vmax.f32 %v158_v1, 0.0  ;;  %v195_v14 = vmax.f32 %v159_v2, 0.0  ;;  %v177_v15 = vadd.f32 %v804_v7, %v134_v3  ;;  %v178_v16 = vadd.f32 %v804_v7, %v135_v5 }
  0x1e   :  { %v258_v19 = vpack.c.bf16 %v193_v9, %v192_v63  ;;  %v212_v20 = vmax.f32 %v176_v10, 0.0  ;;  %v179_v21 = vadd.f32 %v804_v7, %v136_v11  ;;  %v117_v22 = vmul.f32 %v797_v4, %v74_v6 }
  0x1f   :  { %744 = vmatmul.mubr.msk.bf16.gmra.mrb[8].mxu1 %vm286_vm0, %v267_v8  ;;  %v259_v23 = vpack.c.bf16 %v195_v14, %v194_v13  ;;  %v213_v24 = vmax.f32 %v177_v15, 0.0  ;;  %v214_v25 = vmax.f32 %v178_v16, 0.0  ;;  %v118_v26 = vmul.f32 %v797_v4, %v75_v12 }
  0x20   :  { %727 = vmatprep.mubr.msk.bf16.mxu0 %vm286_vm0, %v258_v19  ;;  %v215_v27 = vmax.f32 %v179_v21, 0.0  ;;  %v160_v28 = vadd.f32 %v804_v7, %v117_v22  ;;  %v119_v29 = vmul.f32 %v797_v4, %v76_v17  ;;  %v120_v30 = vmul.f32 %v797_v4, %v77_v18 }
  0x21   :  { %v268_v31 = vpack.c.bf16 %v213_v24, %v212_v20  ;;  %v161_v32 = vadd.f32 %v804_v7, %v118_v26 }
  0x22   :  { %v269_v33 = vpack.c.bf16 %v215_v27, %v214_v25  ;;  %v196_v34 = vmax.f32 %v160_v28, 0.0  ;;  %v162_v35 = vadd.f32 %v804_v7, %v119_v29  ;;  %v163_v36 = vadd.f32 %v804_v7, %v120_v30 }
  0x23   :  { %747 = vmatprep.mubr.msk.bf16.mxu1 %vm286_vm0, %v268_v31  ;;  %v197_v37 = vmax.f32 %v161_v32, 0.0 }
  0x24   :  { %v198_v38 = vmax.f32 %v162_v35, 0.0  ;;  %v199_v39 = vmax.f32 %v163_v36, 0.0 }
  0x25   :  { %728 = vmatmul.mubr.msk.bf16.gmra.mrb[12].mxu0 %vm286_vm0, %v259_v23  ;;  %v260_v40 = vpack.c.bf16 %v197_v37, %v196_v34 }
  0x26   :  { %v261_v4 = vpack.c.bf16 %v199_v39, %v198_v38 }
  0x27   :  { %748 = vmatmul.mubr.msk.bf16.gmra.mrb[12].mxu1 %vm286_vm0, %v269_v33  ;;  %731 = vmatprep.mubr.msk.bf16.mxu0 %vm286_vm0, %v260_v40 }
  0x2d   :  { %732 = vmatmul.mubr.msk.bf16.gmra.mrb[16].mxu0 %vm286_vm0, %v261_v4 }
  0xe0   :  { %v717_v41 = vpop.f32.mrb[0].mxu0 }
  0xe1   :  { %631 = vst [vmem:[%s1108_s4 + $0x10] sm:$0xff] %v717_v41  ;;  %v375_v7 = vpop.f32.mrb[1].mxu0 }
  0xe2   :  { %629 = vst [vmem:[%s1108_s4] sm:$0xff] %v375_v7  ;;  %v718_v42 = vpop.f32.mrb[2].mxu0  ;;  %v737_v43 = vpop.f32.mrb[0].mxu1 }
  0xe3   :  { %632 = vst [vmem:[%s1108_s4 + $0x18] sm:$0xff] %v718_v42  ;;  %v378_v44 = vpop.f32.mrb[3].mxu0  ;;  %651 = vst [vmem:[%s1108_s4 + $0xb0] sm:$0xff] %v737_v43  ;;  %v455_v45 = vpop.f32.mrb[1].mxu1 }
  0xe4   :  { %630 = vst [vmem:[%s1108_s4 + $0x8] sm:$0xff] %v378_v44  ;;  %649 = vst [vmem:[%s1108_s4 + $0xa0] sm:$0xff] %v455_v45  ;;  %v738_v46 = vpop.f32.mrb[2].mxu1 }
  0xe5   :  { %652 = vst [vmem:[%s1108_s4 + $0xb8] sm:$0xff] %v738_v46  ;;  %v458_v47 = vpop.f32.mrb[3].mxu1 }
  0xe6   :  { %650 = vst [vmem:[%s1108_s4 + $0xa8] sm:$0xff] %v458_v47 }
  0xe8   :  { %v721_v48 = vpop.f32.mrb[4].mxu0 }
  0xe9   :  { %635 = vst [vmem:[%s1108_s4 + $0x30] sm:$0xff] %v721_v48  ;;  %v391_v49 = vpop.f32.mrb[5].mxu0 }
  0xea   :  { %633 = vst [vmem:[%s1108_s4 + $0x20] sm:$0xff] %v391_v49  ;;  %v722_v50 = vpop.f32.mrb[6].mxu0  ;;  %v741_v51 = vpop.f32.mrb[4].mxu1 }
  0xeb   :  { %636 = vst [vmem:[%s1108_s4 + $0x38] sm:$0xff] %v722_v50  ;;  %v394_v52 = vpop.f32.mrb[7].mxu0  ;;  %655 = vst [vmem:[%s1108_s4 + $0xd0] sm:$0xff] %v741_v51  ;;  %v471_v53 = vpop.f32.mrb[5].mxu1 }
  0xec   :  { %634 = vst [vmem:[%s1108_s4 + $0x28] sm:$0xff] %v394_v52  ;;  %653 = vst [vmem:[%s1108_s4 + $0xc0] sm:$0xff] %v471_v53  ;;  %v742_v54 = vpop.f32.mrb[6].mxu1 }
  0xed   :  { %656 = vst [vmem:[%s1108_s4 + $0xd8] sm:$0xff] %v742_v54  ;;  %v474_v55 = vpop.f32.mrb[7].mxu1 }
  0xee   :  { %654 = vst [vmem:[%s1108_s4 + $0xc8] sm:$0xff] %v474_v55 }
  0xf0   :  { %v725_v56 = vpop.f32.mrb[8].mxu0 }
  0xf1   :  { %639 = vst [vmem:[%s1108_s4 + $0x50] sm:$0xff] %v725_v56  ;;  %v407_v57 = vpop.f32.mrb[9].mxu0 }
  0xf2   :  { %637 = vst [vmem:[%s1108_s4 + $0x40] sm:$0xff] %v407_v57  ;;  %v726_v58 = vpop.f32.mrb[10].mxu0  ;;  %v745_v59 = vpop.f32.mrb[8].mxu1 }
  0xf3   :  { %640 = vst [vmem:[%s1108_s4 + $0x58] sm:$0xff] %v726_v58  ;;  %v410_v60 = vpop.f32.mrb[11].mxu0  ;;  %659 = vst [vmem:[%s1108_s4 + $0xf0] sm:$0xff] %v745_v59  ;;  %v487_v61 = vpop.f32.mrb[9].mxu1 }
  0xf4   :  { %638 = vst [vmem:[%s1108_s4 + $0x48] sm:$0xff] %v410_v60  ;;  %657 = vst [vmem:[%s1108_s4 + $0xe0] sm:$0xff] %v487_v61  ;;  %v746_v62 = vpop.f32.mrb[10].mxu1 }
  0xf5   :  { %660 = vst [vmem:[%s1108_s4 + $0xf8] sm:$0xff] %v746_v62  ;;  %v490_v63 = vpop.f32.mrb[11].mxu1 }
  0xf6   :  { %658 = vst [vmem:[%s1108_s4 + $0xe8] sm:$0xff] %v490_v63 }
  0xf8   :  { %v729_v0 = vpop.f32.mrb[12].mxu0 }
  0xf9   :  { %643 = vst [vmem:[%s1108_s4 + $0x70] sm:$0xff] %v729_v0  ;;  %v423_v1 = vpop.f32.mrb[13].mxu0 }
  0xfa   :  { %641 = vst [vmem:[%s1108_s4 + $0x60] sm:$0xff] %v423_v1  ;;  %v730_v2 = vpop.f32.mrb[14].mxu0  ;;  %v749_v3 = vpop.f32.mrb[12].mxu1 }
  0xfb   :  { %644 = vst [vmem:[%s1108_s4 + $0x78] sm:$0xff] %v730_v2  ;;  %v426_v5 = vpop.f32.mrb[15].mxu0  ;;  %663 = vst [vmem:[%s1108_s4 + $0x110] sm:$0xff] %v749_v3  ;;  %v503_v6 = vpop.f32.mrb[13].mxu1 }
  0xfc   :  { %642 = vst [vmem:[%s1108_s4 + $0x68] sm:$0xff] %v426_v5  ;;  %661 = vst [vmem:[%s1108_s4 + $0x100] sm:$0xff] %v503_v6  ;;  %v750_v8 = vpop.f32.mrb[14].mxu1 }
  0xfd   :  { %664 = vst [vmem:[%s1108_s4 + $0x118] sm:$0xff] %v750_v8  ;;  %v506_v9 = vpop.f32.mrb[15].mxu1 }
  0xfe   :  { %662 = vst [vmem:[%s1108_s4 + $0x108] sm:$0xff] %v506_v9 }
 0x100   :  { %v733_v10 = vpop.f32.mrb[16].mxu0 }
 0x101   :  { %647 = vst [vmem:[%s1108_s4 + $0x90] sm:$0xff] %v733_v10  ;;  %v439_v11 = vpop.f32.mrb[17].mxu0 }
 0x102   :  { %645 = vst [vmem:[%s1108_s4 + $0x80] sm:$0xff] %v439_v11  ;;  %v734_v12 = vpop.f32.mrb[18].mxu0 }
 0x103   :  { %648 = vst [vmem:[%s1108_s4 + $0x98] sm:$0xff] %v734_v12  ;;  %v442_v13 = vpop.f32.mrb[19].mxu0 }
 0x104   :  { %646 = vst [vmem:[%s1108_s4 + $0x88] sm:$0xff] %v442_v13 }

// kernel: mixstyle_densenet_forward.69
= control target key start
LH: loop header
LB: loop body
LE: loop exit
PB: predicated region body
PF: predicated region fallthrough
CT: control target
= control target key end

     0   :  { %vm64_vm0 = vcmask 130048   ;;  %s169_s0 = inlined_call_operand.vmem [shape: f32[72,16], index: 0, kind: input, shape index: {}]   ;;  %s170_s1 = inlined_call_operand.vmem [shape: f32[1,16], index: 1, kind: input, shape index: {}]   ;;  %s171_s2 = inlined_call_operand.vmem [shape: f32[1,16], index: 2, kind: input, shape index: {}]   ;;  %s172_s3 = inlined_call_operand.vmem [shape: f32[72,16], index: 3, kind: output, shape index: {}]  }
   0x1   :  { %v14_v0 = vld [vmem:[%s169_s0] sm:$0xff]  ;;  %v15_v4 = vld [vmem:[%s169_s0 + $0x8] sm:$0xff]  ;;  %v16_v5 = vld [vmem:[%s169_s0 + $0x10] sm:$0xff] }
   0x2   :  { %v78_v1 = vld [vmem:[%s170_s1] ss:$0 sm:$0xff]  ;;  %v17_v6 = vld [vmem:[%s169_s0 + $0x18] sm:$0xff]  ;;  %v19_v11 = vld [vmem:[%s169_s0 + $0x28] sm:$0xff] }
   0x3   :  { %v79_v2 = vld [vmem:[%s171_s2] ss:$0 sm:$0xff]  ;;  %v30_v3 = vmul.f32 %v78_v1, %v14_v0  ;;  %v31_v7 = vmul.f32 %v78_v1, %v15_v4  ;;  %v32_v8 = vmul.f32 %v78_v1, %v16_v5  ;;  %v33_v9 = vmul.f32 %v78_v1, %v17_v6  ;;  %v20_v12 = vld [vmem:[%s169_s0 + $0x30] sm:$0xff]  ;;  %v21_v17 = vld [vmem:[%s169_s0 + $0x38] sm:$0xff] }
   0x4   :  { %v18_v10 = vld [vmem:[%s169_s0 + $0x20] sm:$0xff]  ;;  %v35_v15 = vmul.f32 %v78_v1, %v19_v11  ;;  %v36_v16 = vmul.f32 %v78_v1, %v20_v12  ;;  %v37_v21 = vmul.f32 %v78_v1, %v21_v17 }
   0x5   :  { %v46_v13 = vadd.f32 %v79_v2, %v30_v3  ;;  %v34_v14 = vmul.f32 %v78_v1, %v18_v10  ;;  %v47_v18 = vadd.f32 %v79_v2, %v31_v7  ;;  %v48_v19 = vadd.f32 %v79_v2, %v32_v8  ;;  %v22_v22 = vld [vmem:[%s169_s0 + $0x40] sm:$0xff] }
   0x6   :  { %v49_v20 = vadd.f32 %v79_v2, %v33_v9  ;;  %v51_v25 = vadd.f32 %v79_v2, %v35_v15  ;;  %v52_v26 = vadd.f32 %v79_v2, %v36_v16  ;;  %v53_v30 = vadd.f32 %v79_v2, %v37_v21 }
   0x7   :  { %v55_v23 = vmax.f32 %v46_v13, 0.0  ;;  %v50_v24 = vadd.f32 %v79_v2, %v34_v14  ;;  %v56_v27 = vmax.f32 %v47_v18, 0.0  ;;  %v57_v28 = vmax.f32 %v48_v19, 0.0 }
   0x8   :  { %v58_v29 = vmax.f32 %v49_v20, 0.0  ;;  %v60_v32 = vmax.f32 %v51_v25, 0.0  ;;  %v61_v33 = vmax.f32 %v52_v26, 0.0  ;;  %v38_v34 = vmul.f32 %v78_v1, %v22_v22 }
   0x9   :  { %65 = vst.msk [vmem:[%s172_s3] sm:$0xff] %vm64_vm0, %v55_v23  ;;  %v59_v31 = vmax.f32 %v50_v24, 0.0  ;;  %66 = vst.msk [vmem:[%s172_s3 + $0x8] sm:$0xff] %vm64_vm0, %v56_v27  ;;  %v62_v35 = vmax.f32 %v53_v30, 0.0 }
   0xa   :  { %67 = vst.msk [vmem:[%s172_s3 + $0x10] sm:$0xff] %vm64_vm0, %v57_v28  ;;  %68 = vst.msk [vmem:[%s172_s3 + $0x18] sm:$0xff] %vm64_vm0, %v58_v29  ;;  %v54_v36 = vadd.f32 %v79_v2, %v38_v34 }
   0xb   :  { %69 = vst.msk [vmem:[%s172_s3 + $0x20] sm:$0xff] %vm64_vm0, %v59_v31  ;;  %70 = vst.msk [vmem:[%s172_s3 + $0x28] sm:$0xff] %vm64_vm0, %v60_v32 }
   0xc   :  { %71 = vst.msk [vmem:[%s172_s3 + $0x30] sm:$0xff] %vm64_vm0, %v61_v33  ;;  %72 = vst.msk [vmem:[%s172_s3 + $0x38] sm:$0xff] %vm64_vm0, %v62_v35  ;;  %v63_v37 = vmax.f32 %v54_v36, 0.0 }
   0xe   :  { %73 = vst.msk [vmem:[%s172_s3 + $0x40] sm:$0xff] %vm64_vm0, %v63_v37 }

// kernel: mixstyle_densenet_forward.66
= control target key start
LH: loop header
LB: loop body
LE: loop exit
PB: predicated region body
PF: predicated region fallthrough
CT: control target
= control target key end

     0   :  { %vm14_vm0 = vcmask 122880   ;;  %vm27_vm1 = vcmask 130048   ;;  %v116_v0 = vmov 0.0   ;;  %s189_s0 = inlined_call_operand.vmem [shape: f32[72,16], index: 0, kind: input, shape index: {}]   ;;  %s190_s1 = inlined_call_operand.vmem [shape: f32[1,16], index: 1, kind: output, shape index: {0}]   ;;  %s191_s2 = inlined_call_operand.vmem [shape: f32[1,16], index: 2, kind: output, shape index: {1}]  }
   0x1   :  { %15 = vst.msk [vmem:[#allocation2] sm:$0x1] %vm14_vm0, %v116_v0  ;;  %16 = vst.msk [vmem:[#allocation3] sm:$0x1] %vm14_vm0, %v116_v0  ;;  %v17_v1 = vld [vmem:[%s189_s0] sm:$0xff]  ;;  %v18_v2 = vld [vmem:[%s189_s0 + $0x8] sm:$0xff] }
   0x2   :  { %v19_v3 = vld [vmem:[%s189_s0 + $0x10] sm:$0xff]  ;;  %v20_v4 = vld [vmem:[%s189_s0 + $0x18] sm:$0xff]  ;;  %v28_v5 = vsel %vm27_vm1, %v17_v1, 0.0  ;;  %v29_v6 = vsel %vm27_vm1, %v18_v2, 0.0  ;;  %v21_v8 = vld [vmem:[%s189_s0 + $0x20] sm:$0xff]  ;;  %v55_v10 = vmul.f32 %v17_v1, %v17_v1  ;;  %v56_v12 = vmul.f32 %v18_v2, %v18_v2 }
   0x3   :  { %v31_v7 = vsel %vm27_vm1, %v19_v3, 0.0  ;;  %v30_v9 = vadd.f32 %v29_v6, %v28_v5  ;;  %v33_v11 = vsel %vm27_vm1, %v20_v4, 0.0  ;;  %v22_v13 = vld [vmem:[%s189_s0 + $0x28] sm:$0xff]  ;;  %v57_v15 = vmul.f32 %v19_v3, %v19_v3  ;;  %v23_v19 = vld [vmem:[%s189_s0 + $0x30] sm:$0xff]  ;;  %v24_v26 = vld [vmem:[%s189_s0 + $0x38] sm:$0xff] }
   0x4   :  { %v58_v16 = vmul.f32 %v20_v4, %v20_v4  ;;  %v35_v17 = vsel %vm27_vm1, %v21_v8, 0.0  ;;  %v59_v18 = vmul.f32 %v21_v8, %v21_v8  ;;  %v64_v21 = vsel %vm27_vm1, %v55_v10, 0.0  ;;  %v25_v32 = vld [vmem:[%s189_s0 + $0x40] sm:$0xff] }
   0x5   :  { %v32_v14 = vadd.f32 %v31_v7, %v30_v9  ;;  %v65_v22 = vsel %vm27_vm1, %v56_v12, 0.0  ;;  %v67_v23 = vsel %vm27_vm1, %v57_v15, 0.0  ;;  %v37_v24 = vsel %vm27_vm1, %v22_v13, 0.0 }
   0x6   :  { %v66_v25 = vadd.f32 %v65_v22, %v64_v21  ;;  %v60_v28 = vmul.f32 %v22_v13, %v22_v13  ;;  %v69_v29 = vsel %vm27_vm1, %v58_v16, 0.0  ;;  %v39_v30 = vsel %vm27_vm1, %v23_v19, 0.0 }
   0x7   :  { %v34_v20 = vadd.f32 %v33_v11, %v32_v14  ;;  %v61_v34 = vmul.f32 %v23_v19, %v23_v19  ;;  %v71_v35 = vsel %vm27_vm1, %v59_v18, 0.0  ;;  %v41_v36 = vsel %vm27_vm1, %v24_v26, 0.0 }
   0x8   :  { %v68_v31 = vadd.f32 %v67_v23, %v66_v25  ;;  %v62_v39 = vmul.f32 %v24_v26, %v24_v26  ;;  %v73_v40 = vsel %vm27_vm1, %v60_v28, 0.0  ;;  %v43_v41 = vsel %vm27_vm1, %v25_v32, 0.0  ;;  %v26_v60 = vld [vmem:[#allocation2] sm:$0x1]  ;;  %v54_v2 = vld [vmem:[#allocation3] sm:$0x1] }
   0x9   :  { %v36_v27 = vadd.f32 %v35_v17, %v34_v20  ;;  %v63_v44 = vmul.f32 %v25_v32, %v25_v32  ;;  %v75_v45 = vsel %vm27_vm1, %v61_v34, 0.0 }
   0xa   :  { %v70_v37 = vadd.f32 %v69_v29, %v68_v31  ;;  %v77_v48 = vsel %vm27_vm1, %v62_v39, 0.0 }
   0xb   :  { %v38_v33 = vadd.f32 %v37_v24, %v36_v27  ;;  %v79_v51 = vsel %vm27_vm1, %v63_v44, 0.0 }
   0xc   :  { %v72_v42 = vadd.f32 %v71_v35, %v70_v37 }
   0xd   :  { %v40_v38 = vadd.f32 %v39_v30, %v38_v33 }
   0xe   :  { %v74_v46 = vadd.f32 %v73_v40, %v72_v42 }
   0xf   :  { %v42_v43 = vadd.f32 %v41_v36, %v40_v38 }
  0x10   :  { %v76_v49 = vadd.f32 %v75_v45, %v74_v46 }
  0x11   :  { %v44_v47 = vadd.f32 %v43_v41, %v42_v43 }
  0x12   :  { %v78_v52 = vadd.f32 %v77_v48, %v76_v49 }
  0x13   :  { %v45_v50 = vrot.slane %v44_v47, 4 }
  0x14   :  { %v80_v54 = vadd.f32 %v79_v51, %v78_v52 }
  0x15   :  { %v46_v53 = vadd.f32 %v45_v50, %v44_v47 }
  0x16   :  { %v81_v56 = vrot.slane %v80_v54, 4 }
  0x17   :  { %v47_v55 = vrot.slane %v46_v53, 2 }
  0x18   :  { %v82_v58 = vadd.f32 %v81_v56, %v80_v54 }
  0x19   :  { %v48_v57 = vadd.f32 %v47_v55, %v46_v53 }
  0x1a   :  { %v83_v61 = vrot.slane %v82_v58, 2 }
  0x1b   :  { %v49_v59 = vrot.slane %v48_v57, 1 }
  0x1c   :  { %v84_v63 = vadd.f32 %v83_v61, %v82_v58 }
  0x1d   :  { %v50_v62 = vadd.f32 %v49_v59, %v48_v57 }
  0x1e   :  { %v85_v1 = vrot.slane %v84_v63, 1 }
  0x1f   :  { %v51_v0 = vadd.f32 %v50_v62, %v26_v60 }
  0x20   :  { %v86_v3 = vadd.f32 %v85_v1, %v84_v63 }
  0x21   :  { %53 = vst.msk [vmem:[#allocation2] sm:$0x1] %vm14_vm0, %v51_v0 }
  0x22   :  { %v87_v4 = vadd.f32 %v86_v3, %v54_v2 }
  0x24   :  { %88 = vst.msk [vmem:[#allocation3] sm:$0x1] %vm14_vm0, %v87_v4 }
  0x28   :  { %v92_v5 = vld [vmem:[#allocation2] sm:$0x1] }
  0x29   :  { %v93_v6 = vmul.f32 0.013888889, %v92_v5 }
  0x2b   :  { %v96_v7 = vmul.f32 %v93_v6, %v93_v6  ;;  %v94_v8 = vld [vmem:[#allocation3] sm:$0x1]  ;;  %v102_v13 = vsub.f32 0.0, %v93_v6 }
  0x2c   :  { %v95_v9 = vmul.f32 0.013888889, %v94_v8 }
  0x2e   :  { %v97_v10 = vsub.f32 %v95_v9, %v96_v7 }
  0x30   :  { %v98_v11 = vmax.f32 %v97_v10, 0.0 }
  0x32   :  { %v99_v12 = vadd.f32 1e-05, %v98_v11 }
  0x34   :  { %114 = vrsqrt.f32 %v99_v12 }
  0x3e   :  { %v115_v14 = vpop.eup %114 }
  0x3f   :  { %101 = vst.msk [vmem:[%s190_s1] sm:$0x1] %vm14_vm0, %v115_v14  ;;  %v103_v15 = vmul.f32 %v115_v14, %v102_v13 }
  0x41   :  { %104 = vst.msk [vmem:[%s191_s2] sm:$0x1] %vm14_vm0, %v103_v15 }

// kernel: mixstyle_densenet_forward.67
= control target key start
LH: loop header
LB: loop body
LE: loop exit
PB: predicated region body
PF: predicated region fallthrough
CT: control target
= control target key end

     0   :  { %v275_v0 = vmov 0.0   ;;  %vm276_vm0 = vmmov 0   ;;  %vm103_vm1 = vcmask 130048   ;;  %s375_s3 = inlined_call_operand.vmem [shape: bf16[16,128], index: 3, kind: input, shape index: {}]   ;;  %s376_s0 = inlined_call_operand.vmem [shape: f32[72,16], index: 0, kind: input, shape index: {}]   ;;  %s377_s1 = inlined_call_operand.vmem [shape: f32[1,16], index: 1, kind: input, shape index: {}]   ;;  %s378_s2 = inlined_call_operand.vmem [shape: f32[1,16], index: 2, kind: input, shape index: {}]   ;;  %s379_s4 = inlined_call_operand.vmem [shape: f32[72,128], index: 4, kind: output, shape index: {}]  }
   0x1   :  { %248 = vmatprep.subr.bf16.mxu0 %v275_v0  ;;  %v274_v1 = vld [vmem:[%s375_s3] sm:$0xff]   ;;  %250 = vmatprep.mubr.msk.bf16.mxu0 %vm276_vm0, %v275_v0  ;;  %v32_v3 = vld [vmem:[%s376_s0 + $0x8] sm:$0xff]  ;;  %v37_v8 = vld [vmem:[%s376_s0 + $0x30] sm:$0xff] }
   0x2   :  { %v31_v2 = vld [vmem:[%s376_s0] sm:$0xff]  ;;  %270 = vmatprep.subr.bf16.mxu1 %v275_v0  ;;  %262 = vmatprep.mubr.msk.bf16.mxu1 %vm276_vm0, %v275_v0  ;;  %v38_v9 = vld [vmem:[%s376_s0 + $0x38] sm:$0xff]  ;;  %v33_v12 = vld [vmem:[%s376_s0 + $0x10] sm:$0xff] }
   0x3   :  { %v234_v4 = vld [vmem:[%s377_s1] ss:$0 sm:$0xff]  ;;  %249 = vmatpush3.bf16.msra.mxu0 %v274_v1  ;;  %271 = vmatpush3.bf16.msra.mxu1 %v274_v1  ;;  %v34_v13 = vld [vmem:[%s376_s0 + $0x18] sm:$0xff]  ;;  %v36_v30 = vld [vmem:[%s376_s0 + $0x28] sm:$0xff] }
   0x4   :  { %v47_v5 = vmul.f32 %v234_v4, %v31_v2  ;;  %v48_v6 = vmul.f32 %v234_v4, %v32_v3  ;;  %v235_v7 = vld [vmem:[%s378_s2] ss:$0 sm:$0xff]  ;;  %v53_v10 = vmul.f32 %v234_v4, %v37_v8  ;;  %v54_v11 = vmul.f32 %v234_v4, %v38_v9 }
   0x5   :  { %v39_v14 = vld [vmem:[%s376_s0 + $0x40] sm:$0xff]  ;;  %v49_v17 = vmul.f32 %v234_v4, %v33_v12  ;;  %v50_v18 = vmul.f32 %v234_v4, %v34_v13  ;;  %v52_v36 = vmul.f32 %v234_v4, %v36_v30 }
   0x6   :  { %v63_v15 = vadd.f32 %v235_v7, %v47_v5  ;;  %v64_v16 = vadd.f32 %v235_v7, %v48_v6  ;;  %v69_v19 = vadd.f32 %v235_v7, %v53_v10  ;;  %v70_v20 = vadd.f32 %v235_v7, %v54_v11  ;;  %v35_v29 = vld [vmem:[%s376_s0 + $0x20] sm:$0xff] }
   0x7   :  { %v55_v21 = vmul.f32 %v234_v4, %v39_v14  ;;  %v65_v24 = vadd.f32 %v235_v7, %v49_v17  ;;  %v66_v25 = vadd.f32 %v235_v7, %v50_v18  ;;  %v51_v35 = vmul.f32 %v234_v4, %v35_v29 }
   0x8   :  { %v72_v22 = vmax.f32 %v63_v15, 0.0  ;;  %v73_v23 = vmax.f32 %v64_v16, 0.0  ;;  %v78_v26 = vmax.f32 %v69_v19, 0.0  ;;  %v79_v27 = vmax.f32 %v70_v20, 0.0 }
   0x9   :  { %v71_v28 = vadd.f32 %v235_v7, %v55_v21  ;;  %v74_v33 = vmax.f32 %v65_v24, 0.0  ;;  %v75_v34 = vmax.f32 %v66_v25, 0.0  ;;  %v67_v39 = vadd.f32 %v235_v7, %v51_v35 }
   0xa   :  { %v90_v31 = vpack.c.bf16 %v73_v23, %v72_v22  ;;  %v93_v32 = vpack.c.bf16 %v79_v27, %v78_v26  ;;  %v68_v40 = vadd.f32 %v235_v7, %v52_v36 }
   0xb   :  { %v80_v37 = vmax.f32 %v71_v28, 0.0  ;;  %v91_v38 = vpack.c.bf16 %v75_v34, %v74_v33  ;;  %v76_v42 = vmax.f32 %v67_v39, 0.0 }
   0xc   :  { %251 = vmatmul.mubr.msk.bf16.vlgmr.msra.gmra.mrb[0].mxu0 %vm103_vm1, %v90_v31  ;;  %263 = vmatmul.mubr.msk.bf16.vlgmr.msra.gmra.mrb[0].mxu1 %vm103_vm1, %v93_v32  ;;  %v77_v43 = vmax.f32 %v68_v40, 0.0 }
   0xd   :  { %254 = vmatprep.mubr.msk.bf16.mxu0 %vm276_vm0, %v275_v0  ;;  %266 = vmatprep.mubr.msk.bf16.mxu1 %vm276_vm0, %v275_v0  ;;  %v94_v41 = vpack.c.bf16 %v80_v37, %v80_v37 }
   0xe   :  { %v92_v44 = vpack.c.bf16 %v77_v43, %v76_v42 }
  0x14   :  { %255 = vmatmul.mubr.msk.bf16.gmra.mrb[4].mxu0 %vm103_vm1, %v91_v38  ;;  %267 = vmatmul.mubr.msk.bf16.gmra.mrb[4].mxu1 %vm103_vm1, %v94_v41 }
  0x15   :  { %258 = vmatprep.mubr.msk.bf16.mxu0 %vm276_vm0, %v275_v0 }
  0x1c   :  { %259 = vmatmul.mubr.msk.bf16.gmra.mrb[8].mxu0 %vm103_vm1, %v92_v44 }
  0xdf   :  { %v153_v45 = vpop.f32.mrb[0].mxu0  ;;  %v177_v47 = vpop.f32.mrb[0].mxu1 }
  0xe0   :  { %221 = vst [vmem:[%s379_s4] sm:$0xff] %v153_v45  ;;  %v252_v46 = vpop.f32.mrb[1].mxu0  ;;  %227 = vst [vmem:[%s379_s4 + $0x30] sm:$0xff] %v177_v47  ;;  %v264_v49 = vpop.f32.mrb[1].mxu1 }
  0xe1   :  { %v156_v48 = vpop.f32.mrb[2].mxu0  ;;  %v180_v51 = vpop.f32.mrb[2].mxu1 }
  0xe2   :  { %222 = vst [vmem:[%s379_s4 + $0x8] sm:$0xff] %v156_v48  ;;  %v253_v50 = vpop.f32.mrb[3].mxu0  ;;  %228 = vst [vmem:[%s379_s4 + $0x38] sm:$0xff] %v180_v51  ;;  %v265_v52 = vpop.f32.mrb[3].mxu1 }
  0xe7   :  { %v161_v53 = vpop.f32.mrb[4].mxu0  ;;  %v185_v55 = vpop.f32.mrb[4].mxu1 }
  0xe8   :  { %223 = vst [vmem:[%s379_s4 + $0x10] sm:$0xff] %v161_v53  ;;  %v256_v54 = vpop.f32.mrb[5].mxu0  ;;  %229 = vst [vmem:[%s379_s4 + $0x40] sm:$0xff] %v185_v55  ;;  %v268_v57 = vpop.f32.mrb[5].mxu1 }
  0xe9   :  { %v164_v56 = vpop.f32.mrb[6].mxu0  ;;  %v188_v59 = vpop.f32.mrb[6].mxu1 }
  0xea   :  { %224 = vst [vmem:[%s379_s4 + $0x18] sm:$0xff] %v164_v56  ;;  %v257_v58 = vpop.f32.mrb[7].mxu0  ;;  %v269_v60 = vpop.f32.mrb[7].mxu1 }
  0xef   :  { %v169_v61 = vpop.f32.mrb[8].mxu0 }
  0xf0   :  { %225 = vst [vmem:[%s379_s4 + $0x20] sm:$0xff] %v169_v61  ;;  %v260_v62 = vpop.f32.mrb[9].mxu0 }
  0xf1   :  { %v172_v63 = vpop.f32.mrb[10].mxu0 }
  0xf2   :  { %226 = vst [vmem:[%s379_s4 + $0x28] sm:$0xff] %v172_v63  ;;  %v261_v0 = vpop.f32.mrb[11].mxu0 }

// kernel: mixstyle_densenet_forward.70
= control target key start
LH: loop header
LB: loop body
LE: loop exit
PB: predicated region body
PF: predicated region fallthrough
CT: control target
= control target key end

     0   :  { %v354_v0 = vmov 0   ;;  %vm157_vm0 = vcmask 130048   ;;  %s456_s1 = inlined_call_operand.vmem [shape: bf16[144,128], index: 1, kind: input, shape index: {}]   ;;  %s457_s0 = inlined_call_operand.vmem [shape: bf16[72,144], index: 0, kind: input, shape index: {}]   ;;  %s458_s2 = inlined_call_operand.vmem [shape: f32[72,128], index: 2, kind: output, shape index: {}]  }
   0x1   :  { %173 = vmatprep.subr.bf16.mxu0 %v354_v0  ;;  %v331_v1 = vld [vmem:[%s456_s1] sm:$0xff]   ;;  %312 = vmatprep.subr.bf16.mxu1 %v354_v0  ;;  %v332_v2 = vld [vmem:[%s456_s1 + $0x8] sm:$0xff]   ;;  %v333_v3 = vld [vmem:[%s456_s1 + $0x10] sm:$0xff]  }
   0x2   :  { %174 = vmatpush1.bf16.msra.mxu0 %v331_v1  ;;  %321 = vmatpush1.bf16.msra.mxu1 %v331_v1  ;;  %v334_v4 = vld [vmem:[%s456_s1 + $0x18] sm:$0xff]   ;;  %v342_v5 = vld [vmem:[%s457_s0 + $0x4] ss:$8 sps:$4 sm:$0xff]   ;;  %v337_v9 = vld [vmem:[%s456_s1 + $0x30] sm:$0xff]  }
   0x3   :  { %175 = vmatprep.subr.bf16.mxu0 %v354_v0  ;;  %313 = vmatprep.subr.bf16.mxu1 %v354_v0  ;;  %v345_v6 = vld [vmem:[%s457_s0 + $0x34] ss:$8 sps:$4 sm:$0xff]   ;;  %v335_v7 = vld [vmem:[%s456_s1 + $0x20] sm:$0xff]   ;;  %v336_v8 = vld [vmem:[%s456_s1 + $0x28] sm:$0xff]  }
   0x4   :  { %307 = vmatprep.mubr.msk.bf16.mxu0 %vm157_vm0, %v342_v5  ;;  %310 = vmatprep.mubr.msk.bf16.mxu1 %vm157_vm0, %v345_v6  ;;  %v338_v10 = vld [vmem:[%s456_s1 + $0x38] sm:$0xff]   ;;  %v339_v11 = vld [vmem:[%s456_s1 + $0x40] sm:$0xff]  }
   0x5   :  { %v42_v12 = vld [vmem:[%s457_s0 + $0x40] sm:$0xff]  ;;  %v343_v14 = vld [vmem:[%s457_s0 + $0x30] ss:$8 sps:$4 sm:$0xff]   ;;  %v346_v15 = vld [vmem:[%s457_s0 + $0x14] ss:$8 sps:$4 sm:$0xff]  }
   0x6   :  { %176 = vmatpush1.bf16.msra.mxu0 %v332_v2  ;;  %322 = vmatpush1.bf16.msra.mxu1 %v332_v2  ;;  %v340_v13 = vld [vmem:[%s457_s0] ss:$8 sps:$4 sm:$0xff]   ;;  %v297_v16 = vcombine.high %v42_v12, %v42_v12  ;;  %v348_v17 = vld [vmem:[%s457_s0 + $0x10] ss:$8 sps:$4 sm:$0xff]   ;;  %v296_v18 = vcombine.low %v42_v12, %v42_v12  ;;  %v351_v19 = vld [vmem:[%s457_s0 + $0x24] ss:$8 sps:$4 sm:$0xff]  }
   0x7   :  { %177 = vmatprep.subr.bf16.mxu0 %v354_v0  ;;  %314 = vmatprep.subr.bf16.mxu1 %v354_v0  ;;  %v353_v20 = vld [vmem:[%s457_s0 + $0x20] ss:$8 sps:$4 sm:$0xff]  }
   0xa   :  { %178 = vmatpush1.bf16.msra.mxu0 %v333_v3  ;;  %323 = vmatpush1.bf16.msra.mxu1 %v333_v3 }
   0xb   :  { %179 = vmatprep.subr.bf16.mxu0 %v354_v0  ;;  %315 = vmatprep.subr.bf16.mxu1 %v354_v0 }
   0xe   :  { %180 = vmatpush1.bf16.msra.mxu0 %v334_v4  ;;  %324 = vmatpush1.bf16.msra.mxu1 %v334_v4 }
   0xf   :  { %181 = vmatprep.subr.bf16.mxu0 %v354_v0  ;;  %316 = vmatprep.subr.bf16.mxu1 %v354_v0 }
  0x12   :  { %182 = vmatpush1.bf16.msra.mxu0 %v335_v7  ;;  %325 = vmatpush1.bf16.msra.mxu1 %v335_v7 }
  0x13   :  { %183 = vmatprep.subr.bf16.mxu0 %v354_v0  ;;  %317 = vmatprep.subr.bf16.mxu1 %v354_v0 }
  0x16   :  { %184 = vmatpush1.bf16.msra.mxu0 %v336_v8  ;;  %326 = vmatpush1.bf16.msra.mxu1 %v336_v8 }
  0x17   :  { %185 = vmatprep.subr.bf16.mxu0 %v354_v0  ;;  %318 = vmatprep.subr.bf16.mxu1 %v354_v0 }
  0x1a   :  { %186 = vmatpush1.bf16.msra.mxu0 %v337_v9  ;;  %327 = vmatpush1.bf16.msra.mxu1 %v337_v9 }
  0x1b   :  { %187 = vmatprep.subr.bf16.mxu0 %v354_v0  ;;  %319 = vmatprep.subr.bf16.mxu1 %v354_v0 }
  0x1e   :  { %188 = vmatpush1.bf16.msra.mxu0 %v338_v10  ;;  %328 = vmatpush1.bf16.msra.mxu1 %v338_v10 }
  0x1f   :  { %189 = vmatprep.subr.bf16.mxu0 %v354_v0  ;;  %320 = vmatprep.subr.bf16.mxu1 %v354_v0 }
  0x22   :  { %190 = vmatpush1.bf16.msra.mxu0 %v339_v11  ;;  %329 = vmatpush1.bf16.msra.mxu1 %v339_v11 }
  0x25   :  { %206 = vmatmul.mubr.bf16.vlgmr.msra.gmra.mrb[0].mxu0 %v340_v13  ;;  %230 = vmatmul.mubr.bf16.vlgmr.msra.gmra.mrb[0].mxu1 %v343_v14 }
  0x26   :  { %308 = vmatprep.mubr.msk.bf16.mxu0 %vm157_vm0, %v346_v15  ;;  %311 = vmatprep.mubr.msk.bf16.mxu1 %vm157_vm0, %v297_v16 }
  0x2d   :  { %214 = vmatmul.mubr.bf16.gmra.mrb[4].mxu0 %v348_v17  ;;  %238 = vmatmul.mubr.bf16.gmra.mrb[4].mxu1 %v296_v18 }
  0x2e   :  { %309 = vmatprep.mubr.msk.bf16.mxu0 %vm157_vm0, %v351_v19 }
  0x35   :  { %222 = vmatmul.mubr.bf16.gmra.mrb[8].mxu0 %v353_v20 }
  0xf8   :  { %v207_v21 = vpop.f32.mrb[0].mxu0  ;;  %v231_v22 = vpop.f32.mrb[0].mxu1 }
  0xf9   :  { %275 = vst [vmem:[%s458_s2] sm:$0xff] %v207_v21  ;;  %v209_v23 = vpop.f32.mrb[1].mxu0  ;;  %281 = vst [vmem:[%s458_s2 + $0x30] sm:$0xff] %v231_v22  ;;  %v233_v24 = vpop.f32.mrb[1].mxu1 }
  0xfa   :  { %v210_v25 = vpop.f32.mrb[2].mxu0  ;;  %v234_v26 = vpop.f32.mrb[2].mxu1 }
  0xfb   :  { %276 = vst [vmem:[%s458_s2 + $0x8] sm:$0xff] %v210_v25  ;;  %v212_v27 = vpop.f32.mrb[3].mxu0  ;;  %282 = vst [vmem:[%s458_s2 + $0x38] sm:$0xff] %v234_v26  ;;  %v236_v28 = vpop.f32.mrb[3].mxu1 }
 0x100   :  { %v215_v29 = vpop.f32.mrb[4].mxu0  ;;  %v239_v30 = vpop.f32.mrb[4].mxu1 }
 0x101   :  { %277 = vst [vmem:[%s458_s2 + $0x10] sm:$0xff] %v215_v29  ;;  %v217_v31 = vpop.f32.mrb[5].mxu0  ;;  %283 = vst [vmem:[%s458_s2 + $0x40] sm:$0xff] %v239_v30  ;;  %v241_v32 = vpop.f32.mrb[5].mxu1 }
 0x102   :  { %v218_v33 = vpop.f32.mrb[6].mxu0  ;;  %v242_v34 = vpop.f32.mrb[6].mxu1 }
 0x103   :  { %278 = vst [vmem:[%s458_s2 + $0x18] sm:$0xff] %v218_v33  ;;  %v220_v35 = vpop.f32.mrb[7].mxu0  ;;  %v243_v36 = vpop.f32.mrb[7].mxu1 }
 0x108   :  { %v223_v37 = vpop.f32.mrb[8].mxu0 }
 0x109   :  { %279 = vst [vmem:[%s458_s2 + $0x20] sm:$0xff] %v223_v37  ;;  %v225_v38 = vpop.f32.mrb[9].mxu0 }
 0x10a   :  { %v226_v39 = vpop.f32.mrb[10].mxu0 }
 0x10b   :  { %280 = vst [vmem:[%s458_s2 + $0x28] sm:$0xff] %v226_v39  ;;  %v228_v40 = vpop.f32.mrb[11].mxu0 }

// kernel: mixstyle_densenet_forward.71
= control target key start
LH: loop header
LB: loop body
LE: loop exit
PB: predicated region body
PF: predicated region fallthrough
CT: control target
= control target key end

     0   :  { %vm14_vm0 = vcmask 188416   ;;  %vm27_vm1 = vcmask 195584   ;;  %v116_v0 = vmov 0.0   ;;  %s189_s0 = inlined_call_operand.vmem [shape: f32[72,24], index: 0, kind: input, shape index: {}]   ;;  %s190_s1 = inlined_call_operand.vmem [shape: f32[1,24], index: 1, kind: output, shape index: {0}]   ;;  %s191_s2 = inlined_call_operand.vmem [shape: f32[1,24], index: 2, kind: output, shape index: {1}]  }
   0x1   :  { %15 = vst.msk [vmem:[#allocation2] sm:$0x1] %vm14_vm0, %v116_v0  ;;  %16 = vst.msk [vmem:[#allocation3] sm:$0x1] %vm14_vm0, %v116_v0  ;;  %v17_v1 = vld [vmem:[%s189_s0] sm:$0xff]  ;;  %v18_v2 = vld [vmem:[%s189_s0 + $0x8] sm:$0xff] }
   0x2   :  { %v19_v3 = vld [vmem:[%s189_s0 + $0x10] sm:$0xff]  ;;  %v20_v4 = vld [vmem:[%s189_s0 + $0x18] sm:$0xff]  ;;  %v28_v5 = vsel %vm27_vm1, %v17_v1, 0.0  ;;  %v29_v6 = vsel %vm27_vm1, %v18_v2, 0.0  ;;  %v21_v8 = vld [vmem:[%s189_s0 + $0x20] sm:$0xff]  ;;  %v55_v10 = vmul.f32 %v17_v1, %v17_v1  ;;  %v56_v12 = vmul.f32 %v18_v2, %v18_v2 }
   0x3   :  { %v31_v7 = vsel %vm27_vm1, %v19_v3, 0.0  ;;  %v30_v9 = vadd.f32 %v29_v6, %v28_v5  ;;  %v33_v11 = vsel %vm27_vm1, %v20_v4, 0.0  ;;  %v22_v13 = vld [vmem:[%s189_s0 + $0x28] sm:$0xff]  ;;  %v57_v15 = vmul.f32 %v19_v3, %v19_v3  ;;  %v23_v19 = vld [vmem:[%s189_s0 + $0x30] sm:$0xff]  ;;  %v24_v26 = vld [vmem:[%s189_s0 + $0x38] sm:$0xff] }
   0x4   :  { %v58_v16 = vmul.f32 %v20_v4, %v20_v4  ;;  %v35_v17 = vsel %vm27_vm1, %v21_v8, 0.0  ;;  %v59_v18 = vmul.f32 %v21_v8, %v21_v8  ;;  %v64_v21 = vsel %vm27_vm1, %v55_v10, 0.0  ;;  %v25_v32 = vld [vmem:[%s189_s0 + $0x40] sm:$0xff] }
   0x5   :  { %v32_v14 = vadd.f32 %v31_v7, %v30_v9  ;;  %v65_v22 = vsel %vm27_vm1, %v56_v12, 0.0  ;;  %v67_v23 = vsel %vm27_vm1, %v57_v15, 0.0  ;;  %v37_v24 = vsel %vm27_vm1, %v22_v13, 0.0 }
   0x6   :  { %v66_v25 = vadd.f32 %v65_v22, %v64_v21  ;;  %v60_v28 = vmul.f32 %v22_v13, %v22_v13  ;;  %v69_v29 = vsel %vm27_vm1, %v58_v16, 0.0  ;;  %v39_v30 = vsel %vm27_vm1, %v23_v19, 0.0 }
   0x7   :  { %v34_v20 = vadd.f32 %v33_v11, %v32_v14  ;;  %v61_v34 = vmul.f32 %v23_v19, %v23_v19  ;;  %v71_v35 = vsel %vm27_vm1, %v59_v18, 0.0  ;;  %v41_v36 = vsel %vm27_vm1, %v24_v26, 0.0 }
   0x8   :  { %v68_v31 = vadd.f32 %v67_v23, %v66_v25  ;;  %v62_v39 = vmul.f32 %v24_v26, %v24_v26  ;;  %v73_v40 = vsel %vm27_vm1, %v60_v28, 0.0  ;;  %v43_v41 = vsel %vm27_vm1, %v25_v32, 0.0  ;;  %v26_v60 = vld [vmem:[#allocation2] sm:$0x1]  ;;  %v54_v2 = vld [vmem:[#allocation3] sm:$0x1] }
   0x9   :  { %v36_v27 = vadd.f32 %v35_v17, %v34_v20  ;;  %v63_v44 = vmul.f32 %v25_v32, %v25_v32  ;;  %v75_v45 = vsel %vm27_vm1, %v61_v34, 0.0 }
   0xa   :  { %v70_v37 = vadd.f32 %v69_v29, %v68_v31  ;;  %v77_v48 = vsel %vm27_vm1, %v62_v39, 0.0 }
   0xb   :  { %v38_v33 = vadd.f32 %v37_v24, %v36_v27  ;;  %v79_v51 = vsel %vm27_vm1, %v63_v44, 0.0 }
   0xc   :  { %v72_v42 = vadd.f32 %v71_v35, %v70_v37 }
   0xd   :  { %v40_v38 = vadd.f32 %v39_v30, %v38_v33 }
   0xe   :  { %v74_v46 = vadd.f32 %v73_v40, %v72_v42 }
   0xf   :  { %v42_v43 = vadd.f32 %v41_v36, %v40_v38 }
  0x10   :  { %v76_v49 = vadd.f32 %v75_v45, %v74_v46 }
  0x11   :  { %v44_v47 = vadd.f32 %v43_v41, %v42_v43 }
  0x12   :  { %v78_v52 = vadd.f32 %v77_v48, %v76_v49 }
  0x13   :  { %v45_v50 = vrot.slane %v44_v47, 4 }
  0x14   :  { %v80_v54 = vadd.f32 %v79_v51, %v78_v52 }
  0x15   :  { %v46_v53 = vadd.f32 %v45_v50, %v44_v47 }
  0x16   :  { %v81_v56 = vrot.slane %v80_v54, 4 }
  0x17   :  { %v47_v55 = vrot.slane %v46_v53, 2 }
  0x18   :  { %v82_v58 = vadd.f32 %v81_v56, %v80_v54 }
  0x19   :  { %v48_v57 = vadd.f32 %v47_v55, %v46_v53 }
  0x1a   :  { %v83_v61 = vrot.slane %v82_v58, 2 }
  0x1b   :  { %v49_v59 = vrot.slane %v48_v57, 1 }
  0x1c   :  { %v84_v63 = vadd.f32 %v83_v61, %v82_v58 }
  0x1d   :  { %v50_v62 = vadd.f32 %v49_v59, %v48_v57 }
  0x1e   :  { %v85_v1 = vrot.slane %v84_v63, 1 }
  0x1f   :  { %v51_v0 = vadd.f32 %v50_v62, %v26_v60 }
  0x20   :  { %v86_v3 = vadd.f32 %v85_v1, %v84_v63 }
  0x21   :  { %53 = vst.msk [vmem:[#allocation2] sm:$0x1] %vm14_vm0, %v51_v0 }
  0x22   :  { %v87_v4 = vadd.f32 %v86_v3, %v54_v2 }
  0x24   :  { %88 = vst.msk [vmem:[#allocation3] sm:$0x1] %vm14_vm0, %v87_v4 }
  0x28   :  { %v92_v5 = vld [vmem:[#allocation2] sm:$0x1] }
  0x29   :  { %v93_v6 = vmul.f32 0.013888889, %v92_v5 }
  0x2b   :  { %v96_v7 = vmul.f32 %v93_v6, %v93_v6  ;;  %v94_v8 = vld [vmem:[#allocation3] sm:$0x1]  ;;  %v102_v13 = vsub.f32 0.0, %v93_v6 }
  0x2c   :  { %v95_v9 = vmul.f32 0.013888889, %v94_v8 }
  0x2e   :  { %v97_v10 = vsub.f32 %v95_v9, %v96_v7 }
  0x30   :  { %v98_v11 = vmax.f32 %v97_v10, 0.0 }
  0x32   :  { %v99_v12 = vadd.f32 1e-05, %v98_v11 }
  0x34   :  { %114 = vrsqrt.f32 %v99_v12 }
  0x3e   :  { %v115_v14 = vpop.eup %114 }
  0x3f   :  { %101 = vst.msk [vmem:[%s190_s1] sm:$0x1] %vm14_vm0, %v115_v14  ;;  %v103_v15 = vmul.f32 %v115_v14, %v102_v13 }
  0x41   :  { %104 = vst.msk [vmem:[%s191_s2] sm:$0x1] %vm14_vm0, %v103_v15 }

// kernel: mixstyle_densenet_forward.72
= control target key start
LH: loop header
LB: loop body
LE: loop exit
PB: predicated region body
PF: predicated region fallthrough
CT: control target
= control target key end

     0   :  { %v290_v0 = vmov 0.0   ;;  %vm123_vm0 = vcmask 1043456   ;;  %vm291_vm1 = vmmov 0   ;;  %vm107_vm2 = vcmask 195584   ;;  %s402_s3 = inlined_call_operand.vmem [shape: bf16[24,128], index: 3, kind: input, shape index: {}]   ;;  %s403_s0 = inlined_call_operand.vmem [shape: f32[72,24], index: 0, kind: input, shape index: {}]   ;;  %s404_s1 = inlined_call_operand.vmem [shape: f32[1,24], index: 1, kind: input, shape index: {}]   ;;  %s405_s2 = inlined_call_operand.vmem [shape: f32[1,24], index: 2, kind: input, shape index: {}]   ;;  %s406_s4 = inlined_call_operand.vmem [shape: f32[72,128], index: 4, kind: output, shape index: {}]  }
   0x1   :  { %258 = vmatprep.subr.bf16.mxu0 %v290_v0  ;;  %v288_v1 = vld [vmem:[%s402_s3] sm:$0xff]   ;;  %282 = vmatprep.subr.bf16.mxu1 %v290_v0  ;;  %v289_v2 = vld [vmem:[%s402_s3 + $0x8] ss:$0 sps:$4 sm:$0xff]   ;;  %v37_v10 = vld [vmem:[%s403_s0 + $0x30] sm:$0xff] }
   0x2   :  { %262 = vmatprep.mubr.msk.bf16.mxu0 %vm291_vm1, %v290_v0  ;;  %v31_v3 = vld [vmem:[%s403_s0] sm:$0xff]  ;;  %274 = vmatprep.mubr.msk.bf16.mxu1 %vm291_vm1, %v290_v0  ;;  %v32_v4 = vld [vmem:[%s403_s0 + $0x8] sm:$0xff]  ;;  %v125_v7 = vsel %vm123_vm0, %v289_v2, 0  ;;  %v38_v11 = vld [vmem:[%s403_s0 + $0x38] sm:$0xff] }
   0x3   :  { %259 = vmatpush3.bf16.msra.mxu0 %v288_v1  ;;  %284 = vmatpush3.bf16.msra.mxu1 %v288_v1  ;;  %v242_v5 = vld [vmem:[%s404_s1] ss:$0 sm:$0xff]  ;;  %v33_v12 = vld [vmem:[%s403_s0 + $0x10] sm:$0xff]  ;;  %v34_v15 = vld [vmem:[%s403_s0 + $0x18] sm:$0xff] }
   0x4   :  { %v243_v6 = vld [vmem:[%s405_s2] ss:$0 sm:$0xff]  ;;  %260 = vmatprep.subr.bf16.mxu0 %v290_v0  ;;  %v47_v8 = vmul.f32 %v242_v5, %v31_v3  ;;  %v48_v9 = vmul.f32 %v242_v5, %v32_v4  ;;  %283 = vmatprep.subr.bf16.mxu1 %v290_v0  ;;  %v53_v13 = vmul.f32 %v242_v5, %v37_v10  ;;  %v36_v32 = vld [vmem:[%s403_s0 + $0x28] sm:$0xff] }
   0x5   :  { %v54_v14 = vmul.f32 %v242_v5, %v38_v11  ;;  %v49_v16 = vmul.f32 %v242_v5, %v33_v12  ;;  %v39_v17 = vld [vmem:[%s403_s0 + $0x40] sm:$0xff]  ;;  %v50_v20 = vmul.f32 %v242_v5, %v34_v15  ;;  %v52_v38 = vmul.f32 %v242_v5, %v36_v32 }
   0x6   :  { %v63_v18 = vadd.f32 %v243_v6, %v47_v8  ;;  %v64_v19 = vadd.f32 %v243_v6, %v48_v9  ;;  %v55_v21 = vmul.f32 %v242_v5, %v39_v17  ;;  %v69_v22 = vadd.f32 %v243_v6, %v53_v13  ;;  %v35_v31 = vld [vmem:[%s403_s0 + $0x20] sm:$0xff] }
   0x7   :  { %261 = vmatpush3.bf16.msra.mxu0 %v125_v7  ;;  %285 = vmatpush3.bf16.msra.mxu1 %v125_v7  ;;  %v70_v23 = vadd.f32 %v243_v6, %v54_v14  ;;  %v65_v26 = vadd.f32 %v243_v6, %v49_v16  ;;  %v66_v27 = vadd.f32 %v243_v6, %v50_v20 }
   0x8   :  { %v72_v24 = vmax.f32 %v63_v18, 0.0  ;;  %v73_v25 = vmax.f32 %v64_v19, 0.0  ;;  %v78_v28 = vmax.f32 %v69_v22, 0.0  ;;  %v71_v30 = vadd.f32 %v243_v6, %v55_v21 }
   0x9   :  { %v79_v29 = vmax.f32 %v70_v23, 0.0  ;;  %v74_v35 = vmax.f32 %v65_v26, 0.0  ;;  %v75_v36 = vmax.f32 %v66_v27, 0.0  ;;  %v51_v37 = vmul.f32 %v242_v5, %v35_v31 }
   0xa   :  { %v90_v33 = vpack.c.bf16 %v73_v25, %v72_v24  ;;  %v80_v39 = vmax.f32 %v71_v30, 0.0  ;;  %v68_v42 = vadd.f32 %v243_v6, %v52_v38 }
   0xb   :  { %v93_v34 = vpack.c.bf16 %v79_v29, %v78_v28  ;;  %v91_v40 = vpack.c.bf16 %v75_v36, %v74_v35  ;;  %v67_v41 = vadd.f32 %v243_v6, %v51_v37 }
   0xc   :  { %263 = vmatmul.mubr.msk.bf16.vlgmr.msra.gmra.mrb[0].mxu0 %vm107_vm2, %v90_v33  ;;  %v94_v43 = vpack.c.bf16 %v80_v39, %v80_v39  ;;  %v77_v45 = vmax.f32 %v68_v42, 0.0 }
   0xd   :  { %275 = vmatmul.mubr.msk.bf16.vlgmr.msra.gmra.mrb[0].mxu1 %vm107_vm2, %v93_v34  ;;  %266 = vmatprep.mubr.msk.bf16.mxu0 %vm291_vm1, %v290_v0  ;;  %v76_v44 = vmax.f32 %v67_v41, 0.0 }
   0xe   :  { %278 = vmatprep.mubr.msk.bf16.mxu1 %vm291_vm1, %v290_v0 }
   0xf   :  { %v92_v46 = vpack.c.bf16 %v77_v45, %v76_v44 }
  0x14   :  { %267 = vmatmul.mubr.msk.bf16.gmra.mrb[4].mxu0 %vm107_vm2, %v91_v40 }
  0x15   :  { %279 = vmatmul.mubr.msk.bf16.gmra.mrb[4].mxu1 %vm107_vm2, %v94_v43  ;;  %270 = vmatprep.mubr.msk.bf16.mxu0 %vm291_vm1, %v290_v0 }
  0x1c   :  { %271 = vmatmul.mubr.msk.bf16.gmra.mrb[8].mxu0 %vm107_vm2, %v92_v46 }
  0xdf   :  { %v161_v47 = vpop.f32.mrb[0].mxu0 }
  0xe0   :  { %229 = vst [vmem:[%s406_s4] sm:$0xff] %v161_v47  ;;  %v264_v48 = vpop.f32.mrb[1].mxu0  ;;  %v185_v49 = vpop.f32.mrb[0].mxu1 }
  0xe1   :  { %v164_v50 = vpop.f32.mrb[2].mxu0  ;;  %235 = vst [vmem:[%s406_s4 + $0x30] sm:$0xff] %v185_v49  ;;  %v276_v51 = vpop.f32.mrb[1].mxu1 }
  0xe2   :  { %230 = vst [vmem:[%s406_s4 + $0x8] sm:$0xff] %v164_v50  ;;  %v265_v52 = vpop.f32.mrb[3].mxu0  ;;  %v188_v53 = vpop.f32.mrb[2].mxu1 }
  0xe3   :  { %236 = vst [vmem:[%s406_s4 + $0x38] sm:$0xff] %v188_v53  ;;  %v277_v54 = vpop.f32.mrb[3].mxu1 }
  0xe7   :  { %v169_v55 = vpop.f32.mrb[4].mxu0 }
  0xe8   :  { %231 = vst [vmem:[%s406_s4 + $0x10] sm:$0xff] %v169_v55  ;;  %v268_v56 = vpop.f32.mrb[5].mxu0  ;;  %v193_v57 = vpop.f32.mrb[4].mxu1 }
  0xe9   :  { %v172_v58 = vpop.f32.mrb[6].mxu0  ;;  %237 = vst [vmem:[%s406_s4 + $0x40] sm:$0xff] %v193_v57  ;;  %v280_v59 = vpop.f32.mrb[5].mxu1 }
  0xea   :  { %232 = vst [vmem:[%s406_s4 + $0x18] sm:$0xff] %v172_v58  ;;  %v269_v60 = vpop.f32.mrb[7].mxu0  ;;  %v196_v61 = vpop.f32.mrb[6].mxu1 }
  0xeb   :  { %v281_v62 = vpop.f32.mrb[7].mxu1 }
  0xef   :  { %v177_v63 = vpop.f32.mrb[8].mxu0 }
  0xf0   :  { %233 = vst [vmem:[%s406_s4 + $0x20] sm:$0xff] %v177_v63  ;;  %v272_v0 = vpop.f32.mrb[9].mxu0 }
  0xf1   :  { %v180_v1 = vpop.f32.mrb[10].mxu0 }
  0xf2   :  { %234 = vst [vmem:[%s406_s4 + $0x28] sm:$0xff] %v180_v1  ;;  %v273_v2 = vpop.f32.mrb[11].mxu0 }

// kernel: mixstyle_densenet_forward.76
= control target key start
LH: loop header
LB: loop body
LE: loop exit
PB: predicated region body
PF: predicated region fallthrough
CT: control target
= control target key end

     0   :  { %vm14_vm0 = vcmask 253952   ;;  %vm27_vm1 = vcmask 261120   ;;  %v116_v0 = vmov 0.0   ;;  %s189_s0 = inlined_call_operand.vmem [shape: f32[72,32], index: 0, kind: input, shape index: {}]   ;;  %s190_s1 = inlined_call_operand.vmem [shape: f32[1,32], index: 1, kind: output, shape index: {0}]   ;;  %s191_s2 = inlined_call_operand.vmem [shape: f32[1,32], index: 2, kind: output, shape index: {1}]  }
   0x1   :  { %15 = vst.msk [vmem:[#allocation2] sm:$0x1] %vm14_vm0, %v116_v0  ;;  %16 = vst.msk [vmem:[#allocation3] sm:$0x1] %vm14_vm0, %v116_v0  ;;  %v17_v1 = vld [vmem:[%s189_s0] sm:$0xff]  ;;  %v18_v2 = vld [vmem:[%s189_s0 + $0x8] sm:$0xff] }
   0x2   :  { %v19_v3 = vld [vmem:[%s189_s0 + $0x10] sm:$0xff]  ;;  %v20_v4 = vld [vmem:[%s189_s0 + $0x18] sm:$0xff]  ;;  %v28_v5 = vsel %vm27_vm1, %v17_v1, 0.0  ;;  %v29_v6 = vsel %vm27_vm1, %v18_v2, 0.0  ;;  %v21_v8 = vld [vmem:[%s189_s0 + $0x20] sm:$0xff]  ;;  %v55_v10 = vmul.f32 %v17_v1, %v17_v1  ;;  %v56_v12 = vmul.f32 %v18_v2, %v18_v2 }
   0x3   :  { %v31_v7 = vsel %vm27_vm1, %v19_v3, 0.0  ;;  %v30_v9 = vadd.f32 %v29_v6, %v28_v5  ;;  %v33_v11 = vsel %vm27_vm1, %v20_v4, 0.0  ;;  %v22_v13 = vld [vmem:[%s189_s0 + $0x28] sm:$0xff]  ;;  %v57_v15 = vmul.f32 %v19_v3, %v19_v3  ;;  %v23_v19 = vld [vmem:[%s189_s0 + $0x30] sm:$0xff]  ;;  %v24_v26 = vld [vmem:[%s189_s0 + $0x38] sm:$0xff] }
   0x4   :  { %v58_v16 = vmul.f32 %v20_v4, %v20_v4  ;;  %v35_v17 = vsel %vm27_vm1, %v21_v8, 0.0  ;;  %v59_v18 = vmul.f32 %v21_v8, %v21_v8  ;;  %v64_v21 = vsel %vm27_vm1, %v55_v10, 0.0  ;;  %v25_v32 = vld [vmem:[%s189_s0 + $0x40] sm:$0xff] }
   0x5   :  { %v32_v14 = vadd.f32 %v31_v7, %v30_v9  ;;  %v65_v22 = vsel %vm27_vm1, %v56_v12, 0.0  ;;  %v67_v23 = vsel %vm27_vm1, %v57_v15, 0.0  ;;  %v37_v24 = vsel %vm27_vm1, %v22_v13, 0.0 }
   0x6   :  { %v66_v25 = vadd.f32 %v65_v22, %v64_v21  ;;  %v60_v28 = vmul.f32 %v22_v13, %v22_v13  ;;  %v69_v29 = vsel %vm27_vm1, %v58_v16, 0.0  ;;  %v39_v30 = vsel %vm27_vm1, %v23_v19, 0.0 }
   0x7   :  { %v34_v20 = vadd.f32 %v33_v11, %v32_v14  ;;  %v61_v34 = vmul.f32 %v23_v19, %v23_v19  ;;  %v71_v35 = vsel %vm27_vm1, %v59_v18, 0.0  ;;  %v41_v36 = vsel %vm27_vm1, %v24_v26, 0.0 }
   0x8   :  { %v68_v31 = vadd.f32 %v67_v23, %v66_v25  ;;  %v62_v39 = vmul.f32 %v24_v26, %v24_v26  ;;  %v73_v40 = vsel %vm27_vm1, %v60_v28, 0.0  ;;  %v43_v41 = vsel %vm27_vm1, %v25_v32, 0.0  ;;  %v26_v60 = vld [vmem:[#allocation2] sm:$0x1]  ;;  %v54_v2 = vld [vmem:[#allocation3] sm:$0x1] }
   0x9   :  { %v36_v27 = vadd.f32 %v35_v17, %v34_v20  ;;  %v63_v44 = vmul.f32 %v25_v32, %v25_v32  ;;  %v75_v45 = vsel %vm27_vm1, %v61_v34, 0.0 }
   0xa   :  { %v70_v37 = vadd.f32 %v69_v29, %v68_v31  ;;  %v77_v48 = vsel %vm27_vm1, %v62_v39, 0.0 }
   0xb   :  { %v38_v33 = vadd.f32 %v37_v24, %v36_v27  ;;  %v79_v51 = vsel %vm27_vm1, %v63_v44, 0.0 }
   0xc   :  { %v72_v42 = vadd.f32 %v71_v35, %v70_v37 }
   0xd   :  { %v40_v38 = vadd.f32 %v39_v30, %v38_v33 }
   0xe   :  { %v74_v46 = vadd.f32 %v73_v40, %v72_v42 }
   0xf   :  { %v42_v43 = vadd.f32 %v41_v36, %v40_v38 }
  0x10   :  { %v76_v49 = vadd.f32 %v75_v45, %v74_v46 }
  0x11   :  { %v44_v47 = vadd.f32 %v43_v41, %v42_v43 }
  0x12   :  { %v78_v52 = vadd.f32 %v77_v48, %v76_v49 }
  0x13   :  { %v45_v50 = vrot.slane %v44_v47, 4 }
  0x14   :  { %v80_v54 = vadd.f32 %v79_v51, %v78_v52 }
  0x15   :  { %v46_v53 = vadd.f32 %v45_v50, %v44_v47 }
  0x16   :  { %v81_v56 = vrot.slane %v80_v54, 4 }
  0x17   :  { %v47_v55 = vrot.slane %v46_v53, 2 }
  0x18   :  { %v82_v58 = vadd.f32 %v81_v56, %v80_v54 }
  0x19   :  { %v48_v57 = vadd.f32 %v47_v55, %v46_v53 }
  0x1a   :  { %v83_v61 = vrot.slane %v82_v58, 2 }
  0x1b   :  { %v49_v59 = vrot.slane %v48_v57, 1 }
  0x1c   :  { %v84_v63 = vadd.f32 %v83_v61, %v82_v58 }
  0x1d   :  { %v50_v62 = vadd.f32 %v49_v59, %v48_v57 }
  0x1e   :  { %v85_v1 = vrot.slane %v84_v63, 1 }
  0x1f   :  { %v51_v0 = vadd.f32 %v50_v62, %v26_v60 }
  0x20   :  { %v86_v3 = vadd.f32 %v85_v1, %v84_v63 }
  0x21   :  { %53 = vst.msk [vmem:[#allocation2] sm:$0x1] %vm14_vm0, %v51_v0 }
  0x22   :  { %v87_v4 = vadd.f32 %v86_v3, %v54_v2 }
  0x24   :  { %88 = vst.msk [vmem:[#allocation3] sm:$0x1] %vm14_vm0, %v87_v4 }
  0x28   :  { %v92_v5 = vld [vmem:[#allocation2] sm:$0x1] }
  0x29   :  { %v93_v6 = vmul.f32 0.013888889, %v92_v5 }
  0x2b   :  { %v96_v7 = vmul.f32 %v93_v6, %v93_v6  ;;  %v94_v8 = vld [vmem:[#allocation3] sm:$0x1]  ;;  %v102_v13 = vsub.f32 0.0, %v93_v6 }
  0x2c   :  { %v95_v9 = vmul.f32 0.013888889, %v94_v8 }
  0x2e   :  { %v97_v10 = vsub.f32 %v95_v9, %v96_v7 }
  0x30   :  { %v98_v11 = vmax.f32 %v97_v10, 0.0 }
  0x32   :  { %v99_v12 = vadd.f32 1e-05, %v98_v11 }
  0x34   :  { %114 = vrsqrt.f32 %v99_v12 }
  0x3e   :  { %v115_v14 = vpop.eup %114 }
  0x3f   :  { %101 = vst.msk [vmem:[%s190_s1] sm:$0x1] %vm14_vm0, %v115_v14  ;;  %v103_v15 = vmul.f32 %v115_v14, %v102_v13 }
  0x41   :  { %104 = vst.msk [vmem:[%s191_s2] sm:$0x1] %vm14_vm0, %v103_v15 }

// kernel: mixstyle_densenet_forward.77
= control target key start
LH: loop header
LB: loop body
LE: loop exit
PB: predicated region body
PF: predicated region fallthrough
CT: control target
= control target key end

     0   :  { %v290_v0 = vmov 0.0   ;;  %vm291_vm0 = vmmov 0   ;;  %vm111_vm1 = vcmask 261120   ;;  %s402_s3 = inlined_call_operand.vmem [shape: bf16[32,128], index: 3, kind: input, shape index: {}]   ;;  %s403_s0 = inlined_call_operand.vmem [shape: f32[72,32], index: 0, kind: input, shape index: {}]   ;;  %s404_s1 = inlined_call_operand.vmem [shape: f32[1,32], index: 1, kind: input, shape index: {}]   ;;  %s405_s2 = inlined_call_operand.vmem [shape: f32[1,32], index: 2, kind: input, shape index: {}]   ;;  %s406_s4 = inlined_call_operand.vmem [shape: f32[72,128], index: 4, kind: output, shape index: {}]  }
   0x1   :  { %258 = vmatprep.subr.bf16.mxu0 %v290_v0  ;;  %v288_v1 = vld [vmem:[%s402_s3] sm:$0xff]   ;;  %282 = vmatprep.subr.bf16.mxu1 %v290_v0  ;;  %v289_v2 = vld [vmem:[%s402_s3 + $0x8] sm:$0xff]   ;;  %v37_v9 = vld [vmem:[%s403_s0 + $0x30] sm:$0xff] }
   0x2   :  { %262 = vmatprep.mubr.msk.bf16.mxu0 %vm291_vm0, %v290_v0  ;;  %274 = vmatprep.mubr.msk.bf16.mxu1 %vm291_vm0, %v290_v0  ;;  %v31_v3 = vld [vmem:[%s403_s0] sm:$0xff]  ;;  %v32_v4 = vld [vmem:[%s403_s0 + $0x8] sm:$0xff]  ;;  %v38_v10 = vld [vmem:[%s403_s0 + $0x38] sm:$0xff] }
   0x3   :  { %259 = vmatpush3.bf16.msra.mxu0 %v288_v1  ;;  %284 = vmatpush3.bf16.msra.mxu1 %v288_v1  ;;  %v242_v5 = vld [vmem:[%s404_s1] ss:$0 sm:$0xff]  ;;  %v33_v13 = vld [vmem:[%s403_s0 + $0x10] sm:$0xff]  ;;  %v34_v14 = vld [vmem:[%s403_s0 + $0x18] sm:$0xff] }
   0x4   :  { %260 = vmatprep.subr.bf16.mxu0 %v290_v0  ;;  %v47_v6 = vmul.f32 %v242_v5, %v31_v3  ;;  %v48_v7 = vmul.f32 %v242_v5, %v32_v4  ;;  %v243_v8 = vld [vmem:[%s405_s2] ss:$0 sm:$0xff]  ;;  %283 = vmatprep.subr.bf16.mxu1 %v290_v0  ;;  %v53_v11 = vmul.f32 %v242_v5, %v37_v9  ;;  %v36_v31 = vld [vmem:[%s403_s0 + $0x28] sm:$0xff] }
   0x5   :  { %v54_v12 = vmul.f32 %v242_v5, %v38_v10  ;;  %v39_v15 = vld [vmem:[%s403_s0 + $0x40] sm:$0xff]  ;;  %v49_v18 = vmul.f32 %v242_v5, %v33_v13  ;;  %v50_v19 = vmul.f32 %v242_v5, %v34_v14  ;;  %v52_v37 = vmul.f32 %v242_v5, %v36_v31 }
   0x6   :  { %v63_v16 = vadd.f32 %v243_v8, %v47_v6  ;;  %v64_v17 = vadd.f32 %v243_v8, %v48_v7  ;;  %v69_v20 = vadd.f32 %v243_v8, %v53_v11  ;;  %v55_v22 = vmul.f32 %v242_v5, %v39_v15  ;;  %v35_v30 = vld [vmem:[%s403_s0 + $0x20] sm:$0xff] }
   0x7   :  { %261 = vmatpush3.bf16.msra.mxu0 %v289_v2  ;;  %285 = vmatpush3.bf16.msra.mxu1 %v289_v2  ;;  %v70_v21 = vadd.f32 %v243_v8, %v54_v12  ;;  %v65_v25 = vadd.f32 %v243_v8, %v49_v18  ;;  %v66_v26 = vadd.f32 %v243_v8, %v50_v19 }
   0x8   :  { %v72_v23 = vmax.f32 %v63_v16, 0.0  ;;  %v73_v24 = vmax.f32 %v64_v17, 0.0  ;;  %v78_v27 = vmax.f32 %v69_v20, 0.0  ;;  %v71_v29 = vadd.f32 %v243_v8, %v55_v22 }
   0x9   :  { %v79_v28 = vmax.f32 %v70_v21, 0.0  ;;  %v74_v34 = vmax.f32 %v65_v25, 0.0  ;;  %v75_v35 = vmax.f32 %v66_v26, 0.0  ;;  %v51_v36 = vmul.f32 %v242_v5, %v35_v30 }
   0xa   :  { %v90_v32 = vpack.c.bf16 %v73_v24, %v72_v23  ;;  %v80_v38 = vmax.f32 %v71_v29, 0.0  ;;  %v68_v41 = vadd.f32 %v243_v8, %v52_v37 }
   0xb   :  { %v93_v33 = vpack.c.bf16 %v79_v28, %v78_v27  ;;  %v91_v39 = vpack.c.bf16 %v75_v35, %v74_v34  ;;  %v67_v40 = vadd.f32 %v243_v8, %v51_v36 }
   0xc   :  { %263 = vmatmul.mubr.msk.bf16.vlgmr.msra.gmra.mrb[0].mxu0 %vm111_vm1, %v90_v32  ;;  %v94_v42 = vpack.c.bf16 %v80_v38, %v80_v38  ;;  %v77_v44 = vmax.f32 %v68_v41, 0.0 }
   0xd   :  { %275 = vmatmul.mubr.msk.bf16.vlgmr.msra.gmra.mrb[0].mxu1 %vm111_vm1, %v93_v33  ;;  %266 = vmatprep.mubr.msk.bf16.mxu0 %vm291_vm0, %v290_v0  ;;  %v76_v43 = vmax.f32 %v67_v40, 0.0 }
   0xe   :  { %278 = vmatprep.mubr.msk.bf16.mxu1 %vm291_vm0, %v290_v0 }
   0xf   :  { %v92_v45 = vpack.c.bf16 %v77_v44, %v76_v43 }
  0x14   :  { %267 = vmatmul.mubr.msk.bf16.gmra.mrb[4].mxu0 %vm111_vm1, %v91_v39 }
  0x15   :  { %279 = vmatmul.mubr.msk.bf16.gmra.mrb[4].mxu1 %vm111_vm1, %v94_v42  ;;  %270 = vmatprep.mubr.msk.bf16.mxu0 %vm291_vm0, %v290_v0 }
  0x1c   :  { %271 = vmatmul.mubr.msk.bf16.gmra.mrb[8].mxu0 %vm111_vm1, %v92_v45 }
  0xdf   :  { %v161_v46 = vpop.f32.mrb[0].mxu0 }
  0xe0   :  { %229 = vst [vmem:[%s406_s4] sm:$0xff] %v161_v46  ;;  %v264_v47 = vpop.f32.mrb[1].mxu0  ;;  %v185_v48 = vpop.f32.mrb[0].mxu1 }
  0xe1   :  { %v164_v49 = vpop.f32.mrb[2].mxu0  ;;  %235 = vst [vmem:[%s406_s4 + $0x30] sm:$0xff] %v185_v48  ;;  %v276_v50 = vpop.f32.mrb[1].mxu1 }
  0xe2   :  { %230 = vst [vmem:[%s406_s4 + $0x8] sm:$0xff] %v164_v49  ;;  %v265_v51 = vpop.f32.mrb[3].mxu0  ;;  %v188_v52 = vpop.f32.mrb[2].mxu1 }
  0xe3   :  { %236 = vst [vmem:[%s406_s4 + $0x38] sm:$0xff] %v188_v52  ;;  %v277_v53 = vpop.f32.mrb[3].mxu1 }
  0xe7   :  { %v169_v54 = vpop.f32.mrb[4].mxu0 }
  0xe8   :  { %231 = vst [vmem:[%s406_s4 + $0x10] sm:$0xff] %v169_v54  ;;  %v268_v55 = vpop.f32.mrb[5].mxu0  ;;  %v193_v56 = vpop.f32.mrb[4].mxu1 }
  0xe9   :  { %v172_v57 = vpop.f32.mrb[6].mxu0  ;;  %237 = vst [vmem:[%s406_s4 + $0x40] sm:$0xff] %v193_v56  ;;  %v280_v58 = vpop.f32.mrb[5].mxu1 }
  0xea   :  { %232 = vst [vmem:[%s406_s4 + $0x18] sm:$0xff] %v172_v57  ;;  %v269_v59 = vpop.f32.mrb[7].mxu0  ;;  %v196_v60 = vpop.f32.mrb[6].mxu1 }
  0xeb   :  { %v281_v61 = vpop.f32.mrb[7].mxu1 }
  0xef   :  { %v177_v62 = vpop.f32.mrb[8].mxu0 }
  0xf0   :  { %233 = vst [vmem:[%s406_s4 + $0x20] sm:$0xff] %v177_v62  ;;  %v272_v63 = vpop.f32.mrb[9].mxu0 }
  0xf1   :  { %v180_v0 = vpop.f32.mrb[10].mxu0 }
  0xf2   :  { %234 = vst [vmem:[%s406_s4 + $0x28] sm:$0xff] %v180_v0  ;;  %v273_v1 = vpop.f32.mrb[11].mxu0 }

// kernel: mixstyle_densenet_forward.78
= control target key start
LH: loop header
LB: loop body
LE: loop exit
PB: predicated region body
PF: predicated region fallthrough
CT: control target
= control target key end

     0   :  { %vm14_vm0 = vcmask 122880   ;;  %vm21_vm1 = vcmask 130048   ;;  %v80_v0 = vmov 0.0   ;;  %s123_s0 = inlined_call_operand.vmem [shape: f32[24,16], index: 0, kind: input, shape index: {}]   ;;  %s124_s1 = inlined_call_operand.vmem [shape: f32[1,16], index: 1, kind: output, shape index: {0}]   ;;  %s125_s2 = inlined_call_operand.vmem [shape: f32[1,16], index: 2, kind: output, shape index: {1}]  }
   0x1   :  { %15 = vst.msk [vmem:[#allocation2] sm:$0x1] %vm14_vm0, %v80_v0  ;;  %16 = vst.msk [vmem:[#allocation3] sm:$0x1] %vm14_vm0, %v80_v0  ;;  %v17_v1 = vld [vmem:[%s123_s0] sm:$0xff]  ;;  %v18_v2 = vld [vmem:[%s123_s0 + $0x8] sm:$0xff] }
   0x2   :  { %v19_v3 = vld [vmem:[%s123_s0 + $0x10] sm:$0xff]  ;;  %v22_v4 = vsel %vm21_vm1, %v17_v1, 0.0  ;;  %v23_v5 = vsel %vm21_vm1, %v18_v2, 0.0  ;;  %v37_v7 = vmul.f32 %v17_v1, %v17_v1  ;;  %v38_v9 = vmul.f32 %v18_v2, %v18_v2 }
   0x3   :  { %v25_v6 = vsel %vm21_vm1, %v19_v3, 0.0  ;;  %v24_v8 = vadd.f32 %v23_v5, %v22_v4  ;;  %v39_v10 = vmul.f32 %v19_v3, %v19_v3 }
   0x4   :  { %v40_v11 = vsel %vm21_vm1, %v37_v7, 0.0  ;;  %v41_v13 = vsel %vm21_vm1, %v38_v9, 0.0 }
   0x5   :  { %v26_v12 = vadd.f32 %v25_v6, %v24_v8  ;;  %v43_v14 = vsel %vm21_vm1, %v39_v10, 0.0  ;;  %v42_v15 = vadd.f32 %v41_v13, %v40_v11 }
   0x7   :  { %v27_v16 = vrot.slane %v26_v12, 4  ;;  %v44_v17 = vadd.f32 %v43_v14, %v42_v15 }
   0x8   :  { %v20_v25 = vld [vmem:[#allocation2] sm:$0x1]  ;;  %v36_v30 = vld [vmem:[#allocation3] sm:$0x1] }
   0x9   :  { %v28_v18 = vadd.f32 %v27_v16, %v26_v12  ;;  %v45_v19 = vrot.slane %v44_v17, 4 }
   0xb   :  { %v29_v20 = vrot.slane %v28_v18, 2  ;;  %v46_v21 = vadd.f32 %v45_v19, %v44_v17 }
   0xd   :  { %v30_v22 = vadd.f32 %v29_v20, %v28_v18  ;;  %v47_v23 = vrot.slane %v46_v21, 2 }
   0xf   :  { %v31_v24 = vrot.slane %v30_v22, 1  ;;  %v48_v26 = vadd.f32 %v47_v23, %v46_v21 }
  0x11   :  { %v32_v27 = vadd.f32 %v31_v24, %v30_v22  ;;  %v49_v28 = vrot.slane %v48_v26, 1 }
  0x13   :  { %v33_v29 = vadd.f32 %v32_v27, %v20_v25  ;;  %v50_v31 = vadd.f32 %v49_v28, %v48_v26 }
  0x15   :  { %35 = vst.msk [vmem:[#allocation2] sm:$0x1] %vm14_vm0, %v33_v29  ;;  %v51_v32 = vadd.f32 %v50_v31, %v36_v30 }
  0x17   :  { %52 = vst.msk [vmem:[#allocation3] sm:$0x1] %vm14_vm0, %v51_v32 }
  0x1c   :  { %v56_v33 = vld [vmem:[#allocation2] sm:$0x1] }
  0x1d   :  { %v57_v34 = vmul.f32 0.055555556, %v56_v33 }
  0x1e   :  { %v58_v35 = vld [vmem:[#allocation3] sm:$0x1] }
  0x1f   :  { %v60_v36 = vmul.f32 %v57_v34, %v57_v34  ;;  %v59_v37 = vmul.f32 0.055555556, %v58_v35  ;;  %v66_v41 = vsub.f32 0.0, %v57_v34 }
  0x21   :  { %v61_v38 = vsub.f32 %v59_v37, %v60_v36 }
  0x23   :  { %v62_v39 = vmax.f32 %v61_v38, 0.0 }
  0x25   :  { %v63_v40 = vadd.f32 1e-05, %v62_v39 }
  0x27   :  { %78 = vrsqrt.f32 %v63_v40 }
  0x31   :  { %v79_v42 = vpop.eup %78 }
  0x32   :  { %65 = vst.msk [vmem:[%s124_s1] sm:$0x1] %vm14_vm0, %v79_v42  ;;  %v67_v43 = vmul.f32 %v79_v42, %v66_v41 }
  0x34   :  { %68 = vst.msk [vmem:[%s125_s2] sm:$0x1] %vm14_vm0, %v67_v43 }

// kernel: mixstyle_densenet_forward.81
= control target key start
LH: loop header
LB: loop body
LE: loop exit
PB: predicated region body
PF: predicated region fallthrough
CT: control target
= control target key end

     0   :  { %vm40_vm0 = vcmask 130048   ;;  %s94_s0 = inlined_call_operand.vmem [shape: f32[24,16], index: 0, kind: input, shape index: {}]   ;;  %s95_s1 = inlined_call_operand.vmem [shape: f32[1,16], index: 1, kind: input, shape index: {}]   ;;  %s96_s2 = inlined_call_operand.vmem [shape: f32[1,16], index: 2, kind: input, shape index: {}]   ;;  %s97_s3 = inlined_call_operand.vmem [shape: f32[24,16], index: 3, kind: output, shape index: {}]  }
   0x1   :  { %v14_v0 = vld [vmem:[%s94_s0] sm:$0xff]  ;;  %v15_v4 = vld [vmem:[%s94_s0 + $0x8] sm:$0xff]  ;;  %v16_v5 = vld [vmem:[%s94_s0 + $0x10] sm:$0xff] }
   0x2   :  { %v48_v1 = vld [vmem:[%s95_s1] ss:$0 sm:$0xff] }
   0x3   :  { %v49_v2 = vld [vmem:[%s96_s2] ss:$0 sm:$0xff]  ;;  %v24_v3 = vmul.f32 %v48_v1, %v14_v0  ;;  %v25_v6 = vmul.f32 %v48_v1, %v15_v4  ;;  %v26_v7 = vmul.f32 %v48_v1, %v16_v5 }
   0x5   :  { %v34_v8 = vadd.f32 %v49_v2, %v24_v3  ;;  %v35_v9 = vadd.f32 %v49_v2, %v25_v6  ;;  %v36_v10 = vadd.f32 %v49_v2, %v26_v7 }
   0x7   :  { %v37_v11 = vmax.f32 %v34_v8, 0.0  ;;  %v38_v12 = vmax.f32 %v35_v9, 0.0  ;;  %v39_v13 = vmax.f32 %v36_v10, 0.0 }
   0x9   :  { %41 = vst.msk [vmem:[%s97_s3] sm:$0xff] %vm40_vm0, %v37_v11  ;;  %42 = vst.msk [vmem:[%s97_s3 + $0x8] sm:$0xff] %vm40_vm0, %v38_v12 }
   0xa   :  { %43 = vst.msk [vmem:[%s97_s3 + $0x10] sm:$0xff] %vm40_vm0, %v39_v13 }

// kernel: mixstyle_densenet_forward.79
= control target key start
LH: loop header
LB: loop body
LE: loop exit
PB: predicated region body
PF: predicated region fallthrough
CT: control target
= control target key end

     0   :  { %vm64_vm0 = vcmask 130048   ;;  %s205_s3 = inlined_call_operand.vmem [shape: bf16[16,128], index: 3, kind: input, shape index: {}]   ;;  %s206_s0 = inlined_call_operand.vmem [shape: f32[24,16], index: 0, kind: input, shape index: {}]   ;;  %s207_s1 = inlined_call_operand.vmem [shape: f32[1,16], index: 1, kind: input, shape index: {}]   ;;  %s208_s2 = inlined_call_operand.vmem [shape: f32[1,16], index: 2, kind: input, shape index: {}]   ;;  %s209_s4 = inlined_call_operand.vmem [shape: f32[24,128], index: 4, kind: output, shape index: {}]  }
   0x1   :  { %v152_v0 = vld [vmem:[%s205_s3] sm:$0xff]   ;;  %v26_v2 = vld [vmem:[%s206_s0 + $0x8] sm:$0xff]  ;;  %v27_v7 = vld [vmem:[%s206_s0 + $0x10] sm:$0xff] }
   0x2   :  { %v25_v1 = vld [vmem:[%s206_s0] sm:$0xff]  ;;  %146 = vmatprep.subr.bf16.mxu0 %v152_v0 }
   0x3   :  { %v138_v3 = vld [vmem:[%s207_s1] ss:$0 sm:$0xff]  ;;  %147 = vmatpush3.bf16.msra.mxu0 %v152_v0 }
   0x4   :  { %v35_v4 = vmul.f32 %v138_v3, %v25_v1  ;;  %v36_v5 = vmul.f32 %v138_v3, %v26_v2  ;;  %v139_v6 = vld [vmem:[%s208_s2] ss:$0 sm:$0xff]  ;;  %v37_v8 = vmul.f32 %v138_v3, %v27_v7 }
   0x6   :  { %v45_v9 = vadd.f32 %v139_v6, %v35_v4  ;;  %v46_v10 = vadd.f32 %v139_v6, %v36_v5  ;;  %v47_v11 = vadd.f32 %v139_v6, %v37_v8 }
   0x8   :  { %v48_v12 = vmax.f32 %v45_v9, 0.0  ;;  %v49_v13 = vmax.f32 %v46_v10, 0.0  ;;  %v50_v14 = vmax.f32 %v47_v11, 0.0 }
   0xa   :  { %v54_v15 = vpack.c.bf16 %v49_v13, %v48_v12  ;;  %v55_v16 = vpack.c.bf16 %v50_v14, %v50_v14 }
   0xc   :  { %148 = vmatprep.mubr.msk.bf16.mxu0 %vm64_vm0, %v54_v15 }
   0xd   :  { %149 = vmatmul.mubr.msk.bf16.vlgmr.msra.gmra.mrb[0].mxu0 %vm64_vm0, %v55_v16 }
  0xe0   :  { %v150_v17 = vpop.f32.mrb[0].mxu0 }
  0xe1   :  { %133 = vst [vmem:[%s209_s4 + $0x10] sm:$0xff] %v150_v17  ;;  %v105_v18 = vpop.f32.mrb[1].mxu0 }
  0xe2   :  { %131 = vst [vmem:[%s209_s4] sm:$0xff] %v105_v18  ;;  %v151_v19 = vpop.f32.mrb[2].mxu0 }
  0xe3   :  { %v108_v20 = vpop.f32.mrb[3].mxu0 }
  0xe4   :  { %132 = vst [vmem:[%s209_s4 + $0x8] sm:$0xff] %v108_v20 }

// kernel: mixstyle_densenet_forward.82
= control target key start
LH: loop header
LB: loop body
LE: loop exit
PB: predicated region body
PF: predicated region fallthrough
CT: control target
= control target key end

     0   :  { %v234_v0 = vmov 0   ;;  %vm112_vm0 = vcmask 130048   ;;  %s295_s1 = inlined_call_operand.vmem [shape: bf16[144,128], index: 1, kind: input, shape index: {}]   ;;  %s296_s0 = inlined_call_operand.vmem [shape: bf16[24,144], index: 0, kind: input, shape index: {}]   ;;  %s297_s2 = inlined_call_operand.vmem [shape: f32[24,128], index: 2, kind: output, shape index: {}]  }
   0x1   :  { %119 = vmatprep.subr.bf16.mxu0 %v234_v0  ;;  %201 = vmatprep.subr.bf16.mxu1 %v234_v0  ;;  %v220_v1 = vld [vmem:[%s295_s1] sm:$0xff]   ;;  %v221_v2 = vld [vmem:[%s295_s1 + $0x8] sm:$0xff]   ;;  %v222_v3 = vld [vmem:[%s295_s1 + $0x10] sm:$0xff]  }
   0x2   :  { %120 = vmatpush1.bf16.msra.mxu0 %v220_v1  ;;  %210 = vmatpush1.bf16.msra.mxu1 %v220_v1  ;;  %v223_v4 = vld [vmem:[%s295_s1 + $0x18] sm:$0xff]   ;;  %v231_v5 = vld [vmem:[%s296_s0 + $0x4] ss:$8 sps:$4 sm:$0xff]   ;;  %v24_v6 = vld [vmem:[%s296_s0 + $0x10] sm:$0xff] }
   0x3   :  { %121 = vmatprep.subr.bf16.mxu0 %v234_v0  ;;  %202 = vmatprep.subr.bf16.mxu1 %v234_v0  ;;  %v189_v7 = vcombine.high %v24_v6, %v24_v6  ;;  %v224_v8 = vld [vmem:[%s295_s1 + $0x20] sm:$0xff]   ;;  %v225_v9 = vld [vmem:[%s295_s1 + $0x28] sm:$0xff]   ;;  %v226_v10 = vld [vmem:[%s295_s1 + $0x30] sm:$0xff]   ;;  %v188_v14 = vcombine.low %v24_v6, %v24_v6 }
   0x4   :  { %199 = vmatprep.mubr.msk.bf16.mxu0 %vm112_vm0, %v231_v5  ;;  %v227_v11 = vld [vmem:[%s295_s1 + $0x38] sm:$0xff]   ;;  %v228_v12 = vld [vmem:[%s295_s1 + $0x40] sm:$0xff]  }
   0x5   :  { %200 = vmatprep.mubr.msk.bf16.mxu1 %vm112_vm0, %v189_v7  ;;  %v229_v13 = vld [vmem:[%s296_s0] ss:$8 sps:$4 sm:$0xff]  }
   0x6   :  { %122 = vmatpush1.bf16.msra.mxu0 %v221_v2  ;;  %211 = vmatpush1.bf16.msra.mxu1 %v221_v2 }
   0x7   :  { %123 = vmatprep.subr.bf16.mxu0 %v234_v0  ;;  %203 = vmatprep.subr.bf16.mxu1 %v234_v0 }
   0xa   :  { %124 = vmatpush1.bf16.msra.mxu0 %v222_v3  ;;  %212 = vmatpush1.bf16.msra.mxu1 %v222_v3 }
   0xb   :  { %125 = vmatprep.subr.bf16.mxu0 %v234_v0  ;;  %204 = vmatprep.subr.bf16.mxu1 %v234_v0 }
   0xe   :  { %126 = vmatpush1.bf16.msra.mxu0 %v223_v4  ;;  %213 = vmatpush1.bf16.msra.mxu1 %v223_v4 }
   0xf   :  { %127 = vmatprep.subr.bf16.mxu0 %v234_v0  ;;  %205 = vmatprep.subr.bf16.mxu1 %v234_v0 }
  0x12   :  { %128 = vmatpush1.bf16.msra.mxu0 %v224_v8  ;;  %214 = vmatpush1.bf16.msra.mxu1 %v224_v8 }
  0x13   :  { %129 = vmatprep.subr.bf16.mxu0 %v234_v0  ;;  %206 = vmatprep.subr.bf16.mxu1 %v234_v0 }
  0x16   :  { %130 = vmatpush1.bf16.msra.mxu0 %v225_v9  ;;  %215 = vmatpush1.bf16.msra.mxu1 %v225_v9 }
  0x17   :  { %131 = vmatprep.subr.bf16.mxu0 %v234_v0  ;;  %207 = vmatprep.subr.bf16.mxu1 %v234_v0 }
  0x1a   :  { %132 = vmatpush1.bf16.msra.mxu0 %v226_v10  ;;  %216 = vmatpush1.bf16.msra.mxu1 %v226_v10 }
  0x1b   :  { %133 = vmatprep.subr.bf16.mxu0 %v234_v0  ;;  %208 = vmatprep.subr.bf16.mxu1 %v234_v0 }
  0x1e   :  { %134 = vmatpush1.bf16.msra.mxu0 %v227_v11  ;;  %217 = vmatpush1.bf16.msra.mxu1 %v227_v11 }
  0x1f   :  { %135 = vmatprep.subr.bf16.mxu0 %v234_v0  ;;  %209 = vmatprep.subr.bf16.mxu1 %v234_v0 }
  0x22   :  { %136 = vmatpush1.bf16.msra.mxu0 %v228_v12  ;;  %218 = vmatpush1.bf16.msra.mxu1 %v228_v12 }
  0x25   :  { %152 = vmatmul.mubr.bf16.vlgmr.msra.gmra.mrb[0].mxu0 %v229_v13  ;;  %160 = vmatmul.mubr.bf16.vlgmr.msra.gmra.mrb[0].mxu1 %v188_v14 }
  0xf8   :  { %v153_v15 = vpop.f32.mrb[0].mxu0  ;;  %v161_v16 = vpop.f32.mrb[0].mxu1 }
  0xf9   :  { %179 = vst [vmem:[%s297_s2] sm:$0xff] %v153_v15  ;;  %181 = vst [vmem:[%s297_s2 + $0x10] sm:$0xff] %v161_v16  ;;  %v155_v17 = vpop.f32.mrb[1].mxu0  ;;  %v163_v18 = vpop.f32.mrb[1].mxu1 }
  0xfa   :  { %v156_v19 = vpop.f32.mrb[2].mxu0  ;;  %v164_v20 = vpop.f32.mrb[2].mxu1 }
  0xfb   :  { %180 = vst [vmem:[%s297_s2 + $0x8] sm:$0xff] %v156_v19  ;;  %v158_v21 = vpop.f32.mrb[3].mxu0  ;;  %v165_v22 = vpop.f32.mrb[3].mxu1 }

// kernel: mixstyle_densenet_forward.83
= control target key start
LH: loop header
LB: loop body
LE: loop exit
PB: predicated region body
PF: predicated region fallthrough
CT: control target
= control target key end

     0   :  { %vm14_vm0 = vcmask 188416   ;;  %vm21_vm1 = vcmask 195584   ;;  %v80_v0 = vmov 0.0   ;;  %s123_s0 = inlined_call_operand.vmem [shape: f32[24,24], index: 0, kind: input, shape index: {}]   ;;  %s124_s1 = inlined_call_operand.vmem [shape: f32[1,24], index: 1, kind: output, shape index: {0}]   ;;  %s125_s2 = inlined_call_operand.vmem [shape: f32[1,24], index: 2, kind: output, shape index: {1}]  }
   0x1   :  { %15 = vst.msk [vmem:[#allocation2] sm:$0x1] %vm14_vm0, %v80_v0  ;;  %16 = vst.msk [vmem:[#allocation3] sm:$0x1] %vm14_vm0, %v80_v0  ;;  %v17_v1 = vld [vmem:[%s123_s0] sm:$0xff]  ;;  %v18_v2 = vld [vmem:[%s123_s0 + $0x8] sm:$0xff] }
   0x2   :  { %v19_v3 = vld [vmem:[%s123_s0 + $0x10] sm:$0xff]  ;;  %v22_v4 = vsel %vm21_vm1, %v17_v1, 0.0  ;;  %v23_v5 = vsel %vm21_vm1, %v18_v2, 0.0  ;;  %v37_v7 = vmul.f32 %v17_v1, %v17_v1  ;;  %v38_v9 = vmul.f32 %v18_v2, %v18_v2 }
   0x3   :  { %v25_v6 = vsel %vm21_vm1, %v19_v3, 0.0  ;;  %v24_v8 = vadd.f32 %v23_v5, %v22_v4  ;;  %v39_v10 = vmul.f32 %v19_v3, %v19_v3 }
   0x4   :  { %v40_v11 = vsel %vm21_vm1, %v37_v7, 0.0  ;;  %v41_v13 = vsel %vm21_vm1, %v38_v9, 0.0 }
   0x5   :  { %v26_v12 = vadd.f32 %v25_v6, %v24_v8  ;;  %v43_v14 = vsel %vm21_vm1, %v39_v10, 0.0  ;;  %v42_v15 = vadd.f32 %v41_v13, %v40_v11 }
   0x7   :  { %v27_v16 = vrot.slane %v26_v12, 4  ;;  %v44_v17 = vadd.f32 %v43_v14, %v42_v15 }
   0x8   :  { %v20_v25 = vld [vmem:[#allocation2] sm:$0x1]  ;;  %v36_v30 = vld [vmem:[#allocation3] sm:$0x1] }
   0x9   :  { %v28_v18 = vadd.f32 %v27_v16, %v26_v12  ;;  %v45_v19 = vrot.slane %v44_v17, 4 }
   0xb   :  { %v29_v20 = vrot.slane %v28_v18, 2  ;;  %v46_v21 = vadd.f32 %v45_v19, %v44_v17 }
   0xd   :  { %v30_v22 = vadd.f32 %v29_v20, %v28_v18  ;;  %v47_v23 = vrot.slane %v46_v21, 2 }
   0xf   :  { %v31_v24 = vrot.slane %v30_v22, 1  ;;  %v48_v26 = vadd.f32 %v47_v23, %v46_v21 }
  0x11   :  { %v32_v27 = vadd.f32 %v31_v24, %v30_v22  ;;  %v49_v28 = vrot.slane %v48_v26, 1 }
  0x13   :  { %v33_v29 = vadd.f32 %v32_v27, %v20_v25  ;;  %v50_v31 = vadd.f32 %v49_v28, %v48_v26 }
  0x15   :  { %35 = vst.msk [vmem:[#allocation2] sm:$0x1] %vm14_vm0, %v33_v29  ;;  %v51_v32 = vadd.f32 %v50_v31, %v36_v30 }
  0x17   :  { %52 = vst.msk [vmem:[#allocation3] sm:$0x1] %vm14_vm0, %v51_v32 }
  0x1c   :  { %v56_v33 = vld [vmem:[#allocation2] sm:$0x1] }
  0x1d   :  { %v57_v34 = vmul.f32 0.055555556, %v56_v33 }
  0x1e   :  { %v58_v35 = vld [vmem:[#allocation3] sm:$0x1] }
  0x1f   :  { %v60_v36 = vmul.f32 %v57_v34, %v57_v34  ;;  %v59_v37 = vmul.f32 0.055555556, %v58_v35  ;;  %v66_v41 = vsub.f32 0.0, %v57_v34 }
  0x21   :  { %v61_v38 = vsub.f32 %v59_v37, %v60_v36 }
  0x23   :  { %v62_v39 = vmax.f32 %v61_v38, 0.0 }
  0x25   :  { %v63_v40 = vadd.f32 1e-05, %v62_v39 }
  0x27   :  { %78 = vrsqrt.f32 %v63_v40 }
  0x31   :  { %v79_v42 = vpop.eup %78 }
  0x32   :  { %65 = vst.msk [vmem:[%s124_s1] sm:$0x1] %vm14_vm0, %v79_v42  ;;  %v67_v43 = vmul.f32 %v79_v42, %v66_v41 }
  0x34   :  { %68 = vst.msk [vmem:[%s125_s2] sm:$0x1] %vm14_vm0, %v67_v43 }

// kernel: mixstyle_densenet_forward.84
= control target key start
LH: loop header
LB: loop body
LE: loop exit
PB: predicated region body
PF: predicated region fallthrough
CT: control target
= control target key end

     0   :  { %vm75_vm0 = vcmask 1043456   ;;  %vm68_vm1 = vcmask 195584   ;;  %s222_s3 = inlined_call_operand.vmem [shape: bf16[24,128], index: 3, kind: input, shape index: {}]   ;;  %s223_s0 = inlined_call_operand.vmem [shape: f32[24,24], index: 0, kind: input, shape index: {}]   ;;  %s224_s1 = inlined_call_operand.vmem [shape: f32[1,24], index: 1, kind: input, shape index: {}]   ;;  %s225_s2 = inlined_call_operand.vmem [shape: f32[1,24], index: 2, kind: input, shape index: {}]   ;;  %s226_s4 = inlined_call_operand.vmem [shape: f32[24,128], index: 4, kind: output, shape index: {}]  }
   0x1   :  { %v165_v0 = vld [vmem:[%s222_s3] sm:$0xff]   ;;  %v166_v1 = vld [vmem:[%s222_s3 + $0x8] ss:$0 sps:$4 sm:$0xff]   ;;  %v27_v8 = vld [vmem:[%s223_s0 + $0x10] sm:$0xff] }
   0x2   :  { %v25_v2 = vld [vmem:[%s223_s0] sm:$0xff]  ;;  %v26_v3 = vld [vmem:[%s223_s0 + $0x8] sm:$0xff]  ;;  %156 = vmatprep.subr.bf16.mxu0 %v165_v0  ;;  %v77_v10 = vsel %vm75_vm0, %v166_v1, 0 }
   0x3   :  { %v146_v4 = vld [vmem:[%s224_s1] ss:$0 sm:$0xff]  ;;  %157 = vmatpush3.bf16.msra.mxu0 %v165_v0 }
   0x4   :  { %v147_v5 = vld [vmem:[%s225_s2] ss:$0 sm:$0xff]  ;;  %v35_v6 = vmul.f32 %v146_v4, %v25_v2  ;;  %v36_v7 = vmul.f32 %v146_v4, %v26_v3  ;;  %v37_v9 = vmul.f32 %v146_v4, %v27_v8  ;;  %164 = vmatprep.subr.msk.bf16.mxu0 %vm75_vm0, %v166_v1 }
   0x6   :  { %v45_v11 = vadd.f32 %v147_v5, %v35_v6  ;;  %v46_v12 = vadd.f32 %v147_v5, %v36_v7  ;;  %v47_v13 = vadd.f32 %v147_v5, %v37_v9 }
   0x7   :  { %159 = vmatpush3.bf16.msra.mxu0 %v77_v10 }
   0x8   :  { %v48_v14 = vmax.f32 %v45_v11, 0.0  ;;  %v49_v15 = vmax.f32 %v46_v12, 0.0  ;;  %v50_v16 = vmax.f32 %v47_v13, 0.0 }
   0xa   :  { %v54_v17 = vpack.c.bf16 %v49_v15, %v48_v14  ;;  %v55_v18 = vpack.c.bf16 %v50_v16, %v50_v16 }
   0xc   :  { %160 = vmatprep.mubr.msk.bf16.mxu0 %vm68_vm1, %v54_v17 }
   0xd   :  { %161 = vmatmul.mubr.msk.bf16.vlgmr.msra.gmra.mrb[0].mxu0 %vm68_vm1, %v55_v18 }
  0xe0   :  { %v162_v19 = vpop.f32.mrb[0].mxu0 }
  0xe1   :  { %141 = vst [vmem:[%s226_s4 + $0x10] sm:$0xff] %v162_v19  ;;  %v113_v20 = vpop.f32.mrb[1].mxu0 }
  0xe2   :  { %139 = vst [vmem:[%s226_s4] sm:$0xff] %v113_v20  ;;  %v163_v21 = vpop.f32.mrb[2].mxu0 }
  0xe3   :  { %v116_v22 = vpop.f32.mrb[3].mxu0 }
  0xe4   :  { %140 = vst [vmem:[%s226_s4 + $0x8] sm:$0xff] %v116_v22 }

// kernel: mixstyle_densenet_forward.88
= control target key start
LH: loop header
LB: loop body
LE: loop exit
PB: predicated region body
PF: predicated region fallthrough
CT: control target
= control target key end

     0   :  { %vm14_vm0 = vcmask 253952   ;;  %vm21_vm1 = vcmask 261120   ;;  %v80_v0 = vmov 0.0   ;;  %s123_s0 = inlined_call_operand.vmem [shape: f32[24,32], index: 0, kind: input, shape index: {}]   ;;  %s124_s1 = inlined_call_operand.vmem [shape: f32[1,32], index: 1, kind: output, shape index: {0}]   ;;  %s125_s2 = inlined_call_operand.vmem [shape: f32[1,32], index: 2, kind: output, shape index: {1}]  }
   0x1   :  { %15 = vst.msk [vmem:[#allocation2] sm:$0x1] %vm14_vm0, %v80_v0  ;;  %16 = vst.msk [vmem:[#allocation3] sm:$0x1] %vm14_vm0, %v80_v0  ;;  %v17_v1 = vld [vmem:[%s123_s0] sm:$0xff]  ;;  %v18_v2 = vld [vmem:[%s123_s0 + $0x8] sm:$0xff] }
   0x2   :  { %v19_v3 = vld [vmem:[%s123_s0 + $0x10] sm:$0xff]  ;;  %v22_v4 = vsel %vm21_vm1, %v17_v1, 0.0  ;;  %v23_v5 = vsel %vm21_vm1, %v18_v2, 0.0  ;;  %v37_v7 = vmul.f32 %v17_v1, %v17_v1  ;;  %v38_v9 = vmul.f32 %v18_v2, %v18_v2 }
   0x3   :  { %v25_v6 = vsel %vm21_vm1, %v19_v3, 0.0  ;;  %v24_v8 = vadd.f32 %v23_v5, %v22_v4  ;;  %v39_v10 = vmul.f32 %v19_v3, %v19_v3 }
   0x4   :  { %v40_v11 = vsel %vm21_vm1, %v37_v7, 0.0  ;;  %v41_v13 = vsel %vm21_vm1, %v38_v9, 0.0 }
   0x5   :  { %v26_v12 = vadd.f32 %v25_v6, %v24_v8  ;;  %v43_v14 = vsel %vm21_vm1, %v39_v10, 0.0  ;;  %v42_v15 = vadd.f32 %v41_v13, %v40_v11 }
   0x7   :  { %v27_v16 = vrot.slane %v26_v12, 4  ;;  %v44_v17 = vadd.f32 %v43_v14, %v42_v15 }
   0x8   :  { %v20_v25 = vld [vmem:[#allocation2] sm:$0x1]  ;;  %v36_v30 = vld [vmem:[#allocation3] sm:$0x1] }
   0x9   :  { %v28_v18 = vadd.f32 %v27_v16, %v26_v12  ;;  %v45_v19 = vrot.slane %v44_v17, 4 }
   0xb   :  { %v29_v20 = vrot.slane %v28_v18, 2  ;;  %v46_v21 = vadd.f32 %v45_v19, %v44_v17 }
   0xd   :  { %v30_v22 = vadd.f32 %v29_v20, %v28_v18  ;;  %v47_v23 = vrot.slane %v46_v21, 2 }
   0xf   :  { %v31_v24 = vrot.slane %v30_v22, 1  ;;  %v48_v26 = vadd.f32 %v47_v23, %v46_v21 }
  0x11   :  { %v32_v27 = vadd.f32 %v31_v24, %v30_v22  ;;  %v49_v28 = vrot.slane %v48_v26, 1 }
  0x13   :  { %v33_v29 = vadd.f32 %v32_v27, %v20_v25  ;;  %v50_v31 = vadd.f32 %v49_v28, %v48_v26 }
  0x15   :  { %35 = vst.msk [vmem:[#allocation2] sm:$0x1] %vm14_vm0, %v33_v29  ;;  %v51_v32 = vadd.f32 %v50_v31, %v36_v30 }
  0x17   :  { %52 = vst.msk [vmem:[#allocation3] sm:$0x1] %vm14_vm0, %v51_v32 }
  0x1c   :  { %v56_v33 = vld [vmem:[#allocation2] sm:$0x1] }
  0x1d   :  { %v57_v34 = vmul.f32 0.055555556, %v56_v33 }
  0x1e   :  { %v58_v35 = vld [vmem:[#allocation3] sm:$0x1] }
  0x1f   :  { %v60_v36 = vmul.f32 %v57_v34, %v57_v34  ;;  %v59_v37 = vmul.f32 0.055555556, %v58_v35  ;;  %v66_v41 = vsub.f32 0.0, %v57_v34 }
  0x21   :  { %v61_v38 = vsub.f32 %v59_v37, %v60_v36 }
  0x23   :  { %v62_v39 = vmax.f32 %v61_v38, 0.0 }
  0x25   :  { %v63_v40 = vadd.f32 1e-05, %v62_v39 }
  0x27   :  { %78 = vrsqrt.f32 %v63_v40 }
  0x31   :  { %v79_v42 = vpop.eup %78 }
  0x32   :  { %65 = vst.msk [vmem:[%s124_s1] sm:$0x1] %vm14_vm0, %v79_v42  ;;  %v67_v43 = vmul.f32 %v79_v42, %v66_v41 }
  0x34   :  { %68 = vst.msk [vmem:[%s125_s2] sm:$0x1] %vm14_vm0, %v67_v43 }

// kernel: mixstyle_densenet_forward.89
= control target key start
LH: loop header
LB: loop body
LE: loop exit
PB: predicated region body
PF: predicated region fallthrough
CT: control target
= control target key end

     0   :  { %vm72_vm0 = vcmask 261120   ;;  %s221_s3 = inlined_call_operand.vmem [shape: bf16[32,128], index: 3, kind: input, shape index: {}]   ;;  %s222_s0 = inlined_call_operand.vmem [shape: f32[24,32], index: 0, kind: input, shape index: {}]   ;;  %s223_s1 = inlined_call_operand.vmem [shape: f32[1,32], index: 1, kind: input, shape index: {}]   ;;  %s224_s2 = inlined_call_operand.vmem [shape: f32[1,32], index: 2, kind: input, shape index: {}]   ;;  %s225_s4 = inlined_call_operand.vmem [shape: f32[24,128], index: 4, kind: output, shape index: {}]  }
   0x1   :  { %v164_v0 = vld [vmem:[%s221_s3] sm:$0xff]   ;;  %v165_v1 = vld [vmem:[%s221_s3 + $0x8] sm:$0xff]   ;;  %v27_v8 = vld [vmem:[%s222_s0 + $0x10] sm:$0xff] }
   0x2   :  { %156 = vmatprep.subr.bf16.mxu0 %v164_v0  ;;  %v25_v2 = vld [vmem:[%s222_s0] sm:$0xff]  ;;  %v26_v3 = vld [vmem:[%s222_s0 + $0x8] sm:$0xff] }
   0x3   :  { %v146_v4 = vld [vmem:[%s223_s1] ss:$0 sm:$0xff]  ;;  %157 = vmatpush3.bf16.msra.mxu0 %v164_v0 }
   0x4   :  { %v35_v5 = vmul.f32 %v146_v4, %v25_v2  ;;  %v36_v6 = vmul.f32 %v146_v4, %v26_v3  ;;  %v147_v7 = vld [vmem:[%s224_s2] ss:$0 sm:$0xff]  ;;  %158 = vmatprep.subr.bf16.mxu0 %v165_v1  ;;  %v37_v9 = vmul.f32 %v146_v4, %v27_v8 }
   0x6   :  { %v45_v10 = vadd.f32 %v147_v7, %v35_v5  ;;  %v46_v11 = vadd.f32 %v147_v7, %v36_v6  ;;  %v47_v12 = vadd.f32 %v147_v7, %v37_v9 }
   0x7   :  { %159 = vmatpush3.bf16.msra.mxu0 %v165_v1 }
   0x8   :  { %v48_v13 = vmax.f32 %v45_v10, 0.0  ;;  %v49_v14 = vmax.f32 %v46_v11, 0.0  ;;  %v50_v15 = vmax.f32 %v47_v12, 0.0 }
   0xa   :  { %v54_v16 = vpack.c.bf16 %v49_v14, %v48_v13  ;;  %v55_v17 = vpack.c.bf16 %v50_v15, %v50_v15 }
   0xc   :  { %160 = vmatprep.mubr.msk.bf16.mxu0 %vm72_vm0, %v54_v16 }
   0xd   :  { %161 = vmatmul.mubr.msk.bf16.vlgmr.msra.gmra.mrb[0].mxu0 %vm72_vm0, %v55_v17 }
  0xe0   :  { %v162_v18 = vpop.f32.mrb[0].mxu0 }
  0xe1   :  { %141 = vst [vmem:[%s225_s4 + $0x10] sm:$0xff] %v162_v18  ;;  %v113_v19 = vpop.f32.mrb[1].mxu0 }
  0xe2   :  { %139 = vst [vmem:[%s225_s4] sm:$0xff] %v113_v19  ;;  %v163_v20 = vpop.f32.mrb[2].mxu0 }
  0xe3   :  { %v116_v21 = vpop.f32.mrb[3].mxu0 }
  0xe4   :  { %140 = vst [vmem:[%s225_s4 + $0x8] sm:$0xff] %v116_v21 }

// kernel: mixstyle_densenet_forward.90
= control target key start
LH: loop header
LB: loop body
LE: loop exit
PB: predicated region body
PF: predicated region fallthrough
CT: control target
= control target key end

     0   :  { %vm14_vm0 = vcmask 122880   ;;  %vm19_vm1 = vcmask 130048   ;;  %v68_v0 = vmov 0.0   ;;  %s99_s0 = inlined_call_operand.vmem [shape: f32[8,16], index: 0, kind: input, shape index: {}]   ;;  %s100_s1 = inlined_call_operand.vmem [shape: f32[1,16], index: 1, kind: output, shape index: {0}]   ;;  %s101_s2 = inlined_call_operand.vmem [shape: f32[1,16], index: 2, kind: output, shape index: {1}]  }
   0x1   :  { %15 = vst.msk [vmem:[#allocation2] sm:$0x1] %vm14_vm0, %v68_v0  ;;  %16 = vst.msk [vmem:[#allocation3] sm:$0x1] %vm14_vm0, %v68_v0  ;;  %v17_v1 = vld [vmem:[%s99_s0] sm:$0xff] }
   0x2   :  { %v20_v2 = vsel %vm19_vm1, %v17_v1, 0.0  ;;  %v31_v3 = vmul.f32 %v17_v1, %v17_v1 }
   0x3   :  { %v21_v4 = vrot.slane %v20_v2, 4 }
   0x4   :  { %v32_v5 = vsel %vm19_vm1, %v31_v3, 0.0 }
   0x5   :  { %v22_v6 = vadd.f32 %v21_v4, %v20_v2  ;;  %v33_v7 = vrot.slane %v32_v5, 4 }
   0x7   :  { %v23_v8 = vrot.slane %v22_v6, 2  ;;  %v34_v9 = vadd.f32 %v33_v7, %v32_v5 }
   0x8   :  { %v18_v14 = vld [vmem:[#allocation2] sm:$0x1]  ;;  %v30_v17 = vld [vmem:[#allocation3] sm:$0x1] }
   0x9   :  { %v24_v10 = vadd.f32 %v23_v8, %v22_v6  ;;  %v35_v11 = vrot.slane %v34_v9, 2 }
   0xb   :  { %v25_v12 = vrot.slane %v24_v10, 1  ;;  %v36_v13 = vadd.f32 %v35_v11, %v34_v9 }
   0xd   :  { %v26_v15 = vadd.f32 %v25_v12, %v24_v10  ;;  %v37_v16 = vrot.slane %v36_v13, 1 }
   0xf   :  { %v27_v18 = vadd.f32 %v26_v15, %v18_v14  ;;  %v38_v19 = vadd.f32 %v37_v16, %v36_v13 }
  0x11   :  { %29 = vst.msk [vmem:[#allocation2] sm:$0x1] %vm14_vm0, %v27_v18  ;;  %v39_v20 = vadd.f32 %v38_v19, %v30_v17 }
  0x13   :  { %40 = vst.msk [vmem:[#allocation3] sm:$0x1] %vm14_vm0, %v39_v20 }
  0x18   :  { %v44_v21 = vld [vmem:[#allocation2] sm:$0x1] }
  0x19   :  { %v45_v22 = vmul.f32 0.5, %v44_v21 }
  0x1a   :  { %v46_v23 = vld [vmem:[#allocation3] sm:$0x1] }
  0x1b   :  { %v47_v24 = vmul.f32 0.5, %v46_v23  ;;  %v48_v25 = vmul.f32 %v45_v22, %v45_v22  ;;  %v54_v29 = vsub.f32 0.0, %v45_v22 }
  0x1d   :  { %v49_v26 = vsub.f32 %v47_v24, %v48_v25 }
  0x1f   :  { %v50_v27 = vmax.f32 %v49_v26, 0.0 }
  0x21   :  { %v51_v28 = vadd.f32 1e-05, %v50_v27 }
  0x23   :  { %66 = vrsqrt.f32 %v51_v28 }
  0x2d   :  { %v67_v30 = vpop.eup %66 }
  0x2e   :  { %53 = vst.msk [vmem:[%s100_s1] sm:$0x1] %vm14_vm0, %v67_v30  ;;  %v55_v31 = vmul.f32 %v67_v30, %v54_v29 }
  0x30   :  { %56 = vst.msk [vmem:[%s101_s2] sm:$0x1] %vm14_vm0, %v55_v31 }

// kernel: mixstyle_densenet_forward.91
= control target key start
LH: loop header
LB: loop body
LE: loop exit
PB: predicated region body
PF: predicated region fallthrough
CT: control target
= control target key end

     0   :  { %v121_v0 = vmov 0.0   ;;  %vm122_vm0 = vmmov 0   ;;  %vm51_vm1 = vcmask 130048   ;;  %s163_s3 = inlined_call_operand.vmem [shape: bf16[16,128], index: 3, kind: input, shape index: {}]   ;;  %s164_s0 = inlined_call_operand.vmem [shape: f32[8,16], index: 0, kind: input, shape index: {}]   ;;  %s165_s1 = inlined_call_operand.vmem [shape: f32[1,16], index: 1, kind: input, shape index: {}]   ;;  %s166_s2 = inlined_call_operand.vmem [shape: f32[1,16], index: 2, kind: input, shape index: {}]   ;;  %s167_s4 = inlined_call_operand.vmem [shape: f32[8,128], index: 4, kind: output, shape index: {}]  }
   0x1   :  { %112 = vmatprep.subr.bf16.mxu0 %v121_v0  ;;  %v120_v1 = vld [vmem:[%s163_s3] sm:$0xff]   ;;  %114 = vmatprep.mubr.msk.bf16.mxu0 %vm122_vm0, %v121_v0 }
   0x2   :  { %v23_v2 = vld [vmem:[%s164_s0] sm:$0xff]  ;;  %113 = vmatpush3.bf16.msra.mxu0 %v120_v1 }
   0x3   :  { %v106_v3 = vld [vmem:[%s165_s1] ss:$0 sm:$0xff] }
   0x4   :  { %v107_v4 = vld [vmem:[%s166_s2] ss:$0 sm:$0xff]  ;;  %v31_v5 = vmul.f32 %v106_v3, %v23_v2 }
   0x6   :  { %v39_v6 = vadd.f32 %v107_v4, %v31_v5 }
   0x8   :  { %v40_v7 = vmax.f32 %v39_v6, 0.0 }
   0xa   :  { %v42_v8 = vpack.c.bf16 %v40_v7, %v40_v7 }
   0xc   :  { %115 = vmatmul.mubr.msk.bf16.vlgmr.msra.gmra.mrb[0].mxu0 %vm51_vm1, %v42_v8 }
  0xdf   :  { %v89_v9 = vpop.f32.mrb[0].mxu0 }
  0xe0   :  { %101 = vst [vmem:[%s167_s4] sm:$0xff] %v89_v9  ;;  %v116_v10 = vpop.f32.mrb[1].mxu0 }
  0xe1   :  { %v92_v11 = vpop.f32.mrb[2].mxu0 }
  0xe2   :  { %v117_v12 = vpop.f32.mrb[3].mxu0 }

// kernel: mixstyle_densenet_forward.93
= control target key start
LH: loop header
LB: loop body
LE: loop exit
PB: predicated region body
PF: predicated region fallthrough
CT: control target
= control target key end

     0   :  { %vm32_vm0 = vcmask 130048   ;;  %s72_s0 = inlined_call_operand.vmem [shape: f32[8,16], index: 0, kind: input, shape index: {}]   ;;  %s73_s1 = inlined_call_operand.vmem [shape: f32[1,16], index: 1, kind: input, shape index: {}]   ;;  %s74_s2 = inlined_call_operand.vmem [shape: f32[1,16], index: 2, kind: input, shape index: {}]   ;;  %s75_s3 = inlined_call_operand.vmem [shape: f32[8,16], index: 3, kind: output, shape index: {}]  }
   0x1   :  { %v14_v0 = vld [vmem:[%s72_s0] sm:$0xff] }
   0x2   :  { %v38_v1 = vld [vmem:[%s73_s1] ss:$0 sm:$0xff] }
   0x3   :  { %v39_v2 = vld [vmem:[%s74_s2] ss:$0 sm:$0xff]  ;;  %v22_v3 = vmul.f32 %v38_v1, %v14_v0 }
   0x5   :  { %v30_v4 = vadd.f32 %v39_v2, %v22_v3 }
   0x7   :  { %v31_v5 = vmax.f32 %v30_v4, 0.0 }
   0x9   :  { %33 = vst.msk [vmem:[%s75_s3] sm:$0xff] %vm32_vm0, %v31_v5 }

// kernel: mixstyle_densenet_forward.94
= control target key start
LH: loop header
LB: loop body
LE: loop exit
PB: predicated region body
PF: predicated region fallthrough
CT: control target
= control target key end

     0   :  { %v176_v0 = vmov 0   ;;  %vm97_vm0 = vcmask 130048   ;;  %s225_s1 = inlined_call_operand.vmem [shape: bf16[144,128], index: 1, kind: input, shape index: {}]   ;;  %s226_s0 = inlined_call_operand.vmem [shape: bf16[8,144], index: 0, kind: input, shape index: {}]   ;;  %s227_s2 = inlined_call_operand.vmem [shape: f32[8,128], index: 2, kind: output, shape index: {}]  }
   0x1   :  { %101 = vmatprep.subr.bf16.mxu0 %v176_v0  ;;  %v165_v1 = vld [vmem:[%s225_s1] sm:$0xff]   ;;  %v166_v2 = vld [vmem:[%s225_s1 + $0x8] sm:$0xff]   ;;  %v167_v3 = vld [vmem:[%s225_s1 + $0x10] sm:$0xff]  }
   0x2   :  { %102 = vmatpush1.bf16.msra.mxu0 %v165_v1  ;;  %v18_v4 = vld [vmem:[%s226_s0] sm:$0xff]  ;;  %v168_v5 = vld [vmem:[%s225_s1 + $0x18] sm:$0xff]   ;;  %v170_v8 = vld [vmem:[%s225_s1 + $0x28] sm:$0xff]  }
   0x3   :  { %103 = vmatprep.subr.bf16.mxu0 %v176_v0  ;;  %v153_v6 = vcombine.high %v18_v4, %v18_v4  ;;  %v169_v7 = vld [vmem:[%s225_s1 + $0x20] sm:$0xff]   ;;  %v171_v9 = vld [vmem:[%s225_s1 + $0x30] sm:$0xff]   ;;  %v172_v10 = vld [vmem:[%s225_s1 + $0x38] sm:$0xff]   ;;  %v152_v12 = vcombine.low %v18_v4, %v18_v4 }
   0x4   :  { %v173_v11 = vld [vmem:[%s225_s1 + $0x40] sm:$0xff]  }
   0x5   :  { %163 = vmatprep.mubr.msk.bf16.mxu0 %vm97_vm0, %v153_v6 }
   0x6   :  { %104 = vmatpush1.bf16.msra.mxu0 %v166_v2 }
   0x7   :  { %105 = vmatprep.subr.bf16.mxu0 %v176_v0 }
   0xa   :  { %106 = vmatpush1.bf16.msra.mxu0 %v167_v3 }
   0xb   :  { %107 = vmatprep.subr.bf16.mxu0 %v176_v0 }
   0xe   :  { %108 = vmatpush1.bf16.msra.mxu0 %v168_v5 }
   0xf   :  { %109 = vmatprep.subr.bf16.mxu0 %v176_v0 }
  0x12   :  { %110 = vmatpush1.bf16.msra.mxu0 %v169_v7 }
  0x13   :  { %111 = vmatprep.subr.bf16.mxu0 %v176_v0 }
  0x16   :  { %112 = vmatpush1.bf16.msra.mxu0 %v170_v8 }
  0x17   :  { %113 = vmatprep.subr.bf16.mxu0 %v176_v0 }
  0x1a   :  { %114 = vmatpush1.bf16.msra.mxu0 %v171_v9 }
  0x1b   :  { %115 = vmatprep.subr.bf16.mxu0 %v176_v0 }
  0x1e   :  { %116 = vmatpush1.bf16.msra.mxu0 %v172_v10 }
  0x1f   :  { %117 = vmatprep.subr.bf16.mxu0 %v176_v0 }
  0x22   :  { %118 = vmatpush1.bf16.msra.mxu0 %v173_v11 }
  0x25   :  { %134 = vmatmul.mubr.bf16.vlgmr.msra.gmra.mrb[0].mxu0 %v152_v12 }
  0xf8   :  { %v135_v13 = vpop.f32.mrb[0].mxu0 }
  0xf9   :  { %147 = vst [vmem:[%s227_s2] sm:$0xff] %v135_v13  ;;  %v137_v14 = vpop.f32.mrb[1].mxu0 }
  0xfa   :  { %v138_v15 = vpop.f32.mrb[2].mxu0 }
  0xfb   :  { %v139_v16 = vpop.f32.mrb[3].mxu0 }

// kernel: mixstyle_densenet_forward.95
= control target key start
LH: loop header
LB: loop body
LE: loop exit
PB: predicated region body
PF: predicated region fallthrough
CT: control target
= control target key end

     0   :  { %vm14_vm0 = vcmask 188416   ;;  %vm19_vm1 = vcmask 195584   ;;  %v68_v0 = vmov 0.0   ;;  %s99_s0 = inlined_call_operand.vmem [shape: f32[8,24], index: 0, kind: input, shape index: {}]   ;;  %s100_s1 = inlined_call_operand.vmem [shape: f32[1,24], index: 1, kind: output, shape index: {0}]   ;;  %s101_s2 = inlined_call_operand.vmem [shape: f32[1,24], index: 2, kind: output, shape index: {1}]  }
   0x1   :  { %15 = vst.msk [vmem:[#allocation2] sm:$0x1] %vm14_vm0, %v68_v0  ;;  %16 = vst.msk [vmem:[#allocation3] sm:$0x1] %vm14_vm0, %v68_v0  ;;  %v17_v1 = vld [vmem:[%s99_s0] sm:$0xff] }
   0x2   :  { %v20_v2 = vsel %vm19_vm1, %v17_v1, 0.0  ;;  %v31_v3 = vmul.f32 %v17_v1, %v17_v1 }
   0x3   :  { %v21_v4 = vrot.slane %v20_v2, 4 }
   0x4   :  { %v32_v5 = vsel %vm19_vm1, %v31_v3, 0.0 }
   0x5   :  { %v22_v6 = vadd.f32 %v21_v4, %v20_v2  ;;  %v33_v7 = vrot.slane %v32_v5, 4 }
   0x7   :  { %v23_v8 = vrot.slane %v22_v6, 2  ;;  %v34_v9 = vadd.f32 %v33_v7, %v32_v5 }
   0x8   :  { %v18_v14 = vld [vmem:[#allocation2] sm:$0x1]  ;;  %v30_v17 = vld [vmem:[#allocation3] sm:$0x1] }
   0x9   :  { %v24_v10 = vadd.f32 %v23_v8, %v22_v6  ;;  %v35_v11 = vrot.slane %v34_v9, 2 }
   0xb   :  { %v25_v12 = vrot.slane %v24_v10, 1  ;;  %v36_v13 = vadd.f32 %v35_v11, %v34_v9 }
   0xd   :  { %v26_v15 = vadd.f32 %v25_v12, %v24_v10  ;;  %v37_v16 = vrot.slane %v36_v13, 1 }
   0xf   :  { %v27_v18 = vadd.f32 %v26_v15, %v18_v14  ;;  %v38_v19 = vadd.f32 %v37_v16, %v36_v13 }
  0x11   :  { %29 = vst.msk [vmem:[#allocation2] sm:$0x1] %vm14_vm0, %v27_v18  ;;  %v39_v20 = vadd.f32 %v38_v19, %v30_v17 }
  0x13   :  { %40 = vst.msk [vmem:[#allocation3] sm:$0x1] %vm14_vm0, %v39_v20 }
  0x18   :  { %v44_v21 = vld [vmem:[#allocation2] sm:$0x1] }
  0x19   :  { %v45_v22 = vmul.f32 0.5, %v44_v21 }
  0x1a   :  { %v46_v23 = vld [vmem:[#allocation3] sm:$0x1] }
  0x1b   :  { %v47_v24 = vmul.f32 0.5, %v46_v23  ;;  %v48_v25 = vmul.f32 %v45_v22, %v45_v22  ;;  %v54_v29 = vsub.f32 0.0, %v45_v22 }
  0x1d   :  { %v49_v26 = vsub.f32 %v47_v24, %v48_v25 }
  0x1f   :  { %v50_v27 = vmax.f32 %v49_v26, 0.0 }
  0x21   :  { %v51_v28 = vadd.f32 1e-05, %v50_v27 }
  0x23   :  { %66 = vrsqrt.f32 %v51_v28 }
  0x2d   :  { %v67_v30 = vpop.eup %66 }
  0x2e   :  { %53 = vst.msk [vmem:[%s100_s1] sm:$0x1] %vm14_vm0, %v67_v30  ;;  %v55_v31 = vmul.f32 %v67_v30, %v54_v29 }
  0x30   :  { %56 = vst.msk [vmem:[%s101_s2] sm:$0x1] %vm14_vm0, %v55_v31 }

// kernel: mixstyle_densenet_forward.96
= control target key start
LH: loop header
LB: loop body
LE: loop exit
PB: predicated region body
PF: predicated region fallthrough
CT: control target
= control target key end

     0   :  { %v134_v0 = vmov 0.0   ;;  %vm59_vm0 = vcmask 1043456   ;;  %vm135_vm1 = vmmov 0   ;;  %vm55_vm2 = vcmask 195584   ;;  %s179_s3 = inlined_call_operand.vmem [shape: bf16[24,128], index: 3, kind: input, shape index: {}]   ;;  %s180_s0 = inlined_call_operand.vmem [shape: f32[8,24], index: 0, kind: input, shape index: {}]   ;;  %s181_s1 = inlined_call_operand.vmem [shape: f32[1,24], index: 1, kind: input, shape index: {}]   ;;  %s182_s2 = inlined_call_operand.vmem [shape: f32[1,24], index: 2, kind: input, shape index: {}]   ;;  %s183_s4 = inlined_call_operand.vmem [shape: f32[8,128], index: 4, kind: output, shape index: {}]  }
   0x1   :  { %122 = vmatprep.subr.bf16.mxu0 %v134_v0  ;;  %v132_v1 = vld [vmem:[%s179_s3] sm:$0xff]   ;;  %126 = vmatprep.mubr.msk.bf16.mxu0 %vm135_vm1, %v134_v0  ;;  %v133_v2 = vld [vmem:[%s179_s3 + $0x8] ss:$0 sps:$4 sm:$0xff]  }
   0x2   :  { %v23_v3 = vld [vmem:[%s180_s0] sm:$0xff]  ;;  %123 = vmatpush3.bf16.msra.mxu0 %v132_v1  ;;  %v61_v6 = vsel %vm59_vm0, %v133_v2, 0 }
   0x3   :  { %v114_v4 = vld [vmem:[%s181_s1] ss:$0 sm:$0xff]  ;;  %124 = vmatprep.subr.bf16.mxu0 %v134_v0 }
   0x4   :  { %v115_v5 = vld [vmem:[%s182_s2] ss:$0 sm:$0xff]  ;;  %v31_v7 = vmul.f32 %v114_v4, %v23_v3 }
   0x6   :  { %v39_v8 = vadd.f32 %v115_v5, %v31_v7  ;;  %125 = vmatpush3.bf16.msra.mxu0 %v61_v6 }
   0x8   :  { %v40_v9 = vmax.f32 %v39_v8, 0.0 }
   0xa   :  { %v42_v10 = vpack.c.bf16 %v40_v9, %v40_v9 }
   0xc   :  { %127 = vmatmul.mubr.msk.bf16.vlgmr.msra.gmra.mrb[0].mxu0 %vm55_vm2, %v42_v10 }
  0xdf   :  { %v97_v11 = vpop.f32.mrb[0].mxu0 }
  0xe0   :  { %109 = vst [vmem:[%s183_s4] sm:$0xff] %v97_v11  ;;  %v128_v12 = vpop.f32.mrb[1].mxu0 }
  0xe1   :  { %v100_v13 = vpop.f32.mrb[2].mxu0 }
  0xe2   :  { %v129_v14 = vpop.f32.mrb[3].mxu0 }

// kernel: mixstyle_densenet_forward.100
= control target key start
LH: loop header
LB: loop body
LE: loop exit
PB: predicated region body
PF: predicated region fallthrough
CT: control target
= control target key end

     0   :  { %vm14_vm0 = vcmask 253952   ;;  %vm19_vm1 = vcmask 261120   ;;  %v68_v0 = vmov 0.0   ;;  %s99_s0 = inlined_call_operand.vmem [shape: f32[8,32], index: 0, kind: input, shape index: {}]   ;;  %s100_s1 = inlined_call_operand.vmem [shape: f32[1,32], index: 1, kind: output, shape index: {0}]   ;;  %s101_s2 = inlined_call_operand.vmem [shape: f32[1,32], index: 2, kind: output, shape index: {1}]  }
   0x1   :  { %15 = vst.msk [vmem:[#allocation2] sm:$0x1] %vm14_vm0, %v68_v0  ;;  %16 = vst.msk [vmem:[#allocation3] sm:$0x1] %vm14_vm0, %v68_v0  ;;  %v17_v1 = vld [vmem:[%s99_s0] sm:$0xff] }
   0x2   :  { %v20_v2 = vsel %vm19_vm1, %v17_v1, 0.0  ;;  %v31_v3 = vmul.f32 %v17_v1, %v17_v1 }
   0x3   :  { %v21_v4 = vrot.slane %v20_v2, 4 }
   0x4   :  { %v32_v5 = vsel %vm19_vm1, %v31_v3, 0.0 }
   0x5   :  { %v22_v6 = vadd.f32 %v21_v4, %v20_v2  ;;  %v33_v7 = vrot.slane %v32_v5, 4 }
   0x7   :  { %v23_v8 = vrot.slane %v22_v6, 2  ;;  %v34_v9 = vadd.f32 %v33_v7, %v32_v5 }
   0x8   :  { %v18_v14 = vld [vmem:[#allocation2] sm:$0x1]  ;;  %v30_v17 = vld [vmem:[#allocation3] sm:$0x1] }
   0x9   :  { %v24_v10 = vadd.f32 %v23_v8, %v22_v6  ;;  %v35_v11 = vrot.slane %v34_v9, 2 }
   0xb   :  { %v25_v12 = vrot.slane %v24_v10, 1  ;;  %v36_v13 = vadd.f32 %v35_v11, %v34_v9 }
   0xd   :  { %v26_v15 = vadd.f32 %v25_v12, %v24_v10  ;;  %v37_v16 = vrot.slane %v36_v13, 1 }
   0xf   :  { %v27_v18 = vadd.f32 %v26_v15, %v18_v14  ;;  %v38_v19 = vadd.f32 %v37_v16, %v36_v13 }
  0x11   :  { %29 = vst.msk [vmem:[#allocation2] sm:$0x1] %vm14_vm0, %v27_v18  ;;  %v39_v20 = vadd.f32 %v38_v19, %v30_v17 }
  0x13   :  { %40 = vst.msk [vmem:[#allocation3] sm:$0x1] %vm14_vm0, %v39_v20 }
  0x18   :  { %v44_v21 = vld [vmem:[#allocation2] sm:$0x1] }
  0x19   :  { %v45_v22 = vmul.f32 0.5, %v44_v21 }
  0x1a   :  { %v46_v23 = vld [vmem:[#allocation3] sm:$0x1] }
  0x1b   :  { %v47_v24 = vmul.f32 0.5, %v46_v23  ;;  %v48_v25 = vmul.f32 %v45_v22, %v45_v22  ;;  %v54_v29 = vsub.f32 0.0, %v45_v22 }
  0x1d   :  { %v49_v26 = vsub.f32 %v47_v24, %v48_v25 }
  0x1f   :  { %v50_v27 = vmax.f32 %v49_v26, 0.0 }
  0x21   :  { %v51_v28 = vadd.f32 1e-05, %v50_v27 }
  0x23   :  { %66 = vrsqrt.f32 %v51_v28 }
  0x2d   :  { %v67_v30 = vpop.eup %66 }
  0x2e   :  { %53 = vst.msk [vmem:[%s100_s1] sm:$0x1] %vm14_vm0, %v67_v30  ;;  %v55_v31 = vmul.f32 %v67_v30, %v54_v29 }
  0x30   :  { %56 = vst.msk [vmem:[%s101_s2] sm:$0x1] %vm14_vm0, %v55_v31 }

// kernel: mixstyle_densenet_forward.101
= control target key start
LH: loop header
LB: loop body
LE: loop exit
PB: predicated region body
PF: predicated region fallthrough
CT: control target
= control target key end

     0   :  { %vm25_vm0 = vcmask 254976   ;;  %v46_v3 = vlaneseq  ;;  %v218_v4 = vmov 0.0|0.0   ;;  %v219_v7 = vmov 0.0   ;;  %s294_s0 = inlined_call_operand.vmem [shape: f32[2,1,32], index: 0, kind: input, shape index: {}]   ;;  %s295_s1 = inlined_call_operand.vmem [shape: f32[1,1,32], index: 1, kind: input, shape index: {}]   ;;  %s296_s2 = inlined_call_operand.vmem [shape: f32[1,1,32], index: 2, kind: input, shape index: {}]   ;;  %s297_s3 = inlined_call_operand.vmem [shape: f32[32,128], index: 3, kind: input, shape index: {}]   ;;  %s298_s4 = inlined_call_operand.vmem [shape: f32[1,128], index: 4, kind: input, shape index: {}]   ;;  %s299_s5 = inlined_call_operand.hbm [shape: f32[2,128], index: 5, kind: output, shape index: {}]  }
   0x1   :  { %v65_v0 = vld [vmem:[%s297_s3] sm:$0xff]  ;;  %v66_v1 = vld [vmem:[%s297_s3 + $0x8] sm:$0xff]  ;;  %v67_v2 = vld [vmem:[%s297_s3 + $0x10] sm:$0xff]  ;;  %183 = vmatprep.subr.bf16.mxu0 %v218_v4  ;;  %26 = vst.msk [vmem:[#allocation2] sm:$0x3] %vm25_vm0, %v219_v7  ;;  %vm220_vm1 = vmmov 0  }
   0x2   :  { %v184_v5 = vpack.c.bf16 %v66_v1, %v65_v0  ;;  %v68_v6 = vld [vmem:[%s297_s3 + $0x18] sm:$0xff]  ;;  %v27_v8 = vld [vmem:[%s294_s0] sm:$0x1]  ;;  %v28_v9 = vld [vmem:[%s294_s0 + $0x1] sm:$0x1]  ;;  %180 = vmatprep.mubr.msk.f32.mxu0 %vm220_vm1, %v219_v7  ;;  %v47_v17 = vshrl.u32 %v46_v3, 7 }
   0x3   :  { %v187_v10 = vpack.c.bf16 %v68_v6, %v67_v2  ;;  %v29_v11 = vld [vmem:[%s295_s1] sm:$0x1]  ;;  %v221_v15 = vmov 1966171168  }
   0x4   :  { %v32_v12 = vld [vmem:[%s296_s2] sm:$0x1]  ;;  %185 = vmatpush3.bf16.msra.mxu0 %v184_v5  ;;  %v30_v13 = vmul.f32 %v29_v11, %v27_v8  ;;  %v31_v14 = vmul.f32 %v29_v11, %v28_v9  ;;  %v44_v16 = vunpack.c.l.s4 %v221_v15 }
   0x5   :  { %10 = vsyncpa [#allocation4], 0  ;;  %186 = vmatprep.subr.bf16.mxu0 %v218_v4  ;;  %vm76_vm2 = vcmask 261120   ;;  %v165_v30 = vld [vmem:[%s298_s4] ss:$0 sm:$0xff]  ;;  %s222_s2 = smov [#allocation3]  }
   0x6   :  { %v33_v18 = vadd.f32 %v32_v12, %v30_v13  ;;  %v34_v19 = vadd.f32 %v32_v12, %v31_v14  ;;  %v45_v20 = vunpack.c.0.s8 %v44_v16  ;;  %s157_s3 = sshll.u32 %s222_s2, 4  ;;  %s158_s3 = int_to_ptr.vmem [resolvable:$true] %s157_s3 }
   0x7   :  { %s194_s9 = scalar_lea.vmem %s158_s3, 32  ;;  %p199_p1 = scmp.lt.s32.totalorder %s158_s3, %s158_s3 }
   0x8   :  { %188 = vmatpush3.bf16.msra.mxu0 %v187_v10  ;;  %v35_v21 = vmax.f32 %v33_v18, 0.0  ;;  %v36_v22 = vmax.f32 %v34_v19, 0.0  ;;  %v48_v23 = vsub.s32 %v45_v20, %v47_v17  ;;  %v37_v26 = vld [vmem:[#allocation2] sm:$0x3]  ;;  %p195_p0 = scmp.ne.s32.totalorder %s158_s3, %s194_s9  ;;  %p200_p2 = scmp.lt.s32.totalorder %s194_s9, %s194_s9 }
   0xa   :  { %v42_v24 = vcombine.low %v35_v21, %v36_v22  ;;  %p201_p3 = por %p200_p2, %p199_p1 }
   0xc   :  { %v49_v25 = vrot.slane %v42_v24, %v48_v23  ;;  %p202_p4 = pnand %p201_p3, %p195_p0 }
   0xe   :  { %v56_v27 = vrot.slane %v49_v25, %v48_v23 }
  0x10   :  { %v58_v28 = vadd.f32 %v56_v27, %v37_v26 }
  0x12   :  { %60 = vst.msk [vmem:[#allocation2] sm:$0x3] %vm25_vm0, %v58_v28 }
  0x19   :  { %v64_v29 = vld [vmem:[#allocation2] sm:$0x3] }
  0x1a   :  { %181 = vmatmul.mubr.msk.f32.vlgmr.msra.gmra.mrb[0].mxu0 %vm76_vm2, %v64_v29 }
  0xed   :  { %v146_v31 = vpop.f32.mrb[0].mxu0 }
  0xee   :  { %v147_v32 = vadd.f32 %v165_v30, %v146_v31  ;;  %v182_v33 = vpop.f32.mrb[1].mxu0 }
  0xf0   :  { %150 = vst [vmem:[#allocation3] sm:$0x3] %v147_v32 }
  0xf1   :  { %205 = shalt.err (!%p202_p4)
}
  0xf2   :  { %s206_s12 = scalar_lea.hbm %s299_s5, 32 }
  0xf3   :  { %p207_p5 = scmp.ne.s32.totalorder %s299_s5, %s206_s12  ;;  %p210_p6 = scmp.lt.u32.totalorder %s206_s12, %s299_s5 }
  0xf5   :  { %p212_p7 = pnand %p210_p6, %p207_p5 }
  0xf7   :  { %215 = shalt.err (!%p212_p7)
}
  0xf8   :  { %160 = dma.vmem_to_hbm [thread:$0]  %s158_s3, 32, %s299_s5, [#allocation4]  }
  0xf9   :  { %216 = dma.done.wait [#allocation4], 32  }
  0xfa   :  { %217 = vsyncadd [#allocation4], 4294967264 }
  0xfb   :  { %164 = vsyncpa [#allocation4], 1 }

</bundles_post_ra>
